<compile_context>
chip_gen: v5e
topology: v5e:2x2
jax: 0.10.0
libtpu: 0.0.40
codegen_flags: <defaults>
</compile_context>

<pallas_src>
import jax
import jax.numpy as jnp
from jax.experimental import pallas as pl
from jax.experimental.pallas import tpu as pltpu


# Logical (scaled-down) channel widths; CP is the lane-padded compute width.
C_STEM, C_MID, C_FEAT = 32, 16, 64      # stand-ins for 64 / 512 / 2048
CP = 128                                # all channel dims zero-padded to 128 lanes
ENCODED_IMAGE_SIZE = 4                  # stand-in for 14
K_STEM = 7 * 7 * 3                      # stem im2col contraction size (147)
K_PAD = 256                             # stem K zero-padded to a lane multiple

_TAPS = tuple((dr, dc) for dr in (-1, 0, 1) for dc in (-1, 0, 1))


# -----------------------------------------------------------------------------
# The fused Pallas kernel: stem conv -> bottleneck residual block -> avg pool.
# Per batch element: HW = H1*W1 spatial positions after the stride-2 stem.
# -----------------------------------------------------------------------------
def _make_encoder_kernel(H1, W1):
    HW = H1 * W1
    f32, bf16 = jnp.float32, jnp.bfloat16

    def kernel(x_ref, ws_ref, w1sc_ref, w2_ref, w3_ref, b_ref, m_ref, p_ref, o_ref):
        # Stem: 7x7/s2 conv as one lane-dense (HW, K_PAD) @ (K_PAD, CP) matmul.
        x0 = jnp.dot(x_ref[0], ws_ref[...], preferred_element_type=f32)
        x0 = jnp.maximum(x0 + b_ref[0:1, :], 0.0).astype(bf16)          # (HW, CP)

        # c1 (1x1 conv) + projected shortcut fused into a single N=2*CP matmul.
        h = jnp.dot(x0, w1sc_ref[...], preferred_element_type=f32)      # (HW, 2CP)
        h1 = jnp.maximum(h[:, :CP] + b_ref[1:2, :], 0.0)                # (HW, CP) f32
        sc = h[:, CP:].astype(bf16)      # shortcut; bf16 halves its live bytes

        # c2: 3x3/s1/p1 conv.  Spatial taps = static sublane rolls of the
        # flattened (HW, CP) activation (XLU) + 0/1 boundary masks (VPU);
        # all 9 taps contract in ONE (HW, 9*CP) @ (9*CP, CP) MXU matmul
        # (no per-tap f32 accumulator, no (HW,HW) shift operands).
        chunks = []
        for k, (dr, dc) in enumerate(_TAPS):
            if dr == 0 and dc == 0:
                t = h1                                  # centre tap: no shift/mask
            else:
                off = dr * W1 + dc                      # flattened source offset
                t = pltpu.roll(h1, (-off) % HW, 0) * m_ref[k]
            chunks.append(t.astype(bf16))
        x2 = jnp.concatenate(chunks, axis=-1)                           # (HW, 9CP)
        h2 = jnp.dot(x2, w2_ref[...], preferred_element_type=f32)
        h2 = jnp.maximum(h2 + b_ref[2:3, :], 0.0).astype(bf16)          # (HW, CP)

        # c3 (1x1 conv) with residual add + ReLU fused into its epilogue
        # (the shortcut bias was pre-folded into bias row 3).
        h3 = jnp.dot(h2, w3_ref[...], preferred_element_type=f32) + b_ref[3:4, :]
        y = jnp.maximum(h3 + sc.astype(f32), 0.0).astype(bf16)          # (HW, CP)

        # AdaptiveAvgPool2d((E,E)) as one bf16 averaging-matrix matmul
        # (exact PyTorch bins), f32 accumulation, lane-dense store.
        o_ref[0] = jnp.dot(p_ref[...], y, preferred_element_type=f32).astype(o_ref.dtype)

    return kernel


# -----------------------------------------------------------------------------
# Plain-JAX glue: im2col for the stem, tap boundary masks, pooling matrix.
# -----------------------------------------------------------------------------
def _im2col(x, kh, kw, stride, pad):
    """x: (B, H, W, C) NHWC -> patches (B, Ho, Wo, kh*kw*C), Ho, Wo."""
    B, H, W, C = x.shape
    xp = jnp.pad(x, ((0, 0), (pad, pad), (pad, pad), (0, 0)))
    Ho = (H + 2 * pad - kh) // stride + 1
    Wo = (W + 2 * pad - kw) // stride + 1
    # NOTE: patch channel order is (di, dj, C_in); the synthetic weights below
    # are generated in the same order (real PyTorch Conv2d weights are
    # (C_out, C_in, kh, kw) per output channel and would need a transpose).
    cols = [xp[:, di:di + stride * Ho:stride, dj:dj + stride * Wo:stride, :]
            for di in range(kh) for dj in range(kw)]
    return jnp.concatenate(cols, axis=-1), Ho, Wo


def _tap_masks(h, w):
    """(9, h*w, 1) 0/1 masks zeroing out-of-image taps of the 3x3/s1/p1 conv."""
    hw = h * w
    rows = jnp.arange(hw) // w
    cols = jnp.arange(hw) % w
    ms = []
    for dr, dc in _TAPS:
        r2, c2 = rows + dr, cols + dc
        ms.append(((r2 >= 0) & (r2 < h) & (c2 >= 0) & (c2 < w)).astype(jnp.float32))
    return jnp.stack(ms)[:, :, None]


def _pool_matrix(h, w, e):
    """(e*e, h*w) averaging matrix reproducing AdaptiveAvgPool2d((e, e)) bins."""
    rows = []
    for i in range(e):
        h0, h1 = (i * h) // e, -((-(i + 1) * h) // e)
        for j in range(e):
            w0, w1 = (j * w) // e, -((-(j + 1) * w) // e)
            m = jnp.zeros((h, w), jnp.float32).at[h0:h1, w0:w1].set(
                1.0 / float((h1 - h0) * (w1 - w0)))
            rows.append(m.reshape(-1))
    return jnp.stack(rows)


# -----------------------------------------------------------------------------
# Parameters (deterministic, synthetic) and their packed kernel operands.
# -----------------------------------------------------------------------------
def init_params(key):
    ks = jax.random.split(key, 10)
    w = lambda k, s: 0.05 * jax.random.normal(k, s, jnp.float32)
    b = lambda k, n: 0.01 * jax.random.normal(k, (n,), jnp.float32)
    return {
        "stem_w": w(ks[0], (K_STEM, C_STEM)),   "stem_b": b(ks[5], C_STEM),
        "c1_w":   w(ks[1], (C_STEM, C_MID)),    "c1_b":   b(ks[6], C_MID),
        "c2_w":   w(ks[2], (9, C_MID, C_MID)),  "c2_b":   b(ks[7], C_MID),
        "c3_w":   w(ks[3], (C_MID, C_FEAT)),    "c3_b":   b(ks[8], C_FEAT),
        "ds_w":   w(ks[4], (C_STEM, C_FEAT)),   "ds_b":   b(ks[9], C_FEAT),
    }


def _pack_params(p):
    """Zero-pad to CP lanes, fuse c1+shortcut weights, fold biases, cast bf16."""
    bf16 = jnp.bfloat16
    ws = jnp.zeros((K_PAD, CP), jnp.float32).at[:K_STEM, :C_STEM].set(p["stem_w"])
    w1sc = (jnp.zeros((CP, 2 * CP), jnp.float32)
            .at[:C_STEM, :C_MID].set(p["c1_w"])
            .at[:C_STEM, CP:CP + C_FEAT].set(p["ds_w"]))
    w2 = (jnp.zeros((9, CP, CP), jnp.float32)
          .at[:, :C_MID, :C_MID].set(p["c2_w"])).reshape(9 * CP, CP)
    w3 = jnp.zeros((CP, CP), jnp.float32).at[:C_MID, :C_FEAT].set(p["c3_w"])
    biases = (jnp.zeros((8, CP), jnp.float32)
              .at[0, :C_STEM].set(p["stem_b"])
              .at[1, :C_MID].set(p["c1_b"])
              .at[2, :C_MID].set(p["c2_b"])
              .at[3, :C_FEAT].set(p["c3_b"] + p["ds_b"]))   # shortcut bias folded
    return ws.astype(bf16), w1sc.astype(bf16), w2.astype(bf16), w3.astype(bf16), biases


# -----------------------------------------------------------------------------
# Forward pass (matches EncoderCNN.forward: backbone -> adaptive pool -> NHWC).
# -----------------------------------------------------------------------------
def encoder_cnn_forward(images, params, encoded_image_size=ENCODED_IMAGE_SIZE):
    # images: (B, 3, H, W) NCHW, like the PyTorch module input.
    B = images.shape[0]
    E = encoded_image_size

    x = jnp.transpose(images, (0, 2, 3, 1)).astype(jnp.bfloat16)       # NHWC bf16
    patches, H1, W1 = _im2col(x, kh=7, kw=7, stride=2, pad=3)
    HW = H1 * W1
    patches = patches.reshape(B, HW, K_STEM)
    patches = jnp.pad(patches, ((0, 0), (0, 0), (0, K_PAD - K_STEM)))  # lane-dense K

    ws, w1sc, w2, w3, biases = _pack_params(params)
    masks = _tap_masks(H1, W1)                            # (9, HW, 1)  f32
    pmat = _pool_matrix(H1, W1, E).astype(jnp.bfloat16)   # (E*E, HW)   bf16

    const2 = lambda b: (0, 0)                             # grid-invariant operands
    const3 = lambda b: (0, 0, 0)

    out = pl.pallas_call(
        _make_encoder_kernel(H1, W1),
        out_shape=jax.ShapeDtypeStruct((B, E * E, CP), jnp.float32),
        grid=(B,),
        in_specs=[
            pl.BlockSpec((1, HW, K_PAD), lambda b: (b, 0, 0)),   # stem patches
            pl.BlockSpec((K_PAD, CP), const2),                   # stem weight
            pl.BlockSpec((CP, 2 * CP), const2),                  # c1 + shortcut weight
            pl.BlockSpec((9 * CP, CP), const2),                  # c2 taps (K-fused)
            pl.BlockSpec((CP, CP), const2),                      # c3 weight
            pl.BlockSpec((8, CP), const2),                       # packed biases
            pl.BlockSpec((9, HW, 1), const3),                    # 3x3 boundary masks
            pl.BlockSpec((E * E, HW), const2),                   # pooling matrix
        ],
        out_specs=pl.BlockSpec((1, E * E, CP), lambda b: (b, 0, 0)),
        compiler_params=pltpu.CompilerParams(dimension_semantics=("parallel",)),
    )(patches, ws, w1sc, w2, w3, biases, masks, pmat)

    # Slice the zero-padded lanes exactly once at the end; the result is already
    # NHWC, i.e. the layout PyTorch produces after out.permute(0, 2, 3, 1).
    return out[:, :, :C_FEAT].reshape(B, E, E, C_FEAT)


if __name__ == "__main__":
    key = jax.random.PRNGKey(0)
    k_img, k_par = jax.random.split(key)
    images = jax.random.normal(k_img, (2, 3, 32, 32), jnp.float32)   # NCHW input
    params = init_params(k_par)

    out = jax.jit(encoder_cnn_forward)(images, params)
    out = jax.block_until_ready(out)

    assert out.shape == (2, ENCODED_IMAGE_SIZE, ENCODED_IMAGE_SIZE, C_FEAT), out.shape
    assert out.dtype == jnp.float32
    assert bool(jnp.all(jnp.isfinite(out)))
    print("KERNEL_OK")
</pallas_src>

<mosaic_0001>
module attributes {stable_mosaic.version = 11 : i64} {
  func.func @kernel(%arg0: i32, %arg1: memref<1x256x256xbf16, #tpu.memory_space<vmem>>, %arg2: memref<256x128xbf16, #tpu.memory_space<vmem>>, %arg3: memref<128x256xbf16, #tpu.memory_space<vmem>>, %arg4: memref<1152x128xbf16, #tpu.memory_space<vmem>>, %arg5: memref<128x128xbf16, #tpu.memory_space<vmem>>, %arg6: memref<8x128xf32, #tpu.memory_space<vmem>>, %arg7: memref<9x256x1xf32, #tpu.memory_space<vmem>>, %arg8: memref<16x256xbf16, #tpu.memory_space<vmem>>, %arg9: memref<1x16x128xf32, #tpu.memory_space<vmem>>) attributes {dimension_semantics = [#tpu.dimension_semantics<parallel>], iteration_bounds = array<i64: 2>, scalar_prefetch = 0 : i64, scratch_operands = 0 : i64, tpu.core_type = #tpu.core_type<tc>, window_params = [{transform_indices = @transform_0, window_bounds = array<i64: 1, 256, 256>}, {pipeline_mode = #tpu.pipeline_mode<synchronous>, transform_indices = @transform_1, window_bounds = array<i64: 256, 128>}, {pipeline_mode = #tpu.pipeline_mode<synchronous>, transform_indices = @transform_2, window_bounds = array<i64: 128, 256>}, {pipeline_mode = #tpu.pipeline_mode<synchronous>, transform_indices = @transform_3, window_bounds = array<i64: 1152, 128>}, {pipeline_mode = #tpu.pipeline_mode<synchronous>, transform_indices = @transform_4, window_bounds = array<i64: 128, 128>}, {pipeline_mode = #tpu.pipeline_mode<synchronous>, transform_indices = @transform_5, window_bounds = array<i64: 8, 128>}, {pipeline_mode = #tpu.pipeline_mode<synchronous>, transform_indices = @transform_6, window_bounds = array<i64: 9, 256, 1>}, {pipeline_mode = #tpu.pipeline_mode<synchronous>, transform_indices = @transform_7, window_bounds = array<i64: 16, 256>}, {transform_indices = @transform_8, window_bounds = array<i64: 1, 16, 128>}]} {
    %c0 = arith.constant 0 : index
    %c0_0 = arith.constant 0 : index
    %c0_1 = arith.constant 0 : index
    %0 = vector.load %arg1[%c0, %c0_0, %c0_1] : memref<1x256x256xbf16, #tpu.memory_space<vmem>>, vector<1x256x256xbf16>
    %1 = vector.shape_cast %0 : vector<1x256x256xbf16> to vector<256x256xbf16>
    %c0_2 = arith.constant 0 : index
    %c0_3 = arith.constant 0 : index
    %2 = vector.load %arg2[%c0_2, %c0_3] : memref<256x128xbf16, #tpu.memory_space<vmem>>, vector<256x128xbf16>
    %cst = arith.constant dense<0.000000e+00> : vector<256x128xf32>
    %3 = tpu.matmul %1, %2, %cst {dimension_numbers = #tpu.dot_dimension_numbers<[1], [0], [0], [1], [0, 0, 1, 1], [], []>} : vector<256x256xbf16>, vector<256x128xbf16>, vector<256x128xf32> -> vector<256x128xf32>
    %c0_4 = arith.constant 0 : index
    %c0_5 = arith.constant 0 : index
    %4 = vector.load %arg6[%c0_4, %c0_5] : memref<8x128xf32, #tpu.memory_space<vmem>>, vector<1x128xf32>
    %5 = vector.broadcast %4 : vector<1x128xf32> to vector<256x128xf32>
    %6 = arith.addf %3, %5 : vector<256x128xf32>
    %cst_6 = arith.constant 0.000000e+00 : f32
    %7 = vector.broadcast %cst_6 : f32 to vector<256x128xf32>
    %8 = arith.maximumf %6, %7 : vector<256x128xf32>
    %9 = arith.truncf %8 : vector<256x128xf32> to vector<256x128xbf16>
    %c0_7 = arith.constant 0 : index
    %c0_8 = arith.constant 0 : index
    %10 = vector.load %arg3[%c0_7, %c0_8] : memref<128x256xbf16, #tpu.memory_space<vmem>>, vector<128x256xbf16>
    %cst_9 = arith.constant dense<0.000000e+00> : vector<256x256xf32>
    %11 = tpu.matmul %9, %10, %cst_9 {dimension_numbers = #tpu.dot_dimension_numbers<[1], [0], [0], [1], [0, 0, 1, 1], [], []>} : vector<256x128xbf16>, vector<128x256xbf16>, vector<256x256xf32> -> vector<256x256xf32>
    %12 = vector.extract_strided_slice %11 {offsets = [0, 0], sizes = [256, 128], strides = [1, 1]} : vector<256x256xf32> to vector<256x128xf32>
    %c1 = arith.constant 1 : index
    %c0_10 = arith.constant 0 : index
    %13 = vector.load %arg6[%c1, %c0_10] : memref<8x128xf32, #tpu.memory_space<vmem>>, vector<1x128xf32>
    %14 = vector.broadcast %13 : vector<1x128xf32> to vector<256x128xf32>
    %15 = arith.addf %12, %14 : vector<256x128xf32>
    %cst_11 = arith.constant 0.000000e+00 : f32
    %16 = vector.broadcast %cst_11 : f32 to vector<256x128xf32>
    %17 = arith.maximumf %15, %16 : vector<256x128xf32>
    %18 = vector.extract_strided_slice %11 {offsets = [0, 128], sizes = [256, 128], strides = [1, 1]} : vector<256x256xf32> to vector<256x128xf32>
    %19 = arith.truncf %18 : vector<256x128xf32> to vector<256x128xbf16>
    %c17_i32 = arith.constant 17 : i32
    %20 = tpu.dynamic_rotate %17 by %c17_i32 dim 0 : vector<256x128xf32>, i32 -> vector<256x128xf32>
    %c0_12 = arith.constant 0 : index
    %c0_13 = arith.constant 0 : index
    %c0_14 = arith.constant 0 : index
    %21 = vector.load %arg7[%c0_12, %c0_13, %c0_14] : memref<9x256x1xf32, #tpu.memory_space<vmem>>, vector<1x256x1xf32>
    %22 = vector.shape_cast %21 : vector<1x256x1xf32> to vector<256x1xf32>
    %23 = vector.broadcast %22 : vector<256x1xf32> to vector<256x128xf32>
    %24 = arith.mulf %20, %23 : vector<256x128xf32>
    %25 = arith.truncf %24 : vector<256x128xf32> to vector<256x128xbf16>
    %c16_i32 = arith.constant 16 : i32
    %26 = tpu.dynamic_rotate %17 by %c16_i32 dim 0 : vector<256x128xf32>, i32 -> vector<256x128xf32>
    %c1_15 = arith.constant 1 : index
    %c0_16 = arith.constant 0 : index
    %c0_17 = arith.constant 0 : index
    %27 = vector.load %arg7[%c1_15, %c0_16, %c0_17] : memref<9x256x1xf32, #tpu.memory_space<vmem>>, vector<1x256x1xf32>
    %28 = vector.shape_cast %27 : vector<1x256x1xf32> to vector<256x1xf32>
    %29 = vector.broadcast %28 : vector<256x1xf32> to vector<256x128xf32>
    %30 = arith.mulf %26, %29 : vector<256x128xf32>
    %31 = arith.truncf %30 : vector<256x128xf32> to vector<256x128xbf16>
    %c15_i32 = arith.constant 15 : i32
    %32 = tpu.dynamic_rotate %17 by %c15_i32 dim 0 : vector<256x128xf32>, i32 -> vector<256x128xf32>
    %c2 = arith.constant 2 : index
    %c0_18 = arith.constant 0 : index
    %c0_19 = arith.constant 0 : index
    %33 = vector.load %arg7[%c2, %c0_18, %c0_19] : memref<9x256x1xf32, #tpu.memory_space<vmem>>, vector<1x256x1xf32>
    %34 = vector.shape_cast %33 : vector<1x256x1xf32> to vector<256x1xf32>
    %35 = vector.broadcast %34 : vector<256x1xf32> to vector<256x128xf32>
    %36 = arith.mulf %32, %35 : vector<256x128xf32>
    %37 = arith.truncf %36 : vector<256x128xf32> to vector<256x128xbf16>
    %c1_i32 = arith.constant 1 : i32
    %38 = tpu.dynamic_rotate %17 by %c1_i32 dim 0 : vector<256x128xf32>, i32 -> vector<256x128xf32>
    %c3 = arith.constant 3 : index
    %c0_20 = arith.constant 0 : index
    %c0_21 = arith.constant 0 : index
    %39 = vector.load %arg7[%c3, %c0_20, %c0_21] : memref<9x256x1xf32, #tpu.memory_space<vmem>>, vector<1x256x1xf32>
    %40 = vector.shape_cast %39 : vector<1x256x1xf32> to vector<256x1xf32>
    %41 = vector.broadcast %40 : vector<256x1xf32> to vector<256x128xf32>
    %42 = arith.mulf %38, %41 : vector<256x128xf32>
    %43 = arith.truncf %42 : vector<256x128xf32> to vector<256x128xbf16>
    %44 = arith.truncf %17 : vector<256x128xf32> to vector<256x128xbf16>
    %c255_i32 = arith.constant 255 : i32
    %45 = tpu.dynamic_rotate %17 by %c255_i32 dim 0 : vector<256x128xf32>, i32 -> vector<256x128xf32>
    %c5 = arith.constant 5 : index
    %c0_22 = arith.constant 0 : index
    %c0_23 = arith.constant 0 : index
    %46 = vector.load %arg7[%c5, %c0_22, %c0_23] : memref<9x256x1xf32, #tpu.memory_space<vmem>>, vector<1x256x1xf32>
    %47 = vector.shape_cast %46 : vector<1x256x1xf32> to vector<256x1xf32>
    %48 = vector.broadcast %47 : vector<256x1xf32> to vector<256x128xf32>
    %49 = arith.mulf %45, %48 : vector<256x128xf32>
    %50 = arith.truncf %49 : vector<256x128xf32> to vector<256x128xbf16>
    %c241_i32 = arith.constant 241 : i32
    %51 = tpu.dynamic_rotate %17 by %c241_i32 dim 0 : vector<256x128xf32>, i32 -> vector<256x128xf32>
    %c6 = arith.constant 6 : index
    %c0_24 = arith.constant 0 : index
    %c0_25 = arith.constant 0 : index
    %52 = vector.load %arg7[%c6, %c0_24, %c0_25] : memref<9x256x1xf32, #tpu.memory_space<vmem>>, vector<1x256x1xf32>
    %53 = vector.shape_cast %52 : vector<1x256x1xf32> to vector<256x1xf32>
    %54 = vector.broadcast %53 : vector<256x1xf32> to vector<256x128xf32>
    %55 = arith.mulf %51, %54 : vector<256x128xf32>
    %56 = arith.truncf %55 : vector<256x128xf32> to vector<256x128xbf16>
    %c240_i32 = arith.constant 240 : i32
    %57 = tpu.dynamic_rotate %17 by %c240_i32 dim 0 : vector<256x128xf32>, i32 -> vector<256x128xf32>
    %c7 = arith.constant 7 : index
    %c0_26 = arith.constant 0 : index
    %c0_27 = arith.constant 0 : index
    %58 = vector.load %arg7[%c7, %c0_26, %c0_27] : memref<9x256x1xf32, #tpu.memory_space<vmem>>, vector<1x256x1xf32>
    %59 = vector.shape_cast %58 : vector<1x256x1xf32> to vector<256x1xf32>
    %60 = vector.broadcast %59 : vector<256x1xf32> to vector<256x128xf32>
    %61 = arith.mulf %57, %60 : vector<256x128xf32>
    %62 = arith.truncf %61 : vector<256x128xf32> to vector<256x128xbf16>
    %c239_i32 = arith.constant 239 : i32
    %63 = tpu.dynamic_rotate %17 by %c239_i32 dim 0 : vector<256x128xf32>, i32 -> vector<256x128xf32>
    %c8 = arith.constant 8 : index
    %c0_28 = arith.constant 0 : index
    %c0_29 = arith.constant 0 : index
    %64 = vector.load %arg7[%c8, %c0_28, %c0_29] : memref<9x256x1xf32, #tpu.memory_space<vmem>>, vector<1x256x1xf32>
    %65 = vector.shape_cast %64 : vector<1x256x1xf32> to vector<256x1xf32>
    %66 = vector.broadcast %65 : vector<256x1xf32> to vector<256x128xf32>
    %67 = arith.mulf %63, %66 : vector<256x128xf32>
    %68 = arith.truncf %67 : vector<256x128xf32> to vector<256x128xbf16>
    %69 = tpu.concatenate %25, %31, %37, %43, %44, %50, %56, %62, %68 in 1 : vector<256x128xbf16>, vector<256x128xbf16>, vector<256x128xbf16>, vector<256x128xbf16>, vector<256x128xbf16>, vector<256x128xbf16>, vector<256x128xbf16>, vector<256x128xbf16>, vector<256x128xbf16> -> vector<256x1152xbf16>
    %c0_30 = arith.constant 0 : index
    %c0_31 = arith.constant 0 : index
    %70 = vector.load %arg4[%c0_30, %c0_31] : memref<1152x128xbf16, #tpu.memory_space<vmem>>, vector<1152x128xbf16>
    %cst_32 = arith.constant dense<0.000000e+00> : vector<256x128xf32>
    %71 = tpu.matmul %69, %70, %cst_32 {dimension_numbers = #tpu.dot_dimension_numbers<[1], [0], [0], [1], [0, 0, 1, 1], [], []>} : vector<256x1152xbf16>, vector<1152x128xbf16>, vector<256x128xf32> -> vector<256x128xf32>
    %c2_33 = arith.constant 2 : index
    %c0_34 = arith.constant 0 : index
    %72 = vector.load %arg6[%c2_33, %c0_34] : memref<8x128xf32, #tpu.memory_space<vmem>>, vector<1x128xf32>
    %73 = vector.broadcast %72 : vector<1x128xf32> to vector<256x128xf32>
    %74 = arith.addf %71, %73 : vector<256x128xf32>
    %cst_35 = arith.constant 0.000000e+00 : f32
    %75 = vector.broadcast %cst_35 : f32 to vector<256x128xf32>
    %76 = arith.maximumf %74, %75 : vector<256x128xf32>
    %77 = arith.truncf %76 : vector<256x128xf32> to vector<256x128xbf16>
    %c0_36 = arith.constant 0 : index
    %c0_37 = arith.constant 0 : index
    %78 = vector.load %arg5[%c0_36, %c0_37] : memref<128x128xbf16, #tpu.memory_space<vmem>>, vector<128x128xbf16>
    %cst_38 = arith.constant dense<0.000000e+00> : vector<256x128xf32>
    %79 = tpu.matmul %77, %78, %cst_38 {dimension_numbers = #tpu.dot_dimension_numbers<[1], [0], [0], [1], [0, 0, 1, 1], [], []>} : vector<256x128xbf16>, vector<128x128xbf16>, vector<256x128xf32> -> vector<256x128xf32>
    %c3_39 = arith.constant 3 : index
    %c0_40 = arith.constant 0 : index
    %80 = vector.load %arg6[%c3_39, %c0_40] : memref<8x128xf32, #tpu.memory_space<vmem>>, vector<1x128xf32>
    %81 = vector.broadcast %80 : vector<1x128xf32> to vector<256x128xf32>
    %82 = arith.addf %79, %81 : vector<256x128xf32>
    %83 = arith.extf %19 : vector<256x128xbf16> to vector<256x128xf32>
    %84 = arith.addf %82, %83 : vector<256x128xf32>
    %cst_41 = arith.constant 0.000000e+00 : f32
    %85 = vector.broadcast %cst_41 : f32 to vector<256x128xf32>
    %86 = arith.maximumf %84, %85 : vector<256x128xf32>
    %87 = arith.truncf %86 : vector<256x128xf32> to vector<256x128xbf16>
    %c0_42 = arith.constant 0 : index
    %c0_43 = arith.constant 0 : index
    %88 = vector.load %arg8[%c0_42, %c0_43] : memref<16x256xbf16, #tpu.memory_space<vmem>>, vector<16x256xbf16>
    %cst_44 = arith.constant dense<0.000000e+00> : vector<16x128xf32>
    %89 = tpu.matmul %88, %87, %cst_44 {dimension_numbers = #tpu.dot_dimension_numbers<[1], [0], [0], [1], [0, 0, 1, 1], [], []>} : vector<16x256xbf16>, vector<256x128xbf16>, vector<16x128xf32> -> vector<16x128xf32>
    %c0_45 = arith.constant 0 : index
    %c0_46 = arith.constant 0 : index
    %c0_47 = arith.constant 0 : index
    %90 = vector.load %arg9[%c0_45, %c0_46, %c0_47] : memref<1x16x128xf32, #tpu.memory_space<vmem>>, vector<1x16x128xf32>
    %91 = vector.shape_cast %90 : vector<1x16x128xf32> to vector<16x128xf32>
    %92 = vector.shape_cast %89 : vector<16x128xf32> to vector<1x16x128xf32>
    tpu.vector_store %arg9[%c0_45, %c0_46, %c0_47], %92 {strides = array<i32>} : memref<1x16x128xf32, #tpu.memory_space<vmem>>, vector<1x16x128xf32>,
    return
  }
  func.func @transform_0(%arg0: i32) -> (i32, i32, i32) {
    %c0_i32 = arith.constant 0 : i32
    %c0_i32_0 = arith.constant 0 : i32
    %c0_i32_1 = arith.constant 0 : i32
    return %arg0, %c0_i32, %c0_i32_0 : i32, i32, i32
  }
  func.func @transform_1(%arg0: i32) -> (i32, i32) {
    %c0_i32 = arith.constant 0 : i32
    %c0_i32_0 = arith.constant 0 : i32
    %c0_i32_1 = arith.constant 0 : i32
    return %c0_i32, %c0_i32_0 : i32, i32
  }
  func.func @transform_2(%arg0: i32) -> (i32, i32) {
    %c0_i32 = arith.constant 0 : i32
    %c0_i32_0 = arith.constant 0 : i32
    %c0_i32_1 = arith.constant 0 : i32
    return %c0_i32, %c0_i32_0 : i32, i32
  }
  func.func @transform_3(%arg0: i32) -> (i32, i32) {
    %c0_i32 = arith.constant 0 : i32
    %c0_i32_0 = arith.constant 0 : i32
    %c0_i32_1 = arith.constant 0 : i32
    return %c0_i32, %c0_i32_0 : i32, i32
  }
  func.func @transform_4(%arg0: i32) -> (i32, i32) {
    %c0_i32 = arith.constant 0 : i32
    %c0_i32_0 = arith.constant 0 : i32
    %c0_i32_1 = arith.constant 0 : i32
    return %c0_i32, %c0_i32_0 : i32, i32
  }
  func.func @transform_5(%arg0: i32) -> (i32, i32) {
    %c0_i32 = arith.constant 0 : i32
    %c0_i32_0 = arith.constant 0 : i32
    %c0_i32_1 = arith.constant 0 : i32
    return %c0_i32, %c0_i32_0 : i32, i32
  }
  func.func @transform_6(%arg0: i32) -> (i32, i32, i32) {
    %c0_i32 = arith.constant 0 : i32
    %c0_i32_0 = arith.constant 0 : i32
    %c0_i32_1 = arith.constant 0 : i32
    %c0_i32_2 = arith.constant 0 : i32
    return %c0_i32, %c0_i32_0, %c0_i32_1 : i32, i32, i32
  }
  func.func @transform_7(%arg0: i32) -> (i32, i32) {
    %c0_i32 = arith.constant 0 : i32
    %c0_i32_0 = arith.constant 0 : i32
    %c0_i32_1 = arith.constant 0 : i32
    return %c0_i32, %c0_i32_0 : i32, i32
  }
  func.func @transform_8(%arg0: i32) -> (i32, i32, i32) {
    %c0_i32 = arith.constant 0 : i32
    %c0_i32_0 = arith.constant 0 : i32
    %c0_i32_1 = arith.constant 0 : i32
    return %arg0, %c0_i32, %c0_i32_0 : i32, i32, i32
  }
}

</mosaic_0001>

<bundles_post_ra>
// kernel: encoder_cnn_forward.1
= control target key start
LH: loop header
LB: loop body
LE: loop exit
PB: predicated region body
PF: predicated region fallthrough
CT: control target
= control target key end

     0   :  { %13 = vsyncpa [#allocation3], 0  ;;  %s10972_s0 = inlined_call_operand.vmem [shape: bf16[2,256,256], index: 0, kind: input, shape index: {}]   ;;  %s10973_s1 = inlined_call_operand.vmem [shape: bf16[256,128], index: 1, kind: input, shape index: {}]   ;;  %s10974_s2 = inlined_call_operand.vmem [shape: bf16[128,256], index: 2, kind: input, shape index: {}]   ;;  %s10975_s3 = inlined_call_operand.vmem [shape: bf16[1152,128], index: 3, kind: input, shape index: {}]   ;;  %s10976_s4 = inlined_call_operand.vmem [shape: bf16[128,128], index: 4, kind: input, shape index: {}]   ;;  %s10977_s5 = inlined_call_operand.vmem [shape: f32[8,128], index: 5, kind: input, shape index: {}]   ;;  %s10978_s6 = inlined_call_operand.vmem [shape: f32[9,256,1], index: 6, kind: input, shape index: {}]   ;;  %s10979_s7 = inlined_call_operand.vmem [shape: bf16[16,256], index: 7, kind: input, shape index: {}]   ;;  %s10980_s8 = inlined_call_operand.hbm [shape: f32[2,16,128], index: 8, kind: output, shape index: {}]  }
   0x1   :  { %15 = vsyncpa [#allocation3 + $0x1], 0  ;;  %s7268_s27 = smov 0   ;;  %s7270_s28 = smov 0  }
   0x2   :  { %s7272_s29 = smov 0   ;;  %s7274_s30 = smov 0  }
   0x3 LB: > { %s7289_s9 = sadd.s32 4294967295, %s7218_s30   ;;  %s6121_s10 = sadd.s32 4294967294, %s7218_s30   ;;  %s7218_s30 = sphi %s7274_s30, %s11903_s30   ;;  %s7214_s29 = sphi %s7272_s29, %s11902_s29   ;;  %s7210_s28 = sphi %s7270_s28, %s11901_s28   ;;  %s7206_s27 = sphi %s7268_s27, %s11900_s27  }
   0x4   : > { %s7293_s11 = sadd.s32 1, %s7218_s30   ;;  %s201_s12 = sadd.s32 1, %s7214_s29 }
   0x5   : > { %s198_s13 = ssub.s32 %s7218_s30, %s7293_s11  ;;  %p211_p0 = scmp.ne.s32.totalorder %s7214_s29, %s7210_s28 }
   0x6   : > { %p199_p1 = scmp.eq.s32.totalorder %s198_s13, 0  ;;  %p212_p2 = scmp.eq.s32.totalorder %s7289_s9, 1 }
   0x7   : > { %p217_p3 = scmp.ne.s32.totalorder %s7210_s28, %s7206_s27  ;;  %p218_p4 = scmp.eq.s32.totalorder %s6121_s10, 1 }
   0x8   : > { %s7304_s14 = scalar_select %p199_p1, %s7214_s29, %s201_s12  }
   0x9   : > { %p7306_p5 = por %p212_p2, %p211_p0  ;;  %p7310_p6 = por %p218_p4, %p217_p3 }
   0xa   : > { %p6124_p7 = scmp.ge.s32.totalorder %s7218_s30, 1  ;;  %p265_p8 = scmp.lt.s32.totalorder %s7218_s30, 3 }
   0xc   : > { %p266_p9 = pnand %p6124_p7, %p265_p8 }
   0xe   : > { %269 = sbr.rel (%p266_p9) target bundleno = 1803 (0x70b), region = 52 }
  0x13   : > { %v1295_v0 = vld [vmem:[%s10978_s6 + $0x20] sm:$0xff]  ;;  %v1293_v1 = vld [vmem:[%s10978_s6 + $0x10] sm:$0xff]  ;;  %v7220_v3 = vmov 0   ;;  %v6981_v4 = vld [vmem:[%s10973_s1 + $0x38] sm:$0xff]  ;;  %p299_p10 = scmp.lt.s32.totalorder %s7289_s9, 1  ;;  %s296_s18 = sand.u32 1, %s7210_s28  }
  0x14   : > { %v1291_v2 = vld [vmem:[%s10978_s6] sm:$0xff]  ;;  %7149 = vset.pattern.permute.xlu2 %v7220_v3  ;;  %7148 = vset.pattern.permute.xlu1 %v7220_v3  ;;  %v6989_v5 = vld [vmem:[%s10973_s1 + $0x78] sm:$0xff]  ;;  %v6980_v6 = vld [vmem:[%s10973_s1 + $0x30] sm:$0xff]  ;;  %s7088_s19 = sshll.u32 %s7289_s9, 4  ;;  %s6044_s26 = scalar_lea.sflag [#allocation3], %s296_s18 }
  0x15   : > { %7147 = vset.pattern.permute.xlu0 %v7220_v3  ;;  %1345 = vperm.xlu2 %7149, %v1295_v0   ;;  %v6988_v7 = vld [vmem:[%s10973_s1 + $0x70] sm:$0xff]  ;;  %v1296_v8 = vld [vmem:[%s10978_s6 + $0x28] sm:$0xff]  ;;  %v1294_v9 = vld [vmem:[%s10978_s6 + $0x18] sm:$0xff]  ;;  %s300_s13 = scalar_select %p299_p10, %s7289_s9, 1 }
  0x16   : > { %1335 = vperm.xlu1 %7148, %v1293_v1   ;;  %1325 = vperm.xlu0 %7147, %v1291_v2   ;;  %v1292_v10 = vld [vmem:[%s10978_s6 + $0x8] sm:$0xff]  ;;  %v6978_v13 = vld [vmem:[%s10973_s1 + $0x20] sm:$0xff]  ;;  %v1298_v16 = vld [vmem:[%s10978_s6 + $0x38] sm:$0xff] }
  0x17   : > { %626 = vmatpush.bf16.msra.mxu0 %v6981_v4  ;;  %715 = vmatpush.bf16.msra.mxu1 %v6989_v5  ;;  %v6979_v11 = vld [vmem:[%s10973_s1 + $0x28] sm:$0xff]  ;;  %v6986_v14 = vld [vmem:[%s10973_s1 + $0x60] sm:$0xff]  ;;  %v1297_v17 = vld [vmem:[%s10978_s6 + $0x30] sm:$0xff]  ;;  %s6941_s21 = sshll.u32 %s300_s13, 8  ;;  %s6125_s13 = sshll.u32 %s296_s18, 4 }
  0x18   : > { %7089 = vmatpush.bf16.msra.mxu2 %v6981_v4  ;;  %7097 = vmatpush.bf16.msra.mxu3 %v6989_v5  ;;  %v6987_v12 = vld [vmem:[%s10973_s1 + $0x68] sm:$0xff]  ;;  %v1299_v15 = vld [vmem:[%s10978_s6 + $0x40] sm:$0xff]  ;;  %v6977_v18 = vld [vmem:[%s10973_s1 + $0x18] sm:$0xff]  ;;  %s7399_s22 = scalar_lea.vmem %s10972_s0, %s6941_s21  ;;  %s298_s20 = scalar_lea.vmem [#allocation2], %s6125_s13 }
  0x19   : > { %v6985_v19 = vld [vmem:[%s10973_s1 + $0x58] sm:$0xff]  ;;  %v6976_v20 = vld [vmem:[%s10973_s1 + $0x10] sm:$0xff]  ;;  %v1300_v24 = vld [vmem:[%s10978_s6 + $0x48] sm:$0xff]  ;;  %s6055_s21 = scalar_lea.hbm %s10980_s8, %s7088_s19  ;;  %s6056_s25 = sshll.u32 %s298_s20, 4  ;;  %s6057_s25 = int_to_ptr.vmem [resolvable:$true] %s6056_s25 }
  0x1a   : > { %v6984_v21 = vld [vmem:[%s10973_s1 + $0x50] sm:$0xff]  ;;  %v1302_v22 = vld [vmem:[%s10978_s6 + $0x58] sm:$0xff]  ;;  %v6975_v25 = vld [vmem:[%s10973_s1 + $0x8] sm:$0xff]  ;;  %s7176_s13 = scalar_lea.hbm %s10980_s8, 32 }
  0x1b   : > { %627 = vmatpush.bf16.msra.mxu0 %v6980_v6  ;;  %716 = vmatpush.bf16.msra.mxu1 %v6988_v7  ;;  %v1301_v23 = vld [vmem:[%s10978_s6 + $0x50] sm:$0xff]  ;;  %v6983_v26 = vld [vmem:[%s10973_s1 + $0x48] sm:$0xff]  ;;  %v6974_v27 = vld [vmem:[%s10973_s1] sm:$0xff] }
  0x1c   : > { %7090 = vmatpush.bf16.msra.mxu2 %v6980_v6  ;;  %7098 = vmatpush.bf16.msra.mxu3 %v6988_v7  ;;  %v6982_v28 = vld [vmem:[%s10973_s1 + $0x40] sm:$0xff]  ;;  %v6943_v30 = vld [vmem:[%s7399_s22 + $0x4] sm:$0xf0]  ;;  %v6132_v32 = vld [vmem:[%s7399_s22 + $0x8] sm:$0xf0] }
  0x1d   : > { %1350 = vperm.xlu2 %7149, %v1296_v8   ;;  %v6130_v29 = vld [vmem:[%s7399_s22] sm:$0xf]  ;;  %v6942_v31 = vld [vmem:[%s7399_s22 + $0x4] sm:$0xf]  ;;  %v6202_v33 = vld [vmem:[%s7399_s22 + $0x90] sm:$0xf] }
  0x1e   : > { %1340 = vperm.xlu1 %7148, %v1294_v9   ;;  %1330 = vperm.xlu0 %7147, %v1292_v10   ;;  %v6961_v34 = vld [vmem:[%s7399_s22 + $0x94] sm:$0xf0]  ;;  %v6960_v35 = vld [vmem:[%s7399_s22 + $0x94] sm:$0xf]  ;;  %v6204_v36 = vld [vmem:[%s7399_s22 + $0x98] sm:$0xf0]  ;;  %v6131_v40 = vor.u32 %v6943_v30, %v6130_v29  ;;  %v6135_v41 = vor.u32 %v6942_v31, %v6132_v32 }
  0x1f   : > { %628 = vmatpush.bf16.msra.mxu0 %v6979_v11  ;;  %717 = vmatpush.bf16.msra.mxu1 %v6987_v12  ;;  %v1305_v37 = vld [vmem:[%s10978_s6 + $0x70] sm:$0xff]  ;;  %v1304_v38 = vld [vmem:[%s10978_s6 + $0x68] sm:$0xff]  ;;  %v1303_v39 = vld [vmem:[%s10978_s6 + $0x60] sm:$0xff]  ;;  %v6203_v42 = vor.u32 %v6961_v34, %v6202_v33  ;;  %v6207_v43 = vor.u32 %v6960_v35, %v6204_v36 }
  0x20   : > { %7091 = vmatpush.bf16.msra.mxu2 %v6979_v11  ;;  %7099 = vmatpush.bf16.msra.mxu3 %v6987_v12  ;;  %v1308_v44 = vld [vmem:[%s10978_s6 + $0x88] sm:$0xff]  ;;  %v1307_v45 = vld [vmem:[%s10978_s6 + $0x80] sm:$0xff]  ;;  %v1306_v46 = vld [vmem:[%s10978_s6 + $0x78] sm:$0xff] }
  0x21   : > { %v6138_v47 = vld [vmem:[%s7399_s22 + $0x10] sm:$0xf]  ;;  %v6945_v48 = vld [vmem:[%s7399_s22 + $0x14] sm:$0xf0]  ;;  %v6944_v49 = vld [vmem:[%s7399_s22 + $0x14] sm:$0xf] }
  0x22   : > { %v6140_v50 = vld [vmem:[%s7399_s22 + $0x18] sm:$0xf0]  ;;  %v6210_v51 = vld [vmem:[%s7399_s22 + $0xa0] sm:$0xf]  ;;  %v6963_v52 = vld [vmem:[%s7399_s22 + $0xa4] sm:$0xf0]  ;;  %v6139_v58 = vor.u32 %v6945_v48, %v6138_v47 }
  0x23   : > { %629 = vmatpush.bf16.msra.mxu0 %v6978_v13  ;;  %718 = vmatpush.bf16.msra.mxu1 %v6986_v14  ;;  %v6962_v53 = vld [vmem:[%s7399_s22 + $0xa4] sm:$0xf]  ;;  %v6212_v54 = vld [vmem:[%s7399_s22 + $0xa8] sm:$0xf0]  ;;  %v1310_v56 = vld [vmem:[%s10978_s6 + $0x98] sm:$0xff]  ;;  %v6143_v59 = vor.u32 %v6944_v49, %v6140_v50  ;;  %v6211_v60 = vor.u32 %v6963_v52, %v6210_v51 }
  0x24   : > { %7092 = vmatpush.bf16.msra.mxu2 %v6978_v13  ;;  %7100 = vmatpush.bf16.msra.mxu3 %v6986_v14  ;;  %v1311_v55 = vld [vmem:[%s10978_s6 + $0xa0] sm:$0xff]  ;;  %v1309_v57 = vld [vmem:[%s10978_s6 + $0x90] sm:$0xff]  ;;  %v6215_v61 = vor.u32 %v6962_v53, %v6212_v54  ;;  %v1314_v62 = vld [vmem:[%s10978_s6 + $0xb8] sm:$0xff] }
  0x25   : > { %1365 = vperm.xlu2 %7149, %v1299_v15   ;;  %v1313_v63 = vld [vmem:[%s10978_s6 + $0xb0] sm:$0xff]  ;;  %v1312_v0 = vld [vmem:[%s10978_s6 + $0xa8] sm:$0xff]  ;;  %v6146_v1 = vld [vmem:[%s7399_s22 + $0x20] sm:$0xf] }
  0x26   : > { %1360 = vperm.xlu1 %7148, %v1298_v16   ;;  %1355 = vperm.xlu0 %7147, %v1297_v17   ;;  %v6947_v2 = vld [vmem:[%s7399_s22 + $0x24] sm:$0xf0]  ;;  %v6946_v3 = vld [vmem:[%s7399_s22 + $0x24] sm:$0xf]  ;;  %v6148_v4 = vld [vmem:[%s7399_s22 + $0x28] sm:$0xf0] }
  0x27   : > { %630 = vmatpush.bf16.msra.mxu0 %v6977_v18  ;;  %719 = vmatpush.bf16.msra.mxu1 %v6985_v19  ;;  %v6218_v5 = vld [vmem:[%s7399_s22 + $0xb0] sm:$0xf]  ;;  %v6965_v6 = vld [vmem:[%s7399_s22 + $0xb4] sm:$0xf0]  ;;  %v6964_v7 = vld [vmem:[%s7399_s22 + $0xb4] sm:$0xf]  ;;  %v6147_v12 = vor.u32 %v6947_v2, %v6146_v1  ;;  %v6151_v13 = vor.u32 %v6946_v3, %v6148_v4 }
  0x28   : > { %7093 = vmatpush.bf16.msra.mxu2 %v6977_v18  ;;  %7101 = vmatpush.bf16.msra.mxu3 %v6985_v19  ;;  %v6220_v8 = vld [vmem:[%s7399_s22 + $0xb8] sm:$0xf0]  ;;  %v1317_v9 = vld [vmem:[%s10978_s6 + $0xd0] sm:$0xff]  ;;  %v1316_v10 = vld [vmem:[%s10978_s6 + $0xc8] sm:$0xff]  ;;  %v6219_v14 = vor.u32 %v6965_v6, %v6218_v5 }
  0x29   : > { %v1315_v11 = vld [vmem:[%s10978_s6 + $0xc0] sm:$0xff]  ;;  %v6223_v15 = vor.u32 %v6964_v7, %v6220_v8  ;;  %v1320_v16 = vld [vmem:[%s10978_s6 + $0xe8] sm:$0xff]  ;;  %v1318_v18 = vld [vmem:[%s10978_s6 + $0xd8] sm:$0xff] }
  0x2a   : > { %v1319_v17 = vld [vmem:[%s10978_s6 + $0xe0] sm:$0xff]  ;;  %v6154_v19 = vld [vmem:[%s7399_s22 + $0x30] sm:$0xf]  ;;  %v6387_v34 = vld [vmem:[%s10978_s6 + $0x118] sm:$0xff] }
  0x2b   : > { %631 = vmatpush.bf16.msra.mxu0 %v6976_v20  ;;  %720 = vmatpush.bf16.msra.mxu1 %v6984_v21  ;;  %v1321_v29 = vld [vmem:[%s10978_s6 + $0xf0] sm:$0xff]  ;;  %v6385_v36 = vld [vmem:[%s10978_s6 + $0x108] sm:$0xff]  ;;  %v6388_v48 = vld [vmem:[%s10978_s6 + $0x120] sm:$0xff] }
  0x2c   : > { %7094 = vmatpush.bf16.msra.mxu2 %v6976_v20  ;;  %7102 = vmatpush.bf16.msra.mxu3 %v6984_v21  ;;  %v6949_v20 = vld [vmem:[%s7399_s22 + $0x34] sm:$0xf0]  ;;  %v6948_v21 = vld [vmem:[%s7399_s22 + $0x34] sm:$0xf]  ;;  %v6389_v47 = vld [vmem:[%s10978_s6 + $0x128] sm:$0xff] }
  0x2d   : > { %1380 = vperm.xlu2 %7149, %v1302_v22   ;;  %v6156_v22 = vld [vmem:[%s7399_s22 + $0x38] sm:$0xf0]  ;;  %v6155_v30 = vor.u32 %v6949_v20, %v6154_v19  ;;  %v6386_v35 = vld [vmem:[%s10978_s6 + $0x110] sm:$0xff]  ;;  %v6393_v54 = vld [vmem:[%s10978_s6 + $0x148] sm:$0xff] }
  0x2e   : > { %1375 = vperm.xlu1 %7148, %v1301_v23   ;;  %1370 = vperm.xlu0 %7147, %v1300_v24   ;;  %v6226_v23 = vld [vmem:[%s7399_s22 + $0xc0] sm:$0xf]  ;;  %v6967_v24 = vld [vmem:[%s7399_s22 + $0xc4] sm:$0xf0]  ;;  %v6159_v31 = vor.u32 %v6948_v21, %v6156_v22  ;;  %v7005_v1 = vld [vmem:[%s10974_s2 + $0x74] sm:$0xf0] }
  0x2f   : > { %632 = vmatpush.bf16.msra.mxu0 %v6975_v25  ;;  %721 = vmatpush.bf16.msra.mxu1 %v6983_v26  ;;  %v6227_v32 = vor.u32 %v6967_v24, %v6226_v23  ;;  %v7004_v2 = vld [vmem:[%s10974_s2 + $0x74] sm:$0xf]  ;;  %v6970_v3 = vld [vmem:[%s7399_s22 + $0xe4] sm:$0xf]  ;;  %v6244_v4 = vld [vmem:[%s7399_s22 + $0xe8] sm:$0xf0] }
  0x30   : > { %7095 = vmatpush.bf16.msra.mxu2 %v6975_v25  ;;  %7103 = vmatpush.bf16.msra.mxu3 %v6983_v26  ;;  %v6966_v25 = vld [vmem:[%s7399_s22 + $0xc4] sm:$0xf]  ;;  %v6228_v26 = vld [vmem:[%s7399_s22 + $0xc8] sm:$0xf0]  ;;  %v6380_v6 = vld [vmem:[%s10974_s2 + $0x78] sm:$0xf0] }
  0x31   : > { %v6231_v33 = vor.u32 %v6966_v25, %v6228_v26  ;;  %v6396_v7 = vld [vmem:[%s10978_s6 + $0x160] sm:$0xff]  ;;  %v6383_v8 = vor.u32 %v7004_v2, %v6380_v6  ;;  %v6372_v22 = vld [vmem:[%s10974_s2 + $0x68] sm:$0xf0]  ;;  %v6362_v24 = vld [vmem:[%s10974_s2 + $0x50] sm:$0xf] }
  0x32   : > { %v7001_v25 = vld [vmem:[%s10974_s2 + $0x54] sm:$0xf0]  ;;  %v7000_v26 = vld [vmem:[%s10974_s2 + $0x54] sm:$0xf]  ;;  %v6995_v6 = vld [vmem:[%s10974_s2 + $0x24] sm:$0xf0] }
  0x33   : > { %633 = vmatpush.bf16.msra.mxu0 %v6974_v27  ;;  %722 = vmatpush.bf16.msra.mxu1 %v6982_v28 }
  0x34   : > { %7096 = vmatpush.bf16.msra.mxu2 %v6974_v27  ;;  %7104 = vmatpush.bf16.msra.mxu3 %v6982_v28  ;;  %v6384_v27 = vld [vmem:[%s10978_s6 + $0x100] sm:$0xff]  ;;  %v1322_v28 = vld [vmem:[%s10978_s6 + $0xf8] sm:$0xff] }
  0x35   : > { %1395 = vperm.xlu2 %7149, %v1305_v37  }
  0x36   : > { %1390 = vperm.xlu1 %7148, %v1304_v38   ;;  %1385 = vperm.xlu0 %7147, %v1303_v39   ;;  %v6162_v38 = vld [vmem:[%s7399_s22 + $0x40] sm:$0xf]  ;;  %v6951_v39 = vld [vmem:[%s7399_s22 + $0x44] sm:$0xf0] }
  0x37   : > { %634 = vmatmul.bf16.vlgmr.msra.gmra.mxu0 %v6131_v40  ;;  %723 = vmatmul.bf16.vlgmr.msra.gmra.mxu1 %v6135_v41  ;;  %v6950_v40 = vld [vmem:[%s7399_s22 + $0x44] sm:$0xf]  ;;  %v6164_v41 = vld [vmem:[%s7399_s22 + $0x48] sm:$0xf0]  ;;  %v6163_v49 = vor.u32 %v6951_v39, %v6162_v38  ;;  %v6354_v38 = vld [vmem:[%s10974_s2 + $0x40] sm:$0xf] }
  0x38   : > { %679 = vmatmul.bf16.vlgmr.msra.gmra.mxu2 %v6203_v42  ;;  %768 = vmatmul.bf16.vlgmr.msra.gmra.mxu3 %v6207_v43  ;;  %v6234_v42 = vld [vmem:[%s7399_s22 + $0xd0] sm:$0xf]  ;;  %v6969_v43 = vld [vmem:[%s7399_s22 + $0xd4] sm:$0xf0]  ;;  %v6167_v50 = vor.u32 %v6950_v40, %v6164_v41  ;;  %v6999_v39 = vld [vmem:[%s10974_s2 + $0x44] sm:$0xf0] }
  0x39   : > { %v6235_v51 = vor.u32 %v6969_v43, %v6234_v42  ;;  %1037 = vmatpush.bf16.msrb.mxu3 %v6383_v8  ;;  %v6998_v40 = vld [vmem:[%s10974_s2 + $0x44] sm:$0xf]  ;;  %v6180_v43 = vld [vmem:[%s7399_s22 + $0x68] sm:$0xf0] }
  0x3d   : > { %1410 = vperm.xlu2 %7149, %v1308_v44   ;;  %v6968_v44 = vld [vmem:[%s7399_s22 + $0xd4] sm:$0xf] }
  0x3e   : > { %1405 = vperm.xlu1 %7148, %v1307_v45   ;;  %1400 = vperm.xlu0 %7147, %v1306_v46   ;;  %v6236_v45 = vld [vmem:[%s7399_s22 + $0xd8] sm:$0xf0]  ;;  %v6390_v46 = vld [vmem:[%s10978_s6 + $0x130] sm:$0xff] }
  0x3f   : > { %v6239_v52 = vor.u32 %v6968_v44, %v6236_v45  ;;  %v6250_v44 = vld [vmem:[%s7399_s22 + $0xf0] sm:$0xf]  ;;  %v6355_v45 = vor.u32 %v6999_v39, %v6354_v38  ;;  %v6407_v38 = vld [vmem:[%s10978_s6 + $0x1b8] sm:$0xff] }
  0x40   : > { %v6406_v39 = vld [vmem:[%s10978_s6 + $0x1b0] sm:$0xff] }
  0x45   : > { %1425 = vperm.xlu2 %7149, %v1311_v55   ;;  %v6392_v55 = vld [vmem:[%s10978_s6 + $0x140] sm:$0xff] }
  0x46   : > { %1420 = vperm.xlu1 %7148, %v1310_v56   ;;  %1415 = vperm.xlu0 %7147, %v1309_v57   ;;  %v6391_v56 = vld [vmem:[%s10978_s6 + $0x138] sm:$0xff]  ;;  %v6170_v57 = vld [vmem:[%s7399_s22 + $0x50] sm:$0xf] }
  0x47   : > { %639 = vmatmul.bf16.gmra.mxu0 %v6139_v58  ;;  %728 = vmatmul.bf16.gmra.mxu1 %v6143_v59  ;;  %v6953_v58 = vld [vmem:[%s7399_s22 + $0x54] sm:$0xf0]  ;;  %v6952_v59 = vld [vmem:[%s7399_s22 + $0x54] sm:$0xf] }
  0x48   : > { %684 = vmatmul.bf16.gmra.mxu2 %v6211_v60  ;;  %773 = vmatmul.bf16.gmra.mxu3 %v6215_v61  ;;  %v6172_v61 = vld [vmem:[%s7399_s22 + $0x58] sm:$0xf0] }
  0x4d   : > { %1440 = vperm.xlu2 %7149, %v1314_v62   ;;  %v6242_v62 = vld [vmem:[%s7399_s22 + $0xe0] sm:$0xf] }
  0x4e   : > { %1435 = vperm.xlu1 %7148, %v1313_v63   ;;  %1430 = vperm.xlu0 %7147, %v1312_v0   ;;  %v6971_v63 = vld [vmem:[%s7399_s22 + $0xe4] sm:$0xf0]  ;;  %v6378_v0 = vld [vmem:[%s10974_s2 + $0x70] sm:$0xf] }
  0x4f   : > { %v6379_v5 = vor.u32 %v7005_v1, %v6378_v0 }
  0x51   : > { %948 = vmatpush.bf16.msrb.mxu2 %v6379_v5  ;;  %v6338_v5 = vld [vmem:[%s10974_s2 + $0x20] sm:$0xf] }
  0x52   : > { %v6339_v8 = vor.u32 %v6995_v6, %v6338_v5  ;;  %v7765_v6 = vld [vmem:[%s10977_s5] ss:$0 sm:$0xff] }
  0x55   : > { %1455 = vperm.xlu2 %7149, %v1317_v9   ;;  %v6395_v9 = vld [vmem:[%s10978_s6 + $0x158] sm:$0xff] }
  0x56   : > { %1450 = vperm.xlu1 %7148, %v1316_v10   ;;  %1445 = vperm.xlu0 %7147, %v1315_v11   ;;  %v6394_v10 = vld [vmem:[%s10978_s6 + $0x150] sm:$0xff]  ;;  %v6171_v11 = vor.u32 %v6953_v58, %v6170_v57  ;;  %v6997_v58 = vld [vmem:[%s10974_s2 + $0x34] sm:$0xf0] }
  0x57   : > { %644 = vmatmul.bf16.gmra.mxu0 %v6147_v12  ;;  %733 = vmatmul.bf16.gmra.mxu1 %v6151_v13  ;;  %v6175_v12 = vor.u32 %v6952_v59, %v6172_v61  ;;  %v6243_v13 = vor.u32 %v6971_v63, %v6242_v62  ;;  %v6346_v57 = vld [vmem:[%s10974_s2 + $0x30] sm:$0xf]  ;;  %v6996_v59 = vld [vmem:[%s10974_s2 + $0x34] sm:$0xf]  ;;  %v6348_v63 = vld [vmem:[%s10974_s2 + $0x38] sm:$0xf0] }
  0x58   : > { %689 = vmatmul.bf16.gmra.mxu2 %v6219_v14  ;;  %778 = vmatmul.bf16.gmra.mxu3 %v6223_v15  ;;  %v6247_v14 = vor.u32 %v6970_v3, %v6244_v4  ;;  %v6347_v0 = vor.u32 %v6997_v58, %v6346_v57  ;;  %v6351_v1 = vor.u32 %v6996_v59, %v6348_v63  ;;  %v6958_v57 = vld [vmem:[%s7399_s22 + $0x84] sm:$0xf]  ;;  %v6196_v58 = vld [vmem:[%s7399_s22 + $0x88] sm:$0xf0]  ;;  %v6414_v59 = vld [vmem:[%s10978_s6 + $0x1f0] sm:$0xff] }
  0x5d   : > { %1470 = vperm.xlu2 %7149, %v1320_v16   ;;  %v6370_v16 = vld [vmem:[%s10974_s2 + $0x60] sm:$0xf] }
  0x5e   : > { %1465 = vperm.xlu1 %7148, %v1319_v17   ;;  %1460 = vperm.xlu0 %7147, %v1318_v18   ;;  %v7003_v17 = vld [vmem:[%s10974_s2 + $0x64] sm:$0xf0]  ;;  %v7002_v18 = vld [vmem:[%s10974_s2 + $0x64] sm:$0xf] }
  0x5f   : > { %v6371_v21 = vor.u32 %v7003_v17, %v6370_v16  ;;  %v6375_v23 = vor.u32 %v7002_v18, %v6372_v22  ;;  %v6993_v16 = vld [vmem:[%s10974_s2 + $0x14] sm:$0xf0]  ;;  %v6992_v17 = vld [vmem:[%s10974_s2 + $0x14] sm:$0xf]  ;;  %v6332_v18 = vld [vmem:[%s10974_s2 + $0x18] sm:$0xf0] }
  0x61   : > { %949 = vmatpush.bf16.msrb.mxu2 %v6371_v21  ;;  %1038 = vmatpush.bf16.msrb.mxu3 %v6375_v23  ;;  %v6186_v23 = vld [vmem:[%s7399_s22 + $0x70] sm:$0xf] }
  0x65   : > { %1582 = vperm.xlu2 %7149, %v6384_v27   ;;  %v6399_v27 = vld [vmem:[%s10978_s6 + $0x178] sm:$0xff] }
  0x66   : > { %1480 = vperm.xlu1 %7148, %v1322_v28   ;;  %1475 = vperm.xlu0 %7147, %v1321_v29   ;;  %v6364_v28 = vld [vmem:[%s10974_s2 + $0x58] sm:$0xf0]  ;;  %v6398_v29 = vld [vmem:[%s10978_s6 + $0x170] sm:$0xff] }
  0x67   : > { %649 = vmatmul.bf16.gmra.mxu0 %v6155_v30  ;;  %738 = vmatmul.bf16.gmra.mxu1 %v6159_v31  ;;  %v6397_v30 = vld [vmem:[%s10978_s6 + $0x168] sm:$0xff]  ;;  %v6363_v31 = vor.u32 %v7001_v25, %v6362_v24  ;;  %v6957_v24 = vld [vmem:[%s7399_s22 + $0x74] sm:$0xf0]  ;;  %v6956_v25 = vld [vmem:[%s7399_s22 + $0x74] sm:$0xf] }
  0x68   : > { %694 = vmatmul.bf16.gmra.mxu2 %v6227_v32  ;;  %783 = vmatmul.bf16.gmra.mxu3 %v6231_v33  ;;  %v6367_v32 = vor.u32 %v7000_v26, %v6364_v28  ;;  %v6178_v33 = vld [vmem:[%s7399_s22 + $0x60] sm:$0xf]  ;;  %v6335_v26 = vor.u32 %v6992_v17, %v6332_v18 }
  0x69   : > { %950 = vmatpush.bf16.msrb.mxu2 %v6363_v31  ;;  %v6991_v31 = vld [vmem:[%s10974_s2 + $0x4] sm:$0xf0] }
  0x6a   : > { %1039 = vmatpush.bf16.msrb.mxu3 %v6367_v32 }
  0x6d   : > { %1597 = vperm.xlu2 %7149, %v6387_v34   ;;  %v6955_v34 = vld [vmem:[%s7399_s22 + $0x64] sm:$0xf0]  ;;  %951 = vmatpush.bf16.msrb.mxu2 %v6355_v45 }
  0x6e   : > { %1592 = vperm.xlu1 %7148, %v6386_v35   ;;  %1587 = vperm.xlu0 %7147, %v6385_v36   ;;  %v6954_v35 = vld [vmem:[%s7399_s22 + $0x64] sm:$0xf] }
  0x6f   : > { %v7511_v37 = vpop.permute.xlu2 %1345 }
  0x70   : > { %11162 = vst [vmem:[#allocation5_spill] sm:$0xff] %v7511_v37 }
  0x71   : > { %952 = vmatpush.bf16.msrb.mxu2 %v6347_v0  ;;  %v6199_v0 = vor.u32 %v6958_v57, %v6196_v58  ;;  %v6423_v57 = vld [vmem:[%s10978_s6 + $0x238] sm:$0xff]  ;;  %v6422_v58 = vld [vmem:[%s10978_s6 + $0x230] sm:$0xff] }
  0x75   : > { %1612 = vperm.xlu2 %7149, %v6390_v46   ;;  %v6356_v46 = vld [vmem:[%s10974_s2 + $0x48] sm:$0xf0]  ;;  %953 = vmatpush.bf16.msrb.mxu2 %v6339_v8 }
  0x76   : > { %1607 = vperm.xlu1 %7148, %v6389_v47   ;;  %1602 = vperm.xlu0 %7147, %v6388_v48   ;;  %v6973_v47 = vld [vmem:[%s7399_s22 + $0xf4] sm:$0xf0]  ;;  %v6972_v48 = vld [vmem:[%s7399_s22 + $0xf4] sm:$0xf] }
  0x77   : > { %654 = vmatmul.bf16.gmra.mxu0 %v6163_v49  ;;  %743 = vmatmul.bf16.gmra.mxu1 %v6167_v50  ;;  %v7530_v53 = vpop.permute.xlu2 %1350  ;;  %v6252_v49 = vld [vmem:[%s7399_s22 + $0xf8] sm:$0xf0]  ;;  %v6359_v50 = vor.u32 %v6998_v40, %v6356_v46  ;;  %v6251_v61 = vor.u32 %v6973_v47, %v6250_v44  ;;  %v6187_v40 = vor.u32 %v6957_v24, %v6186_v23 }
  0x78   : > { %699 = vmatmul.bf16.gmra.mxu2 %v6235_v51  ;;  %788 = vmatmul.bf16.gmra.mxu3 %v6239_v52  ;;  %v6402_v51 = vld [vmem:[%s10978_s6 + $0x190] sm:$0xff]  ;;  %v6401_v52 = vld [vmem:[%s10978_s6 + $0x188] sm:$0xff]  ;;  %v6255_v62 = vor.u32 %v6972_v48, %v6252_v49  ;;  %v6411_v48 = vld [vmem:[%s10978_s6 + $0x1d8] sm:$0xff] }
  0x79   : > { %1040 = vmatpush.bf16.msrb.mxu3 %v6359_v50  ;;  %v6410_v49 = vld [vmem:[%s10978_s6 + $0x1d0] sm:$0xff]  ;;  %v6409_v50 = vld [vmem:[%s10978_s6 + $0x1c8] sm:$0xff] }
  0x7d   : > { %1627 = vperm.xlu2 %7149, %v6393_v54   ;;  %v6400_v54 = vld [vmem:[%s10978_s6 + $0x180] sm:$0xff]  ;;  %1041 = vmatpush.bf16.msrb.mxu3 %v6351_v1 }
  0x7e   : > { %1622 = vperm.xlu1 %7148, %v6392_v55   ;;  %1617 = vperm.xlu0 %7147, %v6391_v56   ;;  %v6179_v55 = vor.u32 %v6955_v34, %v6178_v33  ;;  %v6183_v56 = vor.u32 %v6954_v35, %v6180_v43  ;;  %v6990_v33 = vld [vmem:[%s10974_s2 + $0x4] sm:$0xf]  ;;  %v6324_v34 = vld [vmem:[%s10974_s2 + $0x8] sm:$0xf0] }
  0x7f   : > { %v7544_v60 = vpop.permute.xlu2 %1365  ;;  %v6408_v35 = vld [vmem:[%s10978_s6 + $0x1c0] sm:$0xff]  ;;  %v6327_v44 = vor.u32 %v6990_v33, %v6324_v34 }
  0x80   : > { %11163 = vst [vmem:[#allocation6_spill] sm:$0xff] %v7544_v60 }
  0x85   : > { %1642 = vperm.xlu2 %7149, %v6396_v7   ;;  %v6994_v7 = vld [vmem:[%s10974_s2 + $0x24] sm:$0xf] }
  0x86   : > { %1637 = vperm.xlu1 %7148, %v6395_v9   ;;  %1632 = vperm.xlu0 %7147, %v6394_v10   ;;  %v6340_v9 = vld [vmem:[%s10974_s2 + $0x28] sm:$0xf0] }
  0x87   : > { %659 = vmatmul.bf16.gmra.mxu0 %v6171_v11  ;;  %748 = vmatmul.bf16.gmra.mxu1 %v6175_v12  ;;  %v7572_v15 = vpop.permute.xlu2 %1380  ;;  %v6405_v10 = vld [vmem:[%s10978_s6 + $0x1a8] sm:$0xff]  ;;  %v6404_v11 = vld [vmem:[%s10978_s6 + $0x1a0] sm:$0xff]  ;;  %v6403_v12 = vld [vmem:[%s10978_s6 + $0x198] sm:$0xff] }
  0x88   : > { %11164 = vst [vmem:[#allocation7_spill] sm:$0xff] %v7572_v15  ;;  %v7583_v19 = vpop.permute.xlu1 %1335  ;;  %v7585_v20 = vpop.permute.xlu0 %1325  ;;  %704 = vmatmul.bf16.gmra.mxu2 %v6243_v13  ;;  %793 = vmatmul.bf16.gmra.mxu3 %v6247_v14  ;;  %v6343_v13 = vor.u32 %v6994_v7, %v6340_v9  ;;  %v6330_v14 = vld [vmem:[%s10974_s2 + $0x10] sm:$0xf] }
  0x89   : > { %v6331_v21 = vor.u32 %v6993_v16, %v6330_v14 }
  0x8a   : > { %1042 = vmatpush.bf16.msrb.mxu3 %v6343_v13  ;;  %v6415_v13 = vld [vmem:[%s10978_s6 + $0x1f8] sm:$0xff] }
  0x8b   : > { %954 = vmatpush.bf16.msrb.mxu2 %v6331_v21 }
  0x8d   : > { %1657 = vperm.xlu2 %7149, %v6399_v27  }
  0x8e   : > { %1652 = vperm.xlu1 %7148, %v6398_v29   ;;  %1647 = vperm.xlu0 %7147, %v6397_v30   ;;  %v6188_v29 = vld [vmem:[%s7399_s22 + $0x78] sm:$0xf0]  ;;  %v6322_v30 = vld [vmem:[%s10974_s2] sm:$0xf] }
  0x8f   : > { %v7614_v36 = vpop.permute.xlu2 %1395  ;;  %v6323_v32 = vor.u32 %v6991_v31, %v6322_v30  ;;  %v6191_v43 = vor.u32 %v6956_v25, %v6188_v29  ;;  %1043 = vmatpush.bf16.msrb.mxu3 %v6335_v26 }
  0x90   : > { %11165 = vst [vmem:[#allocation8_spill] sm:$0xff] %v7614_v36  ;;  %v7625_v41 = vpop.permute.xlu1 %1340  ;;  %v7627_v42 = vpop.permute.xlu0 %1330 }
  0x91   : > { %955 = vmatpush.bf16.msrb.mxu2 %v6323_v32 }
  0x93   : > { %1044 = vmatpush.bf16.msrb.mxu3 %v6327_v44 }
  0x95   : > { %1672 = vperm.xlu2 %7149, %v6402_v51  }
  0x96   : > { %1667 = vperm.xlu1 %7148, %v6401_v52   ;;  %1662 = vperm.xlu0 %7147, %v6400_v54   ;;  %v6194_v52 = vld [vmem:[%s7399_s22 + $0x80] sm:$0xf] }
  0x97   : > { %664 = vmatmul.bf16.gmra.mxu0 %v6179_v55  ;;  %753 = vmatmul.bf16.gmra.mxu1 %v6183_v56  ;;  %v7658_v2 = vpop.permute.xlu2 %1410  ;;  %v6959_v56 = vld [vmem:[%s7399_s22 + $0x84] sm:$0xf0]  ;;  %s6058_s22 = sshll.u32 %s6055_s21, 4  ;;  %s6059_s22 = int_to_ptr.hbm [resolvable:$true] %s6058_s22 }
  0x98   : > { %11166 = vst [vmem:[#allocation9_spill] sm:$0xff] %v7658_v2  ;;  %v7660_v3 = vpop.permute.xlu1 %1360  ;;  %v7662_v4 = vpop.permute.xlu0 %1355  ;;  %709 = vmatmul.bf16.gmra.mxu2 %v6251_v61  ;;  %798 = vmatmul.bf16.gmra.mxu3 %v6255_v62  ;;  %v6413_v61 = vld [vmem:[%s10978_s6 + $0x1e8] sm:$0xff]  ;;  %v6412_v62 = vld [vmem:[%s10978_s6 + $0x1e0] sm:$0xff]  ;;  %v6195_v63 = vor.u32 %v6959_v56, %v6194_v52  ;;  %s7170_s10 = sshra.s32 %s6059_s22, 4  ;;  %s7171_s10 = int_to_ptr.hbm [resolvable:$true] %s7170_s10 }
  0x99   : > { %11167 = vst [vmem:[#allocation10_spill] sm:$0xff] %v7660_v3  ;;  %s7172_s9 = scalar_lea.hbm %s7171_s10, 16  ;;  %p7177_p0 = scmp.lt.s32.totalorder %s7171_s10, %s10980_s8 }
  0x9a   : > { %11168 = vst [vmem:[#allocation11_spill] sm:$0xff] %v7662_v4  ;;  %p7173_p11 = scmp.ne.s32.totalorder %s7171_s10, %s7172_s9  ;;  %p7178_p1 = scmp.lt.s32.totalorder %s7176_s13, %s7172_s9 }
  0x9c   : > { %p7174_p12 = pnand %p7173_p11, %p7306_p5  ;;  %p7179_p2 = por %p7178_p1, %p7177_p0 }
  0x9d   : > { %1687 = vperm.xlu2 %7149, %v6405_v10  }
  0x9e   : > { %1682 = vperm.xlu1 %7148, %v6404_v11   ;;  %1677 = vperm.xlu0 %7147, %v6403_v12   ;;  %v6417_v11 = vld [vmem:[%s10978_s6 + $0x208] sm:$0xff]  ;;  %v6416_v12 = vld [vmem:[%s10978_s6 + $0x200] sm:$0xff]  ;;  %p7175_p13 = pneg %p7174_p12 }
  0x9f   : > { %v7697_v22 = vpop.permute.xlu2 %1425 }
  0xa0   : > { %11169 = vst [vmem:[#allocation12_spill] sm:$0xff] %v7697_v22  ;;  %v7702_v27 = vpop.permute.xlu1 %1375  ;;  %v7704_v28 = vpop.permute.xlu0 %1370  ;;  %p7180_p3 = pnand %p7179_p2, %p7175_p13 }
  0xa1   : > { %11170 = vst [vmem:[#allocation13_spill] sm:$0xff] %v7702_v27 }
  0xa2   : > { %11171 = vst [vmem:[#allocation14_spill] sm:$0xff] %v7704_v28 }
  0xa5   : > { %1702 = vperm.xlu2 %7149, %v6408_v35   ;;  %v6420_v35 = vld [vmem:[%s10978_s6 + $0x220] sm:$0xff] }
  0xa6   : > { %1697 = vperm.xlu1 %7148, %v6407_v38   ;;  %1692 = vperm.xlu0 %7147, %v6406_v39   ;;  %v6419_v38 = vld [vmem:[%s10978_s6 + $0x218] sm:$0xff] }
  0xa7   : > { %669 = vmatmul.bf16.gmra.mxu0 %v6187_v40  ;;  %758 = vmatmul.bf16.gmra.mxu1 %v6191_v43  ;;  %v7728_v45 = vpop.permute.xlu2 %1440 }
  0xa8   : > { %11172 = vst [vmem:[#allocation15_spill] sm:$0xff] %v7728_v45  ;;  %v7730_v46 = vpop.permute.xlu1 %1390  ;;  %v7732_v47 = vpop.permute.xlu0 %1385 }
  0xa9   : > { %11173 = vst [vmem:[#allocation16_spill] sm:$0xff] %v7730_v46 }
  0xaa   : > { %11174 = vst [vmem:[#allocation17_spill] sm:$0xff] %v7732_v47 }
  0xad   : > { %1717 = vperm.xlu2 %7149, %v6411_v48   ;;  %v6418_v48 = vld [vmem:[%s10978_s6 + $0x210] sm:$0xff] }
  0xae   : > { %1712 = vperm.xlu1 %7148, %v6410_v49   ;;  %1707 = vperm.xlu0 %7147, %v6409_v50  }
  0xaf   : > { %v7743_v51 = vpop.permute.xlu2 %1455 }
  0xb0   : > { %11175 = vst [vmem:[#allocation18_spill] sm:$0xff] %v7743_v51  ;;  %v7746_v54 = vpop.permute.xlu1 %1405  ;;  %v7748_v55 = vpop.permute.xlu0 %1400 }
  0xb1   : > { %11176 = vst [vmem:[#allocation19_spill] sm:$0xff] %v7746_v54 }
  0xb2   : > { %11177 = vst [vmem:[#allocation20_spill] sm:$0xff] %v7748_v55 }
  0xb4   : > { %v635_v1 = vpop.f32.mrf.mxu0  ;;  %v724_v5 = vpop.f32.mrf.mxu1 }
  0xb5   : > { %1732 = vperm.xlu2 %7149, %v6414_v59   ;;  %v636_v10 = vadd.f32 %v7765_v6, %v635_v1 }
  0xb6   : > { %1727 = vperm.xlu1 %7148, %v6413_v61   ;;  %1722 = vperm.xlu0 %7147, %v6412_v62  }
  0xb7   : > { %674 = vmatmul.bf16.gmra.mxu0 %v6195_v63  ;;  %763 = vmatmul.bf16.gmra.mxu1 %v6199_v0  ;;  %v7767_v7 = vpop.permute.xlu2 %1470  ;;  %v725_v23 = vadd.f32 %v724_v5, %v636_v10  ;;  %v6421_v0 = vld [vmem:[%s10978_s6 + $0x228] sm:$0xff] }
  0xb8   : > { %11178 = vst [vmem:[#allocation21_spill] sm:$0xff] %v7767_v7  ;;  %v7769_v8 = vpop.permute.xlu1 %1420  ;;  %v7771_v9 = vpop.permute.xlu0 %1415 }
  0xb9   : > { %11179 = vst [vmem:[#allocation22_spill] sm:$0xff] %v7769_v8  ;;  %v804_v32 = vmax.f32 %v725_v23, 0.0  ;;  %v6426_v23 = vld [vmem:[%s10978_s6 + $0x250] sm:$0xff] }
  0xba   : > { %11180 = vst [vmem:[#allocation23_spill] sm:$0xff] %v7771_v9 }
  0xbb   : > { %v680_v14 = vpop.f32.mrf.mxu2  ;;  %v769_v16 = vpop.f32.mrf.mxu3 }
  0xbc   : > { %v637_v17 = vpop.f32.mrf.mxu0  ;;  %v726_v18 = vpop.f32.mrf.mxu1  ;;  %v681_v21 = vadd.f32 %v7765_v6, %v680_v14 }
  0xbd   : > { %v638_v24 = vadd.f32 %v7765_v6, %v637_v17  ;;  %1909 = vperm.xlu2 %7149, %v6417_v11  }
  0xbe   : > { %1904 = vperm.xlu1 %7148, %v6416_v12   ;;  %1737 = vperm.xlu0 %7147, %v6415_v13   ;;  %v7785_v25 = vadd.f32 %v769_v16, %v681_v21 }
  0xbf   : > { %v727_v26 = vadd.f32 %v726_v18, %v638_v24  ;;  %v7787_v29 = vpop.permute.xlu2 %1582  ;;  %v6425_v24 = vld [vmem:[%s10978_s6 + $0x248] sm:$0xff] }
  0xc0   : > { %v7789_v30 = vpop.permute.xlu1 %1435  ;;  %v7791_v31 = vpop.permute.xlu0 %1430 }
  0xc1   : > { %11181 = vst [vmem:[#allocation24_spill] sm:$0xff] %v7789_v30  ;;  %v805_v33 = vmax.f32 %v727_v26, 0.0 }
  0xc2   : > { %11182 = vst [vmem:[#allocation25_spill] sm:$0xff] %v7791_v31 }
  0xc3   : > { %v836_v34 = vpack.c.bf16 %v805_v33, %v804_v32  ;;  %v7799_v39 = vpop.f32.mrf.mxu2  ;;  %v7801_v40 = vpop.f32.mrf.mxu3 }
  0xc4   : > { %v640_v43 = vpop.f32.mrf.mxu0  ;;  %v729_v44 = vpop.f32.mrf.mxu1 }
  0xc5   : > { %956 = vmatmul.bf16.vlgmr.msrb.gmra.mxu2 %v836_v34  ;;  %1045 = vmatmul.bf16.vlgmr.msrb.gmra.mxu3 %v836_v34  ;;  %v641_v56 = vadd.f32 %v7765_v6, %v640_v43 }
  0xc6   : > { %1924 = vperm.xlu2 %7149, %v6420_v35   ;;  %1919 = vperm.xlu1 %7148, %v6419_v38   ;;  %v6424_v35 = vld [vmem:[%s10978_s6 + $0x240] sm:$0xff] }
  0xc7   : > { %1914 = vperm.xlu0 %7147, %v6418_v48   ;;  %v7806_v49 = vpop.permute.xlu2 %1597  ;;  %v730_v5 = vadd.f32 %v729_v44, %v641_v56  ;;  %v6429_v56 = vld [vmem:[%s10978_s6 + $0x268] sm:$0xff] }
  0xc8   : > { %v7808_v50 = vpop.permute.xlu1 %1450  ;;  %v7810_v52 = vpop.permute.xlu0 %1445 }
  0xc9   : > { %11183 = vst [vmem:[#allocation26_spill] sm:$0xff] %v7808_v50  ;;  %v806_v17 = vmax.f32 %v730_v5, 0.0 }
  0xca   : > { %11184 = vst [vmem:[#allocation27_spill] sm:$0xff] %v7810_v52 }
  0xcb   : > { %v685_v59 = vpop.f32.mrf.mxu2  ;;  %v774_v61 = vpop.f32.mrf.mxu3 }
  0xcc   : > { %v642_v62 = vpop.f32.mrf.mxu0  ;;  %v731_v63 = vpop.f32.mrf.mxu1  ;;  %v686_v1 = vadd.f32 %v7765_v6, %v685_v59 }
  0xcd   : > { %v643_v10 = vadd.f32 %v7765_v6, %v642_v62 }
  0xce   : > { %1939 = vperm.xlu2 %7149, %v6423_v57   ;;  %1934 = vperm.xlu1 %7148, %v6422_v58   ;;  %v7824_v11 = vadd.f32 %v774_v61, %v686_v1  ;;  %v6428_v57 = vld [vmem:[%s10978_s6 + $0x260] sm:$0xff] }
  0xcf   : > { %v732_v12 = vadd.f32 %v731_v63, %v643_v10  ;;  %1929 = vperm.xlu0 %7147, %v6421_v0   ;;  %v7826_v13 = vpop.permute.xlu2 %1612  ;;  %v6427_v63 = vld [vmem:[%s10978_s6 + $0x258] sm:$0xff] }
  0xd0   : > { %11185 = vst [vmem:[#allocation28_spill] sm:$0xff] %v7826_v13  ;;  %v7828_v14 = vpop.permute.xlu1 %1465  ;;  %v7830_v16 = vpop.permute.xlu0 %1460 }
  0xd1   : > { %11186 = vst [vmem:[#allocation29_spill] sm:$0xff] %v7828_v14  ;;  %v807_v18 = vmax.f32 %v732_v12, 0.0 }
  0xd2   : > { %11187 = vst [vmem:[#allocation30_spill] sm:$0xff] %v7830_v16 }
  0xd3   : > { %v837_v21 = vpack.c.bf16 %v807_v18, %v806_v17  ;;  %v7838_v26 = vpop.f32.mrf.mxu2  ;;  %v7840_v32 = vpop.f32.mrf.mxu3 }
  0xd4   : > { %v645_v33 = vpop.f32.mrf.mxu0  ;;  %v734_v34 = vpop.f32.mrf.mxu1 }
  0xd5   : > { %961 = vmatmul.bf16.gmra.mxu2 %v837_v21  ;;  %1050 = vmatmul.bf16.gmra.mxu3 %v837_v21  ;;  %v646_v48 = vadd.f32 %v7765_v6, %v645_v33 }
  0xd6   : > { %1954 = vperm.xlu2 %7149, %v6426_v23   ;;  %1949 = vperm.xlu1 %7148, %v6425_v24  }
  0xd7   : > { %1944 = vperm.xlu0 %7147, %v6424_v35   ;;  %v7845_v38 = vpop.permute.xlu2 %1627  ;;  %v735_v1 = vadd.f32 %v734_v34, %v646_v48  ;;  %v6432_v34 = vld [vmem:[%s10978_s6 + $0x280] sm:$0xff]  ;;  %v6431_v35 = vld [vmem:[%s10978_s6 + $0x278] sm:$0xff] }
  0xd8   : > { %11188 = vst [vmem:[#allocation31_spill] sm:$0xff] %v7845_v38  ;;  %v7847_v43 = vpop.permute.xlu1 %1480  ;;  %v7849_v44 = vpop.permute.xlu0 %1475 }
  0xd9   : > { %11189 = vst [vmem:[#allocation32_spill] sm:$0xff] %v7847_v43  ;;  %v808_v23 = vmax.f32 %v735_v1, 0.0  ;;  %v6435_v1 = vld [vmem:[%s10978_s6 + $0x298] sm:$0xff] }
  0xda   : > { %11190 = vst [vmem:[#allocation33_spill] sm:$0xff] %v7849_v44 }
  0xdb   : > { %v690_v58 = vpop.f32.mrf.mxu2  ;;  %v779_v59 = vpop.f32.mrf.mxu3 }
  0xdc   : > { %v647_v61 = vpop.f32.mrf.mxu0  ;;  %v736_v62 = vpop.f32.mrf.mxu1  ;;  %v691_v0 = vadd.f32 %v7765_v6, %v690_v58 }
  0xdd   : > { %v648_v5 = vadd.f32 %v7765_v6, %v647_v61 }
  0xde   : > { %1969 = vperm.xlu2 %7149, %v6429_v56   ;;  %1964 = vperm.xlu1 %7148, %v6428_v57   ;;  %v7863_v10 = vadd.f32 %v779_v59, %v691_v0  ;;  %v6430_v59 = vld [vmem:[%s10978_s6 + $0x270] sm:$0xff] }
  0xdf   : > { %v737_v12 = vadd.f32 %v736_v62, %v648_v5  ;;  %1959 = vperm.xlu0 %7147, %v6427_v63   ;;  %v7865_v17 = vpop.permute.xlu2 %1642  ;;  %v6434_v5 = vld [vmem:[%s10978_s6 + $0x290] sm:$0xff] }
  0xe0   : > { %11191 = vst [vmem:[#allocation34_spill] sm:$0xff] %v7865_v17  ;;  %v7867_v18 = vpop.permute.xlu1 %1592  ;;  %v7869_v21 = vpop.permute.xlu0 %1587 }
  0xe1   : > { %v809_v24 = vmax.f32 %v737_v12, 0.0 }
  0xe3   : > { %v838_v33 = vpack.c.bf16 %v809_v24, %v808_v23  ;;  %v7877_v48 = vpop.f32.mrf.mxu2  ;;  %v7879_v56 = vpop.f32.mrf.mxu3 }
  0xe4   : > { %v650_v57 = vpop.f32.mrf.mxu0  ;;  %v739_v58 = vpop.f32.mrf.mxu1 }
  0xe5   : > { %966 = vmatmul.bf16.gmra.mxu2 %v838_v33  ;;  %1055 = vmatmul.bf16.gmra.mxu3 %v838_v33  ;;  %v651_v0 = vadd.f32 %v7765_v6, %v650_v57 }
  0xe6   : > { %1984 = vperm.xlu2 %7149, %v6432_v34   ;;  %1979 = vperm.xlu1 %7148, %v6431_v35   ;;  %v6433_v34 = vld [vmem:[%s10978_s6 + $0x288] sm:$0xff] }
  0xe7   : > { %1974 = vperm.xlu0 %7147, %v6430_v59   ;;  %v7884_v61 = vpop.permute.xlu2 %1657  ;;  %v740_v59 = vadd.f32 %v739_v58, %v651_v0  ;;  %v6438_v58 = vld [vmem:[%s10978_s6 + $0x2b0] sm:$0xff]  ;;  %v6437_v0 = vld [vmem:[%s10978_s6 + $0x2a8] sm:$0xff] }
  0xe8   : > { %11192 = vst [vmem:[#allocation35_spill] sm:$0xff] %v7884_v61  ;;  %v7886_v62 = vpop.permute.xlu1 %1607  ;;  %v7888_v63 = vpop.permute.xlu0 %1602 }
  0xe9   : > { %v810_v16 = vmax.f32 %v740_v59, 0.0 }
  0xeb   : > { %v695_v12 = vpop.f32.mrf.mxu2  ;;  %v784_v23 = vpop.f32.mrf.mxu3 }
  0xec   : > { %v652_v24 = vpop.f32.mrf.mxu0  ;;  %v741_v33 = vpop.f32.mrf.mxu1  ;;  %v696_v35 = vadd.f32 %v7765_v6, %v695_v12 }
  0xed   : > { %v653_v57 = vadd.f32 %v7765_v6, %v652_v24  ;;  %v6436_v24 = vld [vmem:[%s10978_s6 + $0x2a0] sm:$0xff] }
  0xee   : > { %1999 = vperm.xlu2 %7149, %v6435_v1   ;;  %1994 = vperm.xlu1 %7148, %v6434_v5   ;;  %v7902_v44 = vadd.f32 %v784_v23, %v696_v35  ;;  %v6440_v35 = vld [vmem:[%s10978_s6 + $0x2c0] sm:$0xff] }
  0xef   : > { %v742_v43 = vadd.f32 %v741_v33, %v653_v57  ;;  %1989 = vperm.xlu0 %7147, %v6433_v34   ;;  %v7904_v14 = vpop.permute.xlu2 %1672  ;;  %v6448_v34 = vld [vmem:[%s10978_s6 + $0x300] sm:$0xff] }
  0xf0   : > { %11193 = vst [vmem:[#allocation36_spill] sm:$0xff] %v7904_v14  ;;  %v7906_v7 = vpop.permute.xlu1 %1622  ;;  %v7908_v51 = vpop.permute.xlu0 %1617 }
  0xf1   : > { %11194 = vst [vmem:[#allocation37_spill] sm:$0xff] %v7906_v7  ;;  %v811_v52 = vmax.f32 %v742_v43, 0.0 }
  0xf2   : > { %11195 = vst [vmem:[#allocation38_spill] sm:$0xff] %v7908_v51 }
  0xf3   : > { %v839_v50 = vpack.c.bf16 %v811_v52, %v810_v16  ;;  %v7916_v1 = vpop.f32.mrf.mxu2  ;;  %v7918_v5 = vpop.f32.mrf.mxu3 }
  0xf4   : > { %v655_v12 = vpop.f32.mrf.mxu0  ;;  %v744_v23 = vpop.f32.mrf.mxu1 }
  0xf5   : > { %971 = vmatmul.bf16.gmra.mxu2 %v839_v50  ;;  %1060 = vmatmul.bf16.gmra.mxu3 %v839_v50  ;;  %v656_v33 = vadd.f32 %v7765_v6, %v655_v12 }
  0xf6   : > { %2014 = vperm.xlu2 %7149, %v6438_v58   ;;  %2009 = vperm.xlu1 %7148, %v6437_v0   ;;  %v6439_v0 = vld [vmem:[%s10978_s6 + $0x2b8] sm:$0xff] }
  0xf7   : > { %2004 = vperm.xlu0 %7147, %v6436_v24   ;;  %v7923_v52 = vpop.permute.xlu2 %1687  ;;  %v745_v30 = vadd.f32 %v744_v23, %v656_v33  ;;  %v6451_v23 = vld [vmem:[%s10978_s6 + $0x318] sm:$0xff]  ;;  %v6450_v33 = vld [vmem:[%s10978_s6 + $0x310] sm:$0xff] }
  0xf8   : > { %11196 = vst [vmem:[#allocation39_spill] sm:$0xff] %v7923_v52  ;;  %v7925_v16 = vpop.permute.xlu1 %1637  ;;  %v7927_v43 = vpop.permute.xlu0 %1632 }
  0xf9   : > { %11197 = vst [vmem:[#allocation40_spill] sm:$0xff] %v7925_v16  ;;  %v812_v8 = vmax.f32 %v745_v30, 0.0  ;;  %v6449_v30 = vld [vmem:[%s10978_s6 + $0x308] sm:$0xff] }
  0xfa   : > { %11198 = vst [vmem:[#allocation41_spill] sm:$0xff] %v7927_v43 }
  0xfb   : > { %v700_v50 = vpop.f32.mrf.mxu2  ;;  %v789_v59 = vpop.f32.mrf.mxu3 }
  0xfc   : > { %v657_v57 = vpop.f32.mrf.mxu0  ;;  %v746_v58 = vpop.f32.mrf.mxu1  ;;  %v701_v24 = vadd.f32 %v7765_v6, %v700_v50 }
  0xfd   : > { %v658_v12 = vadd.f32 %v7765_v6, %v657_v57 }
  0xfe   : > { %2161 = vperm.xlu2 %7149, %v6448_v34   ;;  %2024 = vperm.xlu1 %7148, %v6440_v35   ;;  %v7941_v45 = vadd.f32 %v789_v59, %v701_v24 }
  0xff   : > { %v747_v22 = vadd.f32 %v746_v58, %v658_v12  ;;  %2019 = vperm.xlu0 %7147, %v6439_v0   ;;  %v7943_v31 = vpop.permute.xlu2 %1702  ;;  %v6453_v58 = vld [vmem:[%s10978_s6 + $0x328] sm:$0xff]  ;;  %v6452_v0 = vld [vmem:[%s10978_s6 + $0x320] sm:$0xff] }
 0x100   : > { %11199 = vst [vmem:[#allocation42_spill] sm:$0xff] %v7943_v31  ;;  %v7945_v52 = vpop.permute.xlu1 %1652  ;;  %v7947_v9 = vpop.permute.xlu0 %1647 }
 0x101   : > { %11200 = vst [vmem:[#allocation43_spill] sm:$0xff] %v7945_v52  ;;  %v813_v14 = vmax.f32 %v747_v22, 0.0 }
 0x102   : > { %11201 = vst [vmem:[#allocation44_spill] sm:$0xff] %v7947_v9 }
 0x103   : > { %v840_v54 = vpack.c.bf16 %v813_v14, %v812_v8  ;;  %v7955_v34 = vpop.f32.mrf.mxu2  ;;  %v7957_v35 = vpop.f32.mrf.mxu3 }
 0x104   : > { %v660_v50 = vpop.f32.mrf.mxu0  ;;  %v749_v59 = vpop.f32.mrf.mxu1 }
 0x105   : > { %976 = vmatmul.bf16.gmra.mxu2 %v840_v54  ;;  %1065 = vmatmul.bf16.gmra.mxu3 %v840_v54  ;;  %v661_v57 = vadd.f32 %v7765_v6, %v660_v50 }
 0x106   : > { %2176 = vperm.xlu2 %7149, %v6451_v23   ;;  %2171 = vperm.xlu1 %7148, %v6450_v33   ;;  %v6441_v33 = vld [vmem:[%s10978_s6 + $0x2c8] sm:$0xff] }
 0x107   : > { %2166 = vperm.xlu0 %7147, %v6449_v30   ;;  %v7962_v22 = vpop.permute.xlu2 %1717 }
 0x108   : > { %11202 = vst [vmem:[#allocation45_spill] sm:$0xff] %v7962_v22  ;;  %v7964_v8 = vpop.permute.xlu1 %1667  ;;  %v7966_v14 = vpop.permute.xlu0 %1662  ;;  %v750_v22 = vadd.f32 %v749_v59, %v661_v57  ;;  %v6455_v59 = vld [vmem:[%s10978_s6 + $0x338] sm:$0xff]  ;;  %v6454_v57 = vld [vmem:[%s10978_s6 + $0x330] sm:$0xff] }
 0x109   : > { %11203 = vst [vmem:[#allocation46_spill] sm:$0xff] %v7964_v8 }
 0x10a   : > { %11204 = vst [vmem:[#allocation47_spill] sm:$0xff] %v7966_v14  ;;  %v814_v55 = vmax.f32 %v750_v22, 0.0  ;;  %v6442_v22 = vld [vmem:[%s10978_s6 + $0x2d0] sm:$0xff] }
 0x10b   : > { %v705_v54 = vpop.f32.mrf.mxu2  ;;  %v794_v24 = vpop.f32.mrf.mxu3 }
 0x10c   : > { %v662_v12 = vpop.f32.mrf.mxu0  ;;  %v751_v23 = vpop.f32.mrf.mxu1  ;;  %v706_v30 = vadd.f32 %v7765_v6, %v705_v54 }
 0x10d   : > { %v663_v50 = vadd.f32 %v7765_v6, %v662_v12 }
 0x10e   : > { %2186 = vperm.xlu2 %7149, %v6453_v58   ;;  %2181 = vperm.xlu1 %7148, %v6452_v0   ;;  %v7980_v31 = vadd.f32 %v794_v24, %v706_v30 }
 0x10f   : > { %v752_v2 = vadd.f32 %v751_v23, %v663_v50  ;;  %2029 = vperm.xlu0 %7147, %v6441_v33   ;;  %v7982_v14 = vpop.permute.xlu2 %1732  ;;  %v6443_v23 = vld [vmem:[%s10978_s6 + $0x2d8] sm:$0xff]  ;;  %v6457_v33 = vld [vmem:[%s10978_s6 + $0x348] sm:$0xff] }
 0x110   : > { %11205 = vst [vmem:[#allocation48_spill] sm:$0xff] %v7982_v14  ;;  %v7984_v8 = vpop.permute.xlu1 %1682  ;;  %v7986_v36 = vpop.permute.xlu0 %1677 }
 0x111   : > { %11206 = vst [vmem:[#allocation49_spill] sm:$0xff] %v7984_v8  ;;  %v815_v52 = vmax.f32 %v752_v2, 0.0 }
 0x112   : > { %11207 = vst [vmem:[#allocation50_spill] sm:$0xff] %v7986_v36 }
 0x113   : > { %v841_v61 = vpack.c.bf16 %v815_v52, %v814_v55  ;;  %v7994_v58 = vpop.f32.mrf.mxu2  ;;  %v7996_v0 = vpop.f32.mrf.mxu3 }
 0x114   : > { %v665_v54 = vpop.f32.mrf.mxu0  ;;  %v754_v24 = vpop.f32.mrf.mxu1 }
 0x115   : > { %981 = vmatmul.bf16.gmra.mxu2 %v841_v61  ;;  %1070 = vmatmul.bf16.gmra.mxu3 %v841_v61  ;;  %v666_v12 = vadd.f32 %v7765_v6, %v665_v54 }
 0x116   : > { %2196 = vperm.xlu2 %7149, %v6455_v59   ;;  %2191 = vperm.xlu1 %7148, %v6454_v57   ;;  %v6456_v59 = vld [vmem:[%s10978_s6 + $0x340] sm:$0xff] }
 0x117   : > { %2034 = vperm.xlu0 %7147, %v6442_v22   ;;  %v8001_v2 = vpop.permute.xlu2 %1909  ;;  %v755_v22 = vadd.f32 %v754_v24, %v666_v12  ;;  %v6444_v24 = vld [vmem:[%s10978_s6 + $0x2e0] sm:$0xff] }
 0x118   : > { %v8003_v55 = vpop.permute.xlu1 %1697  ;;  %v8005_v52 = vpop.permute.xlu0 %1692 }
 0x119   : > { %11208 = vst [vmem:[#allocation51_spill] sm:$0xff] %v8003_v55  ;;  %v816_v47 = vmax.f32 %v755_v22, 0.0 }
 0x11a   : > { %11209 = vst [vmem:[#allocation52_spill] sm:$0xff] %v8005_v52 }
 0x11b   : > { %v710_v61 = vpop.f32.mrf.mxu2  ;;  %v799_v14 = vpop.f32.mrf.mxu3 }
 0x11c   : > { %v667_v30 = vpop.f32.mrf.mxu0  ;;  %v756_v50 = vpop.f32.mrf.mxu1  ;;  %v711_v57 = vadd.f32 %v7765_v6, %v710_v61 }
 0x11d   : > { %v668_v54 = vadd.f32 %v7765_v6, %v667_v30  ;;  %v6462_v30 = vld [vmem:[%s10978_s6 + $0x370] sm:$0xff] }
 0x11e   : > { %2039 = vperm.xlu2 %7149, %v6443_v23   ;;  %2206 = vperm.xlu1 %7148, %v6457_v33   ;;  %v8019_v52 = vadd.f32 %v799_v14, %v711_v57  ;;  %v6459_v14 = vld [vmem:[%s10978_s6 + $0x358] sm:$0xff]  ;;  %v6458_v33 = vld [vmem:[%s10978_s6 + $0x350] sm:$0xff]  ;;  %v6460_v57 = vld [vmem:[%s10978_s6 + $0x360] sm:$0xff] }
 0x11f   : > { %v757_v55 = vadd.f32 %v756_v50, %v668_v54  ;;  %2201 = vperm.xlu0 %7147, %v6456_v59   ;;  %v6461_v50 = vld [vmem:[%s10978_s6 + $0x368] sm:$0xff] }
 0x120   : > { %v8021_v8 = vpop.permute.xlu2 %1924  ;;  %v8023_v36 = vpop.permute.xlu1 %1712 }
 0x121   : > { %11210 = vst [vmem:[#allocation53_spill] sm:$0xff] %v8021_v8  ;;  %v817_v46 = vmax.f32 %v757_v55, 0.0  ;;  %v8025_v17 = vpop.permute.xlu0 %1707 }
 0x122   : > { %11211 = vst [vmem:[#allocation54_spill] sm:$0xff] %v8023_v36 }
 0x123   : > { %11212 = vst [vmem:[#allocation55_spill] sm:$0xff] %v8025_v17  ;;  %v842_v9 = vpack.c.bf16 %v817_v46, %v816_v47  ;;  %v6464_v17 = vld [vmem:[%s10978_s6 + $0x380] sm:$0xff] }
 0x124   : > { %v670_v12 = vpop.f32.mrf.mxu0  ;;  %v759_v23 = vpop.f32.mrf.mxu1 }
 0x125   : > { %986 = vmatmul.bf16.gmra.mxu2 %v842_v9  ;;  %1075 = vmatmul.bf16.gmra.mxu3 %v842_v9  ;;  %v671_v55 = vadd.f32 %v7765_v6, %v670_v12 }
 0x126   : > { %2044 = vperm.xlu2 %7149, %v6444_v24   ;;  %2216 = vperm.xlu1 %7148, %v6459_v14  }
 0x127   : > { %2211 = vperm.xlu0 %7147, %v6458_v33   ;;  %v760_v22 = vadd.f32 %v759_v23, %v671_v55  ;;  %v6445_v23 = vld [vmem:[%s10978_s6 + $0x2e8] sm:$0xff] }
 0x128   : > { %v8036_v46 = vpop.permute.xlu2 %1939  ;;  %v8038_v47 = vpop.permute.xlu1 %1727 }
 0x129   : > { %11213 = vst [vmem:[#allocation56_spill] sm:$0xff] %v8036_v46  ;;  %v8041_v61 = vpop.permute.xlu0 %1722  ;;  %v818_v33 = vmax.f32 %v760_v22, 0.0  ;;  %v6466_v22 = vld [vmem:[%s10978_s6 + $0x390] sm:$0xff] }
 0x12a   : > { %11214 = vst [vmem:[#allocation57_spill] sm:$0xff] %v8038_v47 }
 0x12b   : > { %11215 = vst [vmem:[#allocation58_spill] sm:$0xff] %v8041_v61 }
 0x12c   : > { %v672_v9 = vpop.f32.mrf.mxu0  ;;  %v761_v59 = vpop.f32.mrf.mxu1 }
 0x12d   : > { %v673_v54 = vadd.f32 %v7765_v6, %v672_v9 }
 0x12e   : > { %2231 = vperm.xlu2 %7149, %v6462_v30   ;;  %2226 = vperm.xlu1 %7148, %v6461_v50   ;;  %v6463_v50 = vld [vmem:[%s10978_s6 + $0x378] sm:$0xff] }
 0x12f   : > { %v762_v24 = vadd.f32 %v761_v59, %v673_v54  ;;  %2221 = vperm.xlu0 %7147, %v6460_v57   ;;  %v6446_v54 = vld [vmem:[%s10978_s6 + $0x2f0] sm:$0xff] }
 0x130   : > { %v8053_v14 = vpop.permute.xlu2 %1954  ;;  %v8055_v12 = vpop.permute.xlu1 %1904 }
 0x131   : > { %11216 = vst [vmem:[#allocation59_spill] sm:$0xff] %v8053_v14  ;;  %v819_v61 = vmax.f32 %v762_v24, 0.0  ;;  %v8057_v47 = vpop.permute.xlu0 %1737 }
 0x132   : > { %11217 = vst [vmem:[#allocation60_spill] sm:$0xff] %v8057_v47 }
 0x133   : > { %v843_v36 = vpack.c.bf16 %v819_v61, %v818_v33 }
 0x134   : > { %v675_v55 = vpop.f32.mrf.mxu0  ;;  %v764_v30 = vpop.f32.mrf.mxu1 }
 0x135   : > { %991 = vmatmul.bf16.gmra.mxu2 %v843_v36  ;;  %1080 = vmatmul.bf16.gmra.mxu3 %v843_v36  ;;  %v676_v59 = vadd.f32 %v7765_v6, %v675_v55  ;;  %v8085_v55 = vpop.f32.mrf.mxu2 }
 0x136   : > { %2241 = vperm.xlu2 %7149, %v6464_v17   ;;  %2049 = vperm.xlu1 %7148, %v6445_v23   ;;  %v6465_v17 = vld [vmem:[%s10978_s6 + $0x388] sm:$0xff] }
 0x137   : > { %2236 = vperm.xlu0 %7147, %v6463_v50   ;;  %v765_v24 = vadd.f32 %v764_v30, %v676_v59  ;;  %v6481_v30 = vld [vmem:[%s10978_s6 + $0x508] sm:$0xff]  ;;  %v6480_v59 = vld [vmem:[%s10978_s6 + $0x500] sm:$0xff] }
 0x138   : > { %v8068_v61 = vpop.permute.xlu2 %1969  ;;  %v8070_v9 = vpop.permute.xlu1 %1919 }
 0x139   : > { %11218 = vst [vmem:[#allocation61_spill] sm:$0xff] %v8068_v61  ;;  %v8073_v57 = vpop.permute.xlu0 %1914  ;;  %v820_v14 = vmax.f32 %v765_v24, 0.0 }
 0x13c   : > { %v677_v36 = vpop.f32.mrf.mxu0  ;;  %v766_v23 = vpop.f32.mrf.mxu1 }
 0x13d   : > { %v678_v33 = vadd.f32 %v7765_v6, %v677_v36 }
 0x13e   : > { %2251 = vperm.xlu2 %7149, %v6466_v22   ;;  %2054 = vperm.xlu1 %7148, %v6446_v54   ;;  %v6467_v22 = vld [vmem:[%s10978_s6 + $0x398] sm:$0xff]  ;;  %v683_v54 = vadd.f32 %v7765_v6, %v7799_v39  ;;  %v6468_v39 = vld [vmem:[%s10978_s6 + $0x3a0] sm:$0xff] }
 0x13f   : > { %v767_v50 = vadd.f32 %v766_v23, %v678_v33  ;;  %2246 = vperm.xlu0 %7147, %v6465_v17   ;;  %v6469_v33 = vld [vmem:[%s10978_s6 + $0x3a8] sm:$0xff]  ;;  %v822_v23 = vmax.f32 %v7785_v25, 0.0  ;;  %v6483_v25 = vld [vmem:[%s10978_s6 + $0x518] sm:$0xff] }
 0x140   : > { %v8087_v47 = vpop.permute.xlu2 %1984  ;;  %v8089_v61 = vpop.permute.xlu1 %1934  ;;  %v772_v24 = vadd.f32 %v7801_v40, %v683_v54 }
 0x141   : > { %11219 = vst [vmem:[#allocation62_spill] sm:$0xff] %v8087_v47  ;;  %v821_v27 = vmax.f32 %v767_v50, 0.0  ;;  %v8091_v43 = vpop.permute.xlu0 %1929 }
 0x142   : > { %11220 = vst [vmem:[#allocation63_spill] sm:$0xff] %v8089_v61  ;;  %v823_v50 = vmax.f32 %v772_v24, 0.0  ;;  %v688_v24 = vadd.f32 %v7765_v6, %v7838_v26  ;;  %v6484_v26 = vld [vmem:[%s10978_s6 + $0x520] sm:$0xff] }
 0x143   : > { %11221 = vst [vmem:[#allocation64_spill] sm:$0xff] %v8091_v43  ;;  %v844_v15 = vpack.c.bf16 %v821_v27, %v820_v14 }
 0x144   : > { %v845_v54 = vpack.c.bf16 %v823_v50, %v822_v23 }
 0x145   : > { %996 = vmatmul.bf16.gmra.mxu2 %v844_v15  ;;  %1085 = vmatmul.bf16.gmra.mxu3 %v844_v15  ;;  %v6482_v15 = vld [vmem:[%s10978_s6 + $0x510] sm:$0xff] }
 0x146   : > { %2455 = vperm.xlu2 %7149, %v6481_v30   ;;  %2450 = vperm.xlu1 %7148, %v6480_v59  }
 0x147   : > { %2256 = vperm.xlu0 %7147, %v6467_v22  }
 0x148   : > { %v8104_v27 = vpop.f32.mrf.mxu2  ;;  %v8106_v14 = vpop.permute.xlu2 %1999 }
 0x149   : > { %11222 = vst [vmem:[#allocation65_spill] sm:$0xff] %v8106_v14  ;;  %v8108_v36 = vpop.permute.xlu1 %1949  ;;  %v8110_v17 = vpop.permute.xlu0 %1944  ;;  %v6471_v14 = vld [vmem:[%s10978_s6 + $0x3b8] sm:$0xff] }
 0x14a   : > { %11223 = vst [vmem:[#allocation66_spill] sm:$0xff] %v8108_v36 }
 0x14b   : > { %11224 = vst [vmem:[#allocation67_spill] sm:$0xff] %v8110_v17  ;;  %v6477_v17 = vld [vmem:[%s10978_s6 + $0x3e8] sm:$0xff] }
 0x14e   : > { %2460 = vperm.xlu2 %7149, %v6482_v15   ;;  %2266 = vperm.xlu1 %7148, %v6469_v33   ;;  %v6470_v15 = vld [vmem:[%s10978_s6 + $0x3b0] sm:$0xff] }
 0x14f   : > { %2261 = vperm.xlu0 %7147, %v6468_v39  }
 0x150   : > { %v8123_v30 = vpop.f32.mrf.mxu2  ;;  %v8125_v40 = vpop.permute.xlu2 %2014 }
 0x151   : > { %11225 = vst [vmem:[#allocation68_spill] sm:$0xff] %v8125_v40  ;;  %v8127_v59 = vpop.permute.xlu1 %1964  ;;  %v8129_v22 = vpop.permute.xlu0 %1959  ;;  %v777_v40 = vadd.f32 %v7840_v32, %v688_v24 }
 0x152   : > { %11226 = vst [vmem:[#allocation69_spill] sm:$0xff] %v8127_v59  ;;  %v6487_v59 = vld [vmem:[%s10978_s6 + $0x538] sm:$0xff] }
 0x153   : > { %11227 = vst [vmem:[#allocation70_spill] sm:$0xff] %v8129_v22 }
 0x155   : > { %1001 = vmatmul.bf16.gmra.mxu2 %v845_v54  ;;  %1090 = vmatmul.bf16.gmra.mxu3 %v845_v54  ;;  %v6472_v54 = vld [vmem:[%s10978_s6 + $0x3c0] sm:$0xff] }
 0x156   : > { %2276 = vperm.xlu2 %7149, %v6471_v14   ;;  %2271 = vperm.xlu1 %7148, %v6470_v15   ;;  %v6485_v14 = vld [vmem:[%s10978_s6 + $0x528] sm:$0xff]  ;;  %v824_v15 = vmax.f32 %v7824_v11, 0.0 }
 0x157   : > { %2465 = vperm.xlu0 %7147, %v6483_v25   ;;  %v825_v25 = vmax.f32 %v777_v40, 0.0  ;;  %v6473_v11 = vld [vmem:[%s10978_s6 + $0x3c8] sm:$0xff]  ;;  %v8178_v40 = vpop.f32.mrf.mxu3 }
 0x158   : > { %v8142_v33 = vpop.f32.mrf.mxu2  ;;  %v8144_v39 = vpop.permute.xlu2 %2161 }
 0x159   : > { %v8146_v23 = vpop.permute.xlu1 %1979  ;;  %v8148_v50 = vpop.permute.xlu0 %1974 }
 0x15a   : > { %11228 = vst [vmem:[#allocation71_spill] sm:$0xff] %v8146_v23  ;;  %v846_v23 = vpack.c.bf16 %v825_v25, %v824_v15 }
 0x15b   : > { %11229 = vst [vmem:[#allocation72_spill] sm:$0xff] %v8148_v50 }
 0x15e   : > { %2281 = vperm.xlu2 %7149, %v6472_v54   ;;  %2475 = vperm.xlu1 %7148, %v6485_v14   ;;  %v6486_v54 = vld [vmem:[%s10978_s6 + $0x530] sm:$0xff]  ;;  %v693_v14 = vadd.f32 %v7765_v6, %v7877_v48 }
 0x15f   : > { %2470 = vperm.xlu0 %7147, %v6484_v26   ;;  %v6474_v48 = vld [vmem:[%s10978_s6 + $0x3d0] sm:$0xff] }
 0x160   : > { %v8161_v47 = vpop.f32.mrf.mxu2  ;;  %v8163_v32 = vpop.permute.xlu2 %2176 }
 0x161   : > { %v8165_v24 = vpop.permute.xlu1 %1994  ;;  %v8167_v50 = vpop.permute.xlu0 %1989 }
 0x162   : > { %11230 = vst [vmem:[#allocation73_spill] sm:$0xff] %v8165_v24 }
 0x163   : > { %11231 = vst [vmem:[#allocation74_spill] sm:$0xff] %v8167_v50  ;;  %v782_v50 = vadd.f32 %v7879_v56, %v693_v14 }
 0x165   : > { %1006 = vmatmul.bf16.gmra.mxu2 %v846_v23  ;;  %1095 = vmatmul.bf16.gmra.mxu3 %v846_v23  ;;  %v6488_v23 = vld [vmem:[%s10978_s6 + $0x540] sm:$0xff] }
 0x166   : > { %2485 = vperm.xlu2 %7149, %v6487_v59   ;;  %2480 = vperm.xlu1 %7148, %v6486_v54   ;;  %v6475_v59 = vld [vmem:[%s10978_s6 + $0x3d8] sm:$0xff]  ;;  %v8200_v54 = vpop.f32.mrf.mxu3 }
 0x167   : > { %2286 = vperm.xlu0 %7147, %v6473_v11   ;;  %11235 = vst [vmem:[#allocation78_spill] sm:$0xff] %v8200_v54  ;;  %v826_v11 = vmax.f32 %v7863_v10, 0.0  ;;  %v6489_v10 = vld [vmem:[%s10978_s6 + $0x548] sm:$0xff] }
 0x168   : > { %v8182_v26 = vpop.f32.mrf.mxu2  ;;  %v8184_v15 = vpop.permute.xlu2 %2186 }
 0x169   : > { %11232 = vst [vmem:[#allocation75_spill] sm:$0xff] %v8184_v15  ;;  %v8186_v25 = vpop.permute.xlu1 %2009  ;;  %v8188_v24 = vpop.permute.xlu0 %2004 }
 0x16a   : > { %11233 = vst [vmem:[#allocation76_spill] sm:$0xff] %v8186_v25 }
 0x16b   : > { %11234 = vst [vmem:[#allocation77_spill] sm:$0xff] %v8188_v24  ;;  %v827_v24 = vmax.f32 %v782_v50, 0.0  ;;  %v698_v50 = vadd.f32 %v7765_v6, %v7916_v1  ;;  %v6491_v1 = vld [vmem:[%s10978_s6 + $0x558] sm:$0xff] }
 0x16d   : > { %v847_v16 = vpack.c.bf16 %v827_v24, %v826_v11 }
 0x16e   : > { %2490 = vperm.xlu2 %7149, %v6488_v23   ;;  %2296 = vperm.xlu1 %7148, %v6475_v59   ;;  %v6476_v23 = vld [vmem:[%s10978_s6 + $0x3e0] sm:$0xff]  ;;  %v8222_v24 = vpop.f32.mrf.mxu3 }
 0x16f   : > { %2291 = vperm.xlu0 %7147, %v6474_v48   ;;  %11239 = vst [vmem:[#allocation82_spill] sm:$0xff] %v8222_v24 }
 0x170   : > { %v8203_v56 = vpop.f32.mrf.mxu2  ;;  %v8205_v14 = vpop.permute.xlu2 %2196 }
 0x171   : > { %11236 = vst [vmem:[#allocation79_spill] sm:$0xff] %v8205_v14  ;;  %v8207_v25 = vpop.permute.xlu1 %2024  ;;  %v8209_v22 = vpop.permute.xlu0 %2019 }
 0x172   : > { %11237 = vst [vmem:[#allocation80_spill] sm:$0xff] %v8207_v25  ;;  %v787_v25 = vadd.f32 %v7918_v5, %v698_v50 }
 0x173   : > { %11238 = vst [vmem:[#allocation81_spill] sm:$0xff] %v8209_v22 }
 0x175   : > { %1011 = vmatmul.bf16.gmra.mxu2 %v847_v16  ;;  %1100 = vmatmul.bf16.gmra.mxu3 %v847_v16  ;;  %v6447_v16 = vld [vmem:[%s10978_s6 + $0x2f8] sm:$0xff] }
 0x176   : > { %2306 = vperm.xlu2 %7149, %v6477_v17   ;;  %2301 = vperm.xlu1 %7148, %v6476_v23   ;;  %v6490_v17 = vld [vmem:[%s10978_s6 + $0x550] sm:$0xff]  ;;  %v828_v23 = vmax.f32 %v7902_v44, 0.0  ;;  %v6479_v44 = vld [vmem:[%s10978_s6 + $0x3f8] sm:$0xff] }
 0x177   : > { %2495 = vperm.xlu0 %7147, %v6489_v10   ;;  %v829_v10 = vmax.f32 %v787_v25, 0.0  ;;  %v6478_v25 = vld [vmem:[%s10978_s6 + $0x3f0] sm:$0xff] }
 0x178   : > { %v8224_v59 = vpop.f32.mrf.mxu2  ;;  %v8226_v48 = vpop.permute.xlu2 %2039 }
 0x179   : > { %11240 = vst [vmem:[#allocation83_spill] sm:$0xff] %v8226_v48  ;;  %v8228_v11 = vpop.permute.xlu1 %2171  ;;  %v8230_v54 = vpop.permute.xlu0 %2166  ;;  %v848_v36 = vpack.c.bf16 %v829_v10, %v828_v23 }
 0x17a   : > { %v8249_v48 = vpop.f32.mrf.mxu3 }
 0x17b   : > { %11243 = vst [vmem:[#allocation86_spill] sm:$0xff] %v8249_v48 }
 0x17e   : > { %2059 = vperm.xlu2 %7149, %v6447_v16   ;;  %2505 = vperm.xlu1 %7148, %v6491_v1   ;;  %v6492_v16 = vld [vmem:[%s10978_s6 + $0x560] sm:$0xff]  ;;  %v703_v1 = vadd.f32 %v7765_v6, %v7955_v34 }
 0x17f   : > { %2500 = vperm.xlu0 %7147, %v6490_v17  }
 0x180   : > { %v8243_v24 = vpop.f32.mrf.mxu2  ;;  %v8245_v5 = vpop.permute.xlu2 %2044 }
 0x181   : > { %11241 = vst [vmem:[#allocation84_spill] sm:$0xff] %v8245_v5  ;;  %v8247_v50 = vpop.permute.xlu1 %2181  ;;  %v8251_v22 = vpop.permute.xlu0 %2029  ;;  %v792_v5 = vadd.f32 %v7957_v35, %v703_v1 }
 0x182   : > { %11242 = vst [vmem:[#allocation85_spill] sm:$0xff] %v8247_v50  ;;  %v8279_v34 = vpop.f32.mrf.mxu3 }
 0x183   : > { %11244 = vst [vmem:[#allocation87_spill] sm:$0xff] %v8251_v22 }
 0x184   : > { %11248 = vst [vmem:[#allocation91_spill] sm:$0xff] %v8279_v34  ;;  %v6494_v34 = vld [vmem:[%s10978_s6 + $0x570] sm:$0xff] }
 0x185   : > { %1016 = vmatmul.bf16.gmra.mxu2 %v848_v36  ;;  %1105 = vmatmul.bf16.gmra.mxu3 %v848_v36  ;;  %v6513_v36 = vld [vmem:[%s10978_s6 + $0x608] sm:$0xff] }
 0x186   : > { %2510 = vperm.xlu2 %7149, %v6492_v16   ;;  %2316 = vperm.xlu1 %7148, %v6479_v44   ;;  %v6512_v16 = vld [vmem:[%s10978_s6 + $0x600] sm:$0xff]  ;;  %v6493_v44 = vld [vmem:[%s10978_s6 + $0x568] sm:$0xff] }
 0x187   : > { %2311 = vperm.xlu0 %7147, %v6478_v25   ;;  %v830_v25 = vmax.f32 %v7941_v45, 0.0  ;;  %v6544_v45 = vld [vmem:[%s10978_s6 + $0x700] sm:$0xff] }
 0x188   : > { %v8264_v17 = vpop.f32.mrf.mxu2  ;;  %v8266_v23 = vpop.permute.xlu2 %2231 }
 0x189   : > { %11245 = vst [vmem:[#allocation88_spill] sm:$0xff] %v8266_v23  ;;  %v8268_v10 = vpop.permute.xlu1 %2191  ;;  %v8270_v48 = vpop.permute.xlu0 %2034 }
 0x18a   : > { %11246 = vst [vmem:[#allocation89_spill] sm:$0xff] %v8268_v10 }
 0x18b   : > { %11247 = vst [vmem:[#allocation90_spill] sm:$0xff] %v8270_v48  ;;  %v831_v48 = vmax.f32 %v792_v5, 0.0  ;;  %v8302_v5 = vpop.f32.mrf.mxu3 }
 0x18c   : > { %11252 = vst [vmem:[#allocation95_spill] sm:$0xff] %v8302_v5 }
 0x18d   : > { %v849_v28 = vpack.c.bf16 %v831_v48, %v830_v25  ;;  %v708_v48 = vadd.f32 %v7765_v6, %v7994_v58  ;;  %v6495_v58 = vld [vmem:[%s10978_s6 + $0x578] sm:$0xff] }
 0x18e   : > { %2712 = vperm.xlu2 %7149, %v6513_v36   ;;  %2707 = vperm.xlu1 %7148, %v6512_v16   ;;  %v6545_v36 = vld [vmem:[%s10978_s6 + $0x708] sm:$0xff] }
 0x18f   : > { %2515 = vperm.xlu0 %7147, %v6493_v44  }
 0x190   : > { %v8285_v35 = vpop.f32.mrf.mxu2  ;;  %v8287_v1 = vpop.permute.xlu2 %2241 }
 0x191   : > { %11249 = vst [vmem:[#allocation92_spill] sm:$0xff] %v8287_v1  ;;  %v8289_v22 = vpop.permute.xlu1 %2206  ;;  %v8291_v23 = vpop.permute.xlu0 %2201 }
 0x192   : > { %11250 = vst [vmem:[#allocation93_spill] sm:$0xff] %v8289_v22  ;;  %v6546_v22 = vld [vmem:[%s10978_s6 + $0x710] sm:$0xff] }
 0x193   : > { %11251 = vst [vmem:[#allocation94_spill] sm:$0xff] %v8291_v23  ;;  %v797_v23 = vadd.f32 %v7996_v0, %v708_v48  ;;  %v8325_v5 = vpop.f32.mrf.mxu3 }
 0x194   : > { %11256 = vst [vmem:[#allocation99_spill] sm:$0xff] %v8325_v5 }
 0x195   : > { %1021 = vmatmul.bf16.gmra.mxu2 %v849_v28  ;;  %1110 = vmatmul.bf16.gmra.mxu3 %v849_v28  ;;  %v6577_v28 = vld [vmem:[%s10978_s6 + $0x808] sm:$0xff] }
 0x196   : > { %2520 = vperm.xlu2 %7149, %v6494_v34   ;;  %2969 = vperm.xlu1 %7148, %v6545_v36   ;;  %v6576_v34 = vld [vmem:[%s10978_s6 + $0x800] sm:$0xff]  ;;  %v832_v36 = vmax.f32 %v7980_v31, 0.0  ;;  %v6515_v31 = vld [vmem:[%s10978_s6 + $0x618] sm:$0xff] }
 0x197   : > { %2964 = vperm.xlu0 %7147, %v6544_v45   ;;  %v833_v45 = vmax.f32 %v797_v23, 0.0  ;;  %v6514_v23 = vld [vmem:[%s10978_s6 + $0x610] sm:$0xff] }
 0x198   : > { %v8306_v16 = vpop.f32.mrf.mxu2  ;;  %v8308_v44 = vpop.permute.xlu2 %2251 }
 0x199   : > { %11253 = vst [vmem:[#allocation96_spill] sm:$0xff] %v8308_v44  ;;  %v8310_v25 = vpop.permute.xlu1 %2216  ;;  %v8312_v1 = vpop.permute.xlu0 %2211 }
 0x19a   : > { %11254 = vst [vmem:[#allocation97_spill] sm:$0xff] %v8310_v25  ;;  %v850_v25 = vpack.c.bf16 %v833_v45, %v832_v36 }
 0x19b   : > { %11255 = vst [vmem:[#allocation98_spill] sm:$0xff] %v8312_v1 }
 0x19e   : > { %3226 = vperm.xlu2 %7149, %v6577_v28   ;;  %3221 = vperm.xlu1 %7148, %v6576_v34   ;;  %v713_v28 = vadd.f32 %v7765_v6, %v8085_v55  ;;  %v8347_v34 = vld [vmem:[%s10977_s5 + $0x1] ss:$0 sm:$0xff]  ;;  %v8362_v55 = vpop.f32.mrf.mxu3 }
 0x19f   : > { %2525 = vperm.xlu0 %7147, %v6495_v58   ;;  %v1130_v36 = vadd.f32 %v8347_v34, %v8142_v33  ;;  %v1129_v6 = vadd.f32 %v8347_v34, %v8123_v30  ;;  %11261 = vst [vmem:[#allocation104_spill] sm:$0xff] %v8362_v55  ;;  %v6496_v33 = vld [vmem:[%s10978_s6 + $0x580] sm:$0xff]  ;;  %v834_v30 = vmax.f32 %v8019_v52, 0.0 }
 0x1a0   : > { %v8327_v0 = vpop.f32.mrf.mxu2  ;;  %v2456_v48 = vpop.permute.xlu2 %2455 }
 0x1a1   : > { %v8329_v44 = vpop.permute.xlu1 %2226  ;;  %v8331_v1 = vpop.permute.xlu0 %2221  ;;  %v8378_v55 = vmax.f32 %v1129_v6, 0.0  ;;  %v6579_v6 = vld [vmem:[%s10978_s6 + $0x818] sm:$0xff] }
 0x1a2   : > { %11257 = vst [vmem:[#allocation100_spill] sm:$0xff] %v8329_v44 }
 0x1a3   : > { %11258 = vst [vmem:[#allocation101_spill] sm:$0xff] %v8331_v1 }
 0x1a4   : > { %11263 = vst [vmem:[#allocation106_spill] sm:$0xff] %v8378_v55 }
 0x1a5   : > { %1026 = vmatmul.bf16.gmra.mxu2 %v850_v25  ;;  %1115 = vmatmul.bf16.gmra.mxu3 %v850_v25  ;;  %v802_v25 = vadd.f32 %v8178_v40, %v713_v28  ;;  %v1128_v28 = vadd.f32 %v8347_v34, %v8104_v27 }
 0x1a6   : > { %2974 = vperm.xlu2 %7149, %v6546_v22   ;;  %2722 = vperm.xlu1 %7148, %v6515_v31   ;;  %v6497_v31 = vld [vmem:[%s10978_s6 + $0x588] sm:$0xff] }
 0x1a7   : > { %2717 = vperm.xlu0 %7147, %v6514_v23   ;;  %v1256_v23 = vlaneseq  ;;  %v835_v40 = vmax.f32 %v802_v25, 0.0  ;;  %v8391_v52 = vmax.f32 %v1128_v28, 0.0  ;;  %v1805_v25 = vrot.slane %v8378_v55, 1 }
 0x1a8   : > { %v8349_v58 = vpop.f32.mrf.mxu2  ;;  %v8353_v45 = vpop.permute.xlu2 %2460 }
 0x1a9   : > { %v8355_v5 = vpop.permute.xlu1 %2049  ;;  %v8357_v22 = vpop.permute.xlu0 %2236  ;;  %v8380_v1 = vshrl.u32 %v1256_v23, 7  ;;  %11267 = vst [vmem:[#allocation110_spill] sm:$0xff] %v8391_v52  ;;  %v851_v27 = vpack.c.bf16 %v835_v40, %v834_v30  ;;  %v10981_v40 = vrot.slane %v8391_v52, 1 }
 0x1aa   : > { %11259 = vst [vmem:[#allocation102_spill] sm:$0xff] %v8355_v5  ;;  %v6547_v5 = vld [vmem:[%s10978_s6 + $0x718] sm:$0xff]  ;;  %v8404_v23 = vpop.f32.mrf.mxu3 }
 0x1ab   : > { %11260 = vst [vmem:[#allocation103_spill] sm:$0xff] %v8357_v22  ;;  %v8373_v22 = vmax.f32 %v1130_v36, 0.0  ;;  %vm1836_vm0 = vcmp.lt.s32.totalorder %v8380_v1, 7  ;;  %vm1258_vm1 = vcmp.lt.s32.totalorder %v8380_v1, 1 }
 0x1ac   : > { %11268 = vst [vmem:[#allocation111_spill] sm:$0xff] %v8404_v23  ;;  %v8420_v23 = vsel %vm1836_vm0, %v10981_v40, %v1805_v25 }
 0x1ad   : > { %11262 = vst [vmem:[#allocation105_spill] sm:$0xff] %v8373_v22  ;;  %v1806_v7 = vrot.slane %v8373_v22, 1 }
 0x1ae   : > { %2535 = vperm.xlu2 %7149, %v6497_v31   ;;  %2530 = vperm.xlu1 %7148, %v6496_v33   ;;  %v6578_v33 = vld [vmem:[%s10978_s6 + $0x810] sm:$0xff]  ;;  %11271 = vst [vmem:[#allocation114_spill] sm:$0xff] %v8420_v23 }
 0x1af   : > { %2979 = vperm.xlu0 %7147, %v6547_v5   ;;  %v6516_v5 = vld [vmem:[%s10978_s6 + $0x620] sm:$0xff]  ;;  %v8408_v28 = vsel %vm1836_vm0, %v1805_v25, %v1806_v7  ;;  %v6517_v25 = vld [vmem:[%s10978_s6 + $0x628] sm:$0xff] }
 0x1b0   : > { %v8382_v44 = vpop.f32.mrf.mxu2  ;;  %v8385_v60 = vpop.permute.xlu2 %2276  ;;  %11269 = vst [vmem:[#allocation112_spill] sm:$0xff] %v8408_v28  ;;  %v2609_v30 = vmul.f32 %v2456_v48, %v8408_v28 }
 0x1b1   : > { %11264 = vst [vmem:[#allocation107_spill] sm:$0xff] %v8385_v60  ;;  %v8387_v36 = vpop.permute.xlu1 %2054  ;;  %v8389_v31 = vpop.permute.xlu0 %2246 }
 0x1b2   : > { %11265 = vst [vmem:[#allocation108_spill] sm:$0xff] %v8387_v36  ;;  %v2641_v48 = vpack.c.bf16 %v2609_v30, %v2609_v30 }
 0x1b3   : > { %11266 = vst [vmem:[#allocation109_spill] sm:$0xff] %v8389_v31 }
 0x1b5   : > { %1031 = vmatmul.bf16.gmra.mxu2 %v851_v27  ;;  %1120 = vmatmul.bf16.gmra.mxu3 %v851_v27  ;;  %v1131_v27 = vadd.f32 %v8347_v34, %v8161_v47  ;;  %v1132_v47 = vadd.f32 %v8347_v34, %v8182_v26 }
 0x1b6   : > { %2727 = vperm.xlu2 %7149, %v6516_v5   ;;  %3236 = vperm.xlu1 %7148, %v6579_v6  }
 0x1b7   : > { %3231 = vperm.xlu0 %7147, %v6578_v33   ;;  %v6549_v33 = vld [vmem:[%s10978_s6 + $0x728] sm:$0xff]  ;;  %v8436_v40 = vmax.f32 %v1131_v27, 0.0  ;;  %v8450_v27 = vmax.f32 %v1132_v47, 0.0 }
 0x1b8   : > { %v8412_v36 = vpop.f32.mrf.mxu2  ;;  %v8414_v60 = vpop.permute.xlu2 %2281 }
 0x1b9   : > { %11270 = vst [vmem:[#allocation113_spill] sm:$0xff] %v8414_v60  ;;  %v2451_v31 = vpop.permute.xlu1 %2450  ;;  %v8425_v6 = vpop.permute.xlu0 %2256  ;;  %v6548_v60 = vld [vmem:[%s10978_s6 + $0x720] sm:$0xff]  ;;  %v1807_v10 = vrot.slane %v8436_v40, 1 }
 0x1ba   : > { %v2608_v5 = vmul.f32 %v2451_v31, %v8420_v23  ;;  %11272 = vst [vmem:[#allocation115_spill] sm:$0xff] %v8425_v6  ;;  %v8440_v31 = vunpack.c.l.b16 %v2641_v48  ;;  %v6498_v48 = vld [vmem:[%s10978_s6 + $0x590] sm:$0xff]  ;;  %v1808_v6 = vrot.slane %v8450_v27, 1 }
 0x1bb   : > { %11273 = vst [vmem:[#allocation116_spill] sm:$0xff] %v8436_v40  ;;  %v8470_v47 = vsel %vm1836_vm0, %v1806_v7, %v1807_v10 }
 0x1bc   : > { %v2640_v38 = vpack.c.bf16 %v2608_v5, %v2608_v5  ;;  %11274 = vst [vmem:[#allocation117_spill] sm:$0xff] %v8440_v31 }
 0x1bd   : > { %11277 = vst [vmem:[#allocation120_spill] sm:$0xff] %v8450_v27 }
 0x1be   : > { %v8442_v30 = vunpack.c.l.b16 %v2640_v38  ;;  %2989 = vperm.xlu2 %7149, %v6549_v33   ;;  %2984 = vperm.xlu1 %7148, %v6548_v60   ;;  %v6580_v38 = vld [vmem:[%s10978_s6 + $0x820] sm:$0xff]  ;;  %v6499_v60 = vld [vmem:[%s10978_s6 + $0x598] sm:$0xff]  ;;  %v1134_v33 = vadd.f32 %v8347_v34, %v8224_v59  ;;  %11279 = vst [vmem:[#allocation122_spill] sm:$0xff] %v8470_v47  ;;  %v1136_v59 = vadd.f32 %v8347_v34, %v8264_v17 }
 0x1bf   : > { %2732 = vperm.xlu0 %7147, %v6517_v25   ;;  %v1133_v25 = vadd.f32 %v8347_v34, %v8203_v56  ;;  %v6519_v17 = vld [vmem:[%s10978_s6 + $0x638] sm:$0xff] }
 0x1c0   : > { %11275 = vst [vmem:[#allocation118_spill] sm:$0xff] %v8442_v30  ;;  %v8446_v5 = vpop.f32.mrf.mxu2  ;;  %v2486_v14 = vpop.permute.xlu2 %2485  ;;  %v2610_v30 = vmul.f32 %v8353_v45, %v8470_v47  ;;  %v1135_v45 = vadd.f32 %v8347_v34, %v8243_v24 }
 0x1c1   : > { %v8448_v61 = vpop.permute.xlu1 %2266  ;;  %v8453_v26 = vpop.permute.xlu0 %2261  ;;  %v8485_v7 = vmax.f32 %v1133_v25, 0.0  ;;  %v6518_v25 = vld [vmem:[%s10978_s6 + $0x630] sm:$0xff] }
 0x1c2   : > { %11276 = vst [vmem:[#allocation119_spill] sm:$0xff] %v8448_v61 }
 0x1c3   : > { %11278 = vst [vmem:[#allocation121_spill] sm:$0xff] %v8453_v26  ;;  %v8477_v26 = vmax.f32 %v1134_v33, 0.0 }
 0x1c4   : > { %11282 = vst [vmem:[#allocation125_spill] sm:$0xff] %v8485_v7 }
 0x1c5   : > { %11280 = vst [vmem:[#allocation123_spill] sm:$0xff] %v8477_v26  ;;  %v1810_v24 = vrot.slane %v8477_v26, 1 }
 0x1c6   : > { %3241 = vperm.xlu2 %7149, %v6580_v38   ;;  %2545 = vperm.xlu1 %7148, %v6499_v60   ;;  %v8489_v60 = vsel %vm1836_vm0, %v1807_v10, %v1808_v6  ;;  %v8503_v10 = vmax.f32 %v1136_v59, 0.0  ;;  %v6500_v59 = vld [vmem:[%s10978_s6 + $0x5a0] sm:$0xff] }
 0x1c7   : > { %2540 = vperm.xlu0 %7147, %v6498_v48   ;;  %v2642_v48 = vpack.c.bf16 %v2610_v30, %v2610_v30  ;;  %v1809_v30 = vrot.slane %v8485_v7, 1 }
 0x1c8   : > { %v8475_v31 = vpop.f32.mrf.mxu2  ;;  %v8481_v56 = vpop.permute.xlu2 %2490  ;;  %11283 = vst [vmem:[#allocation126_spill] sm:$0xff] %v8503_v10  ;;  %v1812_v51 = vrot.slane %v8503_v10, 1 }
 0x1c9   : > { %v8483_v61 = vpop.permute.xlu1 %2271  ;;  %v2466_v38 = vpop.permute.xlu0 %2465  ;;  %v8509_v46 = vunpack.c.l.b16 %v2642_v48 }
 0x1ca   : > { %11281 = vst [vmem:[#allocation124_spill] sm:$0xff] %v8483_v61  ;;  %v2611_v33 = vmul.f32 %v2466_v38, %v8489_v60  ;;  %v6581_v61 = vld [vmem:[%s10978_s6 + $0x828] sm:$0xff]  ;;  %v8507_v38 = vmax.f32 %v1135_v45, 0.0 }
 0x1cb   : > { %11285 = vst [vmem:[#allocation128_spill] sm:$0xff] %v8509_v46  ;;  %v6551_v46 = vld [vmem:[%s10978_s6 + $0x738] sm:$0xff] }
 0x1cc   : > { %v2643_v4 = vpack.c.bf16 %v2611_v33, %v2611_v33  ;;  %11284 = vst [vmem:[#allocation127_spill] sm:$0xff] %v8507_v38 }
 0x1ce   : > { %2742 = vperm.xlu2 %7149, %v6519_v17   ;;  %2737 = vperm.xlu1 %7148, %v6518_v25   ;;  %v8511_v3 = vunpack.c.l.b16 %v2643_v4  ;;  %v8522_v25 = vsel %vm1836_vm0, %v1809_v30, %v1810_v24  ;;  %v8527_v4 = vsel %vm1836_vm0, %v1808_v6, %v1809_v30 }
 0x1cf   : > { %3246 = vperm.xlu0 %7147, %v6581_v61   ;;  %v1811_v61 = vrot.slane %v8507_v38, 1 }
 0x1d0   : > { %11286 = vst [vmem:[#allocation129_spill] sm:$0xff] %v8511_v3  ;;  %v8513_v13 = vpop.f32.mrf.mxu2  ;;  %v8518_v33 = vpop.permute.xlu2 %2306 }
 0x1d1   : > { %11287 = vst [vmem:[#allocation130_spill] sm:$0xff] %v8518_v33  ;;  %v2476_v17 = vpop.permute.xlu1 %2475  ;;  %v2471_v48 = vpop.permute.xlu0 %2470  ;;  %v8542_v6 = vsel %vm1836_vm0, %v1811_v61, %v1812_v51 }
 0x1d2   : > { %v2613_v45 = vmul.f32 %v2476_v17, %v8522_v25  ;;  %v2612_v10 = vmul.f32 %v2471_v48, %v8527_v4  ;;  %v6550_v17 = vld [vmem:[%s10978_s6 + $0x730] sm:$0xff]  ;;  %11288 = vst [vmem:[#allocation131_spill] sm:$0xff] %v8542_v6  ;;  %v2615_v48 = vmul.f32 %v2486_v14, %v8542_v6 }
 0x1d4   : > { %v2645_v3 = vpack.c.bf16 %v2613_v45, %v2613_v45  ;;  %v2644_v30 = vpack.c.bf16 %v2612_v10, %v2612_v10  ;;  %v8557_v10 = vsel %vm1836_vm0, %v1810_v24, %v1811_v61  ;;  %v2647_v14 = vpack.c.bf16 %v2615_v48, %v2615_v48  ;;  %v6501_v24 = vld [vmem:[%s10978_s6 + $0x5a8] sm:$0xff] }
 0x1d5   : > { %11292 = vst [vmem:[#allocation135_spill] sm:$0xff] %v8557_v10 }
 0x1d6   : > { %v8545_v33 = vunpack.c.l.b16 %v2645_v3  ;;  %2550 = vperm.xlu2 %7149, %v6500_v59   ;;  %2999 = vperm.xlu1 %7148, %v6551_v46   ;;  %v8547_v38 = vunpack.c.l.b16 %v2644_v30  ;;  %v1137_v3 = vadd.f32 %v8347_v34, %v8285_v35  ;;  %v6582_v30 = vld [vmem:[%s10978_s6 + $0x830] sm:$0xff]  ;;  %v8577_v35 = vunpack.c.l.b16 %v2647_v14 }
 0x1d7   : > { %2994 = vperm.xlu0 %7147, %v6550_v17   ;;  %v6583_v17 = vld [vmem:[%s10978_s6 + $0x838] sm:$0xff] }
 0x1d8   : > { %11289 = vst [vmem:[#allocation132_spill] sm:$0xff] %v8545_v33  ;;  %v8549_v26 = vpop.f32.mrf.mxu2  ;;  %v8553_v15 = vpop.permute.xlu2 %2059  ;;  %v8573_v61 = vmax.f32 %v1137_v3, 0.0 }
 0x1d9   : > { %11290 = vst [vmem:[#allocation133_spill] sm:$0xff] %v8547_v38  ;;  %v2481_v8 = vpop.permute.xlu1 %2480  ;;  %v8562_v59 = vpop.permute.xlu0 %2286 }
 0x1da   : > { %11291 = vst [vmem:[#allocation134_spill] sm:$0xff] %v8553_v15  ;;  %v2614_v46 = vmul.f32 %v2481_v8, %v8557_v10  ;;  %v1138_v8 = vadd.f32 %v8347_v34, %v8306_v16  ;;  %v1813_v16 = vrot.slane %v8573_v61, 1 }
 0x1db   : > { %11293 = vst [vmem:[#allocation136_spill] sm:$0xff] %v8562_v59 }
 0x1dc   : > { %v2646_v45 = vpack.c.bf16 %v2614_v46, %v2614_v46  ;;  %11294 = vst [vmem:[#allocation137_spill] sm:$0xff] %v8573_v61  ;;  %v8589_v3 = vmax.f32 %v1138_v8, 0.0  ;;  %v1139_v8 = vadd.f32 %v8347_v34, %v8327_v0  ;;  %v8609_v38 = vsel %vm1836_vm0, %v1812_v51, %v1813_v16 }
 0x1dd   : > { %11295 = vst [vmem:[#allocation138_spill] sm:$0xff] %v8577_v35  ;;  %v2616_v35 = vmul.f32 %v8481_v56, %v8609_v38 }
 0x1de   : > { %v8579_v48 = vunpack.c.l.b16 %v2646_v45  ;;  %3256 = vperm.xlu2 %7149, %v6583_v17   ;;  %3251 = vperm.xlu1 %7148, %v6582_v30   ;;  %11298 = vst [vmem:[#allocation141_spill] sm:$0xff] %v8589_v3  ;;  %v6552_v45 = vld [vmem:[%s10978_s6 + $0x740] sm:$0xff]  ;;  %v6521_v17 = vld [vmem:[%s10978_s6 + $0x648] sm:$0xff]  ;;  %v8624_v51 = vmax.f32 %v1139_v8, 0.0 }
 0x1df   : > { %2555 = vperm.xlu0 %7147, %v6501_v24   ;;  %v6520_v30 = vld [vmem:[%s10978_s6 + $0x640] sm:$0xff]  ;;  %v1140_v24 = vadd.f32 %v8347_v34, %v8349_v58  ;;  %v6553_v8 = vld [vmem:[%s10978_s6 + $0x748] sm:$0xff] }
 0x1e0   : > { %11296 = vst [vmem:[#allocation139_spill] sm:$0xff] %v8579_v48  ;;  %v8583_v46 = vpop.f32.mrf.mxu2  ;;  %v8585_v33 = vpop.permute.xlu2 %2510  ;;  %v1814_v48 = vrot.slane %v8589_v3, 1  ;;  %v2648_v3 = vpack.c.bf16 %v2616_v35, %v2616_v35  ;;  %v1815_v35 = vrot.slane %v8624_v51, 1 }
 0x1e1   : > { %v8587_v15 = vpop.permute.xlu1 %2296  ;;  %v8592_v14 = vpop.permute.xlu0 %2291  ;;  %v8618_v58 = vmax.f32 %v1140_v24, 0.0  ;;  %11304 = vst [vmem:[#allocation147_spill] sm:$0xff] %v8624_v51  ;;  %v6502_v24 = vld [vmem:[%s10978_s6 + $0x5b0] sm:$0xff] }
 0x1e2   : > { %11297 = vst [vmem:[#allocation140_spill] sm:$0xff] %v8587_v15 }
 0x1e3   : > { %11299 = vst [vmem:[#allocation142_spill] sm:$0xff] %v8592_v14  ;;  %v8614_v14 = vpop.f32.mrf.mxu3 }
 0x1e4   : > { %11300 = vst [vmem:[#allocation143_spill] sm:$0xff] %v8614_v14  ;;  %v1816_v14 = vrot.slane %v8618_v58, 1 }
 0x1e5   : > { %11301 = vst [vmem:[#allocation144_spill] sm:$0xff] %v8618_v58 }
 0x1e6   : > { %3004 = vperm.xlu2 %7149, %v6552_v45   ;;  %2752 = vperm.xlu1 %7148, %v6521_v17   ;;  %v8628_v17 = vsel %vm1836_vm0, %v1813_v16, %v1814_v48  ;;  %v8642_v16 = vunpack.c.l.b16 %v2648_v3  ;;  %v1141_v3 = vadd.f32 %v8347_v34, %v8382_v44 }
 0x1e7   : > { %2747 = vperm.xlu0 %7147, %v6520_v30   ;;  %v6503_v30 = vld [vmem:[%s10978_s6 + $0x5b8] sm:$0xff] }
 0x1e8   : > { %v8616_v15 = vpop.f32.mrf.mxu2  ;;  %v8620_v59 = vpop.permute.xlu2 %2712  ;;  %11305 = vst [vmem:[#allocation148_spill] sm:$0xff] %v8642_v16  ;;  %v6522_v16 = vld [vmem:[%s10978_s6 + $0x650] sm:$0xff]  ;;  %v8675_v58 = vmax.f32 %v1141_v3, 0.0 }
 0x1e9   : > { %11302 = vst [vmem:[#allocation145_spill] sm:$0xff] %v8620_v59  ;;  %v8622_v0 = vpop.permute.xlu1 %2301  ;;  %v2496_v45 = vpop.permute.xlu0 %2495 }
 0x1ea   : > { %11303 = vst [vmem:[#allocation146_spill] sm:$0xff] %v8622_v0  ;;  %v2617_v56 = vmul.f32 %v2496_v45, %v8628_v17  ;;  %v1817_v3 = vrot.slane %v8675_v58, 1 }
 0x1eb   : > { %11310 = vst [vmem:[#allocation153_spill] sm:$0xff] %v8675_v58 }
 0x1ec   : > { %v2649_v59 = vpack.c.bf16 %v2617_v56, %v2617_v56  ;;  %v8654_v56 = vsel %vm1836_vm0, %v1815_v35, %v1816_v14 }
 0x1ed   : > { %11307 = vst [vmem:[#allocation150_spill] sm:$0xff] %v8654_v56 }
 0x1ee   : > { %2565 = vperm.xlu2 %7149, %v6503_v30   ;;  %2560 = vperm.xlu1 %7148, %v6502_v24   ;;  %v8644_v45 = vunpack.c.l.b16 %v2649_v59  ;;  %v8656_v30 = vpop.f32.mrf.mxu3 }
 0x1ef   : > { %3009 = vperm.xlu0 %7147, %v6553_v8   ;;  %11308 = vst [vmem:[#allocation151_spill] sm:$0xff] %v8656_v30  ;;  %v8663_v8 = vsel %vm1836_vm0, %v1814_v48, %v1815_v35  ;;  %v6585_v30 = vld [vmem:[%s10978_s6 + $0x848] sm:$0xff]  ;;  %v1142_v48 = vadd.f32 %v8347_v34, %v8412_v36 }
 0x1f0   : > { %11306 = vst [vmem:[#allocation149_spill] sm:$0xff] %v8644_v45  ;;  %v8646_v0 = vpop.f32.mrf.mxu2  ;;  %v8650_v50 = vpop.permute.xlu2 %2520 }
 0x1f1   : > { %v2506_v37 = vpop.permute.xlu1 %2505  ;;  %v2501_v24 = vpop.permute.xlu0 %2500  ;;  %11309 = vst [vmem:[#allocation152_spill] sm:$0xff] %v8663_v8 }
 0x1f2   : > { %v2619_v59 = vmul.f32 %v2506_v37, %v8654_v56  ;;  %v2618_v61 = vmul.f32 %v2501_v24, %v8663_v8  ;;  %v6584_v37 = vld [vmem:[%s10978_s6 + $0x840] sm:$0xff] }
 0x1f4   : > { %v2651_v45 = vpack.c.bf16 %v2619_v59, %v2619_v59  ;;  %v2650_v44 = vpack.c.bf16 %v2618_v61, %v2618_v61  ;;  %v8689_v61 = vmax.f32 %v1142_v48, 0.0 }
 0x1f6   : > { %v8679_v35 = vunpack.c.l.b16 %v2651_v45  ;;  %2757 = vperm.xlu2 %7149, %v6522_v16   ;;  %3266 = vperm.xlu1 %7148, %v6585_v30   ;;  %v8681_v24 = vunpack.c.l.b16 %v2650_v44  ;;  %11314 = vst [vmem:[#allocation157_spill] sm:$0xff] %v8689_v61  ;;  %v6555_v16 = vld [vmem:[%s10978_s6 + $0x758] sm:$0xff]  ;;  %v6554_v45 = vld [vmem:[%s10978_s6 + $0x750] sm:$0xff]  ;;  %v8700_v30 = vpop.f32.mrf.mxu3  ;;  %v8707_v44 = vsel %vm1836_vm0, %v1816_v14, %v1817_v3  ;;  %v1818_v48 = vrot.slane %v8689_v61, 1 }
 0x1f7   : > { %3261 = vperm.xlu0 %7147, %v6584_v37   ;;  %11316 = vst [vmem:[#allocation159_spill] sm:$0xff] %v8700_v30  ;;  %v6523_v37 = vld [vmem:[%s10978_s6 + $0x658] sm:$0xff]  ;;  %v2620_v59 = vmul.f32 %v8585_v33, %v8707_v44  ;;  %v6586_v33 = vld [vmem:[%s10978_s6 + $0x850] sm:$0xff] }
 0x1f8   : > { %11311 = vst [vmem:[#allocation154_spill] sm:$0xff] %v8679_v35  ;;  %v8683_v51 = vpop.f32.mrf.mxu2  ;;  %v3227_v8 = vpop.permute.xlu2 %3226  ;;  %v8722_v14 = vsel %vm1836_vm0, %v1817_v3, %v1818_v48 }
 0x1f9   : > { %11312 = vst [vmem:[#allocation155_spill] sm:$0xff] %v8681_v24  ;;  %v8687_v56 = vpop.permute.xlu1 %2316  ;;  %v8692_v36 = vpop.permute.xlu0 %2311 }
 0x1fa   : > { %11313 = vst [vmem:[#allocation156_spill] sm:$0xff] %v8687_v56 }
 0x1fb   : > { %11315 = vst [vmem:[#allocation158_spill] sm:$0xff] %v8692_v36  ;;  %v1143_v36 = vadd.f32 %v8347_v34, %v8446_v5  ;;  %v6504_v5 = vld [vmem:[%s10978_s6 + $0x5c0] sm:$0xff] }
 0x1fc   : > { %11317 = vst [vmem:[#allocation160_spill] sm:$0xff] %v8707_v44 }
 0x1fd   : > { %11320 = vst [vmem:[#allocation163_spill] sm:$0xff] %v8722_v14  ;;  %v8736_v3 = vmax.f32 %v1143_v36, 0.0 }
 0x1fe   : > { %3019 = vperm.xlu2 %7149, %v6555_v16   ;;  %3014 = vperm.xlu1 %7148, %v6554_v45   ;;  %v2652_v16 = vpack.c.bf16 %v2620_v59, %v2620_v59 }
 0x1ff   : > { %2762 = vperm.xlu0 %7147, %v6523_v37   ;;  %v6505_v37 = vld [vmem:[%s10978_s6 + $0x5c8] sm:$0xff]  ;;  %11322 = vst [vmem:[#allocation165_spill] sm:$0xff] %v8736_v3 }
 0x200   : > { %v8712_v24 = vpop.f32.mrf.mxu2  ;;  %v8714_v35 = vpop.permute.xlu2 %2974  ;;  %v8740_v59 = vunpack.c.l.b16 %v2652_v16  ;;  %v6524_v16 = vld [vmem:[%s10978_s6 + $0x660] sm:$0xff] }
 0x201   : > { %11318 = vst [vmem:[#allocation161_spill] sm:$0xff] %v8714_v35  ;;  %v8716_v30 = vpop.permute.xlu1 %2707  ;;  %v2516_v56 = vpop.permute.xlu0 %2515 }
 0x202   : > { %11319 = vst [vmem:[#allocation162_spill] sm:$0xff] %v8716_v30  ;;  %v2621_v45 = vmul.f32 %v2516_v56, %v8722_v14  ;;  %v8734_v30 = vpop.f32.mrf.mxu3  ;;  %v1144_v56 = vadd.f32 %v8347_v34, %v8475_v31  ;;  %v1819_v31 = vrot.slane %v8736_v3, 1  ;;  %v3380_v14 = vmul.f32 %v3227_v8, %v8489_v60  ;;  %v7029_v8 = vld [vmem:[%s10975_s3 + $0xb8] sm:$0xff] }
 0x203   : > { %11321 = vst [vmem:[#allocation164_spill] sm:$0xff] %v8734_v30  ;;  %5063 = vmatpush.bf16.msra.mxu2 %v7029_v8 }
 0x204   : > { %v2653_v35 = vpack.c.bf16 %v2621_v45, %v2621_v45  ;;  %11323 = vst [vmem:[#allocation166_spill] sm:$0xff] %v8740_v59  ;;  %v8752_v36 = vmax.f32 %v1144_v56, 0.0  ;;  %v8771_v56 = vsel %vm1836_vm0, %v1818_v48, %v1819_v31  ;;  %v7013_v48 = vld [vmem:[%s10975_s3 + $0x38] sm:$0xff]  ;;  %v3412_v59 = vpack.c.bf16 %v3380_v14, %v3380_v14  ;;  %v6506_v14 = vld [vmem:[%s10978_s6 + $0x5d0] sm:$0xff] }
 0x205   : > { %11328 = vst [vmem:[#allocation171_spill] sm:$0xff] %v8771_v56  ;;  %4885 = vmatpush.bf16.msrb.mxu0 %v7013_v48 }
 0x206   : > { %3271 = vperm.xlu2 %7149, %v6586_v33   ;;  %2575 = vperm.xlu1 %7148, %v6505_v37   ;;  %v8742_v61 = vunpack.c.l.b16 %v2653_v35  ;;  %11326 = vst [vmem:[#allocation169_spill] sm:$0xff] %v8752_v36  ;;  %v6525_v35 = vld [vmem:[%s10978_s6 + $0x668] sm:$0xff]  ;;  %v6587_v37 = vld [vmem:[%s10978_s6 + $0x858] sm:$0xff] }
 0x207   : > { %2570 = vperm.xlu0 %7147, %v6504_v5   ;;  %v7021_v5 = vld [vmem:[%s10975_s3 + $0x78] sm:$0xff] }
 0x208   : > { %11324 = vst [vmem:[#allocation167_spill] sm:$0xff] %v8742_v61  ;;  %v8744_v58 = vpop.f32.mrf.mxu2  ;;  %v8748_v45 = vpop.permute.xlu2 %2535  ;;  %v2622_v61 = vmul.f32 %v8650_v50, %v8771_v56  ;;  %4974 = vmatpush.bf16.msrb.mxu1 %v7021_v5  ;;  %v1146_v50 = vadd.f32 %v8347_v34, %v8549_v26  ;;  %v7020_v5 = vld [vmem:[%s10975_s3 + $0x70] sm:$0xff]  ;;  %v11332_v56 = vrot.slane %v8752_v36, 1  ;;  %v1145_v26 = vadd.f32 %v8347_v34, %v8513_v13  ;;  %v6556_v13 = vld [vmem:[%s10978_s6 + $0x760] sm:$0xff] }
 0x209   : > { %v8750_v30 = vpop.permute.xlu1 %2969  ;;  %v8755_v33 = vpop.permute.xlu0 %2964 }
 0x20a   : > { %11325 = vst [vmem:[#allocation168_spill] sm:$0xff] %v8750_v30  ;;  %v8802_v44 = vsel %vm1836_vm0, %v1819_v31, %v11332_v56  ;;  %v7012_v31 = vld [vmem:[%s10975_s3 + $0x30] sm:$0xff]  ;;  %v8825_v48 = vmax.f32 %v1146_v50, 0.0 }
 0x20b   : > { %11327 = vst [vmem:[#allocation170_spill] sm:$0xff] %v8755_v33  ;;  %v8777_v33 = vpop.f32.mrf.mxu3  ;;  %4886 = vmatpush.bf16.msrb.mxu0 %v7012_v31 }
 0x20c   : > { %11329 = vst [vmem:[#allocation172_spill] sm:$0xff] %v8777_v33  ;;  %4975 = vmatpush.bf16.msrb.mxu1 %v7020_v5 }
 0x20d   : > { %11333 = vst [vmem:[#allocation175_spill] sm:$0xff] %v8802_v44 }
 0x20e   : > { %2772 = vperm.xlu2 %7149, %v6525_v35   ;;  %2767 = vperm.xlu1 %7148, %v6524_v16   ;;  %v7037_v35 = vld [vmem:[%s10975_s3 + $0xf8] sm:$0xff]  ;;  %11334 = vst [vmem:[#allocation176_spill] sm:$0xff] %v8825_v48 }
 0x20f   : > { %3276 = vperm.xlu0 %7147, %v6587_v37   ;;  %5152 = vmatpush.bf16.msra.mxu3 %v7037_v35  ;;  %v7019_v35 = vld [vmem:[%s10975_s3 + $0x68] sm:$0xff] }
 0x210   : > { %v8779_v30 = vpop.f32.mrf.mxu2  ;;  %v8792_v16 = vpop.permute.xlu2 %2727  ;;  %4976 = vmatpush.bf16.msrb.mxu1 %v7019_v35  ;;  %v7010_v35 = vld [vmem:[%s10975_s3 + $0x20] sm:$0xff] }
 0x211   : > { %11330 = vst [vmem:[#allocation173_spill] sm:$0xff] %v8779_v30  ;;  %v3222_v37 = vpop.permute.xlu1 %3221  ;;  %v2526_v3 = vpop.permute.xlu0 %2525 }
 0x212   : > { %11331 = vst [vmem:[#allocation174_spill] sm:$0xff] %v8792_v16  ;;  %v3379_v33 = vmul.f32 %v3222_v37, %v8470_v47  ;;  %v2654_v16 = vpack.c.bf16 %v2622_v61, %v2622_v61  ;;  %v2623_v30 = vmul.f32 %v2526_v3, %v8802_v44  ;;  %v6557_v37 = vld [vmem:[%s10978_s6 + $0x768] sm:$0xff]  ;;  %v7028_v61 = vld [vmem:[%s10975_s3 + $0xb0] sm:$0xff]  ;;  %v8834_v44 = vmax.f32 %v1145_v26, 0.0 }
 0x213   : > { %v7036_v3 = vld [vmem:[%s10975_s3 + $0xf0] sm:$0xff]  ;;  %5064 = vmatpush.bf16.msra.mxu2 %v7028_v61  ;;  %v7035_v26 = vld [vmem:[%s10975_s3 + $0xe8] sm:$0xff]  ;;  %v8863_v61 = vpop.f32.mrf.mxu3 }
 0x214   : > { %v3411_v56 = vpack.c.bf16 %v3379_v33, %v3379_v33  ;;  %v2655_v8 = vpack.c.bf16 %v2623_v30, %v2623_v30  ;;  %v8830_v33 = vunpack.c.l.b16 %v3412_v59  ;;  %11337 = vst [vmem:[#allocation179_spill] sm:$0xff] %v8834_v44  ;;  %v8836_v47 = vunpack.c.l.b16 %v2654_v16  ;;  %5153 = vmatpush.bf16.msra.mxu3 %v7036_v3  ;;  %v7011_v59 = vld [vmem:[%s10975_s3 + $0x28] sm:$0xff] }
 0x215   : > { %v7027_v16 = vld [vmem:[%s10975_s3 + $0xa8] sm:$0xff]  ;;  %11342 = vst [vmem:[#allocation184_spill] sm:$0xff] %v8863_v61  ;;  %4887 = vmatpush.bf16.msrb.mxu0 %v7011_v59  ;;  %v7026_v61 = vld [vmem:[%s10975_s3 + $0xa0] sm:$0xff]  ;;  %v11344_v59 = vrot.slane %v8825_v48, 1 }
 0x216   : > { %11335 = vst [vmem:[#allocation177_spill] sm:$0xff] %v8830_v33  ;;  %v8832_v5 = vunpack.c.l.b16 %v3411_v56  ;;  %2580 = vperm.xlu2 %7149, %v6506_v14   ;;  %3029 = vperm.xlu1 %7148, %v6557_v37   ;;  %v8838_v43 = vunpack.c.l.b16 %v2655_v8  ;;  %v1821_v8 = vrot.slane %v8834_v44, 1  ;;  %v6589_v30 = vld [vmem:[%s10978_s6 + $0x868] sm:$0xff]  ;;  %v6588_v37 = vld [vmem:[%s10978_s6 + $0x860] sm:$0xff]  ;;  %v6507_v14 = vld [vmem:[%s10978_s6 + $0x5d8] sm:$0xff]  ;;  %v1147_v44 = vadd.f32 %v8347_v34, %v8583_v46 }
 0x217   : > { %11338 = vst [vmem:[#allocation180_spill] sm:$0xff] %v8836_v47  ;;  %3024 = vperm.xlu0 %7147, %v6556_v13   ;;  %v7018_v13 = vld [vmem:[%s10975_s3 + $0x60] sm:$0xff]  ;;  %5065 = vmatpush.bf16.msra.mxu2 %v7027_v16  ;;  %v7017_v16 = vld [vmem:[%s10975_s3 + $0x58] sm:$0xff] }
 0x218   : > { %11336 = vst [vmem:[#allocation178_spill] sm:$0xff] %v8832_v5  ;;  %v8842_v50 = vpop.f32.mrf.mxu2  ;;  %v8856_v31 = vpop.permute.xlu2 %2989  ;;  %5154 = vmatpush.bf16.msra.mxu3 %v7035_v26  ;;  %v7034_v5 = vld [vmem:[%s10975_s3 + $0xe0] sm:$0xff]  ;;  %v8890_v33 = vsel %vm1836_vm0, %v1821_v8, %v11344_v59  ;;  %4977 = vmatpush.bf16.msrb.mxu1 %v7018_v13  ;;  %v7009_v59 = vld [vmem:[%s10975_s3 + $0x18] sm:$0xff]  ;;  %v9005_v46 = vmax.f32 %v1147_v44, 0.0 }
 0x219   : > { %11339 = vst [vmem:[#allocation181_spill] sm:$0xff] %v8838_v43  ;;  %v8858_v56 = vpop.permute.xlu1 %2722  ;;  %v8865_v3 = vpop.permute.xlu0 %2717  ;;  %v2625_v26 = vmul.f32 %v8748_v45, %v8890_v33  ;;  %4888 = vmatpush.bf16.msrb.mxu0 %v7010_v35  ;;  %v7025_v13 = vld [vmem:[%s10975_s3 + $0x98] sm:$0xff] }
 0x21a   : > { %11340 = vst [vmem:[#allocation182_spill] sm:$0xff] %v8856_v31  ;;  %v7033_v45 = vld [vmem:[%s10975_s3 + $0xd8] sm:$0xff]  ;;  %v1823_v44 = vrot.slane %v9005_v46, 1 }
 0x21b   : > { %11341 = vst [vmem:[#allocation183_spill] sm:$0xff] %v8858_v56  ;;  %5066 = vmatpush.bf16.msra.mxu2 %v7026_v61  ;;  %v7016_v61 = vld [vmem:[%s10975_s3 + $0x50] sm:$0xff]  ;;  %v2657_v35 = vpack.c.bf16 %v2625_v26, %v2625_v26  ;;  %v6527_v56 = vld [vmem:[%s10978_s6 + $0x678] sm:$0xff] }
 0x21c   : > { %11343 = vst [vmem:[#allocation185_spill] sm:$0xff] %v8865_v3  ;;  %5155 = vmatpush.bf16.msra.mxu3 %v7034_v5  ;;  %4978 = vmatpush.bf16.msrb.mxu1 %v7017_v16  ;;  %v6558_v3 = vld [vmem:[%s10978_s6 + $0x770] sm:$0xff]  ;;  %v8931_v16 = vpop.f32.mrf.mxu3 }
 0x21d   : > { %11345 = vst [vmem:[#allocation186_spill] sm:$0xff] %v8890_v33  ;;  %4889 = vmatpush.bf16.msrb.mxu0 %v7009_v59  ;;  %v7032_v59 = vld [vmem:[%s10975_s3 + $0xd0] sm:$0xff] }
 0x21e   : > { %3286 = vperm.xlu2 %7149, %v6589_v30   ;;  %3281 = vperm.xlu1 %7148, %v6588_v37   ;;  %v11346_v37 = vrot.slane %v8752_v36, 1  ;;  %11349 = vst [vmem:[#allocation189_spill] sm:$0xff] %v8931_v16  ;;  %v7015_v16 = vld [vmem:[%s10975_s3 + $0x48] sm:$0xff] }
 0x21f   : > { %2585 = vperm.xlu0 %7147, %v6507_v14   ;;  %5067 = vmatpush.bf16.msra.mxu2 %v7025_v13  ;;  %v6509_v13 = vld [vmem:[%s10978_s6 + $0x5e8] sm:$0xff]  ;;  %11358 = vst [vmem:[#allocation198_spill] sm:$0xff] %v9005_v46 }
 0x220   : > { %v8897_v47 = vpop.f32.mrf.mxu2  ;;  %v8908_v30 = vpop.permute.xlu2 %3241  ;;  %v8914_v5 = vsel %vm1836_vm0, %v11346_v37, %v1821_v8  ;;  %v7008_v8 = vld [vmem:[%s10975_s3 + $0x10] sm:$0xff]  ;;  %5156 = vmatpush.bf16.msra.mxu3 %v7033_v45  ;;  %4979 = vmatpush.bf16.msrb.mxu1 %v7016_v61  ;;  %v7007_v61 = vld [vmem:[%s10975_s3 + $0x8] sm:$0xff] }
 0x221   : > { %v2531_v14 = vpop.permute.xlu1 %2530  ;;  %11347 = vst [vmem:[#allocation187_spill] sm:$0xff] %v8914_v5  ;;  %v8920_v31 = vpop.permute.xlu0 %2979  ;;  %v7024_v37 = vld [vmem:[%s10975_s3 + $0x90] sm:$0xff]  ;;  %4890 = vmatpush.bf16.msrb.mxu0 %v7008_v8 }
 0x222   : > { %v2624_v43 = vmul.f32 %v2531_v14, %v8914_v5  ;;  %11348 = vst [vmem:[#allocation188_spill] sm:$0xff] %v8920_v31  ;;  %v6526_v14 = vld [vmem:[%s10978_s6 + $0x670] sm:$0xff] }
 0x223   : > { %5068 = vmatpush.bf16.msra.mxu2 %v7024_v37 }
 0x224   : > { %v2656_v26 = vpack.c.bf16 %v2624_v43, %v2624_v43  ;;  %v8945_v43 = vunpack.c.l.b16 %v2657_v35  ;;  %5157 = vmatpush.bf16.msra.mxu3 %v7032_v59  ;;  %v7023_v35 = vld [vmem:[%s10975_s3 + $0x88] sm:$0xff]  ;;  %4980 = vmatpush.bf16.msrb.mxu1 %v7015_v16  ;;  %v7006_v16 = vld [vmem:[%s10975_s3] sm:$0xff] }
 0x225   : > { %4891 = vmatpush.bf16.msrb.mxu0 %v7007_v61  ;;  %v1148_v61 = vadd.f32 %v8347_v34, %v8616_v15 }
 0x226   : > { %11350 = vst [vmem:[#allocation190_spill] sm:$0xff] %v8945_v43  ;;  %v8947_v31 = vunpack.c.l.b16 %v2656_v26  ;;  %3034 = vperm.xlu2 %7149, %v6558_v3   ;;  %2782 = vperm.xlu1 %7148, %v6527_v56   ;;  %v7031_v56 = vld [vmem:[%s10975_s3 + $0xc8] sm:$0xff]  ;;  %v7014_v26 = vld [vmem:[%s10975_s3 + $0x40] sm:$0xff] }
 0x227   : > { %2777 = vperm.xlu0 %7147, %v6526_v14   ;;  %5069 = vmatpush.bf16.msra.mxu2 %v7023_v35  ;;  %v8997_v33 = vmax.f32 %v1148_v61, 0.0 }
 0x228   : > { %11351 = vst [vmem:[#allocation191_spill] sm:$0xff] %v8947_v31  ;;  %v8951_v45 = vpop.f32.mrf.mxu2  ;;  %v8962_v3 = vpop.permute.xlu2 %2742  ;;  %v6508_v31 = vld [vmem:[%s10978_s6 + $0x5e0] sm:$0xff]  ;;  %5158 = vmatpush.bf16.msra.mxu3 %v7031_v56  ;;  %4981 = vmatpush.bf16.msrb.mxu1 %v7014_v26 }
 0x229   : > { %11352 = vst [vmem:[#allocation192_spill] sm:$0xff] %v8951_v45  ;;  %v3237_v8 = vpop.permute.xlu1 %3236  ;;  %v3232_v37 = vpop.permute.xlu0 %3231  ;;  %4892 = vmatpush.bf16.msrb.mxu0 %v7006_v16 }
 0x22a   : > { %11353 = vst [vmem:[#allocation193_spill] sm:$0xff] %v8962_v3  ;;  %v3382_v14 = vmul.f32 %v3237_v8, %v8522_v25  ;;  %v3381_v59 = vmul.f32 %v3232_v37, %v8527_v4  ;;  %v6559_v8 = vld [vmem:[%s10978_s6 + $0x778] sm:$0xff]  ;;  %v7022_v37 = vld [vmem:[%s10975_s3 + $0x80] sm:$0xff] }
 0x22b   : > { %v7030_v3 = vld [vmem:[%s10975_s3 + $0xc0] sm:$0xff]  ;;  %5070 = vmatpush.bf16.msra.mxu2 %v7022_v37 }
 0x22c   : > { %v3414_v43 = vpack.c.bf16 %v3382_v14, %v3382_v14  ;;  %v3413_v36 = vpack.c.bf16 %v3381_v59, %v3381_v59  ;;  %v8989_v14 = vpop.f32.mrf.mxu3  ;;  %5159 = vmatpush.bf16.msra.mxu3 %v7030_v3  ;;  %v11045_v3 = vrot.slane %v8997_v33, 1 }
 0x22d   : > { %11354 = vst [vmem:[#allocation194_spill] sm:$0xff] %v8989_v14 }
 0x22e   : > { %v8993_v35 = vunpack.c.l.b16 %v3414_v43  ;;  %2595 = vperm.xlu2 %7149, %v6509_v13   ;;  %2590 = vperm.xlu1 %7148, %v6508_v31   ;;  %v8995_v56 = vunpack.c.l.b16 %v3413_v36  ;;  %v6528_v36 = vld [vmem:[%s10978_s6 + $0x680] sm:$0xff]  ;;  %v6591_v31 = vld [vmem:[%s10978_s6 + $0x878] sm:$0xff]  ;;  %v6590_v13 = vld [vmem:[%s10978_s6 + $0x870] sm:$0xff] }
 0x22f   : > { %3039 = vperm.xlu0 %7147, %v6559_v8  }
 0x230   : > { %11355 = vst [vmem:[#allocation195_spill] sm:$0xff] %v8993_v35  ;;  %v1029_v5 = vpop.f32.mrf.mxu2  ;;  %v9001_v26 = vpop.permute.xlu2 %2550 }
 0x231   : > { %11356 = vst [vmem:[#allocation196_spill] sm:$0xff] %v8995_v56  ;;  %v9003_v59 = vpop.permute.xlu1 %2984  ;;  %v9007_v43 = vpop.permute.xlu0 %2732  ;;  %v1157_v16 = vadd.f32 %v8347_v34, %v1029_v5  ;;  %v9030_v56 = vsel %vm1836_vm0, %v1823_v44, %v11045_v3  ;;  %v11362_v5 = vrot.slane %v8825_v48, 1  ;;  %v6561_v3 = vld [vmem:[%s10978_s6 + $0x788] sm:$0xff] }
 0x232   : > { %11357 = vst [vmem:[#allocation197_spill] sm:$0xff] %v9003_v59 }
 0x233   : > { %11359 = vst [vmem:[#allocation199_spill] sm:$0xff] %v9007_v43 }
 0x234   : > { %v9021_v8 = vpop.f32.mrf.mxu3  ;;  %11361 = vst [vmem:[#allocation201_spill] sm:$0xff] %v9030_v56 }
 0x235   : > { %11360 = vst [vmem:[#allocation200_spill] sm:$0xff] %v9021_v8  ;;  %v9039_v8 = vmax.f32 %v1157_v16, 0.0 }
 0x236   : > { %2787 = vperm.xlu2 %7149, %v6528_v36   ;;  %3296 = vperm.xlu1 %7148, %v6591_v31  }
 0x237   : > { %3291 = vperm.xlu0 %7147, %v6590_v13   ;;  %v9037_v13 = vsel %vm1836_vm0, %v11362_v5, %v1823_v44  ;;  %11364 = vst [vmem:[#allocation203_spill] sm:$0xff] %v9039_v8  ;;  %v6529_v44 = vld [vmem:[%s10978_s6 + $0x688] sm:$0xff]  ;;  %v11056_v46 = vrot.slane %v9039_v8, 7 }
 0x238   : > { %v1032_v37 = vpop.f32.mrf.mxu2  ;;  %v9024_v15 = vpop.permute.xlu2 %3256  ;;  %11363 = vst [vmem:[#allocation202_spill] sm:$0xff] %v9037_v13 }
 0x239   : > { %v1158_v61 = vadd.f32 %v8347_v34, %v1032_v37  ;;  %v2546_v14 = vpop.permute.xlu1 %2545  ;;  %v2541_v31 = vpop.permute.xlu0 %2540 }
 0x23a   : > { %v2627_v36 = vmul.f32 %v2546_v14, %v9030_v56  ;;  %v2626_v35 = vmul.f32 %v2541_v31, %v9037_v13  ;;  %v6560_v14 = vld [vmem:[%s10978_s6 + $0x780] sm:$0xff]  ;;  %v1224_v56 = vrot.slane %v8391_v52, 7 }
 0x23b   : > { %v9041_v37 = vmax.f32 %v1158_v61, 0.0  ;;  %v3383_v61 = vmul.f32 %v8908_v30, %v8557_v10 }
 0x23c   : > { %v2659_v59 = vpack.c.bf16 %v2627_v36, %v2627_v36  ;;  %v2658_v5 = vpack.c.bf16 %v2626_v35, %v2626_v35 }
 0x23d   : > { %11365 = vst [vmem:[#allocation204_spill] sm:$0xff] %v9041_v37  ;;  %v1254_v16 = vrot.slane %v9041_v37, 7  ;;  %v1740_v43 = vmul.f32 %v7787_v29, %v9041_v37  ;;  %v3415_v48 = vpack.c.bf16 %v3383_v61, %v3383_v61 }
 0x23e   : > { %v9056_v31 = vunpack.c.l.b16 %v2659_v59  ;;  %3049 = vperm.xlu2 %7149, %v6561_v3   ;;  %3044 = vperm.xlu1 %7148, %v6560_v14   ;;  %v9061_v36 = vunpack.c.l.b16 %v2658_v5  ;;  %v1149_v5 = vadd.f32 %v8347_v34, %v8646_v0  ;;  %v6511_v0 = vld [vmem:[%s10978_s6 + $0x5f8] sm:$0xff] }
 0x23f   : > { %2792 = vperm.xlu0 %7147, %v6529_v44   ;;  %v9077_v14 = vsel %vm1258_vm1, %v11056_v46, %v1254_v16  ;;  %v9079_v44 = vpop.f32.mrf.mxu3  ;;  %v1772_v30 = vpack.c.bf16 %v1740_v43, %v1740_v43  ;;  %v6592_v46 = vld [vmem:[%s10978_s6 + $0x880] sm:$0xff]  ;;  %v9114_v61 = vunpack.c.l.b16 %v3415_v48  ;;  %v11377_v48 = vrot.slane %v8391_v52, 1 }
 0x240   : > { %11366 = vst [vmem:[#allocation205_spill] sm:$0xff] %v9056_v31  ;;  %v1034_v35 = vpop.f32.mrf.mxu2  ;;  %v9069_v3 = vpop.permute.xlu2 %3004  ;;  %v9110_v45 = vmax.f32 %v1149_v5, 0.0 }
 0x241   : > { %11367 = vst [vmem:[#allocation206_spill] sm:$0xff] %v9061_v36  ;;  %v1159_v59 = vadd.f32 %v8347_v34, %v1034_v35  ;;  %v9071_v29 = vpop.permute.xlu1 %2737  ;;  %v3247_v13 = vpop.permute.xlu0 %3246  ;;  %v11371_v35 = vrot.slane %v8378_v55, 7  ;;  %v3571_v10 = vunpack.c.l.b16 %v1772_v30 }
 0x242   : > { %11368 = vst [vmem:[#allocation207_spill] sm:$0xff] %v9069_v3  ;;  %v3384_v3 = vmul.f32 %v3247_v13, %v8542_v6  ;;  %v1483_v13 = vmul.f32 %v7585_v20, %v9077_v14 }
 0x243   : > { %11369 = vst [vmem:[#allocation208_spill] sm:$0xff] %v9071_v29  ;;  %v9087_v36 = vsel %vm1258_vm1, %v1224_v56, %v11371_v35  ;;  %v9089_v31 = vmax.f32 %v1159_v59, 0.0  ;;  %v6510_v59 = vld [vmem:[%s10978_s6 + $0x5f0] sm:$0xff] }
 0x244   : > { %11370 = vst [vmem:[#allocation209_spill] sm:$0xff] %v9079_v44  ;;  %v2320_v43 = vmul.f32 %v8230_v54, %v9087_v36  ;;  %v3416_v44 = vpack.c.bf16 %v3384_v3, %v3384_v3  ;;  %v1150_v54 = vadd.f32 %v8347_v34, %v8683_v51  ;;  %v1515_v51 = vpack.c.bf16 %v1483_v13, %v1483_v13 }
 0x245   : > { %11372 = vst [vmem:[#allocation210_spill] sm:$0xff] %v9087_v36  ;;  %v1835_v35 = vrot.slane %v9089_v31, 1  ;;  %v1741_v29 = vmul.f32 %v7869_v21, %v9089_v31  ;;  %v1255_v8 = vrot.slane %v9089_v31, 7  ;;  %v11376_v21 = vrot.slane %v9041_v37, 1 }
 0x246   : > { %11373 = vst [vmem:[#allocation211_spill] sm:$0xff] %v9089_v31  ;;  %3301 = vperm.xlu2 %7149, %v6592_v46   ;;  %2605 = vperm.xlu1 %7148, %v6511_v0   ;;  %v9116_v6 = vunpack.c.l.b16 %v3416_v44  ;;  %v9150_v13 = vmax.f32 %v1150_v54, 0.0  ;;  %v2352_v30 = vpack.c.bf16 %v2320_v43, %v2320_v43  ;;  %v3475_v43 = vunpack.c.l.b16 %v1515_v51 }
 0x247   : > { %11374 = vst [vmem:[#allocation212_spill] sm:$0xff] %v9114_v61  ;;  %2600 = vperm.xlu0 %7147, %v6510_v59   ;;  %v1773_v20 = vpack.c.bf16 %v1741_v29, %v1741_v29  ;;  %v9120_v3 = vsel %vm1258_vm1, %v1254_v16, %v1255_v8  ;;  %v9126_v5 = vsel %vm1836_vm0, %v11376_v21, %v1835_v35  ;;  %v9163_v54 = vpop.f32.mrf.mxu3 }
 0x248   : > { %11375 = vst [vmem:[#allocation213_spill] sm:$0xff] %v9116_v6  ;;  %v1484_v34 = vmul.f32 %v7627_v42, %v9120_v3  ;;  %v9134_v46 = vsel %vm1836_vm0, %v1835_v35, %v11377_v48  ;;  %v2062_v16 = vmul.f32 %v8055_v12, %v9126_v5  ;;  %v9140_v29 = vpop.permute.xlu2 %2565  ;;  %v9148_v59 = vsel %vm1258_vm1, %v1255_v8, %v1224_v56 }
 0x249   : > { %v9142_v44 = vpop.permute.xlu1 %2999  ;;  %v3572_v0 = vunpack.c.l.b16 %v1773_v20  ;;  %v2063_v42 = vmul.f32 %v8001_v2, %v9134_v46  ;;  %11379 = vst [vmem:[#allocation215_spill] sm:$0xff] %v9148_v59  ;;  %v1825_v35 = vrot.slane %v9110_v45, 1  ;;  %v9153_v12 = vpop.permute.xlu0 %2994  ;;  %v6531_v20 = vld [vmem:[%s10978_s6 + $0x698] sm:$0xff]  ;;  %v6530_v2 = vld [vmem:[%s10978_s6 + $0x690] sm:$0xff]  ;;  %v2319_v8 = vmul.f32 %v8144_v39, %v9148_v59 }
 0x24a   : > { %11378 = vst [vmem:[#allocation214_spill] sm:$0xff] %v9142_v44  ;;  %v1516_v21 = vpack.c.bf16 %v1484_v34, %v1484_v34  ;;  %v2094_v48 = vpack.c.bf16 %v2062_v16, %v2062_v16  ;;  %v6593_v34 = vld [vmem:[%s10978_s6 + $0x888] sm:$0xff]  ;;  %v11383_v39 = vrot.slane %v8997_v33, 1  ;;  %v3386_v51 = vmul.f32 %v9024_v15, %v8628_v17 }
 0x24b   : > { %11380 = vst [vmem:[#allocation216_spill] sm:$0xff] %v9150_v13  ;;  %v3603_v61 = vpack.c.b16 %v3572_v0, %v3571_v10  ;;  %v2095_v56 = vpack.c.bf16 %v2063_v42, %v2063_v42  ;;  %v1742_v0 = vmul.f32 %v7867_v18, %v8391_v52  ;;  %v2351_v31 = vpack.c.bf16 %v2319_v8, %v2319_v8 }
 0x24c   : > { %11381 = vst [vmem:[#allocation217_spill] sm:$0xff] %v9153_v12  ;;  %v3476_v10 = vunpack.c.l.b16 %v1516_v21  ;;  %v3667_v16 = vunpack.c.l.b16 %v2094_v48  ;;  %v1743_v42 = vmul.f32 %v7806_v49, %v8378_v55  ;;  %v11066_v18 = vrot.slane %v9150_v13, 1 }
 0x24d   : > { %11382 = vst [vmem:[#allocation218_spill] sm:$0xff] %v9163_v54  ;;  %4982 = vmatmul.bf16.vlgmr.msrb.gmra.mxu1 %v3603_v61  ;;  %v3668_v6 = vunpack.c.l.b16 %v2095_v56  ;;  %v9176_v54 = vsel %vm1836_vm0, %v11383_v39, %v1825_v35  ;;  %v3764_v61 = vunpack.c.l.b16 %v2352_v30  ;;  %v3763_v56 = vunpack.c.l.b16 %v2351_v31 }
 0x24e   : > { %2802 = vperm.xlu2 %7149, %v6531_v20   ;;  %2797 = vperm.xlu1 %7148, %v6530_v2   ;;  %v3507_v21 = vpack.c.b16 %v3476_v10, %v3475_v43  ;;  %v2628_v48 = vmul.f32 %v9001_v26, %v9176_v54  ;;  %v1226_v8 = vrot.slane %v8373_v22, 7  ;;  %v11065_v39 = vrot.slane %v8436_v40, 7  ;;  %v9190_v20 = vld [vmem:[%s10977_s5 + $0x1] ss:$0 sm:$0xff] }
 0x24f   : > { %3306 = vperm.xlu0 %7147, %v6593_v34   ;;  %v3699_v49 = vpack.c.b16 %v3668_v6, %v3667_v16  ;;  %v1774_v12 = vpack.c.bf16 %v1742_v0, %v1742_v0  ;;  %v2065_v15 = vmul.f32 %v8070_v9, %v8408_v28  ;;  %v1152_v26 = vadd.f32 %v9190_v20, %v8744_v58 }
 0x250   : > { %4893 = vmatmul.bf16.vlgmr.msrb.gmra.mxu0 %v3507_v21  ;;  %v3795_v6 = vpack.c.b16 %v3764_v61, %v3763_v56  ;;  %v9194_v31 = vpop.permute.xlu2 %2757  ;;  %v1775_v2 = vpack.c.bf16 %v1743_v42, %v1743_v42  ;;  %v3418_v34 = vpack.c.bf16 %v3386_v51, %v3386_v51  ;;  %v9201_v9 = vsel %vm1836_vm0, %v1825_v35, %v11066_v18  ;;  %v6594_v21 = vld [vmem:[%s10978_s6 + $0x890] sm:$0xff]  ;;  %v6563_v35 = vld [vmem:[%s10978_s6 + $0x798] sm:$0xff]  ;;  %v9237_v18 = vpop.f32.mrf.mxu3 }
 0x251   : > { %5071 = vmatmul.bf16.vlgmr.msra.gmra.mxu2 %v3699_v49  ;;  %11384 = vst [vmem:[#allocation219_spill] sm:$0xff] %v9194_v31  ;;  %v3252_v30 = vpop.permute.xlu1 %3251  ;;  %v2556_v10 = vpop.permute.xlu0 %2555  ;;  %v1485_v16 = vmul.f32 %v7583_v19, %v9148_v59  ;;  %v2064_v58 = vmul.f32 %v8073_v57, %v8420_v23  ;;  %v1151_v0 = vadd.f32 %v9190_v20, %v8712_v24  ;;  %v11386_v57 = vrot.slane %v8378_v55, 7 }
 0x252   : > { %v3385_v43 = vmul.f32 %v3252_v30, %v8609_v38  ;;  %v2660_v42 = vpack.c.bf16 %v2628_v48, %v2628_v48  ;;  %5160 = vmatmul.bf16.vlgmr.msra.gmra.mxu3 %v3795_v6  ;;  %v2629_v51 = vmul.f32 %v2556_v10, %v9201_v9  ;;  %v9220_v19 = vsel %vm1258_vm1, %v1226_v8, %v11065_v39  ;;  %v6562_v48 = vld [vmem:[%s10978_s6 + $0x790] sm:$0xff] }
 0x253   : > { %11385 = vst [vmem:[#allocation220_spill] sm:$0xff] %v9220_v19  ;;  %v9226_v24 = vsel %vm1258_vm1, %v11386_v57, %v1226_v8  ;;  %v1486_v49 = vmul.f32 %v7625_v41, %v9087_v36  ;;  %v9235_v6 = vmax.f32 %v1152_v26, 0.0  ;;  %v3574_v10 = vunpack.c.l.b16 %v1775_v2 }
 0x254   : > { %v3417_v61 = vpack.c.bf16 %v3385_v43, %v3385_v43  ;;  %v2321_v56 = vmul.f32 %v8228_v11, %v9226_v24  ;;  %v2661_v30 = vpack.c.bf16 %v2629_v51, %v2629_v51  ;;  %v2097_v39 = vpack.c.bf16 %v2065_v15, %v2065_v15  ;;  %11387 = vst [vmem:[#allocation221_spill] sm:$0xff] %v9237_v18 }
 0x255   : > { %v9239_v8 = vunpack.c.l.b16 %v3418_v34  ;;  %v1517_v57 = vpack.c.bf16 %v1485_v16, %v1485_v16  ;;  %v2322_v41 = vmul.f32 %v8163_v32, %v9220_v19  ;;  %v9245_v23 = vmax.f32 %v1151_v0, 0.0 }
 0x256   : > { %v9241_v43 = vunpack.c.l.b16 %v3417_v61  ;;  %3311 = vperm.xlu2 %7149, %v6594_v21   ;;  %3059 = vperm.xlu1 %7148, %v6563_v35   ;;  %v9247_v11 = vunpack.c.l.b16 %v2660_v42  ;;  %v9249_v26 = vunpack.c.l.b16 %v2661_v30  ;;  %v3573_v2 = vunpack.c.l.b16 %v1774_v12  ;;  %v6533_v12 = vld [vmem:[%s10978_s6 + $0x6a8] sm:$0xff] }
 0x257   : > { %11388 = vst [vmem:[#allocation222_spill] sm:$0xff] %v9239_v8  ;;  %3054 = vperm.xlu0 %7147, %v6562_v48   ;;  %v1518_v34 = vpack.c.bf16 %v1486_v49, %v1486_v49  ;;  %v2353_v51 = vpack.c.bf16 %v2321_v56, %v2321_v56  ;;  %v2096_v61 = vpack.c.bf16 %v2064_v58, %v2064_v58  ;;  %v3477_v35 = vunpack.c.l.b16 %v1517_v57  ;;  %v6532_v58 = vld [vmem:[%s10978_s6 + $0x6a0] sm:$0xff]  ;;  %v6595_v56 = vld [vmem:[%s10978_s6 + $0x898] sm:$0xff] }
 0x258   : > { %11389 = vst [vmem:[#allocation223_spill] sm:$0xff] %v9241_v43  ;;  %v9256_v32 = vpop.permute.xlu2 %3019  ;;  %v2354_v48 = vpack.c.bf16 %v2322_v41, %v2322_v41  ;;  %v1827_v30 = vrot.slane %v9245_v23, 1  ;;  %v3604_v15 = vpack.c.b16 %v3574_v10, %v3573_v2  ;;  %v3670_v49 = vunpack.c.l.b16 %v2097_v39 }
 0x259   : > { %11390 = vst [vmem:[#allocation224_spill] sm:$0xff] %v9247_v11  ;;  %v9258_v0 = vpop.permute.xlu1 %2752  ;;  %v9260_v42 = vpop.permute.xlu0 %2747  ;;  %v3478_v16 = vunpack.c.l.b16 %v1518_v34  ;;  %v3765_v21 = vunpack.c.l.b16 %v2353_v51  ;;  %v11395_v57 = vrot.slane %v9235_v6, 1  ;;  %v3669_v41 = vunpack.c.l.b16 %v2096_v61 }
 0x25a   : > { %11391 = vst [vmem:[#allocation225_spill] sm:$0xff] %v9249_v26  ;;  %v3766_v18 = vunpack.c.l.b16 %v2354_v48  ;;  %v1745_v34 = vmul.f32 %v7886_v62, %v8436_v40  ;;  %v1228_v51 = vrot.slane %v8450_v27, 7  ;;  %v11072_v43 = vrot.slane %v8485_v7, 7 }
 0x25b   : > { %11392 = vst [vmem:[#allocation226_spill] sm:$0xff] %v9256_v32  ;;  %v9276_v10 = vsel %vm1836_vm0, %v1827_v30, %v11395_v57  ;;  %v3508_v39 = vpack.c.b16 %v3478_v16, %v3477_v35  ;;  %v3700_v28 = vpack.c.b16 %v3670_v49, %v3669_v41  ;;  %v9284_v57 = vpop.f32.mrf.mxu3  ;;  %v11397_v16 = vrot.slane %v9150_v13, 1 }
 0x25c   : > { %11393 = vst [vmem:[#allocation227_spill] sm:$0xff] %v9258_v0  ;;  %v2631_v2 = vmul.f32 %v9140_v29, %v9276_v10  ;;  %v1744_v62 = vmul.f32 %v7888_v63, %v8373_v22  ;;  %v6565_v63 = vld [vmem:[%s10978_s6 + $0x7a8] sm:$0xff]  ;;  %v1777_v49 = vpack.c.bf16 %v1745_v34, %v1745_v34 }
 0x25d   : > { %11394 = vst [vmem:[#allocation228_spill] sm:$0xff] %v9260_v42  ;;  %4987 = vmatmul.bf16.gmra.mxu1 %v3604_v15  ;;  %v3796_v15 = vpack.c.b16 %v3766_v18, %v3765_v21  ;;  %v9292_v35 = vsel %vm1836_vm0, %v11397_v16, %v1827_v30  ;;  %v11399_v18 = vld [vmem:[#allocation64_spill] sm:$0xff]  ;;  %v6596_v30 = vld [vmem:[%s10978_s6 + $0x8a0] sm:$0xff]  ;;  %v11405_v16 = vld [vmem:[#allocation122_spill] sm:$0xff] }
 0x25e   : > { %2812 = vperm.xlu2 %7149, %v6533_v12   ;;  %2807 = vperm.xlu1 %7148, %v6532_v58   ;;  %11396 = vst [vmem:[#allocation229_spill] sm:$0xff] %v9284_v57  ;;  %v2663_v48 = vpack.c.bf16 %v2631_v2, %v2631_v2  ;;  %v2067_v21 = vmul.f32 %v11399_v18, %v8489_v60  ;;  %v6564_v2 = vld [vmem:[%s10978_s6 + $0x7a0] sm:$0xff] }
 0x25f   : > { %3316 = vperm.xlu0 %7147, %v6595_v56   ;;  %v11400_v56 = vrot.slane %v8436_v40, 7  ;;  %v11406_v18 = vld [vmem:[#allocation53_spill] sm:$0xff]  ;;  %v1776_v57 = vpack.c.bf16 %v1744_v62, %v1744_v62 }
 0x260   : > { %4898 = vmatmul.bf16.gmra.mxu0 %v3508_v39  ;;  %v9286_v61 = vpop.permute.xlu2 %3271  ;;  %v11403_v39 = vld [vmem:[#allocation5_spill] sm:$0xff]  ;;  %v9330_v8 = vunpack.c.l.b16 %v2663_v48 }
 0x261   : > { %5076 = vmatmul.bf16.gmra.mxu2 %v3700_v28  ;;  %v2561_v29 = vpop.permute.xlu1 %2560  ;;  %v9297_v58 = vpop.permute.xlu0 %3009  ;;  %v1488_v28 = vmul.f32 %v7530_v53, %v9220_v19  ;;  %v9313_v41 = vsel %vm1258_vm1, %v11400_v56, %v1228_v51  ;;  %v9319_v53 = vsel %vm1258_vm1, %v1228_v51, %v11072_v43  ;;  %v1487_v34 = vmul.f32 %v11403_v39, %v9226_v24  ;;  %v11409_v43 = vld [vmem:[#allocation75_spill] sm:$0xff] }
 0x262   : > { %v2630_v12 = vmul.f32 %v2561_v29, %v9292_v35  ;;  %11398 = vst [vmem:[#allocation230_spill] sm:$0xff] %v9297_v58  ;;  %5165 = vmatmul.bf16.gmra.mxu3 %v3796_v15  ;;  %v11404_v15 = vld [vmem:[#allocation85_spill] sm:$0xff]  ;;  %v2066_v56 = vmul.f32 %v11406_v18, %v11405_v16  ;;  %v2324_v59 = vmul.f32 %v11409_v43, %v9319_v53  ;;  %v3576_v39 = vunpack.c.l.b16 %v1777_v49  ;;  %v11413_v43 = vld [vmem:[#allocation152_spill] sm:$0xff] }
 0x263   : > { %11401 = vst [vmem:[#allocation64_spill] sm:$0xff] %v9313_v41  ;;  %v2323_v29 = vmul.f32 %v11404_v15, %v9313_v41  ;;  %v1520_v51 = vpack.c.bf16 %v1488_v28, %v1488_v28  ;;  %v1519_v11 = vpack.c.bf16 %v1487_v34, %v1487_v34  ;;  %v9340_v18 = vpop.f32.mrf.mxu3  ;;  %v6535_v34 = vld [vmem:[%s10978_s6 + $0x6b8] sm:$0xff] }
 0x264   : > { %11402 = vst [vmem:[#allocation231_spill] sm:$0xff] %v9319_v53  ;;  %v2662_v60 = vpack.c.bf16 %v2630_v12, %v2630_v12  ;;  %v2099_v12 = vpack.c.bf16 %v2067_v21, %v2067_v21  ;;  %v2098_v16 = vpack.c.bf16 %v2066_v56, %v2066_v56  ;;  %v2356_v32 = vpack.c.bf16 %v2324_v59, %v2324_v59 }
 0x265   : > { %11407 = vst [vmem:[#allocation5_spill] sm:$0xff] %v9330_v8  ;;  %v2355_v26 = vpack.c.bf16 %v2323_v29, %v2323_v29  ;;  %v6534_v29 = vld [vmem:[%s10978_s6 + $0x6b0] sm:$0xff]  ;;  %v3479_v15 = vunpack.c.l.b16 %v1519_v11  ;;  %v1154_v59 = vadd.f32 %v9190_v20, %v8842_v50 }
 0x266   : > { %v9332_v36 = vunpack.c.l.b16 %v2662_v60  ;;  %3321 = vperm.xlu2 %7149, %v6596_v30   ;;  %3069 = vperm.xlu1 %7148, %v6565_v63   ;;  %v3575_v60 = vunpack.c.l.b16 %v1776_v57  ;;  %11411 = vst [vmem:[#allocation53_spill] sm:$0xff] %v9340_v18  ;;  %v11412_v30 = vld [vmem:[#allocation150_spill] sm:$0xff]  ;;  %v3480_v63 = vunpack.c.l.b16 %v1520_v51  ;;  %v3672_v56 = vunpack.c.l.b16 %v2099_v12  ;;  %v11418_v50 = vld [vmem:[#allocation123_spill] sm:$0xff] }
 0x267   : > { %3064 = vperm.xlu0 %7147, %v6564_v2   ;;  %v3767_v51 = vunpack.c.l.b16 %v2355_v26  ;;  %v3768_v11 = vunpack.c.l.b16 %v2356_v32  ;;  %v11417_v26 = vld [vmem:[#allocation38_spill] sm:$0xff]  ;;  %v9365_v31 = vmax.f32 %v1154_v59, 0.0  ;;  %v11421_v32 = vld [vmem:[#allocation28_spill] sm:$0xff] }
 0x268   : > { %11408 = vst [vmem:[#allocation85_spill] sm:$0xff] %v9332_v36  ;;  %v9338_v62 = vpop.permute.xlu2 %2772  ;;  %v3605_v49 = vpack.c.b16 %v3576_v39, %v3575_v60  ;;  %v3671_v60 = vunpack.c.l.b16 %v2098_v16  ;;  %v3509_v12 = vpack.c.b16 %v3480_v63, %v3479_v15  ;;  %v11424_v59 = vld [vmem:[#allocation56_spill] sm:$0xff] }
 0x269   : > { %11410 = vst [vmem:[#allocation122_spill] sm:$0xff] %v9338_v62  ;;  %v3267_v48 = vpop.permute.xlu1 %3266  ;;  %v3262_v21 = vpop.permute.xlu0 %3261  ;;  %v1747_v62 = vmul.f32 %v11417_v26, %v8485_v7  ;;  %v3797_v15 = vpack.c.b16 %v3768_v11, %v3767_v51  ;;  %v6567_v51 = vld [vmem:[%s10978_s6 + $0x7b8] sm:$0xff]  ;;  %v11426_v26 = vrot.slane %v8485_v7, 7 }
 0x26a   : > { %v3388_v28 = vmul.f32 %v3267_v48, %v11412_v30  ;;  %v3387_v2 = vmul.f32 %v3262_v21, %v11413_v43  ;;  %v6597_v48 = vld [vmem:[%s10978_s6 + $0x8a8] sm:$0xff]  ;;  %v11414_v21 = vld [vmem:[#allocation173_spill] sm:$0xff]  ;;  %v3701_v8 = vpack.c.b16 %v3672_v56, %v3671_v60  ;;  %v1746_v56 = vmul.f32 %v11421_v32, %v8450_v27  ;;  %v11438_v7 = vld [vmem:[#allocation160_spill] sm:$0xff] }
 0x26b   : > { %v1153_v18 = vadd.f32 %v9190_v20, %v11414_v21  ;;  %v2069_v21 = vmul.f32 %v11424_v59, %v8522_v25  ;;  %v9397_v25 = vpop.f32.mrf.mxu3 }
 0x26c   : > { %v3420_v57 = vpack.c.bf16 %v3388_v28, %v3388_v28  ;;  %v3419_v39 = vpack.c.bf16 %v3387_v2, %v3387_v2  ;;  %v1230_v2 = vrot.slane %v11418_v50, 7  ;;  %11428 = vst [vmem:[#allocation28_spill] sm:$0xff] %v9397_v25 }
 0x26d   : > { %4992 = vmatmul.bf16.gmra.mxu1 %v3605_v49  ;;  %v11419_v49 = vld [vmem:[#allocation127_spill] sm:$0xff] }
 0x26e   : > { %v9357_v36 = vunpack.c.l.b16 %v3420_v57  ;;  %2822 = vperm.xlu2 %7149, %v6535_v34   ;;  %2817 = vperm.xlu1 %7148, %v6534_v29   ;;  %v9359_v28 = vunpack.c.l.b16 %v3419_v39  ;;  %v11080_v16 = vrot.slane %v11419_v49, 7  ;;  %v9375_v57 = vmax.f32 %v1153_v18, 0.0  ;;  %v11425_v18 = vld [vmem:[#allocation11_spill] sm:$0xff] }
 0x26f   : > { %3326 = vperm.xlu0 %7147, %v6597_v48   ;;  %v11422_v48 = vld [vmem:[#allocation10_spill] sm:$0xff]  ;;  %v1489_v11 = vmul.f32 %v11425_v18, %v9313_v41  ;;  %v9395_v32 = vsel %vm1258_vm1, %v11426_v26, %v1230_v2  ;;  %v11431_v18 = vld [vmem:[#allocation63_spill] sm:$0xff]  ;;  %v11081_v26 = vrot.slane %v9365_v31, 1  ;;  %v3389_v41 = vmul.f32 %v9286_v61, %v11438_v7 }
 0x270   : > { %11415 = vst [vmem:[#allocation75_spill] sm:$0xff] %v9357_v36  ;;  %4903 = vmatmul.bf16.gmra.mxu0 %v3509_v12  ;;  %v9369_v63 = vpop.permute.xlu2 %2580  ;;  %v1490_v39 = vmul.f32 %v11422_v48, %v9319_v53  ;;  %v1779_v12 = vpack.c.bf16 %v1747_v62, %v1747_v62  ;;  %v6566_v62 = vld [vmem:[%s10978_s6 + $0x7b0] sm:$0xff]  ;;  %v11430_v48 = vld [vmem:[#allocation89_spill] sm:$0xff]  ;;  %v2068_v34 = vmul.f32 %v11431_v18, %v8527_v4  ;;  %v1829_v36 = vrot.slane %v9375_v57, 1 }
 0x271   : > { %11416 = vst [vmem:[#allocation150_spill] sm:$0xff] %v9359_v28  ;;  %5081 = vmatmul.bf16.gmra.mxu2 %v3701_v8  ;;  %v9371_v29 = vpop.permute.xlu1 %3014  ;;  %v9379_v60 = vpop.permute.xlu0 %2762  ;;  %v6598_v8 = vld [vmem:[%s10978_s6 + $0x8b0] sm:$0xff]  ;;  %v2325_v59 = vmul.f32 %v11430_v48, %v9395_v32  ;;  %v1778_v28 = vpack.c.bf16 %v1746_v56, %v1746_v56  ;;  %v1521_v58 = vpack.c.bf16 %v1489_v11, %v1489_v11 }
 0x272   : > { %11420 = vst [vmem:[#allocation152_spill] sm:$0xff] %v9371_v29  ;;  %5170 = vmatmul.bf16.gmra.mxu3 %v3797_v15  ;;  %v9403_v15 = vsel %vm1258_vm1, %v1230_v2, %v11080_v16  ;;  %v1522_v25 = vpack.c.bf16 %v1490_v39, %v1490_v39  ;;  %v2101_v2 = vpack.c.bf16 %v2069_v21, %v2069_v21  ;;  %v11432_v16 = vld [vmem:[#allocation79_spill] sm:$0xff] }
 0x273   : > { %11423 = vst [vmem:[#allocation173_spill] sm:$0xff] %v9379_v60  ;;  %v2326_v29 = vmul.f32 %v11432_v16, %v9403_v15  ;;  %v3578_v60 = vunpack.c.l.b16 %v1779_v12  ;;  %v2357_v42 = vpack.c.bf16 %v2325_v59, %v2325_v59  ;;  %v2100_v48 = vpack.c.bf16 %v2068_v34, %v2068_v34  ;;  %v6537_v59 = vld [vmem:[%s10978_s6 + $0x6c8] sm:$0xff] }
 0x274   : > { %11427 = vst [vmem:[#allocation38_spill] sm:$0xff] %v9395_v32  ;;  %v9422_v56 = vsel %vm1836_vm0, %v1829_v36, %v11081_v26  ;;  %v3577_v39 = vunpack.c.l.b16 %v1778_v28  ;;  %v11433_v16 = vrot.slane %v9235_v6, 1  ;;  %v3482_v34 = vunpack.c.l.b16 %v1522_v25  ;;  %v6536_v28 = vld [vmem:[%s10978_s6 + $0x6c0] sm:$0xff]  ;;  %v9442_v26 = vpop.f32.mrf.mxu3 }
 0x275   : > { %11429 = vst [vmem:[#allocation10_spill] sm:$0xff] %v9403_v15  ;;  %v2358_v12 = vpack.c.bf16 %v2326_v29, %v2326_v29  ;;  %v3674_v18 = vunpack.c.l.b16 %v2101_v2  ;;  %v3769_v25 = vunpack.c.l.b16 %v2357_v42  ;;  %v11437_v2 = vld [vmem:[#allocation31_spill] sm:$0xff] }
 0x276   : > { %3331 = vperm.xlu2 %7149, %v6598_v8   ;;  %3079 = vperm.xlu1 %7148, %v6567_v51   ;;  %v9429_v51 = vsel %vm1836_vm0, %v11433_v16, %v1829_v36  ;;  %v6599_v36 = vld [vmem:[%s10978_s6 + $0x8b8] sm:$0xff]  ;;  %v3481_v16 = vunpack.c.l.b16 %v1521_v58  ;;  %11435 = vst [vmem:[#allocation56_spill] sm:$0xff] %v9442_v26  ;;  %v6600_v26 = vld [vmem:[%s10978_s6 + $0x8c0] sm:$0xff] }
 0x277   : > { %3074 = vperm.xlu0 %7147, %v6566_v62   ;;  %v3606_v62 = vpack.c.b16 %v3578_v60, %v3577_v39  ;;  %v11434_v60 = vld [vmem:[#allocation137_spill] sm:$0xff]  ;;  %v11441_v39 = vld [vmem:[#allocation126_spill] sm:$0xff] }
 0x278   : > { %v9416_v0 = vpop.permute.xlu2 %3286  ;;  %v3510_v27 = vpack.c.b16 %v3482_v34, %v3481_v16 }
 0x279   : > { %v2576_v4 = vpop.permute.xlu1 %2575  ;;  %v2571_v8 = vpop.permute.xlu0 %2570 }
 0x27a   : > { %v2633_v21 = vmul.f32 %v2576_v4, %v9422_v56  ;;  %v2632_v11 = vmul.f32 %v2571_v8, %v9429_v51  ;;  %v3673_v8 = vunpack.c.l.b16 %v2100_v48  ;;  %v3770_v48 = vunpack.c.l.b16 %v2358_v12 }
 0x27c   : > { %v2665_v4 = vpack.c.bf16 %v2633_v21, %v2633_v21  ;;  %v2664_v29 = vpack.c.bf16 %v2632_v11, %v2632_v11  ;;  %v1749_v21 = vmul.f32 %v11437_v2, %v11419_v49  ;;  %v3702_v42 = vpack.c.b16 %v3674_v18, %v3673_v8  ;;  %v11440_v11 = vld [vmem:[#allocation6_spill] sm:$0xff] }
 0x27d   : > { %4997 = vmatmul.bf16.gmra.mxu1 %v3606_v62  ;;  %v1491_v62 = vmul.f32 %v11440_v11, %v9395_v32  ;;  %v11446_v18 = vrot.slane %v11434_v60, 7  ;;  %v1155_v8 = vadd.f32 %v9190_v20, %v8897_v47  ;;  %v6568_v47 = vld [vmem:[%s10978_s6 + $0x7c0] sm:$0xff] }
 0x27e   : > { %v9444_v44 = vunpack.c.l.b16 %v2665_v4  ;;  %2832 = vperm.xlu2 %7149, %v6537_v59   ;;  %2827 = vperm.xlu1 %7148, %v6536_v28   ;;  %v9450_v58 = vunpack.c.l.b16 %v2664_v29  ;;  %v1232_v4 = vrot.slane %v11441_v39, 7  ;;  %v11442_v59 = vld [vmem:[#allocation37_spill] sm:$0xff]  ;;  %v11443_v28 = vld [vmem:[#allocation14_spill] sm:$0xff]  ;;  %v3798_v29 = vpack.c.b16 %v3770_v48, %v3769_v25  ;;  %v11450_v25 = vld [vmem:[#allocation163_spill] sm:$0xff] }
 0x27f   : > { %3336 = vperm.xlu0 %7147, %v6599_v36   ;;  %v1748_v34 = vmul.f32 %v11442_v59, %v11418_v50  ;;  %v1492_v16 = vmul.f32 %v11443_v28, %v9403_v15  ;;  %v1781_v11 = vpack.c.bf16 %v1749_v21, %v1749_v21  ;;  %v11448_v59 = vld [vmem:[#allocation131_spill] sm:$0xff]  ;;  %v11449_v28 = vld [vmem:[#allocation66_spill] sm:$0xff]  ;;  %v9495_v32 = vmax.f32 %v1155_v8, 0.0  ;;  %v11456_v15 = vld [vmem:[#allocation192_spill] sm:$0xff] }
 0x280   : > { %11436 = vst [vmem:[#allocation11_spill] sm:$0xff] %v9444_v44  ;;  %4908 = vmatmul.bf16.gmra.mxu0 %v3510_v27  ;;  %v9461_v36 = vpop.permute.xlu2 %3034  ;;  %v9469_v27 = vsel %vm1258_vm1, %v1232_v4, %v11446_v18  ;;  %v2071_v61 = vmul.f32 %v11449_v28, %v11448_v59  ;;  %v6569_v18 = vld [vmem:[%s10978_s6 + $0x7c8] sm:$0xff]  ;;  %v11451_v59 = vld [vmem:[#allocation93_spill] sm:$0xff]  ;;  %v11453_v28 = vld [vmem:[#allocation67_spill] sm:$0xff] }
 0x281   : > { %11439 = vst [vmem:[#allocation89_spill] sm:$0xff] %v9450_v58  ;;  %5086 = vmatmul.bf16.gmra.mxu2 %v3702_v42  ;;  %v9463_v12 = vpop.permute.xlu1 %2767  ;;  %v3277_v2 = vpop.permute.xlu0 %3276  ;;  %v3421_v42 = vpack.c.bf16 %v3389_v41, %v3389_v41  ;;  %v1780_v21 = vpack.c.bf16 %v1748_v34, %v1748_v34  ;;  %v1523_v58 = vpack.c.bf16 %v1491_v62, %v1491_v62  ;;  %v3580_v62 = vunpack.c.l.b16 %v1781_v11 }
 0x282   : > { %11444 = vst [vmem:[#allocation63_spill] sm:$0xff] %v9461_v36  ;;  %5175 = vmatmul.bf16.gmra.mxu3 %v3798_v29  ;;  %v3390_v48 = vmul.f32 %v3277_v2, %v11450_v25  ;;  %v2328_v41 = vmul.f32 %v11451_v59, %v9469_v27  ;;  %v11452_v29 = vld [vmem:[#allocation135_spill] sm:$0xff]  ;;  %v1524_v44 = vpack.c.bf16 %v1492_v16, %v1492_v16  ;;  %v11457_v59 = vld [vmem:[#allocation94_spill] sm:$0xff] }
 0x283   : > { %11445 = vst [vmem:[#allocation79_spill] sm:$0xff] %v9463_v12  ;;  %v2070_v2 = vmul.f32 %v11453_v28, %v11452_v29  ;;  %v11454_v12 = vrot.slane %v11419_v49, 7  ;;  %v1156_v34 = vadd.f32 %v9190_v20, %v11456_v15  ;;  %v2103_v29 = vpack.c.bf16 %v2071_v61, %v2071_v61  ;;  %v9505_v28 = vpop.f32.mrf.mxu3 }
 0x284   : > { %11447 = vst [vmem:[#allocation31_spill] sm:$0xff] %v9469_v27  ;;  %v3422_v36 = vpack.c.bf16 %v3390_v48, %v3390_v48  ;;  %v9501_v16 = vunpack.c.l.b16 %v3421_v42  ;;  %v3484_v11 = vunpack.c.l.b16 %v1524_v44  ;;  %v1831_v61 = vrot.slane %v9495_v32, 1  ;;  %v6601_v44 = vld [vmem:[%s10978_s6 + $0x8c8] sm:$0xff] }
 0x285   : > { %v9493_v50 = vsel %vm1258_vm1, %v11454_v12, %v1232_v4  ;;  %11460 = vst [vmem:[#allocation14_spill] sm:$0xff] %v9505_v28  ;;  %v3579_v4 = vunpack.c.l.b16 %v1780_v21  ;;  %v2360_v12 = vpack.c.bf16 %v2328_v41, %v2328_v41  ;;  %v2102_v8 = vpack.c.bf16 %v2070_v2, %v2070_v2  ;;  %v6539_v21 = vld [vmem:[%s10978_s6 + $0x6d8] sm:$0xff]  ;;  %v6538_v41 = vld [vmem:[%s10978_s6 + $0x6d0] sm:$0xff] }
 0x286   : > { %11455 = vst [vmem:[#allocation160_spill] sm:$0xff] %v9493_v50  ;;  %3341 = vperm.xlu2 %7149, %v6600_v26   ;;  %3089 = vperm.xlu1 %7148, %v6569_v18   ;;  %v2327_v53 = vmul.f32 %v11457_v59, %v9493_v50  ;;  %v9503_v48 = vunpack.c.l.b16 %v3422_v36  ;;  %v9513_v18 = vmax.f32 %v1156_v34, 0.0  ;;  %v3483_v2 = vunpack.c.l.b16 %v1523_v58  ;;  %v11466_v58 = vld [vmem:[#allocation175_spill] sm:$0xff] }
 0x287   : > { %11458 = vst [vmem:[#allocation6_spill] sm:$0xff] %v9501_v16  ;;  %3084 = vperm.xlu0 %7147, %v6568_v47   ;;  %v3607_v47 = vpack.c.b16 %v3580_v62, %v3579_v4  ;;  %v3676_v59 = vunpack.c.l.b16 %v2103_v29  ;;  %v3772_v34 = vunpack.c.l.b16 %v2360_v12  ;;  %v3675_v28 = vunpack.c.l.b16 %v2102_v8  ;;  %v11464_v4 = vld [vmem:[#allocation147_spill] sm:$0xff] }
 0x288   : > { %11459 = vst [vmem:[#allocation37_spill] sm:$0xff] %v9503_v48  ;;  %v9509_v15 = vpop.permute.xlu2 %2595  ;;  %v2359_v42 = vpack.c.bf16 %v2327_v53, %v2327_v53  ;;  %v3511_v20 = vpack.c.b16 %v3484_v11, %v3483_v2  ;;  %v11463_v53 = vld [vmem:[#allocation40_spill] sm:$0xff]  ;;  %v11465_v48 = vrot.slane %v9365_v31, 1  ;;  %v3392_v29 = vmul.f32 %v9416_v0, %v11466_v58  ;;  %v11467_v2 = vld [vmem:[#allocation141_spill] sm:$0xff]  ;;  %v11468_v16 = vld [vmem:[#allocation7_spill] sm:$0xff] }
 0x289   : > { %v9511_v26 = vpop.permute.xlu1 %3029  ;;  %v9516_v36 = vpop.permute.xlu0 %3024  ;;  %v1751_v62 = vmul.f32 %v11463_v53, %v11434_v60  ;;  %v1234_v53 = vrot.slane %v11467_v2, 7 }
 0x28a   : > { %11461 = vst [vmem:[#allocation131_spill] sm:$0xff] %v9511_v26  ;;  %v3771_v11 = vunpack.c.l.b16 %v2359_v42 }
 0x28b   : > { %11462 = vst [vmem:[#allocation66_spill] sm:$0xff] %v9516_v36  ;;  %v9534_v36 = vsel %vm1836_vm0, %v11465_v48, %v1831_v61  ;;  %v1494_v48 = vmul.f32 %v11468_v16, %v9469_v27  ;;  %v1783_v42 = vpack.c.bf16 %v1751_v62, %v1751_v62  ;;  %v9548_v12 = vpop.f32.mrf.mxu3  ;;  %v11476_v62 = vld [vmem:[#allocation70_spill] sm:$0xff] }
 0x28c   : > { %v2634_v8 = vmul.f32 %v9369_v63, %v9534_v36  ;;  %v3799_v26 = vpack.c.b16 %v3772_v34, %v3771_v11  ;;  %11471 = vst [vmem:[#allocation93_spill] sm:$0xff] %v9548_v12  ;;  %v11472_v63 = vrot.slane %v11464_v4, 7  ;;  %v11475_v34 = vrot.slane %v9513_v18, 1 }
 0x28d   : > { %5002 = vmatmul.bf16.gmra.mxu1 %v3607_v47  ;;  %v3703_v47 = vpack.c.b16 %v3676_v59, %v3675_v28  ;;  %v11474_v59 = vld [vmem:[#allocation171_spill] sm:$0xff] }
 0x28e   : > { %2842 = vperm.xlu2 %7149, %v6539_v21   ;;  %2837 = vperm.xlu1 %7148, %v6538_v41   ;;  %v11470_v21 = vld [vmem:[#allocation41_spill] sm:$0xff]  ;;  %v9554_v28 = vsel %vm1258_vm1, %v1234_v53, %v11472_v63  ;;  %v9561_v11 = vsel %vm1836_vm0, %v1831_v61, %v11475_v34  ;;  %v11478_v61 = vrot.slane %v11434_v60, 7 }
 0x28f   : > { %3346 = vperm.xlu0 %7147, %v6601_v44   ;;  %v1750_v41 = vmul.f32 %v11470_v21, %v11441_v39  ;;  %11473 = vst [vmem:[#allocation135_spill] sm:$0xff] %v9554_v28  ;;  %v2666_v21 = vpack.c.bf16 %v2634_v8, %v2634_v8  ;;  %v11477_v63 = vld [vmem:[#allocation13_spill] sm:$0xff]  ;;  %v6570_v8 = vld [vmem:[%s10978_s6 + $0x7d0] sm:$0xff] }
 0x290   : > { %4913 = vmatmul.bf16.gmra.mxu0 %v3511_v20  ;;  %v9544_v49 = vpop.permute.xlu2 %2787  ;;  %v3424_v20 = vpack.c.bf16 %v3392_v29, %v3392_v29  ;;  %v6602_v29 = vld [vmem:[%s10978_s6 + $0x8d0] sm:$0xff] }
 0x291   : > { %5091 = vmatmul.bf16.gmra.mxu2 %v3703_v47  ;;  %11469 = vst [vmem:[#allocation163_spill] sm:$0xff] %v9544_v49  ;;  %v3282_v0 = vpop.permute.xlu1 %3281  ;;  %v2586_v44 = vpop.permute.xlu0 %2585  ;;  %v2073_v47 = vmul.f32 %v11476_v62, %v8628_v17  ;;  %v1493_v49 = vmul.f32 %v11477_v63, %v9493_v50  ;;  %v9578_v17 = vsel %vm1258_vm1, %v11478_v61, %v1234_v53  ;;  %v11481_v62 = vld [vmem:[#allocation97_spill] sm:$0xff]  ;;  %v3582_v53 = vunpack.c.l.b16 %v1783_v42  ;;  %v11484_v61 = vld [vmem:[#allocation98_spill] sm:$0xff] }
 0x292   : > { %v3391_v16 = vmul.f32 %v3282_v0, %v11474_v59  ;;  %5180 = vmatmul.bf16.gmra.mxu3 %v3799_v26  ;;  %v2635_v12 = vmul.f32 %v2586_v44, %v9561_v11  ;;  %v6571_v0 = vld [vmem:[%s10978_s6 + $0x7d8] sm:$0xff]  ;;  %11479 = vst [vmem:[#allocation67_spill] sm:$0xff] %v9578_v17  ;;  %v11480_v44 = vld [vmem:[#allocation59_spill] sm:$0xff]  ;;  %v2330_v39 = vmul.f32 %v11481_v62, %v9554_v28  ;;  %v9587_v63 = vunpack.c.l.b16 %v3424_v20 }
 0x293   : > { %v2072_v34 = vmul.f32 %v11480_v44, %v8609_v38  ;;  %v1782_v52 = vpack.c.bf16 %v1750_v41, %v1750_v41  ;;  %v2329_v50 = vmul.f32 %v11484_v61, %v9578_v17  ;;  %v2105_v55 = vpack.c.bf16 %v2073_v47, %v2073_v47  ;;  %v11490_v44 = vld [vmem:[#allocation203_spill] sm:$0xff]  ;;  %v9614_v61 = vpop.f32.mrf.mxu3 }
 0x294   : > { %v3423_v26 = vpack.c.bf16 %v3391_v16, %v3391_v16  ;;  %v2667_v27 = vpack.c.bf16 %v2635_v12, %v2635_v12  ;;  %11482 = vst [vmem:[#allocation192_spill] sm:$0xff] %v9587_v63  ;;  %v1526_v16 = vpack.c.bf16 %v1494_v48, %v1494_v48  ;;  %v9593_v22 = vunpack.c.l.b16 %v2666_v21 }
 0x295   : > { %v1525_v41 = vpack.c.bf16 %v1493_v49, %v1493_v49  ;;  %v2104_v20 = vpack.c.bf16 %v2072_v34, %v2072_v34  ;;  %v6541_v49 = vld [vmem:[%s10978_s6 + $0x6e8] sm:$0xff]  ;;  %v3678_v34 = vunpack.c.l.b16 %v2105_v55  ;;  %11491 = vst [vmem:[#allocation70_spill] sm:$0xff] %v9614_v61 }
 0x296   : > { %v9589_v60 = vunpack.c.l.b16 %v3423_v26  ;;  %3351 = vperm.xlu2 %7149, %v6602_v29   ;;  %3099 = vperm.xlu1 %7148, %v6571_v0   ;;  %11485 = vst [vmem:[#allocation40_spill] sm:$0xff] %v9593_v22  ;;  %v9595_v38 = vunpack.c.l.b16 %v2667_v27  ;;  %v2362_v26 = vpack.c.bf16 %v2330_v39, %v2330_v39  ;;  %v3581_v0 = vunpack.c.l.b16 %v1782_v52  ;;  %v6540_v39 = vld [vmem:[%s10978_s6 + $0x6e0] sm:$0xff]  ;;  %v6603_v52 = vld [vmem:[%s10978_s6 + $0x8d8] sm:$0xff] }
 0x297   : > { %3094 = vperm.xlu0 %7147, %v6570_v8   ;;  %v3486_v21 = vunpack.c.l.b16 %v1526_v16  ;;  %v2361_v27 = vpack.c.bf16 %v2329_v50, %v2329_v50  ;;  %v1833_v8 = vrot.slane %v11490_v44, 1  ;;  %v3485_v16 = vunpack.c.l.b16 %v1525_v41  ;;  %v11493_v29 = vld [vmem:[#allocation153_spill] sm:$0xff] }
 0x298   : > { %11483 = vst [vmem:[#allocation94_spill] sm:$0xff] %v9589_v60  ;;  %v9601_v42 = vpop.permute.xlu2 %3049  ;;  %v3608_v62 = vpack.c.b16 %v3582_v53, %v3581_v0  ;;  %v11492_v50 = vrot.slane %v9041_v37, 1  ;;  %v3677_v0 = vunpack.c.l.b16 %v2104_v20  ;;  %v3774_v12 = vunpack.c.l.b16 %v2362_v26  ;;  %v11494_v37 = vld [vmem:[#allocation44_spill] sm:$0xff] }
 0x299   : > { %11486 = vst [vmem:[#allocation175_spill] sm:$0xff] %v9595_v38  ;;  %v9603_v48 = vpop.permute.xlu1 %2782  ;;  %v9605_v47 = vpop.permute.xlu0 %2777  ;;  %v11112_v60 = vrot.slane %v11493_v29, 7  ;;  %v3512_v61 = vpack.c.b16 %v3486_v21, %v3485_v16  ;;  %v3773_v63 = vunpack.c.l.b16 %v2361_v27  ;;  %v1753_v22 = vmul.f32 %v11494_v37, %v11464_v4  ;;  %v11495_v38 = vld [vmem:[#allocation144_spill] sm:$0xff]  ;;  %v11497_v21 = vld [vmem:[#allocation34_spill] sm:$0xff]  ;;  %v6604_v16 = vld [vmem:[%s10978_s6 + $0x8e0] sm:$0xff] }
 0x29a   : > { %11487 = vst [vmem:[#allocation7_spill] sm:$0xff] %v9601_v42  ;;  %v9623_v53 = vsel %vm1836_vm0, %v1833_v8, %v11492_v50  ;;  %v3704_v41 = vpack.c.b16 %v3678_v34, %v3677_v0  ;;  %v1236_v50 = vrot.slane %v11495_v38, 7  ;;  %v1752_v27 = vmul.f32 %v11497_v21, %v11467_v2  ;;  %v6573_v0 = vld [vmem:[%s10978_s6 + $0x7e8] sm:$0xff]  ;;  %v6572_v21 = vld [vmem:[%s10978_s6 + $0x7e0] sm:$0xff] }
 0x29b   : > { %11488 = vst [vmem:[#allocation41_spill] sm:$0xff] %v9603_v48  ;;  %v2637_v55 = vmul.f32 %v9509_v15, %v9623_v53  ;;  %v3800_v20 = vpack.c.b16 %v3774_v12, %v3773_v63 }
 0x29c   : > { %11489 = vst [vmem:[#allocation171_spill] sm:$0xff] %v9605_v47  ;;  %v9645_v37 = vsel %vm1258_vm1, %v1236_v50, %v11112_v60  ;;  %v11506_v60 = vld [vmem:[#allocation100_spill] sm:$0xff]  ;;  %v1784_v42 = vpack.c.bf16 %v1752_v27, %v1752_v27 }
 0x29d   : > { %5007 = vmatmul.bf16.gmra.mxu1 %v3608_v62  ;;  %v11496_v62 = vrot.slane %v9513_v18, 1  ;;  %11499 = vst [vmem:[#allocation13_spill] sm:$0xff] %v9645_v37  ;;  %v2669_v63 = vpack.c.bf16 %v2637_v55, %v2637_v55  ;;  %v11502_v55 = vld [vmem:[#allocation17_spill] sm:$0xff] }
 0x29e   : > { %2852 = vperm.xlu2 %7149, %v6541_v49   ;;  %2847 = vperm.xlu1 %7148, %v6540_v39   ;;  %v11498_v49 = vld [vmem:[#allocation16_spill] sm:$0xff] }
 0x29f   : > { %3356 = vperm.xlu0 %7147, %v6603_v52   ;;  %v9635_v15 = vsel %vm1836_vm0, %v11496_v62, %v1833_v8  ;;  %v1496_v39 = vmul.f32 %v11498_v49, %v9554_v28  ;;  %v11501_v8 = vld [vmem:[#allocation61_spill] sm:$0xff]  ;;  %v11503_v62 = vrot.slane %v11464_v4, 7  ;;  %v9677_v47 = vunpack.c.l.b16 %v2669_v63  ;;  %v11511_v63 = vld [vmem:[#allocation186_spill] sm:$0xff] }
 0x2a0   : > { %4918 = vmatmul.bf16.gmra.mxu0 %v3512_v61  ;;  %v2075_v61 = vmul.f32 %v11501_v8, %v11412_v30  ;;  %v9652_v52 = vpop.permute.xlu2 %3301  ;;  %v11505_v49 = vld [vmem:[#allocation69_spill] sm:$0xff] }
 0x2a1   : > { %5096 = vmatmul.bf16.gmra.mxu2 %v3704_v41  ;;  %v2591_v26 = vpop.permute.xlu1 %2590  ;;  %v9648_v34 = vpop.permute.xlu0 %3039  ;;  %v1785_v41 = vpack.c.bf16 %v1753_v22, %v1753_v22  ;;  %v9666_v30 = vsel %vm1258_vm1, %v11503_v62, %v1236_v50  ;;  %v2074_v8 = vmul.f32 %v11505_v49, %v11413_v43  ;;  %v2332_v22 = vmul.f32 %v11506_v60, %v9645_v37 }
 0x2a2   : > { %v2636_v12 = vmul.f32 %v2591_v26, %v9635_v15  ;;  %11500 = vst [vmem:[#allocation59_spill] sm:$0xff] %v9648_v34  ;;  %5185 = vmatmul.bf16.gmra.mxu3 %v3800_v20  ;;  %v1495_v26 = vmul.f32 %v11502_v55, %v9578_v17  ;;  %v9675_v34 = vpop.f32.mrf.mxu3  ;;  %v1528_v55 = vpack.c.bf16 %v1496_v39, %v1496_v39  ;;  %v3583_v39 = vunpack.c.l.b16 %v1784_v42  ;;  %v6605_v42 = vld [vmem:[%s10978_s6 + $0x8e8] sm:$0xff] }
 0x2a3   : > { %11504 = vst [vmem:[#allocation97_spill] sm:$0xff] %v9666_v30  ;;  %v2107_v50 = vpack.c.bf16 %v2075_v61, %v2075_v61  ;;  %v3584_v2 = vunpack.c.l.b16 %v1785_v41  ;;  %v2106_v27 = vpack.c.bf16 %v2074_v8, %v2074_v8  ;;  %v2364_v49 = vpack.c.bf16 %v2332_v22, %v2332_v22  ;;  %v6543_v41 = vld [vmem:[%s10978_s6 + $0x6f8] sm:$0xff] }
 0x2a4   : > { %v2668_v20 = vpack.c.bf16 %v2636_v12, %v2636_v12  ;;  %11507 = vst [vmem:[#allocation98_spill] sm:$0xff] %v9675_v34  ;;  %v11510_v12 = vld [vmem:[#allocation101_spill] sm:$0xff]  ;;  %v1527_v60 = vpack.c.bf16 %v1495_v26, %v1495_v26  ;;  %v3488_v17 = vunpack.c.l.b16 %v1528_v55  ;;  %v6542_v26 = vld [vmem:[%s10978_s6 + $0x6f0] sm:$0xff] }
 0x2a5   : > { %11508 = vst [vmem:[#allocation203_spill] sm:$0xff] %v9677_v47  ;;  %v2331_v62 = vmul.f32 %v11510_v12, %v9666_v30  ;;  %v3609_v28 = vpack.c.b16 %v3584_v2, %v3583_v39  ;;  %v3679_v2 = vunpack.c.l.b16 %v2106_v27  ;;  %v3776_v12 = vunpack.c.l.b16 %v2364_v49 }
 0x2a6   : > { %v9679_v48 = vunpack.c.l.b16 %v2668_v20  ;;  %3361 = vperm.xlu2 %7149, %v6604_v16   ;;  %3109 = vperm.xlu1 %7148, %v6573_v0   ;;  %v11512_v0 = vld [vmem:[#allocation187_spill] sm:$0xff] }
 0x2a7   : > { %3104 = vperm.xlu0 %7147, %v6572_v21   ;;  %v2363_v16 = vpack.c.bf16 %v2331_v62, %v2331_v62  ;;  %v3680_v21 = vunpack.c.l.b16 %v2107_v50  ;;  %v11514_v62 = vld [vmem:[#allocation165_spill] sm:$0xff] }
 0x2a8   : > { %11509 = vst [vmem:[#allocation44_spill] sm:$0xff] %v9679_v48  ;;  %v9696_v22 = vpop.permute.xlu2 %2802  ;;  %v11119_v39 = vrot.slane %v11514_v62, 7 }
 0x2a9   : > { %v3297_v34 = vpop.permute.xlu1 %3296  ;;  %v3292_v20 = vpop.permute.xlu0 %3291  ;;  %11513 = vst [vmem:[#allocation34_spill] sm:$0xff] %v9696_v22  ;;  %v3775_v48 = vunpack.c.l.b16 %v2363_v16 }
 0x2aa   : > { %v3394_v4 = vmul.f32 %v3297_v34, %v11511_v63  ;;  %v3393_v61 = vmul.f32 %v3292_v20, %v11512_v0  ;;  %v3487_v34 = vunpack.c.l.b16 %v1527_v60  ;;  %v11517_v60 = vld [vmem:[#allocation35_spill] sm:$0xff]  ;;  %v9705_v22 = vpop.f32.mrf.mxu3 }
 0x2ab   : > { %v1755_v47 = vmul.f32 %v11517_v60, %v11493_v29  ;;  %11518 = vst [vmem:[#allocation17_spill] sm:$0xff] %v9705_v22  ;;  %v11527_v60 = vrot.slane %v11493_v29, 7  ;;  %v11531_v22 = vld [vmem:[#allocation88_spill] sm:$0xff] }
 0x2ac   : > { %v3426_v8 = vpack.c.bf16 %v3394_v4, %v3394_v4  ;;  %v3425_v55 = vpack.c.bf16 %v3393_v61, %v3393_v61  ;;  %v3513_v43 = vpack.c.b16 %v3488_v17, %v3487_v34  ;;  %v3705_v4 = vpack.c.b16 %v3680_v21, %v3679_v2  ;;  %v11521_v17 = vld [vmem:[#allocation43_spill] sm:$0xff]  ;;  %v11523_v21 = vld [vmem:[#allocation20_spill] sm:$0xff] }
 0x2ad   : > { %5012 = vmatmul.bf16.gmra.mxu1 %v3609_v28  ;;  %v11519_v28 = vld [vmem:[#allocation157_spill] sm:$0xff]  ;;  %v3801_v61 = vpack.c.b16 %v3776_v12, %v3775_v48  ;;  %v6606_v48 = vld [vmem:[%s10978_s6 + $0x8f0] sm:$0xff]  ;;  %v1787_v2 = vpack.c.bf16 %v1755_v47, %v1755_v47  ;;  %v11526_v12 = vld [vmem:[#allocation8_spill] sm:$0xff] }
 0x2ae   : > { %v9699_v20 = vunpack.c.l.b16 %v3426_v8  ;;  %2862 = vperm.xlu2 %7149, %v6543_v41   ;;  %2857 = vperm.xlu1 %7148, %v6542_v26   ;;  %v9701_v50 = vunpack.c.l.b16 %v3425_v55  ;;  %v1238_v27 = vrot.slane %v11519_v28, 7  ;;  %v1754_v26 = vmul.f32 %v11521_v17, %v11495_v38  ;;  %v6575_v55 = vld [vmem:[%s10978_s6 + $0x7f8] sm:$0xff] }
 0x2af   : > { %3366 = vperm.xlu0 %7147, %v6605_v42   ;;  %v1498_v8 = vmul.f32 %v11523_v21, %v9645_v37  ;;  %v11525_v42 = vld [vmem:[#allocation71_spill] sm:$0xff] }
 0x2b0   : > { %11515 = vst [vmem:[#allocation16_spill] sm:$0xff] %v9699_v20  ;;  %4923 = vmatmul.bf16.gmra.mxu0 %v3513_v43  ;;  %v9718_v16 = vsel %vm1258_vm1, %v1238_v27, %v11119_v39  ;;  %v2077_v34 = vmul.f32 %v11525_v42, %v11450_v25  ;;  %v9738_v17 = vsel %vm1258_vm1, %v11527_v60, %v1238_v27  ;;  %v6574_v25 = vld [vmem:[%s10978_s6 + $0x7f0] sm:$0xff]  ;;  %v9749_v27 = vpop.permute.xlu2 %3311  ;;  %v3586_v60 = vunpack.c.l.b16 %v1787_v2  ;;  %v6607_v2 = vld [vmem:[%s10978_s6 + $0x8f8] sm:$0xff] }
 0x2b1   : > { %11516 = vst [vmem:[#allocation61_spill] sm:$0xff] %v9701_v50  ;;  %5101 = vmatmul.bf16.gmra.mxu2 %v3705_v4  ;;  %v9710_v41 = vpop.permute.xlu1 %3044  ;;  %v9722_v43 = vpop.permute.xlu0 %2792  ;;  %v1497_v4 = vmul.f32 %v11526_v12, %v9666_v30  ;;  %v11530_v42 = vld [vmem:[#allocation103_spill] sm:$0xff]  ;;  %v1786_v47 = vpack.c.bf16 %v1754_v26, %v1754_v26  ;;  %v1530_v39 = vpack.c.bf16 %v1498_v8, %v1498_v8 }
 0x2b2   : > { %11520 = vst [vmem:[#allocation69_spill] sm:$0xff] %v9710_v41  ;;  %5190 = vmatmul.bf16.gmra.mxu3 %v3801_v61  ;;  %v11529_v61 = vld [vmem:[#allocation72_spill] sm:$0xff]  ;;  %v2334_v49 = vmul.f32 %v11530_v42, %v9718_v16  ;;  %v2109_v12 = vpack.c.bf16 %v2077_v34, %v2077_v34  ;;  %v2333_v50 = vmul.f32 %v11531_v22, %v9738_v17 }
 0x2b3   : > { %11522 = vst [vmem:[#allocation100_spill] sm:$0xff] %v9718_v16  ;;  %v2076_v21 = vmul.f32 %v11529_v61, %v11438_v7  ;;  %v1529_v20 = vpack.c.bf16 %v1497_v4, %v1497_v4  ;;  %v3585_v7 = vunpack.c.l.b16 %v1786_v47  ;;  %v9751_v61 = vpop.f32.mrf.mxu3  ;;  %v11533_v47 = vld [vmem:[#allocation179_spill] sm:$0xff] }
 0x2b4   : > { %11524 = vst [vmem:[#allocation101_spill] sm:$0xff] %v9722_v43  ;;  %v2366_v43 = vpack.c.bf16 %v2334_v49, %v2334_v49  ;;  %v3682_v22 = vunpack.c.l.b16 %v2109_v12 }
 0x2b5   : > { %11528 = vst [vmem:[#allocation186_spill] sm:$0xff] %v9738_v17  ;;  %v2108_v41 = vpack.c.bf16 %v2076_v21, %v2076_v21  ;;  %v3610_v42 = vpack.c.b16 %v3586_v60, %v3585_v7  ;;  %v3489_v4 = vunpack.c.l.b16 %v1529_v20  ;;  %v11536_v60 = vld [vmem:[#allocation202_spill] sm:$0xff] }
 0x2b6   : > { %3371 = vperm.xlu2 %7149, %v6606_v48   ;;  %3119 = vperm.xlu1 %7148, %v6575_v55   ;;  %11532 = vst [vmem:[#allocation187_spill] sm:$0xff] %v9751_v61  ;;  %v3490_v48 = vunpack.c.l.b16 %v1530_v39  ;;  %v2365_v55 = vpack.c.bf16 %v2333_v50, %v2333_v50  ;;  %v3778_v21 = vunpack.c.l.b16 %v2366_v43  ;;  %v11124_v61 = vrot.slane %v11533_v47, 7  ;;  %v11535_v50 = vld [vmem:[#allocation46_spill] sm:$0xff] }
 0x2b7   : > { %3114 = vperm.xlu0 %7147, %v6574_v25   ;;  %v3681_v25 = vunpack.c.l.b16 %v2108_v41  ;;  %v3395_v12 = vmul.f32 %v9652_v52, %v11536_v60  ;;  %v11541_v52 = vld [vmem:[#allocation9_spill] sm:$0xff] }
 0x2b8   : > { %v3514_v39 = vpack.c.b16 %v3490_v48, %v3489_v4  ;;  %v3777_v20 = vunpack.c.l.b16 %v2365_v55  ;;  %v9768_v41 = vpop.permute.xlu2 %2812  ;;  %v11540_v48 = vld [vmem:[#allocation47_spill] sm:$0xff] }
 0x2b9   : > { %v2606_v29 = vpop.permute.xlu1 %2605  ;;  %v2601_v8 = vpop.permute.xlu0 %2600  ;;  %11539 = vst [vmem:[#allocation20_spill] sm:$0xff] %v9768_v41  ;;  %v1756_v4 = vmul.f32 %v11540_v48, %v11519_v28  ;;  %v11546_v48 = vld [vmem:[#allocation19_spill] sm:$0xff]  ;;  %v11551_v41 = vld [vmem:[#allocation92_spill] sm:$0xff] }
 0x2ba   : > { %v2639_v26 = vmul.f32 %v2606_v29, %v9134_v46  ;;  %v2638_v34 = vmul.f32 %v2601_v8, %v9126_v5  ;;  %v1757_v8 = vmul.f32 %v11535_v50, %v11514_v62  ;;  %v3802_v43 = vpack.c.b16 %v3778_v21, %v3777_v20  ;;  %v11544_v21 = vld [vmem:[#allocation201_spill] sm:$0xff] }
 0x2bb   : > { %v3427_v50 = vpack.c.bf16 %v3395_v12, %v3395_v12  ;;  %v9785_v20 = vpop.f32.mrf.mxu3 }
 0x2bc   : > { %v2671_v38 = vpack.c.bf16 %v2639_v26, %v2639_v26  ;;  %v2670_v49 = vpack.c.bf16 %v2638_v34, %v2638_v34  ;;  %v3706_v26 = vpack.c.b16 %v3682_v22, %v3681_v25  ;;  %v11538_v34 = vld [vmem:[#allocation169_spill] sm:$0xff]  ;;  %v11543_v25 = vld [vmem:[#allocation74_spill] sm:$0xff]  ;;  %11545 = vst [vmem:[#allocation8_spill] sm:$0xff] %v9785_v20 }
 0x2bd   : > { %5017 = vmatmul.bf16.gmra.mxu1 %v3610_v42  ;;  %v1240_v42 = vrot.slane %v11538_v34, 7  ;;  %v9801_v28 = vunpack.c.l.b16 %v3427_v50 }
 0x2be   : > { %v9759_v29 = vunpack.c.l.b16 %v2671_v38  ;;  %v9765_v7 = vunpack.c.l.b16 %v2670_v49  ;;  %v1500_v49 = vmul.f32 %v11541_v52, %v9718_v16  ;;  %v1499_v52 = vmul.f32 %v11546_v48, %v9738_v17  ;;  %v11557_v17 = vld [vmem:[#allocation50_spill] sm:$0xff] }
 0x2bf   : > { %3376 = vperm.xlu0 %7147, %v6607_v2   ;;  %v9780_v55 = vsel %vm1258_vm1, %v1240_v42, %v11124_v61  ;;  %v1789_v2 = vpack.c.bf16 %v1757_v8, %v1757_v8  ;;  %v11547_v38 = vrot.slane %v11514_v62, 7  ;;  %v11549_v8 = vld [vmem:[#allocation62_spill] sm:$0xff]  ;;  %11552 = vst [vmem:[#allocation103_spill] sm:$0xff] %v9801_v28 }
 0x2c0   : > { %11534 = vst [vmem:[#allocation35_spill] sm:$0xff] %v9759_v29  ;;  %4928 = vmatmul.bf16.gmra.mxu0 %v3514_v39  ;;  %v2079_v39 = vmul.f32 %v11543_v25, %v11466_v58  ;;  %v11550_v58 = vld [vmem:[#allocation109_spill] sm:$0xff]  ;;  %v1788_v25 = vpack.c.bf16 %v1756_v4, %v1756_v4 }
 0x2c1   : > { %11537 = vst [vmem:[#allocation43_spill] sm:$0xff] %v9765_v7  ;;  %5106 = vmatmul.bf16.gmra.mxu2 %v3706_v26  ;;  %v3307_v22 = vpop.permute.xlu0 %3306  ;;  %v9793_v61 = vsel %vm1258_vm1, %v11547_v38, %v1240_v42  ;;  %v2078_v7 = vmul.f32 %v11549_v8, %v11474_v59  ;;  %v2336_v12 = vmul.f32 %v11550_v58, %v9780_v55  ;;  %v3588_v29 = vunpack.c.l.b16 %v1789_v2  ;;  %v11556_v59 = vld [vmem:[#allocation198_spill] sm:$0xff] }
 0x2c2   : > { %11542 = vst [vmem:[#allocation71_spill] sm:$0xff] %v9780_v55  ;;  %5195 = vmatmul.bf16.gmra.mxu3 %v3802_v43  ;;  %v3396_v26 = vmul.f32 %v3307_v22, %v11544_v21  ;;  %v1532_v22 = vpack.c.bf16 %v1500_v49, %v1500_v49  ;;  %v2111_v20 = vpack.c.bf16 %v2079_v39, %v2079_v39  ;;  %v3587_v8 = vunpack.c.l.b16 %v1788_v25  ;;  %v9812_v49 = vld [vmem:[%s10977_s5 + $0x2] ss:$0 sm:$0xff]  ;;  %v9814_v39 = vpop.permute.xlu2 %3321 }
 0x2c3   : > { %11548 = vst [vmem:[#allocation72_spill] sm:$0xff] %v9793_v61  ;;  %v2335_v48 = vmul.f32 %v11551_v41, %v9793_v61  ;;  %v1531_v42 = vpack.c.bf16 %v1499_v52, %v1499_v52  ;;  %v2110_v38 = vpack.c.bf16 %v2078_v7, %v2078_v7  ;;  %v2368_v16 = vpack.c.bf16 %v2336_v12, %v2336_v12  ;;  %v9816_v25 = vpop.f32.mrf.mxu3 }
 0x2c4   : > { %v3428_v43 = vpack.c.bf16 %v3396_v26, %v3396_v26  ;;  %v3492_v41 = vunpack.c.l.b16 %v1532_v22  ;;  %v3611_v50 = vpack.c.b16 %v3588_v29, %v3587_v8  ;;  %v3684_v26 = vunpack.c.l.b16 %v2111_v20  ;;  %11555 = vst [vmem:[#allocation202_spill] sm:$0xff] %v9816_v25 }
 0x2c5   : > { %v2367_v2 = vpack.c.bf16 %v2335_v48, %v2335_v48  ;;  %v3491_v7 = vunpack.c.l.b16 %v1531_v42  ;;  %v3683_v12 = vunpack.c.l.b16 %v2110_v38  ;;  %v1759_v22 = vmul.f32 %v11557_v17, %v11533_v47  ;;  %v11558_v48 = vld [vmem:[#allocation176_spill] sm:$0xff] }
 0x2c6   : > { %v9803_v62 = vunpack.c.l.b16 %v3428_v43  ;;  %v3780_v43 = vunpack.c.l.b16 %v2368_v16  ;;  %v1242_v30 = vrot.slane %v11558_v48, 7  ;;  %v3397_v29 = vmul.f32 %v9749_v27, %v9176_v54  ;;  %v11559_v16 = vld [vmem:[#allocation36_spill] sm:$0xff] }
 0x2c7   : > { %v3707_v20 = vpack.c.b16 %v3684_v26, %v3683_v12  ;;  %v3779_v42 = vunpack.c.l.b16 %v2367_v2  ;;  %v1758_v8 = vmul.f32 %v11559_v16, %v11538_v34  ;;  %v11564_v12 = vrot.slane %v11533_v47, 7  ;;  %v11565_v16 = vld [vmem:[#allocation73_spill] sm:$0xff] }
 0x2c8   : > { %11553 = vst [vmem:[#allocation88_spill] sm:$0xff] %v9803_v62 }
 0x2c9   : > { %v9807_v58 = vpop.permute.xlu0 %3054 }
 0x2ca   : > { %11554 = vst [vmem:[#allocation46_spill] sm:$0xff] %v9807_v58  ;;  %v4983_v4 = vpop.f32.mrf.mxu1  ;;  %v3515_v58 = vpack.c.b16 %v3492_v41, %v3491_v7  ;;  %v3803_v41 = vpack.c.b16 %v3780_v43, %v3779_v42  ;;  %v11561_v7 = vld [vmem:[#allocation23_spill] sm:$0xff]  ;;  %v9843_v43 = vsel %vm1258_vm1, %v11564_v12, %v1242_v30 }
 0x2cb   : > { %v1501_v17 = vmul.f32 %v11561_v7, %v9793_v61 }
 0x2cd   : > { %v4894_v52 = vpop.f32.mrf.mxu0  ;;  %5022 = vmatmul.bf16.gmra.mxu1 %v3611_v50  ;;  %v11560_v50 = vld [vmem:[#allocation22_spill] sm:$0xff] }
 0x2ce   : > { %v4895_v62 = vadd.f32 %v9812_v49, %v4894_v52  ;;  %v1502_v28 = vmul.f32 %v11560_v50, %v9780_v55  ;;  %v11562_v52 = vrot.slane %v11556_v59, 7  ;;  %v2080_v50 = vmul.f32 %v11565_v16, %v11512_v0 }
 0x2d0   : > { %4933 = vmatmul.bf16.gmra.mxu0 %v3515_v58  ;;  %v4984_v38 = vadd.f32 %v4983_v4, %v4895_v62  ;;  %v9835_v27 = vsel %vm1258_vm1, %v1242_v30, %v11562_v52  ;;  %v1791_v62 = vpack.c.bf16 %v1759_v22, %v1759_v22  ;;  %v11563_v4 = vld [vmem:[#allocation65_spill] sm:$0xff]  ;;  %v1790_v52 = vpack.c.bf16 %v1758_v8, %v1758_v8  ;;  %v11566_v22 = vld [vmem:[#allocation115_spill] sm:$0xff]  ;;  %v11568_v30 = vld [vmem:[#allocation96_spill] sm:$0xff] }
 0x2d1   : > { %5111 = vmatmul.bf16.gmra.mxu2 %v3707_v20  ;;  %v3317_v2 = vpop.permute.xlu0 %3316  ;;  %v2081_v26 = vmul.f32 %v11563_v4, %v11511_v63  ;;  %v3429_v20 = vpack.c.bf16 %v3397_v29, %v3397_v29  ;;  %v1534_v25 = vpack.c.bf16 %v1502_v28, %v1502_v28  ;;  %v2338_v34 = vmul.f32 %v11566_v22, %v9835_v27  ;;  %v9850_v63 = vpop.permute.xlu2 %2822 }
 0x2d2   : > { %v4985_v58 = vpop.f32.mrf.mxu1  ;;  %5200 = vmatmul.bf16.gmra.mxu3 %v3803_v41  ;;  %v3398_v42 = vmul.f32 %v3317_v2, %v9201_v9  ;;  %11567 = vst [vmem:[#allocation47_spill] sm:$0xff] %v9850_v63  ;;  %v2337_v29 = vmul.f32 %v11568_v30, %v9843_v43  ;;  %v1533_v41 = vpack.c.bf16 %v1501_v17, %v1501_v17  ;;  %v3590_v55 = vunpack.c.l.b16 %v1791_v62 }
 0x2d3   : > { %v2113_v0 = vpack.c.bf16 %v2081_v26, %v2081_v26  ;;  %v9855_v16 = vunpack.c.l.b16 %v3429_v20  ;;  %v3589_v63 = vunpack.c.l.b16 %v1790_v52  ;;  %v3494_v30 = vunpack.c.l.b16 %v1534_v25 }
 0x2d4   : > { %v5072_v7 = vpop.f32.mrf.mxu2  ;;  %v3430_v4 = vpack.c.bf16 %v3398_v42, %v3398_v42  ;;  %v2112_v42 = vpack.c.bf16 %v2080_v50, %v2080_v50  ;;  %v2369_v17 = vpack.c.bf16 %v2337_v29, %v2337_v29  ;;  %v3493_v26 = vunpack.c.l.b16 %v1533_v41  ;;  %v11572_v29 = vld [vmem:[#allocation39_spill] sm:$0xff] }
 0x2d5   : > { %v5073_v47 = vadd.f32 %v5072_v7, %v4984_v38  ;;  %v4896_v61 = vpop.f32.mrf.mxu0  ;;  %v5161_v12 = vpop.f32.mrf.mxu3  ;;  %11569 = vst [vmem:[#allocation9_spill] sm:$0xff] %v9855_v16  ;;  %v2370_v38 = vpack.c.bf16 %v2338_v34, %v2338_v34  ;;  %v3612_v62 = vpack.c.b16 %v3590_v55, %v3589_v63  ;;  %v3686_v20 = vunpack.c.l.b16 %v2113_v0  ;;  %v11581_v16 = vld [vmem:[#allocation121_spill] sm:$0xff] }
 0x2d6   : > { %v4897_v2 = vadd.f32 %v9812_v49, %v4896_v61  ;;  %v9857_v28 = vunpack.c.l.b16 %v3430_v4  ;;  %v11142_v34 = vrot.slane %v9110_v45, 7  ;;  %v3781_v25 = vunpack.c.l.b16 %v2369_v17 }
 0x2d7   : > { %v9859_v8 = vadd.f32 %v5161_v12, %v5073_v47  ;;  %v3516_v47 = vpack.c.b16 %v3494_v30, %v3493_v26  ;;  %v3782_v52 = vunpack.c.l.b16 %v2370_v38  ;;  %v1244_v55 = vrot.slane %v8997_v33, 7 }
 0x2d8   : > { %11570 = vst [vmem:[#allocation74_spill] sm:$0xff] %v9857_v28  ;;  %v4986_v22 = vadd.f32 %v4985_v58, %v4897_v2  ;;  %v3685_v58 = vunpack.c.l.b16 %v2112_v42  ;;  %v1761_v2 = vmul.f32 %v11572_v29, %v11556_v59  ;;  %v3399_v63 = vmul.f32 %v9814_v39, %v9292_v35  ;;  %v11574_v42 = vld [vmem:[#allocation49_spill] sm:$0xff] }
 0x2d9   : > { %v9863_v37 = vpop.permute.xlu0 %3064  ;;  %v1760_v38 = vmul.f32 %v11574_v42, %v11558_v48  ;;  %v3804_v17 = vpack.c.b16 %v3782_v52, %v3781_v25  ;;  %v9884_v39 = vsel %vm1258_vm1, %v1244_v55, %v11142_v34  ;;  %v11579_v29 = vld [vmem:[#allocation77_spill] sm:$0xff] }
 0x2da   : > { %11571 = vst [vmem:[#allocation201_spill] sm:$0xff] %v9863_v37  ;;  %v4988_v61 = vpop.f32.mrf.mxu1  ;;  %v3708_v0 = vpack.c.b16 %v3686_v20, %v3685_v58 }
 0x2dc   : > { %v5074_v40 = vpop.f32.mrf.mxu2 }
 0x2dd   : > { %v5075_v4 = vadd.f32 %v5074_v40, %v4986_v22  ;;  %v4899_v19 = vpop.f32.mrf.mxu0  ;;  %5027 = vmatmul.bf16.gmra.mxu1 %v3612_v62  ;;  %v5163_v50 = vpop.f32.mrf.mxu3  ;;  %v11576_v62 = vld [vmem:[#allocation12_spill] sm:$0xff] }
 0x2de   : > { %v4900_v12 = vadd.f32 %v9812_v49, %v4899_v19  ;;  %v3332_v40 = vpop.permute.xlu2 %3331  ;;  %v11575_v19 = vld [vmem:[#allocation25_spill] sm:$0xff]  ;;  %v1503_v26 = vmul.f32 %v11576_v62, %v9843_v43 }
 0x2df   : > { %v9872_v41 = vadd.f32 %v5163_v50, %v5075_v4  ;;  %v1504_v30 = vmul.f32 %v11575_v19, %v9835_v27  ;;  %v3431_v50 = vpack.c.bf16 %v3399_v63, %v3399_v63  ;;  %v1792_v19 = vpack.c.bf16 %v1760_v38, %v1760_v38 }
 0x2e0   : > { %4938 = vmatmul.bf16.gmra.mxu0 %v3516_v47  ;;  %v4989_v22 = vadd.f32 %v4988_v61, %v4900_v12  ;;  %v1793_v61 = vpack.c.bf16 %v1761_v2, %v1761_v2  ;;  %v11577_v47 = vld [vmem:[#allocation76_spill] sm:$0xff]  ;;  %v11578_v12 = vrot.slane %v11556_v59, 7  ;;  %v11580_v2 = vld [vmem:[#allocation119_spill] sm:$0xff]  ;;  %v1535_v34 = vpack.c.bf16 %v1503_v26, %v1503_v26 }
 0x2e1   : > { %11573 = vst [vmem:[#allocation19_spill] sm:$0xff] %v9872_v41  ;;  %5116 = vmatmul.bf16.gmra.mxu2 %v3708_v0  ;;  %v3327_v20 = vpop.permute.xlu0 %3326  ;;  %v2083_v58 = vmul.f32 %v11577_v47, %v11544_v21  ;;  %v2082_v0 = vmul.f32 %v11579_v29, %v11536_v60  ;;  %v2340_v62 = vmul.f32 %v11580_v2, %v9884_v39  ;;  %v9902_v37 = vunpack.c.l.b16 %v3431_v50 }
 0x2e2   : > { %v4990_v4 = vpop.f32.mrf.mxu1  ;;  %v9892_v52 = vsel %vm1258_vm1, %v11578_v12, %v1244_v55  ;;  %5205 = vmatmul.bf16.gmra.mxu3 %v3804_v17  ;;  %v3400_v25 = vmul.f32 %v3327_v20, %v9276_v10  ;;  %v1536_v7 = vpack.c.bf16 %v1504_v30, %v1504_v30  ;;  %v3592_v20 = vunpack.c.l.b16 %v1793_v61 }
 0x2e3   : > { %v2339_v55 = vmul.f32 %v11581_v16, %v9892_v52  ;;  %v2115_v28 = vpack.c.bf16 %v2083_v58, %v2083_v58  ;;  %11582 = vst [vmem:[#allocation62_spill] sm:$0xff] %v9902_v37  ;;  %v3591_v30 = vunpack.c.l.b16 %v1792_v19  ;;  %v3495_v50 = vunpack.c.l.b16 %v1535_v34 }
 0x2e4   : > { %v5077_v42 = vpop.f32.mrf.mxu2  ;;  %v3432_v21 = vpack.c.bf16 %v3400_v25, %v3400_v25  ;;  %v2114_v25 = vpack.c.bf16 %v2082_v0, %v2082_v0  ;;  %v3496_v26 = vunpack.c.l.b16 %v1536_v7 }
 0x2e5   : > { %v5078_v63 = vadd.f32 %v5077_v42, %v4989_v22  ;;  %v4901_v47 = vpop.f32.mrf.mxu0  ;;  %v5166_v12 = vpop.f32.mrf.mxu3  ;;  %v2372_v22 = vpack.c.bf16 %v2340_v62, %v2340_v62  ;;  %v2371_v2 = vpack.c.bf16 %v2339_v55, %v2339_v55  ;;  %v3613_v58 = vpack.c.b16 %v3592_v20, %v3591_v30  ;;  %v11587_v55 = vld [vmem:[#allocation51_spill] sm:$0xff]  ;;  %v11589_v30 = vld [vmem:[#allocation52_spill] sm:$0xff] }
 0x2e6   : > { %v4902_v17 = vadd.f32 %v9812_v49, %v4901_v47  ;;  %v9904_v60 = vunpack.c.l.b16 %v3432_v21  ;;  %v9908_v42 = vpop.permute.xlu2 %2832  ;;  %v3688_v21 = vunpack.c.l.b16 %v2115_v28  ;;  %v3687_v0 = vunpack.c.l.b16 %v2114_v25 }
 0x2e7   : > { %v9906_v38 = vadd.f32 %v5166_v12, %v5078_v63  ;;  %11585 = vst [vmem:[#allocation198_spill] sm:$0xff] %v9908_v42  ;;  %v3784_v19 = vunpack.c.l.b16 %v2372_v22  ;;  %v11146_v62 = vrot.slane %v9245_v23, 7  ;;  %v3783_v7 = vunpack.c.l.b16 %v2371_v2  ;;  %v11590_v22 = vld [vmem:[#allocation15_spill] sm:$0xff] }
 0x2e8   : > { %11583 = vst [vmem:[#allocation109_spill] sm:$0xff] %v9904_v60  ;;  %v4991_v29 = vadd.f32 %v4990_v4, %v4902_v17  ;;  %v3517_v4 = vpack.c.b16 %v3496_v26, %v3495_v50  ;;  %v1763_v37 = vmul.f32 %v11587_v55, %v9110_v45  ;;  %v1246_v20 = vrot.slane %v9150_v13, 7  ;;  %v11594_v55 = vld [vmem:[#allocation68_spill] sm:$0xff] }
 0x2e9   : > { %11584 = vst [vmem:[#allocation92_spill] sm:$0xff] %v9906_v38  ;;  %v9912_v47 = vpop.permute.xlu0 %3074  ;;  %v3401_v28 = vmul.f32 %v3332_v40, %v9429_v51  ;;  %v1762_v25 = vmul.f32 %v11589_v30, %v8997_v33  ;;  %v1506_v26 = vmul.f32 %v11590_v22, %v9884_v39  ;;  %v3805_v2 = vpack.c.b16 %v3784_v19, %v3783_v7  ;;  %v11591_v40 = vld [vmem:[#allocation24_spill] sm:$0xff] }
 0x2ea   : > { %11586 = vst [vmem:[#allocation50_spill] sm:$0xff] %v9912_v47  ;;  %v4993_v61 = vpop.f32.mrf.mxu1  ;;  %v1505_v50 = vmul.f32 %v11591_v40, %v9892_v52  ;;  %v11595_v40 = vld [vmem:[#allocation107_spill] sm:$0xff] }
 0x2eb   : > { %v1794_v22 = vpack.c.bf16 %v1762_v25, %v1762_v25 }
 0x2ec   : > { %v5079_v41 = vpop.f32.mrf.mxu2  ;;  %v1537_v60 = vpack.c.bf16 %v1505_v50, %v1505_v50  ;;  %v11602_v50 = vld [vmem:[#allocation55_spill] sm:$0xff] }
 0x2ed   : > { %v5080_v63 = vadd.f32 %v5079_v41, %v4991_v29  ;;  %v4904_v12 = vpop.f32.mrf.mxu0  ;;  %5032 = vmatmul.bf16.gmra.mxu1 %v3613_v58  ;;  %v5168_v17 = vpop.f32.mrf.mxu3  ;;  %v3709_v41 = vpack.c.b16 %v3688_v21, %v3687_v0  ;;  %v9930_v58 = vsel %vm1258_vm1, %v1246_v20, %v11146_v62  ;;  %v11593_v0 = vrot.slane %v9110_v45, 7 }
 0x2ee   : > { %v4905_v16 = vadd.f32 %v9812_v49, %v4904_v12 }
 0x2ef   : > { %v9920_v34 = vadd.f32 %v5168_v17, %v5080_v63  ;;  %v9940_v19 = vsel %vm1258_vm1, %v11593_v0, %v1246_v20  ;;  %v3342_v17 = vpop.permute.xlu2 %3341  ;;  %v11596_v20 = vld [vmem:[#allocation124_spill] sm:$0xff] }
 0x2f0   : > { %4943 = vmatmul.bf16.gmra.mxu0 %v3517_v4  ;;  %v4994_v29 = vadd.f32 %v4993_v61, %v4905_v16  ;;  %v1795_v16 = vpack.c.bf16 %v1763_v37, %v1763_v37  ;;  %v11592_v61 = vld [vmem:[#allocation81_spill] sm:$0xff]  ;;  %v3433_v4 = vpack.c.bf16 %v3401_v28, %v3401_v28  ;;  %v1538_v37 = vpack.c.bf16 %v1506_v26, %v1506_v26 }
 0x2f1   : > { %11588 = vst [vmem:[#allocation176_spill] sm:$0xff] %v9920_v34  ;;  %5121 = vmatmul.bf16.gmra.mxu2 %v3709_v41  ;;  %v3337_v21 = vpop.permute.xlu0 %3336  ;;  %v2085_v12 = vmul.f32 %v11592_v61, %v9201_v9  ;;  %v2084_v41 = vmul.f32 %v11594_v55, %v9176_v54  ;;  %v2342_v9 = vmul.f32 %v11595_v40, %v9930_v58  ;;  %v3593_v55 = vunpack.c.l.b16 %v1794_v22 }
 0x2f2   : > { %v4995_v63 = vpop.f32.mrf.mxu1  ;;  %5210 = vmatmul.bf16.gmra.mxu3 %v3805_v2  ;;  %v3402_v7 = vmul.f32 %v3337_v21, %v9422_v56  ;;  %v2341_v0 = vmul.f32 %v11596_v20, %v9940_v19  ;;  %v3594_v21 = vunpack.c.l.b16 %v1795_v16  ;;  %v9950_v34 = vunpack.c.l.b16 %v3433_v4 }
 0x2f3   : > { %v2117_v47 = vpack.c.bf16 %v2085_v12, %v2085_v12  ;;  %v3497_v12 = vunpack.c.l.b16 %v1537_v60  ;;  %v1248_v60 = vrot.slane %v9235_v6, 7 }
 0x2f4   : > { %v5082_v30 = vpop.f32.mrf.mxu2  ;;  %v3434_v28 = vpack.c.bf16 %v3402_v7, %v3402_v7  ;;  %11597 = vst [vmem:[#allocation36_spill] sm:$0xff] %v9950_v34  ;;  %v2116_v7 = vpack.c.bf16 %v2084_v41, %v2084_v41  ;;  %v2373_v40 = vpack.c.bf16 %v2341_v0, %v2341_v0  ;;  %v3614_v16 = vpack.c.b16 %v3594_v21, %v3593_v55 }
 0x2f5   : > { %v5083_v61 = vadd.f32 %v5082_v30, %v4994_v29  ;;  %v4906_v62 = vpop.f32.mrf.mxu0  ;;  %v5171_v42 = vpop.f32.mrf.mxu3  ;;  %v2374_v29 = vpack.c.bf16 %v2342_v9, %v2342_v9  ;;  %v3498_v30 = vunpack.c.l.b16 %v1538_v37  ;;  %v3690_v4 = vunpack.c.l.b16 %v2117_v47 }
 0x2f6   : > { %v4907_v2 = vadd.f32 %v9812_v49, %v4906_v62  ;;  %v9952_v54 = vunpack.c.l.b16 %v3434_v28  ;;  %v3689_v41 = vunpack.c.l.b16 %v2116_v7  ;;  %v11148_v9 = vrot.slane %v9375_v57, 7  ;;  %v11604_v7 = vld [vmem:[#allocation42_spill] sm:$0xff] }
 0x2f7   : > { %v9954_v25 = vadd.f32 %v5171_v42, %v5083_v61  ;;  %v9960_v28 = vpop.permute.xlu2 %2842  ;;  %v3786_v22 = vunpack.c.l.b16 %v2374_v29  ;;  %v3785_v0 = vunpack.c.l.b16 %v2373_v40  ;;  %v1765_v21 = vmul.f32 %v11602_v50, %v9245_v23 }
 0x2f8   : > { %11598 = vst [vmem:[#allocation22_spill] sm:$0xff] %v9952_v54  ;;  %v4996_v26 = vadd.f32 %v4995_v63, %v4907_v2  ;;  %v3518_v63 = vpack.c.b16 %v3498_v30, %v3497_v12  ;;  %v3403_v47 = vmul.f32 %v3342_v17, %v9534_v36  ;;  %v1764_v29 = vmul.f32 %v11604_v7, %v9150_v13  ;;  %v11605_v30 = vld [vmem:[#allocation26_spill] sm:$0xff]  ;;  %v11606_v17 = vld [vmem:[#allocation27_spill] sm:$0xff]  ;;  %v11611_v54 = vld [vmem:[#allocation113_spill] sm:$0xff] }
 0x2f9   : > { %11599 = vst [vmem:[#allocation23_spill] sm:$0xff] %v9954_v25  ;;  %v9958_v20 = vpop.permute.xlu0 %3084  ;;  %v3806_v40 = vpack.c.b16 %v3786_v22, %v3785_v0  ;;  %v9978_v50 = vsel %vm1258_vm1, %v1248_v60, %v11148_v9  ;;  %v1507_v12 = vmul.f32 %v11606_v17, %v9940_v19  ;;  %v11609_v0 = vld [vmem:[#allocation80_spill] sm:$0xff] }
 0x2fa   : > { %11600 = vst [vmem:[#allocation65_spill] sm:$0xff] %v9958_v20  ;;  %v4998_v62 = vpop.f32.mrf.mxu1 }
 0x2fb   : > { %11601 = vst [vmem:[#allocation73_spill] sm:$0xff] %v9960_v28  ;;  %v1539_v34 = vpack.c.bf16 %v1507_v12, %v1507_v12 }
 0x2fc   : > { %v5084_v38 = vpop.f32.mrf.mxu2 }
 0x2fd   : > { %v5085_v42 = vadd.f32 %v5084_v38, %v4996_v26  ;;  %v4909_v61 = vpop.f32.mrf.mxu0  ;;  %5037 = vmatmul.bf16.gmra.mxu1 %v3614_v16  ;;  %v5173_v2 = vpop.f32.mrf.mxu3  ;;  %v3710_v38 = vpack.c.b16 %v3690_v4, %v3689_v41  ;;  %v1508_v16 = vmul.f32 %v11605_v30, %v9930_v58  ;;  %v3435_v41 = vpack.c.bf16 %v3403_v47, %v3403_v47 }
 0x2fe   : > { %v4910_v37 = vadd.f32 %v9812_v49, %v4909_v61  ;;  %v11607_v61 = vld [vmem:[#allocation87_spill] sm:$0xff]  ;;  %v1796_v30 = vpack.c.bf16 %v1764_v29, %v1764_v29 }
 0x2ff   : > { %v9968_v55 = vadd.f32 %v5173_v2, %v5085_v42  ;;  %v11608_v2 = vrot.slane %v9245_v23, 7  ;;  %v1540_v17 = vpack.c.bf16 %v1508_v16, %v1508_v16  ;;  %v9998_v20 = vunpack.c.l.b16 %v3435_v41 }
 0x300   : > { %4948 = vmatmul.bf16.gmra.mxu0 %v3518_v63  ;;  %v4999_v26 = vadd.f32 %v4998_v62, %v4910_v37  ;;  %v1797_v62 = vpack.c.bf16 %v1765_v21, %v1765_v21  ;;  %v2087_v63 = vmul.f32 %v11607_v61, %v9276_v10  ;;  %v11610_v21 = vld [vmem:[#allocation136_spill] sm:$0xff]  ;;  %v3499_v41 = vunpack.c.l.b16 %v1539_v34 }
 0x301   : > { %11603 = vst [vmem:[#allocation115_spill] sm:$0xff] %v9968_v55  ;;  %5126 = vmatmul.bf16.gmra.mxu2 %v3710_v38  ;;  %v3347_v4 = vpop.permute.xlu0 %3346  ;;  %v9988_v22 = vsel %vm1258_vm1, %v11608_v2, %v1248_v60  ;;  %v2086_v38 = vmul.f32 %v11609_v0, %v9292_v35  ;;  %v2344_v9 = vmul.f32 %v11610_v21, %v9978_v50  ;;  %v3352_v35 = vpop.permute.xlu2 %3351 }
 0x302   : > { %v5000_v42 = vpop.f32.mrf.mxu1  ;;  %5215 = vmatmul.bf16.gmra.mxu3 %v3806_v40  ;;  %v3404_v37 = vmul.f32 %v3347_v4, %v9561_v11  ;;  %v2343_v60 = vmul.f32 %v11611_v54, %v9988_v22  ;;  %v3596_v4 = vunpack.c.l.b16 %v1797_v62  ;;  %v2119_v28 = vpack.c.bf16 %v2087_v63, %v2087_v63  ;;  %11612 = vst [vmem:[#allocation96_spill] sm:$0xff] %v9998_v20 }
 0x303   : > { %v3500_v54 = vunpack.c.l.b16 %v1540_v17  ;;  %v3405_v34 = vmul.f32 %v3352_v35, %v9635_v15 }
 0x304   : > { %v5087_v7 = vpop.f32.mrf.mxu2  ;;  %v3436_v10 = vpack.c.bf16 %v3404_v37, %v3404_v37  ;;  %v3595_v37 = vunpack.c.l.b16 %v1796_v30  ;;  %v2375_v62 = vpack.c.bf16 %v2343_v60, %v2343_v60  ;;  %v3692_v55 = vunpack.c.l.b16 %v2119_v28 }
 0x305   : > { %v5088_v47 = vadd.f32 %v5087_v7, %v4999_v26  ;;  %v4911_v61 = vpop.f32.mrf.mxu0  ;;  %v5176_v2 = vpop.f32.mrf.mxu3  ;;  %v2118_v26 = vpack.c.bf16 %v2086_v38, %v2086_v38  ;;  %v2376_v7 = vpack.c.bf16 %v2344_v9, %v2344_v9  ;;  %v1250_v9 = vrot.slane %v9365_v31, 7 }
 0x306   : > { %v4912_v40 = vadd.f32 %v9812_v49, %v4911_v61  ;;  %v10000_v29 = vunpack.c.l.b16 %v3436_v10  ;;  %v3615_v63 = vpack.c.b16 %v3596_v4, %v3595_v37  ;;  %v11153_v38 = vrot.slane %v9495_v32, 7  ;;  %v11615_v37 = vld [vmem:[#allocation54_spill] sm:$0xff] }
 0x307   : > { %v10002_v16 = vadd.f32 %v5176_v2, %v5088_v47  ;;  %v3519_v47 = vpack.c.b16 %v3500_v54, %v3499_v41  ;;  %v3788_v30 = vunpack.c.l.b16 %v2376_v7  ;;  %v3787_v4 = vunpack.c.l.b16 %v2375_v62 }
 0x308   : > { %11613 = vst [vmem:[#allocation39_spill] sm:$0xff] %v10000_v29  ;;  %v5001_v0 = vadd.f32 %v5000_v42, %v4912_v40  ;;  %v3691_v42 = vunpack.c.l.b16 %v2118_v26  ;;  %v11614_v40 = vld [vmem:[#allocation45_spill] sm:$0xff]  ;;  %v1766_v26 = vmul.f32 %v11615_v37, %v9235_v6 }
 0x309   : > { %v10006_v21 = vpop.permute.xlu0 %3094  ;;  %v1767_v60 = vmul.f32 %v11614_v40, %v9375_v57  ;;  %v10018_v7 = vpop.permute.xlu2 %2852  ;;  %v3807_v54 = vpack.c.b16 %v3788_v30, %v3787_v4  ;;  %v11620_v40 = vld [vmem:[#allocation18_spill] sm:$0xff] }
 0x30a   : > { %v5003_v61 = vpop.f32.mrf.mxu1  ;;  %11616 = vst [vmem:[#allocation49_spill] sm:$0xff] %v10018_v7  ;;  %v1798_v37 = vpack.c.bf16 %v1766_v26, %v1766_v26 }
 0x30c   : > { %v5089_v25 = vpop.f32.mrf.mxu2 }
 0x30d   : > { %v5090_v10 = vadd.f32 %v5089_v25, %v5001_v0  ;;  %v4914_v13 = vpop.f32.mrf.mxu0  ;;  %5042 = vmatmul.bf16.gmra.mxu1 %v3615_v63  ;;  %v5178_v2 = vpop.f32.mrf.mxu3  ;;  %v3711_v25 = vpack.c.b16 %v3692_v55, %v3691_v42  ;;  %v11617_v63 = vld [vmem:[#allocation30_spill] sm:$0xff]  ;;  %v10029_v55 = vsel %vm1258_vm1, %v1250_v9, %v11153_v38  ;;  %v11619_v42 = vld [vmem:[#allocation83_spill] sm:$0xff] }
 0x30e   : > { %v4915_v17 = vadd.f32 %v9812_v49, %v4914_v13  ;;  %v7053_v13 = vld [vmem:[%s10975_s3 + $0x178] sm:$0xff]  ;;  %v1510_v35 = vmul.f32 %v11617_v63, %v9978_v50  ;;  %v2089_v30 = vmul.f32 %v11619_v42, %v9422_v56  ;;  %v11621_v63 = vld [vmem:[#allocation90_spill] sm:$0xff] }
 0x30f   : > { %v10014_v28 = vadd.f32 %v5178_v2, %v5090_v10  ;;  %v3437_v2 = vpack.c.bf16 %v3405_v34, %v3405_v34  ;;  %5330 = vmatpush.bf16.msra.mxu1 %v7053_v13  ;;  %v11623_v34 = vld [vmem:[#allocation142_spill] sm:$0xff] }
 0x310   : > { %4953 = vmatmul.bf16.gmra.mxu0 %v3519_v47  ;;  %v5004_v0 = vadd.f32 %v5003_v61, %v4915_v17  ;;  %v11618_v61 = vrot.slane %v9375_v57, 7  ;;  %v1799_v47 = vpack.c.bf16 %v1767_v60, %v1767_v60  ;;  %v1542_v56 = vpack.c.bf16 %v1510_v35, %v1510_v35 }
 0x311   : > { %5131 = vmatmul.bf16.gmra.mxu2 %v3711_v25  ;;  %v3357_v41 = vpop.permute.xlu0 %3356  ;;  %v1509_v25 = vmul.f32 %v11620_v40, %v9988_v22  ;;  %v2121_v40 = vpack.c.bf16 %v2089_v30, %v2089_v30  ;;  %v10049_v29 = vunpack.c.l.b16 %v3437_v2  ;;  %v7052_v2 = vld [vmem:[%s10975_s3 + $0x170] sm:$0xff]  ;;  %v1252_v35 = vrot.slane %v9513_v18, 7 }
 0x312   : > { %v10035_v62 = vsel %vm1258_vm1, %v11618_v61, %v1250_v9  ;;  %v5005_v10 = vpop.f32.mrf.mxu1  ;;  %5220 = vmatmul.bf16.gmra.mxu3 %v3807_v54  ;;  %v3406_v17 = vmul.f32 %v3357_v41, %v9623_v53  ;;  %v2088_v9 = vmul.f32 %v11621_v63, %v9429_v51  ;;  %v11622_v61 = vld [vmem:[#allocation140_spill] sm:$0xff]  ;;  %v3598_v42 = vunpack.c.l.b16 %v1799_v47 }
 0x313   : > { %v2346_v12 = vmul.f32 %v11622_v61, %v10029_v55  ;;  %v2345_v54 = vmul.f32 %v11623_v34, %v10035_v62  ;;  %11624 = vst [vmem:[#allocation25_spill] sm:$0xff] %v10049_v29  ;;  %v1541_v63 = vpack.c.bf16 %v1509_v25, %v1509_v25  ;;  %v7061_v47 = vld [vmem:[%s10975_s3 + $0x1b8] sm:$0xff]  ;;  %v7060_v34 = vld [vmem:[%s10975_s3 + $0x1b0] sm:$0xff]  ;;  %5331 = vmatpush.bf16.msra.mxu1 %v7052_v2  ;;  %v11627_v2 = vld [vmem:[#allocation57_spill] sm:$0xff] }
 0x314   : > { %v5092_v4 = vpop.f32.mrf.mxu2  ;;  %v3438_v60 = vpack.c.bf16 %v3406_v17, %v3406_v17  ;;  %v2120_v17 = vpack.c.bf16 %v2088_v9, %v2088_v9  ;;  %v3694_v9 = vunpack.c.l.b16 %v2121_v40  ;;  %5419 = vmatpush.bf16.msrb.mxu2 %v7061_v47  ;;  %v7051_v47 = vld [vmem:[%s10975_s3 + $0x168] sm:$0xff] }
 0x315   : > { %v5093_v38 = vadd.f32 %v5092_v4, %v5004_v0  ;;  %v4916_v20 = vpop.f32.mrf.mxu0  ;;  %v5181_v41 = vpop.f32.mrf.mxu3  ;;  %v2378_v0 = vpack.c.bf16 %v2346_v12, %v2346_v12  ;;  %v3597_v4 = vunpack.c.l.b16 %v1798_v37  ;;  %v3502_v12 = vunpack.c.l.b16 %v1542_v56 }
 0x316   : > { %v4917_v13 = vadd.f32 %v9812_v49, %v4916_v20  ;;  %v10051_v26 = vunpack.c.l.b16 %v3438_v60  ;;  %v7045_v20 = vld [vmem:[%s10975_s3 + $0x138] sm:$0xff]  ;;  %v2377_v25 = vpack.c.bf16 %v2345_v54, %v2345_v54  ;;  %v7044_v60 = vld [vmem:[%s10975_s3 + $0x130] sm:$0xff]  ;;  %v3501_v56 = vunpack.c.l.b16 %v1541_v63 }
 0x317   : > { %v10053_v51 = vadd.f32 %v5181_v41, %v5093_v38  ;;  %v7069_v38 = vld [vmem:[%s10975_s3 + $0x1f8] sm:$0xff]  ;;  %v3616_v37 = vpack.c.b16 %v3598_v42, %v3597_v4  ;;  %5241 = vmatpush.bf16.msra.mxu0 %v7045_v20  ;;  %v3362_v41 = vpop.permute.xlu2 %3361  ;;  %v7068_v54 = vld [vmem:[%s10975_s3 + $0x1f0] sm:$0xff]  ;;  %v3693_v4 = vunpack.c.l.b16 %v2120_v17  ;;  %v3790_v20 = vunpack.c.l.b16 %v2378_v0  ;;  %v7043_v0 = vld [vmem:[%s10975_s3 + $0x128] sm:$0xff]  ;;  %5332 = vmatpush.bf16.msra.mxu1 %v7051_v47 }
 0x318   : > { %11625 = vst [vmem:[#allocation12_spill] sm:$0xff] %v10051_v26  ;;  %v5006_v61 = vadd.f32 %v5005_v10, %v4917_v13  ;;  %5508 = vmatpush.bf16.msrb.mxu3 %v7069_v38  ;;  %v3520_v38 = vpack.c.b16 %v3502_v12, %v3501_v56  ;;  %v1769_v26 = vmul.f32 %v11627_v2, %v9495_v32  ;;  %v3789_v17 = vunpack.c.l.b16 %v2377_v25  ;;  %v7059_v12 = vld [vmem:[%s10975_s3 + $0x1a8] sm:$0xff] }
 0x319   : > { %v10066_v30 = vpop.permute.xlu0 %3104  ;;  %5420 = vmatpush.bf16.msrb.mxu2 %v7060_v34  ;;  %v11629_v25 = vld [vmem:[#allocation58_spill] sm:$0xff] }
 0x31a   : > { %11626 = vst [vmem:[#allocation76_spill] sm:$0xff] %v10066_v30  ;;  %v5008_v10 = vpop.f32.mrf.mxu1  ;;  %v3407_v30 = vmul.f32 %v3362_v41, %v9126_v5  ;;  %v7067_v5 = vld [vmem:[%s10975_s3 + $0x1e8] sm:$0xff]  ;;  %v11631_v41 = vrot.slane %v11490_v44, 7 }
 0x31b   : > { %5242 = vmatpush.bf16.msra.mxu0 %v7044_v60  ;;  %v7050_v60 = vld [vmem:[%s10975_s3 + $0x160] sm:$0xff]  ;;  %v11633_v47 = vld [vmem:[#allocation102_spill] sm:$0xff] }
 0x31c   : > { %v5094_v13 = vpop.f32.mrf.mxu2  ;;  %5509 = vmatpush.bf16.msrb.mxu3 %v7068_v54  ;;  %v10110_v56 = vsel %vm1258_vm1, %v1252_v35, %v11631_v41  ;;  %v11632_v54 = vrot.slane %v9495_v32, 7  ;;  %5333 = vmatpush.bf16.msra.mxu1 %v7050_v60 }
 0x31d   : > { %v5095_v42 = vadd.f32 %v5094_v13, %v5006_v61  ;;  %v4919_v40 = vpop.f32.mrf.mxu0  ;;  %5047 = vmatmul.bf16.gmra.mxu1 %v3616_v37  ;;  %v5183_v29 = vpop.f32.mrf.mxu3  ;;  %v3712_v37 = vpack.c.b16 %v3694_v9, %v3693_v4  ;;  %v1768_v9 = vmul.f32 %v11629_v25, %v9365_v31  ;;  %5421 = vmatpush.bf16.msrb.mxu2 %v7059_v12  ;;  %v7049_v12 = vld [vmem:[%s10975_s3 + $0x158] sm:$0xff] }
 0x31e   : > { %v4920_v63 = vadd.f32 %v9812_v49, %v4919_v40 }
 0x31f   : > { %v10088_v61 = vadd.f32 %v5183_v29, %v5095_v42  ;;  %v3808_v29 = vpack.c.b16 %v3790_v20, %v3789_v17  ;;  %v10116_v42 = vsel %vm1258_vm1, %v11632_v54, %v1252_v35  ;;  %v1801_v20 = vpack.c.bf16 %v1769_v26, %v1769_v26  ;;  %5243 = vmatpush.bf16.msra.mxu0 %v7043_v0  ;;  %v11634_v17 = vld [vmem:[#allocation84_spill] sm:$0xff]  ;;  %v11635_v35 = vld [vmem:[#allocation29_spill] sm:$0xff]  ;;  %v11636_v26 = vld [vmem:[#allocation130_spill] sm:$0xff] }
 0x320   : > { %4958 = vmatmul.bf16.gmra.mxu0 %v3520_v38  ;;  %v5009_v13 = vadd.f32 %v5008_v10, %v4920_v63  ;;  %v11630_v10 = vld [vmem:[#allocation21_spill] sm:$0xff]  ;;  %v2091_v63 = vmul.f32 %v11633_v47, %v9561_v11  ;;  %v3439_v38 = vpack.c.bf16 %v3407_v30, %v3407_v30  ;;  %v2090_v1 = vmul.f32 %v11634_v17, %v9534_v36  ;;  %v11637_v54 = vld [vmem:[#allocation146_spill] sm:$0xff] }
 0x321   : > { %11628 = vst [vmem:[#allocation77_spill] sm:$0xff] %v10088_v61  ;;  %5136 = vmatmul.bf16.gmra.mxu2 %v3712_v37  ;;  %v1512_v34 = vmul.f32 %v11630_v10, %v10029_v55  ;;  %v3367_v40 = vpop.permute.xlu0 %3366  ;;  %v7042_v37 = vld [vmem:[%s10975_s3 + $0x120] sm:$0xff]  ;;  %v1511_v25 = vmul.f32 %v11635_v35, %v10035_v62  ;;  %5510 = vmatpush.bf16.msrb.mxu3 %v7067_v5  ;;  %v3600_v35 = vunpack.c.l.b16 %v1801_v20  ;;  %v7057_v20 = vld [vmem:[%s10975_s3 + $0x198] sm:$0xff] }
 0x322   : > { %v5010_v4 = vpop.f32.mrf.mxu1  ;;  %5225 = vmatmul.bf16.gmra.mxu3 %v3808_v29  ;;  %v3408_v2 = vmul.f32 %v3367_v40, %v9134_v46  ;;  %v7058_v11 = vld [vmem:[%s10975_s3 + $0x1a0] sm:$0xff]  ;;  %v2348_v30 = vmul.f32 %v11636_v26, %v10110_v56  ;;  %v1800_v41 = vpack.c.bf16 %v1768_v9, %v1768_v9  ;;  %v2347_v40 = vmul.f32 %v11637_v54, %v10116_v42  ;;  %v7041_v9 = vld [vmem:[%s10975_s3 + $0x118] sm:$0xff] }
 0x323   : > { %v7066_v46 = vld [vmem:[%s10975_s3 + $0x1e0] sm:$0xff]  ;;  %v1544_v5 = vpack.c.bf16 %v1512_v34, %v1512_v34  ;;  %v2123_v7 = vpack.c.bf16 %v2091_v63, %v2091_v63  ;;  %v10142_v61 = vunpack.c.l.b16 %v3439_v38  ;;  %5244 = vmatpush.bf16.msra.mxu0 %v7042_v37  ;;  %v1543_v60 = vpack.c.bf16 %v1511_v25, %v1511_v25  ;;  %5422 = vmatpush.bf16.msrb.mxu2 %v7058_v11  ;;  %v7065_v63 = vld [vmem:[%s10975_s3 + $0x1d8] sm:$0xff] }
 0x324   : > { %v5097_v10 = vpop.f32.mrf.mxu2  ;;  %v3440_v0 = vpack.c.bf16 %v3408_v2, %v3408_v2  ;;  %v2122_v38 = vpack.c.bf16 %v2090_v1, %v2090_v1  ;;  %v3599_v26 = vunpack.c.l.b16 %v1800_v41  ;;  %5334 = vmatpush.bf16.msra.mxu1 %v7049_v12  ;;  %v2379_v11 = vpack.c.bf16 %v2347_v40, %v2347_v40  ;;  %v7040_v1 = vld [vmem:[%s10975_s3 + $0x110] sm:$0xff] }
 0x325   : > { %v5098_v29 = vadd.f32 %v5097_v10, %v5009_v13  ;;  %v4921_v36 = vpop.f32.mrf.mxu0  ;;  %v5186_v47 = vpop.f32.mrf.mxu3  ;;  %11638 = vst [vmem:[#allocation119_spill] sm:$0xff] %v10142_v61  ;;  %5511 = vmatpush.bf16.msrb.mxu3 %v7066_v46  ;;  %v2380_v10 = vpack.c.bf16 %v2348_v30, %v2348_v30  ;;  %v3504_v25 = vunpack.c.l.b16 %v1544_v5  ;;  %v7056_v41 = vld [vmem:[%s10975_s3 + $0x190] sm:$0xff] }
 0x326   : > { %v4922_v17 = vadd.f32 %v9812_v49, %v4921_v36  ;;  %v10144_v2 = vunpack.c.l.b16 %v3440_v0  ;;  %v3617_v46 = vpack.c.b16 %v3600_v35, %v3599_v26  ;;  %v3503_v36 = vunpack.c.l.b16 %v1543_v60 }
 0x327   : > { %v10146_v13 = vadd.f32 %v5186_v47, %v5098_v29  ;;  %v3696_v29 = vunpack.c.l.b16 %v2123_v7  ;;  %5245 = vmatpush.bf16.msra.mxu0 %v7041_v9  ;;  %5423 = vmatpush.bf16.msrb.mxu2 %v7057_v20  ;;  %v3695_v54 = vunpack.c.l.b16 %v2122_v38  ;;  %v3792_v40 = vunpack.c.l.b16 %v2380_v10  ;;  %v7064_v7 = vld [vmem:[%s10975_s3 + $0x1d0] sm:$0xff]  ;;  %v7047_v9 = vld [vmem:[%s10975_s3 + $0x148] sm:$0xff] }
 0x328   : > { %11639 = vst [vmem:[#allocation121_spill] sm:$0xff] %v10144_v2  ;;  %v5011_v34 = vadd.f32 %v5010_v4, %v4922_v17  ;;  %v7048_v4 = vld [vmem:[%s10975_s3 + $0x150] sm:$0xff]  ;;  %v3521_v35 = vpack.c.b16 %v3504_v25, %v3503_v36  ;;  %v3791_v20 = vunpack.c.l.b16 %v2379_v11  ;;  %v7039_v10 = vld [vmem:[%s10975_s3 + $0x108] sm:$0xff] }
 0x329   : > { %5512 = vmatpush.bf16.msrb.mxu3 %v7065_v63  ;;  %5335 = vmatpush.bf16.msra.mxu1 %v7048_v4  ;;  %v11640_v63 = vld [vmem:[#allocation60_spill] sm:$0xff]  ;;  %v7055_v25 = vld [vmem:[%s10975_s3 + $0x188] sm:$0xff] }
 0x32a   : > { %v5013_v0 = vpop.f32.mrf.mxu1  ;;  %v1771_v38 = vmul.f32 %v11640_v63, %v11490_v44  ;;  %v3809_v4 = vpack.c.b16 %v3792_v40, %v3791_v20  ;;  %v11644_v40 = vld [vmem:[#allocation33_spill] sm:$0xff]  ;;  %v11646_v63 = vld [vmem:[#allocation156_spill] sm:$0xff] }
 0x32b   : > { %5246 = vmatpush.bf16.msra.mxu0 %v7040_v1  ;;  %5424 = vmatpush.bf16.msrb.mxu2 %v7056_v41  ;;  %v11642_v1 = vld [vmem:[#allocation32_spill] sm:$0xff]  ;;  %v11643_v41 = vld [vmem:[#allocation134_spill] sm:$0xff] }
 0x32c   : > { %v5099_v30 = vpop.f32.mrf.mxu2 }
 0x32d   : > { %v5100_v12 = vadd.f32 %v5099_v30, %v5011_v34  ;;  %v4924_v5 = vpop.f32.mrf.mxu0  ;;  %5052 = vmatmul.bf16.gmra.mxu1 %v3617_v46  ;;  %v5188_v47 = vpop.f32.mrf.mxu3  ;;  %v3713_v34 = vpack.c.b16 %v3696_v29, %v3695_v54  ;;  %v11641_v46 = vld [vmem:[#allocation48_spill] sm:$0xff]  ;;  %5513 = vmatpush.bf16.msrb.mxu3 %v7064_v7  ;;  %v7063_v29 = vld [vmem:[%s10975_s3 + $0x1c8] sm:$0xff]  ;;  %v1514_v30 = vmul.f32 %v11642_v1, %v10110_v56  ;;  %v7038_v54 = vld [vmem:[%s10975_s3 + $0x100] sm:$0xff] }
 0x32e   : > { %v4925_v17 = vadd.f32 %v9812_v49, %v4924_v5  ;;  %v1770_v11 = vmul.f32 %v11641_v46, %v9513_v18  ;;  %5336 = vmatpush.bf16.msra.mxu1 %v7047_v9  ;;  %v1803_v5 = vpack.c.bf16 %v1771_v38, %v1771_v38  ;;  %v1513_v7 = vmul.f32 %v11644_v40, %v10116_v42 }
 0x32f   : > { %v10175_v60 = vadd.f32 %v5188_v47, %v5100_v12  ;;  %v2093_v12 = vmul.f32 %v11643_v41, %v9623_v53  ;;  %5247 = vmatpush.bf16.msra.mxu0 %v7039_v10  ;;  %5425 = vmatpush.bf16.msrb.mxu2 %v7055_v25  ;;  %v2350_v38 = vmul.f32 %v11646_v63, %v9120_v3  ;;  %v7062_v10 = vld [vmem:[%s10975_s3 + $0x1c0] sm:$0xff] }
 0x330   : > { %4963 = vmatmul.bf16.gmra.mxu0 %v3521_v35  ;;  %v5014_v26 = vadd.f32 %v5013_v0, %v4925_v17  ;;  %v7046_v0 = vld [vmem:[%s10975_s3 + $0x140] sm:$0xff]  ;;  %v11645_v35 = vld [vmem:[#allocation108_spill] sm:$0xff]  ;;  %v1802_v20 = vpack.c.bf16 %v1770_v11, %v1770_v11  ;;  %v1545_v40 = vpack.c.bf16 %v1513_v7, %v1513_v7 }
 0x331   : > { %5141 = vmatmul.bf16.gmra.mxu2 %v3713_v34  ;;  %v7054_v17 = vld [vmem:[%s10975_s3 + $0x180] sm:$0xff]  ;;  %v2092_v9 = vmul.f32 %v11645_v35, %v9635_v15  ;;  %5514 = vmatpush.bf16.msrb.mxu3 %v7063_v29  ;;  %v2125_v1 = vpack.c.bf16 %v2093_v12, %v2093_v12  ;;  %v3602_v15 = vunpack.c.l.b16 %v1803_v5  ;;  %v2382_v63 = vpack.c.bf16 %v2350_v38, %v2350_v38 }
 0x332   : > { %v5015_v36 = vpop.f32.mrf.mxu1  ;;  %5230 = vmatmul.bf16.gmra.mxu3 %v3809_v4  ;;  %v1546_v4 = vpack.c.bf16 %v1514_v30, %v1514_v30  ;;  %5337 = vmatpush.bf16.msra.mxu1 %v7046_v0  ;;  %v3601_v35 = vunpack.c.l.b16 %v1802_v20 }
 0x333   : > { %5248 = vmatpush.bf16.msra.mxu0 %v7038_v54  ;;  %5426 = vmatpush.bf16.msrb.mxu2 %v7054_v17  ;;  %v2124_v29 = vpack.c.bf16 %v2092_v9, %v2092_v9 }
 0x334   : > { %v5102_v47 = vpop.f32.mrf.mxu2  ;;  %v3506_v37 = vunpack.c.l.b16 %v1546_v4  ;;  %v3618_v61 = vpack.c.b16 %v3602_v15, %v3601_v35  ;;  %v11650_v15 = vld [vmem:[#allocation220_spill] sm:$0xff]  ;;  %v11655_v35 = vld [vmem:[#allocation170_spill] sm:$0xff] }
 0x335   : > { %v5103_v53 = vadd.f32 %v5102_v47, %v5014_v26  ;;  %v4926_v34 = vpop.f32.mrf.mxu0  ;;  %v5191_v25 = vpop.f32.mrf.mxu3  ;;  %v11647_v26 = vld [vmem:[#allocation158_spill] sm:$0xff]  ;;  %5515 = vmatpush.bf16.msrb.mxu3 %v7062_v10  ;;  %v3697_v2 = vunpack.c.l.b16 %v2124_v29  ;;  %v11654_v29 = vld [vmem:[#allocation105_spill] sm:$0xff] }
 0x336   : > { %v4927_v46 = vadd.f32 %v9812_v49, %v4926_v34  ;;  %v2349_v11 = vmul.f32 %v11647_v26, %v9077_v14  ;;  %v3698_v34 = vunpack.c.l.b16 %v2125_v1  ;;  %v3794_v26 = vunpack.c.l.b16 %v2382_v63 }
 0x337   : > { %v10213_v41 = vadd.f32 %v5191_v25, %v5103_v53  ;;  %v3505_v53 = vunpack.c.l.b16 %v1545_v40 }
 0x338   : > { %v5016_v47 = vadd.f32 %v5015_v36, %v4927_v46  ;;  %v2381_v0 = vpack.c.bf16 %v2349_v11, %v2349_v11  ;;  %v3714_v9 = vpack.c.b16 %v3698_v34, %v3697_v2  ;;  %v11649_v46 = vld [vmem:[#allocation162_spill] sm:$0xff]  ;;  %v11651_v11 = vld [vmem:[#allocation145_spill] sm:$0xff]  ;;  %v3122_v2 = vmul.f32 %v11655_v35, %v11654_v29 }
 0x339   : > { %v3522_v7 = vpack.c.b16 %v3506_v37, %v3505_v53  ;;  %v2865_v1 = vmul.f32 %v11649_v46, %v9226_v24  ;;  %v2866_v40 = vmul.f32 %v11651_v11, %v11650_v15 }
 0x33a   : > { %v5018_v30 = vpop.f32.mrf.mxu1  ;;  %v3793_v20 = vunpack.c.l.b16 %v2381_v0  ;;  %v10231_v0 = vld [vmem:[%s10977_s5 + $0x2] ss:$0 sm:$0xff] }
 0x33c   : > { %v5104_v12 = vpop.f32.mrf.mxu2  ;;  %v3810_v10 = vpack.c.b16 %v3794_v26, %v3793_v20  ;;  %v11658_v26 = vld [vmem:[#allocation110_spill] sm:$0xff]  ;;  %v3154_v20 = vpack.c.bf16 %v3122_v2, %v3122_v2 }
 0x33d   : > { %v5105_v25 = vadd.f32 %v5104_v12, %v5016_v47  ;;  %v4929_v5 = vpop.f32.mrf.mxu0  ;;  %5057 = vmatmul.bf16.gmra.mxu1 %v3618_v61  ;;  %v5193_v54 = vpop.f32.mrf.mxu3  ;;  %v11652_v47 = vld [vmem:[#allocation116_spill] sm:$0xff]  ;;  %v11656_v12 = vld [vmem:[#allocation106_spill] sm:$0xff] }
 0x33e   : > { %v4930_v36 = vadd.f32 %v9812_v49, %v4929_v5  ;;  %v11653_v49 = vld [vmem:[#allocation168_spill] sm:$0xff]  ;;  %v2384_v53 = vpack.c.bf16 %v11656_v12, %v11656_v12  ;;  %v4147_v35 = vunpack.c.l.b16 %v3154_v20  ;;  %v11666_v20 = vld [vmem:[#allocation185_spill] sm:$0xff] }
 0x33f   : > { %v10218_v17 = vadd.f32 %v5193_v54, %v5105_v25  ;;  %v3123_v37 = vmul.f32 %v11653_v49, %v11652_v47  ;;  %v2897_v25 = vpack.c.bf16 %v2865_v1, %v2865_v1  ;;  %v2383_v54 = vpack.c.bf16 %v11658_v26, %v11658_v26  ;;  %v11659_v1 = vld [vmem:[#allocation117_spill] sm:$0xff] }
 0x340   : > { %4968 = vmatmul.bf16.gmra.mxu0 %v3522_v7  ;;  %v5019_v38 = vadd.f32 %v5018_v30, %v4930_v36  ;;  %v2898_v7 = vpack.c.bf16 %v2866_v40, %v2866_v40 }
 0x341   : > { %11648 = vst [vmem:[#allocation51_spill] sm:$0xff] %v10218_v17  ;;  %5146 = vmatmul.bf16.gmra.mxu2 %v3714_v9  ;;  %v3155_v9 = vpack.c.bf16 %v3123_v37, %v3123_v37  ;;  %v4051_v46 = vunpack.c.l.b16 %v2897_v25  ;;  %v3859_v15 = vunpack.c.l.b16 %v2383_v54  ;;  %v11663_v54 = vld [vmem:[#allocation231_spill] sm:$0xff] }
 0x342   : > { %v5020_v4 = vpop.f32.mrf.mxu1  ;;  %5235 = vmatmul.bf16.gmra.mxu3 %v3810_v10  ;;  %v3860_v10 = vunpack.c.l.b16 %v2384_v53  ;;  %v4052_v11 = vunpack.c.l.b16 %v2898_v7  ;;  %v11664_v7 = vld [vmem:[#allocation183_spill] sm:$0xff] }
 0x343   : > { %v4148_v49 = vunpack.c.l.b16 %v3155_v9  ;;  %v11665_v9 = vld [vmem:[#allocation64_spill] sm:$0xff] }
 0x344   : > { %v5107_v61 = vpop.f32.mrf.mxu2  ;;  %v3891_v40 = vpack.c.b16 %v3860_v10, %v3859_v15  ;;  %v4083_v37 = vpack.c.b16 %v4052_v11, %v4051_v46  ;;  %v11669_v11 = vld [vmem:[#allocation120_spill] sm:$0xff] }
 0x345   : > { %v5108_v63 = vadd.f32 %v5107_v61, %v5019_v38  ;;  %v4931_v34 = vpop.f32.mrf.mxu0  ;;  %v5196_v30 = vpop.f32.mrf.mxu3  ;;  %v4179_v53 = vpack.c.b16 %v4148_v49, %v4147_v35  ;;  %v11670_v49 = vld [vmem:[#allocation161_spill] sm:$0xff] }
 0x346   : > { %v4932_v24 = vadd.f32 %v10231_v0, %v4931_v34  ;;  %v3124_v35 = vmul.f32 %v11670_v49, %v11669_v11  ;;  %v11672_v49 = vld [vmem:[#allocation129_spill] sm:$0xff] }
 0x347   : > { %v10236_v5 = vadd.f32 %v5196_v30, %v5108_v63  ;;  %v11660_v63 = vld [vmem:[#allocation118_spill] sm:$0xff] }
 0x348   : > { %v5021_v36 = vadd.f32 %v5020_v4, %v4932_v24  ;;  %v11661_v30 = vpack.c.b16 %v11659_v1, %v11660_v63  ;;  %v11667_v63 = vld [vmem:[#allocation125_spill] sm:$0xff] }
 0x349   : > { %11657 = vst [vmem:[#allocation52_spill] sm:$0xff] %v10236_v5 }
 0x34a   : > { %v5023_v38 = vpop.f32.mrf.mxu1 }
 0x34c   : > { %v5109_v61 = vpop.f32.mrf.mxu2 }
 0x34d   : > { %v5110_v34 = vadd.f32 %v5109_v61, %v5021_v36  ;;  %v4934_v17 = vpop.f32.mrf.mxu0  ;;  %5338 = vmatmul.bf16.vlgmr.msra.gmra.mxu1 %v11661_v30  ;;  %v5198_v5 = vpop.f32.mrf.mxu3  ;;  %v2868_v36 = vmul.f32 %v11664_v7, %v11663_v54  ;;  %v2867_v61 = vmul.f32 %v11666_v20, %v11665_v9  ;;  %v11668_v30 = vld [vmem:[#allocation188_spill] sm:$0xff]  ;;  %v3156_v9 = vpack.c.bf16 %v3124_v35, %v3124_v35 }
 0x34e   : > { %v4935_v4 = vadd.f32 %v10231_v0, %v4934_v17  ;;  %v3125_v17 = vmul.f32 %v11668_v30, %v11667_v63 }
 0x34f   : > { %v10244_v2 = vadd.f32 %v5198_v5, %v5110_v34  ;;  %v2900_v34 = vpack.c.bf16 %v2868_v36, %v2868_v36  ;;  %v11673_v36 = vld [vmem:[#allocation128_spill] sm:$0xff] }
 0x350   : > { %5249 = vmatmul.bf16.vlgmr.msra.gmra.mxu0 %v3891_v40  ;;  %v5024_v24 = vadd.f32 %v5023_v38, %v4935_v4  ;;  %v2386_v38 = vpack.c.bf16 %v11652_v47, %v11652_v47  ;;  %v2899_v4 = vpack.c.bf16 %v2867_v61, %v2867_v61  ;;  %v3157_v54 = vpack.c.bf16 %v3125_v17, %v3125_v17 }
 0x351   : > { %11662 = vst [vmem:[#allocation15_spill] sm:$0xff] %v10244_v2  ;;  %5427 = vmatmul.bf16.vlgmr.msrb.gmra.mxu2 %v4083_v37  ;;  %v4054_v20 = vunpack.c.l.b16 %v2900_v34  ;;  %v11674_v61 = vpack.c.b16 %v11672_v49, %v11673_v36  ;;  %v11679_v49 = vld [vmem:[#allocation174_spill] sm:$0xff] }
 0x352   : > { %v5025_v25 = vpop.f32.mrf.mxu1  ;;  %5516 = vmatmul.bf16.vlgmr.msrb.gmra.mxu3 %v4179_v53  ;;  %v2385_v53 = vpack.c.bf16 %v11654_v29, %v11654_v29  ;;  %v3862_v7 = vunpack.c.l.b16 %v2386_v38  ;;  %v4150_v47 = vunpack.c.l.b16 %v3157_v54  ;;  %v4149_v29 = vunpack.c.l.b16 %v3156_v9 }
 0x354   : > { %v5112_v1 = vpop.f32.mrf.mxu2  ;;  %v4180_v35 = vpack.c.b16 %v4150_v47, %v4149_v29  ;;  %v11683_v47 = vld [vmem:[#allocation182_spill] sm:$0xff] }
 0x355   : > { %v5113_v10 = vadd.f32 %v5112_v1, %v5024_v24  ;;  %v4936_v46 = vpop.f32.mrf.mxu0  ;;  %v5201_v5 = vpop.f32.mrf.mxu3  ;;  %v4053_v1 = vunpack.c.l.b16 %v2899_v4  ;;  %v11676_v4 = vld [vmem:[#allocation10_spill] sm:$0xff] }
 0x356   : > { %v4937_v15 = vadd.f32 %v10231_v0, %v4936_v46  ;;  %v3861_v46 = vunpack.c.l.b16 %v2385_v53 }
 0x357   : > { %v10257_v40 = vadd.f32 %v5201_v5, %v5113_v10  ;;  %v4084_v17 = vpack.c.b16 %v4054_v20, %v4053_v1 }
 0x358   : > { %v5026_v37 = vadd.f32 %v5025_v25, %v4937_v15  ;;  %v3892_v5 = vpack.c.b16 %v3862_v7, %v3861_v46  ;;  %v11682_v46 = vld [vmem:[#allocation127_spill] sm:$0xff] }
 0x359   : > { %11671 = vst [vmem:[#allocation24_spill] sm:$0xff] %v10257_v40 }
 0x35a   : > { %v5028_v24 = vpop.f32.mrf.mxu1 }
 0x35c   : > { %v5114_v30 = vpop.f32.mrf.mxu2 }
 0x35d   : > { %v5115_v2 = vadd.f32 %v5114_v30, %v5026_v37  ;;  %v4939_v26 = vpop.f32.mrf.mxu0  ;;  %5343 = vmatmul.bf16.gmra.mxu1 %v11674_v61  ;;  %v5203_v10 = vpop.f32.mrf.mxu3  ;;  %v11677_v37 = vld [vmem:[#allocation199_spill] sm:$0xff]  ;;  %v11678_v30 = vld [vmem:[#allocation38_spill] sm:$0xff] }
 0x35e   : > { %v4940_v25 = vadd.f32 %v10231_v0, %v4939_v26  ;;  %v2870_v53 = vmul.f32 %v11677_v37, %v11676_v4  ;;  %v2869_v36 = vmul.f32 %v11679_v49, %v11678_v30  ;;  %v11680_v61 = vld [vmem:[#allocation123_spill] sm:$0xff]  ;;  %v11681_v26 = vld [vmem:[#allocation197_spill] sm:$0xff] }
 0x35f   : > { %v10265_v15 = vadd.f32 %v5203_v10, %v5115_v2  ;;  %v3126_v7 = vmul.f32 %v11681_v26, %v11680_v61  ;;  %v3127_v10 = vmul.f32 %v11683_v47, %v11682_v46  ;;  %v11685_v47 = vld [vmem:[#allocation132_spill] sm:$0xff] }
 0x360   : > { %5254 = vmatmul.bf16.gmra.mxu0 %v3892_v5  ;;  %v5029_v38 = vadd.f32 %v5028_v24, %v4940_v25  ;;  %v2388_v24 = vpack.c.bf16 %v11667_v63, %v11667_v63  ;;  %v2902_v25 = vpack.c.bf16 %v2870_v53, %v2870_v53  ;;  %v11686_v53 = vld [vmem:[#allocation133_spill] sm:$0xff] }
 0x361   : > { %11675 = vst [vmem:[#allocation81_spill] sm:$0xff] %v10265_v15  ;;  %5432 = vmatmul.bf16.gmra.mxu2 %v4084_v17  ;;  %v2387_v17 = vpack.c.bf16 %v11669_v11, %v11669_v11  ;;  %v3158_v4 = vpack.c.bf16 %v3126_v7, %v3126_v7 }
 0x362   : > { %v5030_v34 = vpop.f32.mrf.mxu1  ;;  %5521 = vmatmul.bf16.gmra.mxu3 %v4180_v35  ;;  %v2901_v35 = vpack.c.bf16 %v2869_v36, %v2869_v36  ;;  %v3864_v37 = vunpack.c.l.b16 %v2388_v24  ;;  %v4056_v30 = vunpack.c.l.b16 %v2902_v25 }
 0x363   : > { %v3863_v26 = vunpack.c.l.b16 %v2387_v17  ;;  %v4151_v63 = vunpack.c.l.b16 %v3158_v4  ;;  %v11689_v17 = vld [vmem:[#allocation160_spill] sm:$0xff] }
 0x364   : > { %v5117_v54 = vpop.f32.mrf.mxu2 }
 0x365   : > { %v5118_v9 = vadd.f32 %v5117_v54, %v5029_v38  ;;  %v4941_v20 = vpop.f32.mrf.mxu0  ;;  %v5206_v2 = vpop.f32.mrf.mxu3  ;;  %v3159_v54 = vpack.c.bf16 %v3127_v10, %v3127_v10  ;;  %v3893_v11 = vpack.c.b16 %v3864_v37, %v3863_v26 }
 0x366   : > { %v4942_v1 = vadd.f32 %v10231_v0, %v4941_v20  ;;  %v4055_v20 = vunpack.c.l.b16 %v2901_v35 }
 0x367   : > { %v10278_v5 = vadd.f32 %v5206_v2, %v5118_v9  ;;  %v11687_v9 = vpack.c.b16 %v11685_v47, %v11686_v53  ;;  %v4152_v36 = vunpack.c.l.b16 %v3159_v54  ;;  %v11692_v47 = vld [vmem:[#allocation193_spill] sm:$0xff]  ;;  %v11695_v54 = vld [vmem:[#allocation126_spill] sm:$0xff] }
 0x368   : > { %v5031_v29 = vadd.f32 %v5030_v34, %v4942_v1  ;;  %v4085_v7 = vpack.c.b16 %v4056_v30, %v4055_v20  ;;  %v11696_v30 = vld [vmem:[#allocation217_spill] sm:$0xff] }
 0x369   : > { %11684 = vst [vmem:[#allocation68_spill] sm:$0xff] %v10278_v5  ;;  %v4181_v10 = vpack.c.b16 %v4152_v36, %v4151_v63 }
 0x36a   : > { %v5033_v38 = vpop.f32.mrf.mxu1 }
 0x36c   : > { %v5119_v49 = vpop.f32.mrf.mxu2 }
 0x36d   : > { %v5120_v15 = vadd.f32 %v5119_v49, %v5031_v29  ;;  %v4944_v40 = vpop.f32.mrf.mxu0  ;;  %5348 = vmatmul.bf16.gmra.mxu1 %v11687_v9  ;;  %v5208_v34 = vpop.f32.mrf.mxu3  ;;  %v11690_v29 = vld [vmem:[#allocation208_spill] sm:$0xff]  ;;  %v11691_v49 = vld [vmem:[#allocation31_spill] sm:$0xff]  ;;  %v11693_v9 = vld [vmem:[#allocation137_spill] sm:$0xff] }
 0x36e   : > { %v4945_v2 = vadd.f32 %v10231_v0, %v4944_v40  ;;  %v2871_v35 = vmul.f32 %v11690_v29, %v11689_v17  ;;  %v2872_v53 = vmul.f32 %v11692_v47, %v11691_v49  ;;  %v11694_v40 = vld [vmem:[#allocation214_spill] sm:$0xff] }
 0x36f   : > { %v10286_v1 = vadd.f32 %v5208_v34, %v5120_v15  ;;  %v3129_v37 = vmul.f32 %v11694_v40, %v11693_v9  ;;  %v3128_v15 = vmul.f32 %v11696_v30, %v11695_v54  ;;  %v2390_v34 = vpack.c.bf16 %v11682_v46, %v11682_v46 }
 0x370   : > { %5259 = vmatmul.bf16.gmra.mxu0 %v3893_v11  ;;  %v5034_v24 = vadd.f32 %v5033_v38, %v4945_v2  ;;  %v2903_v2 = vpack.c.bf16 %v2871_v35, %v2871_v35  ;;  %v11698_v35 = vld [vmem:[#allocation138_spill] sm:$0xff] }
 0x371   : > { %11688 = vst [vmem:[#allocation107_spill] sm:$0xff] %v10286_v1  ;;  %5437 = vmatmul.bf16.gmra.mxu2 %v4085_v7  ;;  %v2389_v7 = vpack.c.bf16 %v11680_v61, %v11680_v61  ;;  %v3161_v17 = vpack.c.bf16 %v3129_v37, %v3129_v37  ;;  %v3160_v29 = vpack.c.bf16 %v3128_v15, %v3128_v15  ;;  %v3866_v47 = vunpack.c.l.b16 %v2390_v34 }
 0x372   : > { %v5035_v25 = vpop.f32.mrf.mxu1  ;;  %5526 = vmatmul.bf16.gmra.mxu3 %v4181_v10  ;;  %v2904_v10 = vpack.c.bf16 %v2872_v53, %v2872_v53 }
 0x373   : > { %v3865_v40 = vunpack.c.l.b16 %v2389_v7  ;;  %v4153_v1 = vunpack.c.l.b16 %v3160_v29  ;;  %v11702_v7 = vld [vmem:[#allocation135_spill] sm:$0xff]  ;;  %v11705_v29 = vld [vmem:[#allocation228_spill] sm:$0xff] }
 0x374   : > { %v5122_v4 = vpop.f32.mrf.mxu2  ;;  %v4058_v30 = vunpack.c.l.b16 %v2904_v10  ;;  %v11703_v10 = vld [vmem:[#allocation227_spill] sm:$0xff] }
 0x375   : > { %v5123_v26 = vadd.f32 %v5122_v4, %v5034_v24  ;;  %v4946_v20 = vpop.f32.mrf.mxu0  ;;  %v5211_v38 = vpop.f32.mrf.mxu3  ;;  %v4057_v24 = vunpack.c.l.b16 %v2903_v2  ;;  %v3894_v53 = vpack.c.b16 %v3866_v47, %v3865_v40 }
 0x376   : > { %v4947_v63 = vadd.f32 %v10231_v0, %v4946_v20  ;;  %v4154_v20 = vunpack.c.l.b16 %v3161_v17  ;;  %v11704_v17 = vld [vmem:[#allocation67_spill] sm:$0xff] }
 0x377   : > { %v10299_v11 = vadd.f32 %v5211_v38, %v5123_v26  ;;  %v11699_v26 = vld [vmem:[#allocation139_spill] sm:$0xff]  ;;  %v4086_v37 = vpack.c.b16 %v4058_v30, %v4057_v24 }
 0x378   : > { %v5036_v36 = vadd.f32 %v5035_v25, %v4947_v63  ;;  %v11700_v38 = vpack.c.b16 %v11698_v35, %v11699_v26  ;;  %v4182_v34 = vpack.c.b16 %v4154_v20, %v4153_v1  ;;  %v11706_v26 = vld [vmem:[#allocation147_spill] sm:$0xff]  ;;  %v2392_v1 = vpack.c.bf16 %v11693_v9, %v11693_v9 }
 0x379   : > { %11697 = vst [vmem:[#allocation124_spill] sm:$0xff] %v10299_v11  ;;  %v11709_v30 = vld [vmem:[#allocation207_spill] sm:$0xff] }
 0x37a   : > { %v5038_v49 = vpop.f32.mrf.mxu1 }
 0x37c   : > { %v5124_v4 = vpop.f32.mrf.mxu2 }
 0x37d   : > { %v5125_v5 = vadd.f32 %v5124_v4, %v5036_v36  ;;  %v4949_v46 = vpop.f32.mrf.mxu0  ;;  %5353 = vmatmul.bf16.gmra.mxu1 %v11700_v38  ;;  %v5213_v25 = vpop.f32.mrf.mxu3  ;;  %v2874_v36 = vmul.f32 %v11703_v10, %v11702_v7  ;;  %v2873_v4 = vmul.f32 %v11705_v29, %v11704_v17  ;;  %v11707_v38 = vld [vmem:[#allocation230_spill] sm:$0xff]  ;;  %v3868_v10 = vunpack.c.l.b16 %v2392_v1 }
 0x37e   : > { %v4950_v61 = vadd.f32 %v10231_v0, %v4949_v46  ;;  %v3131_v46 = vmul.f32 %v11707_v38, %v11706_v26 }
 0x37f   : > { %v10307_v15 = vadd.f32 %v5213_v25, %v5125_v5  ;;  %v2906_v25 = vpack.c.bf16 %v2874_v36, %v2874_v36  ;;  %v11712_v36 = vld [vmem:[#allocation148_spill] sm:$0xff] }
 0x380   : > { %5264 = vmatmul.bf16.gmra.mxu0 %v3894_v53  ;;  %v5039_v63 = vadd.f32 %v5038_v49, %v4950_v61  ;;  %v11708_v49 = vld [vmem:[#allocation141_spill] sm:$0xff]  ;;  %v2905_v61 = vpack.c.bf16 %v2873_v4, %v2873_v4  ;;  %v3163_v7 = vpack.c.bf16 %v3131_v46, %v3131_v46 }
 0x381   : > { %11701 = vst [vmem:[#allocation55_spill] sm:$0xff] %v10307_v15  ;;  %5442 = vmatmul.bf16.gmra.mxu2 %v4086_v37  ;;  %v3130_v20 = vmul.f32 %v11709_v30, %v11708_v49  ;;  %v4060_v29 = vunpack.c.l.b16 %v2906_v25  ;;  %v11711_v30 = vld [vmem:[#allocation149_spill] sm:$0xff] }
 0x382   : > { %v5040_v2 = vpop.f32.mrf.mxu1  ;;  %5531 = vmatmul.bf16.gmra.mxu3 %v4182_v34  ;;  %v2391_v34 = vpack.c.bf16 %v11695_v54, %v11695_v54  ;;  %v4156_v9 = vunpack.c.l.b16 %v3163_v7  ;;  %v11713_v4 = vpack.c.b16 %v11711_v30, %v11712_v36  ;;  %v11718_v30 = vld [vmem:[#allocation219_spill] sm:$0xff] }
 0x383   : > { %v3162_v17 = vpack.c.bf16 %v3130_v20, %v3130_v20 }
 0x384   : > { %v5127_v35 = vpop.f32.mrf.mxu2 }
 0x385   : > { %v5128_v47 = vadd.f32 %v5127_v35, %v5039_v63  ;;  %v4951_v24 = vpop.f32.mrf.mxu0  ;;  %v5216_v5 = vpop.f32.mrf.mxu3  ;;  %v4059_v35 = vunpack.c.l.b16 %v2905_v61  ;;  %v4155_v54 = vunpack.c.l.b16 %v3162_v17  ;;  %v11715_v61 = vld [vmem:[#allocation13_spill] sm:$0xff] }
 0x386   : > { %v4952_v40 = vadd.f32 %v10231_v0, %v4951_v24  ;;  %v3867_v24 = vunpack.c.l.b16 %v2391_v34 }
 0x387   : > { %v10320_v53 = vadd.f32 %v5216_v5, %v5128_v47  ;;  %v4087_v46 = vpack.c.b16 %v4060_v29, %v4059_v35  ;;  %v4183_v20 = vpack.c.b16 %v4156_v9, %v4155_v54  ;;  %v11722_v9 = vld [vmem:[#allocation226_spill] sm:$0xff] }
 0x388   : > { %v5041_v37 = vadd.f32 %v5040_v2, %v4952_v40  ;;  %v3895_v5 = vpack.c.b16 %v3868_v10, %v3867_v24  ;;  %v11721_v24 = vld [vmem:[#allocation153_spill] sm:$0xff] }
 0x389   : > { %11710 = vst [vmem:[#allocation42_spill] sm:$0xff] %v10320_v53 }
 0x38a   : > { %v5043_v63 = vpop.f32.mrf.mxu1 }
 0x38c   : > { %v5129_v38 = vpop.f32.mrf.mxu2 }
 0x38d   : > { %v5130_v15 = vadd.f32 %v5129_v38, %v5041_v37  ;;  %v4954_v11 = vpop.f32.mrf.mxu0  ;;  %5358 = vmatmul.bf16.gmra.mxu1 %v11713_v4  ;;  %v5218_v47 = vpop.f32.mrf.mxu3  ;;  %v11716_v37 = vld [vmem:[#allocation173_spill] sm:$0xff]  ;;  %v11719_v4 = vld [vmem:[#allocation144_spill] sm:$0xff] }
 0x38e   : > { %v4955_v2 = vadd.f32 %v10231_v0, %v4954_v11  ;;  %v2876_v34 = vmul.f32 %v11716_v37, %v11715_v61  ;;  %v11717_v38 = vld [vmem:[#allocation97_spill] sm:$0xff]  ;;  %v11720_v11 = vld [vmem:[#allocation152_spill] sm:$0xff] }
 0x38f   : > { %v10328_v40 = vadd.f32 %v5218_v47, %v5130_v15  ;;  %v2875_v36 = vmul.f32 %v11718_v30, %v11717_v38  ;;  %v3132_v10 = vmul.f32 %v11720_v11, %v11719_v4  ;;  %v3133_v47 = vmul.f32 %v11722_v9, %v11721_v24  ;;  %v11724_v9 = vld [vmem:[#allocation154_spill] sm:$0xff] }
 0x390   : > { %5269 = vmatmul.bf16.gmra.mxu0 %v3895_v5  ;;  %v5044_v1 = vadd.f32 %v5043_v63, %v4955_v2  ;;  %v2394_v63 = vpack.c.bf16 %v11706_v26, %v11706_v26  ;;  %v2908_v2 = vpack.c.bf16 %v2876_v34, %v2876_v34  ;;  %v11725_v34 = vld [vmem:[#allocation155_spill] sm:$0xff] }
 0x391   : > { %11714 = vst [vmem:[#allocation26_spill] sm:$0xff] %v10328_v40  ;;  %5447 = vmatmul.bf16.gmra.mxu2 %v4087_v46  ;;  %v2393_v46 = vpack.c.bf16 %v11708_v49, %v11708_v49  ;;  %v3164_v61 = vpack.c.bf16 %v3132_v10, %v3132_v10 }
 0x392   : > { %v5045_v25 = vpop.f32.mrf.mxu1  ;;  %5536 = vmatmul.bf16.gmra.mxu3 %v4183_v20  ;;  %v2907_v20 = vpack.c.bf16 %v2875_v36, %v2875_v36  ;;  %v3870_v37 = vunpack.c.l.b16 %v2394_v63  ;;  %v4062_v38 = vunpack.c.l.b16 %v2908_v2 }
 0x393   : > { %v3869_v11 = vunpack.c.l.b16 %v2393_v46  ;;  %v4157_v26 = vunpack.c.l.b16 %v3164_v61  ;;  %v11728_v46 = vld [vmem:[#allocation186_spill] sm:$0xff] }
 0x394   : > { %v5132_v7 = vpop.f32.mrf.mxu2 }
 0x395   : > { %v5133_v17 = vadd.f32 %v5132_v7, %v5044_v1  ;;  %v4956_v29 = vpop.f32.mrf.mxu0  ;;  %v5221_v15 = vpop.f32.mrf.mxu3  ;;  %v3165_v7 = vpack.c.bf16 %v3133_v47, %v3133_v47  ;;  %v3896_v49 = vpack.c.b16 %v3870_v37, %v3869_v11 }
 0x396   : > { %v4957_v35 = vadd.f32 %v10231_v0, %v4956_v29  ;;  %v4061_v29 = vunpack.c.l.b16 %v2907_v20 }
 0x397   : > { %v10341_v5 = vadd.f32 %v5221_v15, %v5133_v17  ;;  %v11726_v17 = vpack.c.b16 %v11724_v9, %v11725_v34  ;;  %v4158_v36 = vunpack.c.l.b16 %v3165_v7  ;;  %v11731_v9 = vld [vmem:[#allocation122_spill] sm:$0xff]  ;;  %v11734_v7 = vld [vmem:[#allocation157_spill] sm:$0xff] }
 0x398   : > { %v5046_v54 = vadd.f32 %v5045_v25, %v4957_v35  ;;  %v4088_v10 = vpack.c.b16 %v4062_v38, %v4061_v29  ;;  %v11735_v38 = vld [vmem:[#allocation66_spill] sm:$0xff] }
 0x399   : > { %11723 = vst [vmem:[#allocation27_spill] sm:$0xff] %v10341_v5  ;;  %v4184_v47 = vpack.c.b16 %v4158_v36, %v4157_v26 }
 0x39a   : > { %v5048_v1 = vpop.f32.mrf.mxu1 }
 0x39c   : > { %v5134_v30 = vpop.f32.mrf.mxu2 }
 0x39d   : > { %v5135_v40 = vadd.f32 %v5134_v30, %v5046_v54  ;;  %v4959_v53 = vpop.f32.mrf.mxu0  ;;  %5363 = vmatmul.bf16.gmra.mxu1 %v11726_v17  ;;  %v5223_v25 = vpop.f32.mrf.mxu3  ;;  %v11729_v54 = vld [vmem:[#allocation79_spill] sm:$0xff]  ;;  %v11730_v30 = vld [vmem:[#allocation100_spill] sm:$0xff]  ;;  %v11732_v17 = vld [vmem:[#allocation165_spill] sm:$0xff] }
 0x39e   : > { %v4960_v15 = vadd.f32 %v10231_v0, %v4959_v53  ;;  %v2877_v20 = vmul.f32 %v11729_v54, %v11728_v46  ;;  %v2878_v34 = vmul.f32 %v11731_v9, %v11730_v30  ;;  %v11733_v53 = vld [vmem:[#allocation131_spill] sm:$0xff] }
 0x39f   : > { %v10349_v35 = vadd.f32 %v5223_v25, %v5135_v40  ;;  %v3135_v37 = vmul.f32 %v11733_v53, %v11732_v17  ;;  %v3134_v40 = vmul.f32 %v11735_v38, %v11734_v7  ;;  %v2396_v25 = vpack.c.bf16 %v11721_v24, %v11721_v24 }
 0x3a0   : > { %5274 = vmatmul.bf16.gmra.mxu0 %v3896_v49  ;;  %v5049_v63 = vadd.f32 %v5048_v1, %v4960_v15  ;;  %v2909_v15 = vpack.c.bf16 %v2877_v20, %v2877_v20  ;;  %v11737_v20 = vld [vmem:[#allocation167_spill] sm:$0xff] }
 0x3a1   : > { %11727 = vst [vmem:[#allocation87_spill] sm:$0xff] %v10349_v35  ;;  %5452 = vmatmul.bf16.gmra.mxu2 %v4088_v10  ;;  %v2395_v10 = vpack.c.bf16 %v11719_v4, %v11719_v4  ;;  %v3167_v46 = vpack.c.bf16 %v3135_v37, %v3135_v37  ;;  %v3166_v54 = vpack.c.bf16 %v3134_v40, %v3134_v40  ;;  %v3872_v9 = vunpack.c.l.b16 %v2396_v25  ;;  %v10370_v40 = vpop.permute.xlu1 %2797 }
 0x3a2   : > { %v5050_v2 = vpop.f32.mrf.mxu1  ;;  %5541 = vmatmul.bf16.gmra.mxu3 %v4184_v47  ;;  %v2910_v47 = vpack.c.bf16 %v2878_v34, %v2878_v34 }
 0x3a3   : > { %v3871_v53 = vunpack.c.l.b16 %v2395_v10  ;;  %v4159_v35 = vunpack.c.l.b16 %v3166_v54  ;;  %v11743_v54 = vld [vmem:[#allocation72_spill] sm:$0xff] }
 0x3a4   : > { %v5137_v61 = vpop.f32.mrf.mxu2  ;;  %v4064_v38 = vunpack.c.l.b16 %v2910_v47  ;;  %v11742_v47 = vld [vmem:[#allocation41_spill] sm:$0xff] }
 0x3a5   : > { %v5138_v11 = vadd.f32 %v5137_v61, %v5049_v63  ;;  %v4961_v29 = vpop.f32.mrf.mxu0  ;;  %v5226_v1 = vpop.f32.mrf.mxu3  ;;  %v4063_v63 = vunpack.c.l.b16 %v2909_v15  ;;  %v3897_v34 = vpack.c.b16 %v3872_v9, %v3871_v53  ;;  %v11746_v9 = vld [vmem:[#allocation59_spill] sm:$0xff] }
 0x3a6   : > { %v4962_v26 = vadd.f32 %v10231_v0, %v4961_v29  ;;  %v4160_v29 = vunpack.c.l.b16 %v3167_v46 }
 0x3a7   : > { %v10362_v49 = vadd.f32 %v5226_v1, %v5138_v11  ;;  %v11738_v11 = vld [vmem:[#allocation166_spill] sm:$0xff]  ;;  %v4089_v37 = vpack.c.b16 %v4064_v38, %v4063_v63 }
 0x3a8   : > { %v5051_v36 = vadd.f32 %v5050_v2, %v4962_v26  ;;  %v11739_v1 = vpack.c.b16 %v11737_v20, %v11738_v11  ;;  %v4185_v15 = vpack.c.b16 %v4160_v29, %v4159_v35  ;;  %v2398_v35 = vpack.c.bf16 %v11732_v17, %v11732_v17  ;;  %v11748_v29 = vld [vmem:[#allocation63_spill] sm:$0xff] }
 0x3a9   : > { %11736 = vst [vmem:[#allocation80_spill] sm:$0xff] %v10362_v49 }
 0x3aa   : > { %v5053_v30 = vpop.f32.mrf.mxu1 }
 0x3ac   : > { %v5139_v61 = vpop.f32.mrf.mxu2 }
 0x3ad   : > { %v5140_v5 = vadd.f32 %v5139_v61, %v5051_v36  ;;  %v4964_v24 = vpop.f32.mrf.mxu0  ;;  %5368 = vmatmul.bf16.gmra.mxu1 %v11739_v1  ;;  %v5228_v2 = vpop.f32.mrf.mxu3  ;;  %v11741_v36 = vld [vmem:[#allocation71_spill] sm:$0xff] }
 0x3ae   : > { %v4965_v4 = vadd.f32 %v10231_v0, %v4964_v24  ;;  %v2880_v46 = vmul.f32 %v11742_v47, %v11741_v36  ;;  %v11744_v61 = vld [vmem:[#allocation171_spill] sm:$0xff]  ;;  %v2397_v36 = vpack.c.bf16 %v11734_v7, %v11734_v7 }
 0x3af   : > { %v10372_v26 = vadd.f32 %v5228_v2, %v5140_v5  ;;  %v2879_v20 = vmul.f32 %v11744_v61, %v11743_v54  ;;  %v11745_v24 = vld [vmem:[#allocation179_spill] sm:$0xff]  ;;  %v3874_v61 = vunpack.c.l.b16 %v2398_v35 }
 0x3b0   : > { %5279 = vmatmul.bf16.gmra.mxu0 %v3897_v34  ;;  %v5054_v25 = vadd.f32 %v5053_v30, %v4965_v4  ;;  %v3137_v63 = vmul.f32 %v11746_v9, %v11745_v24  ;;  %v11747_v30 = vld [vmem:[#allocation169_spill] sm:$0xff]  ;;  %v2912_v4 = vpack.c.bf16 %v2880_v46, %v2880_v46 }
 0x3b1   : > { %11740 = vst [vmem:[#allocation136_spill] sm:$0xff] %v10372_v26  ;;  %5457 = vmatmul.bf16.gmra.mxu2 %v4089_v37  ;;  %v3136_v2 = vmul.f32 %v11748_v29, %v11747_v30  ;;  %v2911_v34 = vpack.c.bf16 %v2879_v20, %v2879_v20  ;;  %v3873_v26 = vunpack.c.l.b16 %v2397_v36  ;;  %v11750_v20 = vld [vmem:[#allocation181_spill] sm:$0xff] }
 0x3b2   : > { %v5055_v10 = vpop.f32.mrf.mxu1  ;;  %5546 = vmatmul.bf16.gmra.mxu3 %v4185_v15  ;;  %v3169_v47 = vpack.c.bf16 %v3137_v63, %v3137_v63  ;;  %v4066_v9 = vunpack.c.l.b16 %v2912_v4 }
 0x3b3   : > { %v3898_v63 = vpack.c.b16 %v3874_v61, %v3873_v26  ;;  %v11755_v26 = vld [vmem:[#allocation69_spill] sm:$0xff] }
 0x3b4   : > { %v5142_v11 = vpop.f32.mrf.mxu2  ;;  %v4162_v49 = vunpack.c.l.b16 %v3169_v47  ;;  %v3138_v61 = vmul.f32 %v11755_v26, %v11558_v48 }
 0x3b5   : > { %v5143_v53 = vadd.f32 %v5142_v11, %v5054_v25  ;;  %v4966_v38 = vpop.f32.mrf.mxu0  ;;  %v5231_v5 = vpop.f32.mrf.mxu3  ;;  %v3168_v11 = vpack.c.bf16 %v3136_v2, %v3136_v2 }
 0x3b6   : > { %v4967_v1 = vadd.f32 %v10231_v0, %v4966_v38  ;;  %v10389_v25 = vpop.permute.xlu1 %3059  ;;  %v4065_v38 = vunpack.c.l.b16 %v2911_v34  ;;  %v11753_v34 = vld [vmem:[#allocation101_spill] sm:$0xff] }
 0x3b7   : > { %v10385_v37 = vadd.f32 %v5231_v5, %v5143_v53  ;;  %v11751_v53 = vld [vmem:[#allocation180_spill] sm:$0xff] }
 0x3b8   : > { %v5056_v15 = vadd.f32 %v5055_v10, %v4967_v1  ;;  %v11752_v5 = vpack.c.b16 %v11750_v20, %v11751_v53  ;;  %v4161_v1 = vunpack.c.l.b16 %v3168_v11 }
 0x3b9   : > { %11749 = vst [vmem:[#allocation113_spill] sm:$0xff] %v10385_v37  ;;  %v4090_v37 = vpack.c.b16 %v4066_v9, %v4065_v38 }
 0x3ba   : > { %v5058_v54 = vpop.f32.mrf.mxu1  ;;  %v4186_v2 = vpack.c.b16 %v4162_v49, %v4161_v1 }
 0x3bc   : > { %v5144_v17 = vpop.f32.mrf.mxu2 }
 0x3bd   : > { %v5145_v29 = vadd.f32 %v5144_v17, %v5056_v15  ;;  %v4969_v46 = vpop.f32.mrf.mxu0  ;;  %5373 = vmatmul.bf16.gmra.mxu1 %v11752_v5  ;;  %v5233_v10 = vpop.f32.mrf.mxu3  ;;  %v2882_v15 = vmul.f32 %v11753_v34, %v9835_v27  ;;  %v11754_v17 = vld [vmem:[#allocation163_spill] sm:$0xff] }
 0x3be   : > { %v4970_v7 = vadd.f32 %v10231_v0, %v4969_v46  ;;  %v10399_v36 = vpop.permute.xlu1 %2807  ;;  %v2881_v46 = vmul.f32 %v11754_v17, %v9843_v43  ;;  %v11756_v27 = vld [vmem:[#allocation7_spill] sm:$0xff]  ;;  %v2399_v43 = vpack.c.bf16 %v11747_v30, %v11747_v30 }
 0x3bf   : > { %v10395_v12 = vadd.f32 %v5233_v10, %v5145_v29  ;;  %v2914_v29 = vpack.c.bf16 %v2882_v15, %v2882_v15  ;;  %v3170_v10 = vpack.c.bf16 %v3138_v61, %v3138_v61  ;;  %v11757_v15 = vld [vmem:[#allocation190_spill] sm:$0xff] }
 0x3c0   : > { %5284 = vmatmul.bf16.gmra.mxu0 %v3898_v63  ;;  %v5059_v35 = vadd.f32 %v5058_v54, %v4970_v7  ;;  %v3139_v54 = vmul.f32 %v11756_v27, %v11556_v59  ;;  %v2913_v5 = vpack.c.bf16 %v2881_v46, %v2881_v46 }
 0x3c1   : > { %5462 = vmatmul.bf16.gmra.mxu2 %v4090_v37  ;;  %v2400_v37 = vpack.c.bf16 %v11745_v24, %v11745_v24  ;;  %v4163_v24 = vunpack.c.l.b16 %v3170_v10  ;;  %v11761_v10 = vld [vmem:[#allocation46_spill] sm:$0xff] }
 0x3c2   : > { %v5060_v4 = vpop.f32.mrf.mxu1  ;;  %5551 = vmatmul.bf16.gmra.mxu3 %v4186_v2  ;;  %v3171_v1 = vpack.c.bf16 %v3139_v54, %v3139_v54  ;;  %v3875_v2 = vunpack.c.l.b16 %v2399_v43  ;;  %v4067_v34 = vunpack.c.l.b16 %v2913_v5  ;;  %v11760_v43 = vld [vmem:[#allocation34_spill] sm:$0xff] }
 0x3c3   : > { %v3876_v63 = vunpack.c.l.b16 %v2400_v37  ;;  %v2884_v5 = vmul.f32 %v11760_v43, %v9884_v39 }
 0x3c4   : > { %v5147_v47 = vpop.f32.mrf.mxu2  ;;  %v4164_v61 = vunpack.c.l.b16 %v3171_v1 }
 0x3c5   : > { %v5148_v11 = vadd.f32 %v5147_v47, %v5059_v35  ;;  %v4971_v9 = vpop.f32.mrf.mxu0  ;;  %v5236_v38 = vpop.f32.mrf.mxu3  ;;  %v4068_v35 = vunpack.c.l.b16 %v2914_v29  ;;  %v3899_v46 = vpack.c.b16 %v3876_v63, %v3875_v2  ;;  %v2883_v29 = vmul.f32 %v10370_v40, %v9892_v52 }
 0x3c6   : > { %v4972_v49 = vadd.f32 %v10231_v0, %v4971_v9  ;;  %v3070_v47 = vpop.permute.xlu1 %3069  ;;  %v4187_v27 = vpack.c.b16 %v4164_v61, %v4163_v24  ;;  %v3140_v63 = vmul.f32 %v11761_v10, %v8997_v33  ;;  %v11766_v10 = vld [vmem:[#allocation92_spill] sm:$0xff] }
 0x3c7   : > { %v10410_v20 = vadd.f32 %v5236_v38, %v5148_v11  ;;  %v11758_v11 = vld [vmem:[#allocation191_spill] sm:$0xff]  ;;  %v4091_v38 = vpack.c.b16 %v4068_v35, %v4067_v34  ;;  %v2402_v34 = vpack.c.bf16 %v11556_v59, %v11556_v59  ;;  %v2915_v52 = vpack.c.bf16 %v2883_v29, %v2883_v29  ;;  %v11763_v29 = vld [vmem:[#allocation205_spill] sm:$0xff] }
 0x3c8   : > { %v5061_v53 = vadd.f32 %v5060_v4, %v4972_v49  ;;  %v11759_v9 = vpack.c.b16 %v11757_v15, %v11758_v11  ;;  %v3172_v15 = vpack.c.bf16 %v3140_v63, %v3140_v63 }
 0x3ca   : > { %v5339_v7 = vpop.f32.mrf.mxu1  ;;  %v4165_v59 = vunpack.c.l.b16 %v3172_v15 }
 0x3cc   : > { %v5149_v0 = vpop.f32.mrf.mxu2 }
 0x3cd   : > { %v5150_v17 = vadd.f32 %v5149_v0, %v5061_v53  ;;  %v5250_v26 = vpop.f32.mrf.mxu0  ;;  %5378 = vmatmul.bf16.gmra.mxu1 %v11759_v9  ;;  %v5238_v4 = vpop.f32.mrf.mxu3  ;;  %v11762_v0 = vld [vmem:[#allocation19_spill] sm:$0xff]  ;;  %v3878_v9 = vunpack.c.l.b16 %v2402_v34 }
 0x3ce   : > { %v5251_v30 = vadd.f32 %v5250_v26, %v9859_v8  ;;  %v3141_v8 = vmul.f32 %v10389_v25, %v9110_v45  ;;  %v10431_v40 = vpop.permute.xlu1 %2817  ;;  %v2401_v25 = vpack.c.bf16 %v11558_v48, %v11558_v48 }
 0x3cf   : > { %v10418_v49 = vadd.f32 %v5238_v4, %v5150_v17  ;;  %v2916_v17 = vpack.c.bf16 %v2884_v5, %v2884_v5  ;;  %v4069_v4 = vunpack.c.l.b16 %v2915_v52  ;;  %v11767_v52 = vld [vmem:[#allocation20_spill] sm:$0xff] }
 0x3d0   : > { %5289 = vmatmul.bf16.gmra.mxu0 %v3899_v46  ;;  %v5340_v37 = vadd.f32 %v5339_v7, %v5251_v30  ;;  %v3173_v26 = vpack.c.bf16 %v3141_v8, %v3141_v8  ;;  %v3877_v46 = vunpack.c.l.b16 %v2401_v25  ;;  %v3143_v25 = vmul.f32 %v3070_v47, %v9245_v23 }
 0x3d1   : > { %5467 = vmatmul.bf16.gmra.mxu2 %v4091_v38  ;;  %v4070_v61 = vunpack.c.l.b16 %v2916_v17  ;;  %v11768_v17 = vld [vmem:[#allocation216_spill] sm:$0xff] }
 0x3d2   : > { %v5341_v54 = vpop.f32.mrf.mxu1  ;;  %5556 = vmatmul.bf16.gmra.mxu3 %v4187_v27  ;;  %v4166_v38 = vunpack.c.l.b16 %v3173_v26  ;;  %v3900_v5 = vpack.c.b16 %v3878_v9, %v3877_v46  ;;  %v11769_v26 = vld [vmem:[#allocation201_spill] sm:$0xff]  ;;  %v3175_v47 = vpack.c.bf16 %v3143_v25, %v3143_v25 }
 0x3d3   : > { %v4092_v8 = vpack.c.b16 %v4070_v61, %v4069_v4  ;;  %v3142_v15 = vmul.f32 %v11769_v26, %v11768_v17  ;;  %v2404_v61 = vpack.c.bf16 %v9110_v45, %v9110_v45 }
 0x3d4   : > { %v5428_v53 = vpop.f32.mrf.mxu2 }
 0x3d5   : > { %v5429_v1 = vadd.f32 %v5428_v53, %v5340_v37  ;;  %v5252_v35 = vpop.f32.mrf.mxu0  ;;  %v5517_v7 = vpop.f32.mrf.mxu3  ;;  %v11764_v53 = vld [vmem:[#allocation206_spill] sm:$0xff] }
 0x3d6   : > { %v5253_v2 = vadd.f32 %v5252_v35, %v11762_v0  ;;  %v11765_v43 = vpack.c.b16 %v11763_v29, %v11764_v53  ;;  %v4188_v35 = vpack.c.b16 %v4166_v38, %v4165_v59  ;;  %v3880_v29 = vunpack.c.l.b16 %v2404_v61 }
 0x3d7   : > { %v10433_v24 = vadd.f32 %v5517_v7, %v5429_v1  ;;  %v3080_v7 = vpop.permute.xlu1 %3079 }
 0x3d8   : > { %v5342_v39 = vadd.f32 %v5341_v54, %v5253_v2  ;;  %v2885_v2 = vmul.f32 %v10399_v36, %v9940_v19 }
 0x3da   : > { %v5344_v11 = vpop.f32.mrf.mxu1  ;;  %v2917_v38 = vpack.c.bf16 %v2885_v2, %v2885_v2  ;;  %v11772_v2 = vld [vmem:[#allocation224_spill] sm:$0xff] }
 0x3dc   : > { %v5430_v30 = vpop.f32.mrf.mxu2  ;;  %v4071_v53 = vunpack.c.l.b16 %v2917_v38  ;;  %v3145_v38 = vmul.f32 %v3080_v7, %v9375_v57 }
 0x3dd   : > { %v5431_v37 = vadd.f32 %v5430_v30, %v5342_v39  ;;  %v5255_v27 = vpop.f32.mrf.mxu0  ;;  %5383 = vmatmul.bf16.gmra.mxu1 %v11765_v43  ;;  %v5519_v54 = vpop.f32.mrf.mxu3  ;;  %v2886_v39 = vmul.f32 %v11767_v52, %v9930_v58  ;;  %v11770_v30 = vld [vmem:[#allocation176_spill] sm:$0xff]  ;;  %v2403_v58 = vpack.c.bf16 %v8997_v33, %v8997_v33  ;;  %v11774_v33 = vld [vmem:[#allocation23_spill] sm:$0xff] }
 0x3de   : > { %v5256_v48 = vadd.f32 %v5255_v27, %v11766_v10 }
 0x3df   : > { %v10441_v63 = vadd.f32 %v5519_v54, %v5431_v37  ;;  %v2918_v59 = vpack.c.bf16 %v2886_v39, %v2886_v39  ;;  %v3174_v37 = vpack.c.bf16 %v3142_v15, %v3142_v15  ;;  %v2828_v43 = vpop.permute.xlu1 %2827  ;;  %v3879_v10 = vunpack.c.l.b16 %v2403_v58 }
 0x3e0   : > { %5294 = vmatmul.bf16.gmra.mxu0 %v3900_v5  ;;  %v5345_v1 = vadd.f32 %v5344_v11, %v5256_v48  ;;  %v4168_v5 = vunpack.c.l.b16 %v3175_v47 }
 0x3e1   : > { %5472 = vmatmul.bf16.gmra.mxu2 %v4092_v8  ;;  %v4072_v48 = vunpack.c.l.b16 %v2918_v59  ;;  %v4167_v8 = vunpack.c.l.b16 %v3174_v37  ;;  %v3901_v39 = vpack.c.b16 %v3880_v29, %v3879_v10  ;;  %v11777_v29 = vld [vmem:[#allocation115_spill] sm:$0xff] }
 0x3e2   : > { %v5346_v0 = vpop.f32.mrf.mxu1  ;;  %5561 = vmatmul.bf16.gmra.mxu3 %v4188_v35  ;;  %v11771_v35 = vld [vmem:[#allocation225_spill] sm:$0xff] }
 0x3e3   : > { %v4093_v25 = vpack.c.b16 %v4072_v48, %v4071_v53  ;;  %v3177_v48 = vpack.c.bf16 %v3145_v38, %v3145_v38 }
 0x3e4   : > { %v5433_v34 = vpop.f32.mrf.mxu2 }
 0x3e5   : > { %v5434_v9 = vadd.f32 %v5433_v34, %v5345_v1  ;;  %v5257_v4 = vpop.f32.mrf.mxu0  ;;  %v5522_v11 = vpop.f32.mrf.mxu3 }
 0x3e6   : > { %v5258_v46 = vadd.f32 %v5257_v4, %v11770_v30 }
 0x3e7   : > { %v10453_v19 = vadd.f32 %v5522_v11, %v5434_v9  ;;  %v4189_v9 = vpack.c.b16 %v4168_v5, %v4167_v8  ;;  %v2887_v11 = vmul.f32 %v10431_v40, %v9988_v22  ;;  %v3090_v59 = vpop.permute.xlu1 %3089 }
 0x3e8   : > { %v5347_v36 = vadd.f32 %v5346_v0, %v5258_v46  ;;  %v11773_v0 = vpack.c.b16 %v11771_v35, %v11772_v2  ;;  %v11775_v46 = vld [vmem:[#allocation47_spill] sm:$0xff] }
 0x3e9   : > { %v2888_v61 = vmul.f32 %v11775_v46, %v9978_v50  ;;  %v2919_v22 = vpack.c.bf16 %v2887_v11, %v2887_v11  ;;  %v2405_v50 = vpack.c.bf16 %v11768_v17, %v11768_v17 }
 0x3ea   : > { %v5349_v27 = vpop.f32.mrf.mxu1 }
 0x3eb   : > { %v2920_v7 = vpack.c.bf16 %v2888_v61, %v2888_v61  ;;  %v3881_v2 = vunpack.c.l.b16 %v2405_v50 }
 0x3ec   : > { %v5435_v54 = vpop.f32.mrf.mxu2 }
 0x3ed   : > { %v5436_v45 = vadd.f32 %v5435_v54, %v5347_v36  ;;  %v5260_v1 = vpop.f32.mrf.mxu0  ;;  %5388 = vmatmul.bf16.gmra.mxu1 %v11773_v0  ;;  %v5524_v34 = vpop.f32.mrf.mxu3  ;;  %v11776_v36 = vld [vmem:[#allocation50_spill] sm:$0xff]  ;;  %v2406_v54 = vpack.c.bf16 %v9245_v23, %v9245_v23  ;;  %v4074_v0 = vunpack.c.l.b16 %v2920_v7  ;;  %v2408_v7 = vpack.c.bf16 %v9375_v57, %v9375_v57 }
 0x3ee   : > { %v5261_v52 = vadd.f32 %v5260_v1, %v11774_v33  ;;  %v3144_v58 = vmul.f32 %v11776_v36, %v9235_v6  ;;  %v4073_v1 = vunpack.c.l.b16 %v2919_v22 }
 0x3ef   : > { %v10461_v26 = vadd.f32 %v5524_v34, %v5436_v45  ;;  %v3882_v45 = vunpack.c.l.b16 %v2406_v54  ;;  %v4170_v34 = vunpack.c.l.b16 %v3177_v48 }
 0x3f0   : > { %5299 = vmatmul.bf16.gmra.mxu0 %v3901_v39  ;;  %v5350_v15 = vadd.f32 %v5349_v27, %v5261_v52  ;;  %v3176_v5 = vpack.c.bf16 %v3144_v58, %v3144_v58  ;;  %v11778_v39 = vld [vmem:[#allocation5_spill] sm:$0xff]  ;;  %v4094_v11 = vpack.c.b16 %v4074_v0, %v4073_v1  ;;  %v2889_v58 = vmul.f32 %v2828_v43, %v10035_v62 }
 0x3f1   : > { %5477 = vmatmul.bf16.gmra.mxu2 %v4093_v25  ;;  %v11779_v25 = vld [vmem:[#allocation85_spill] sm:$0xff] }
 0x3f2   : > { %v5351_v4 = vpop.f32.mrf.mxu1  ;;  %5566 = vmatmul.bf16.gmra.mxu3 %v4189_v9  ;;  %v4169_v33 = vunpack.c.l.b16 %v3176_v5  ;;  %v2921_v48 = vpack.c.bf16 %v2889_v58, %v2889_v58 }
 0x3f4   : > { %v5438_v30 = vpop.f32.mrf.mxu2  ;;  %v4190_v38 = vpack.c.b16 %v4170_v34, %v4169_v33 }
 0x3f5   : > { %v5439_v47 = vadd.f32 %v5438_v30, %v5350_v15  ;;  %v5262_v37 = vpop.f32.mrf.mxu0  ;;  %v5527_v27 = vpop.f32.mrf.mxu3  ;;  %v11780_v15 = vpack.c.b16 %v11778_v39, %v11779_v25  ;;  %v11783_v39 = vld [vmem:[#allocation11_spill] sm:$0xff]  ;;  %v11784_v25 = vld [vmem:[#allocation89_spill] sm:$0xff] }
 0x3f6   : > { %v5263_v53 = vadd.f32 %v5262_v37, %v11777_v29  ;;  %v2838_v30 = vpop.permute.xlu1 %2837  ;;  %v11781_v37 = vld [vmem:[#allocation198_spill] sm:$0xff]  ;;  %v3147_v29 = vmul.f32 %v3090_v59, %v9495_v32 }
 0x3f7   : > { %v10473_v40 = vadd.f32 %v5527_v27, %v5439_v47  ;;  %v2890_v27 = vmul.f32 %v11781_v37, %v10029_v55  ;;  %v2407_v55 = vpack.c.bf16 %v9235_v6, %v9235_v6  ;;  %v2891_v58 = vmul.f32 %v2838_v30, %v10116_v42  ;;  %v7077_v37 = vld [vmem:[%s10975_s3 + $0x238] sm:$0xff] }
 0x3f8   : > { %v5352_v10 = vadd.f32 %v5351_v4, %v5263_v53  ;;  %v3902_v4 = vpack.c.b16 %v3882_v45, %v3881_v2  ;;  %v3179_v59 = vpack.c.bf16 %v3147_v29, %v3147_v29  ;;  %v4075_v2 = vunpack.c.l.b16 %v2921_v48  ;;  %5597 = vmatpush.bf16.msrb.mxu0 %v7077_v37 }
 0x3f9   : > { %v2922_v5 = vpack.c.bf16 %v2890_v27, %v2890_v27  ;;  %v3883_v34 = vunpack.c.l.b16 %v2407_v55  ;;  %v2410_v42 = vpack.c.bf16 %v9495_v32, %v9495_v32  ;;  %v2923_v30 = vpack.c.bf16 %v2891_v58, %v2891_v58 }
 0x3fa   : > { %v5354_v8 = vpop.f32.mrf.mxu1  ;;  %v4172_v33 = vunpack.c.l.b16 %v3179_v59 }
 0x3fb   : > { %v3886_v55 = vunpack.c.l.b16 %v2410_v42 }
 0x3fc   : > { %v5440_v35 = vpop.f32.mrf.mxu2 }
 0x3fd   : > { %v5441_v52 = vadd.f32 %v5440_v35, %v5352_v10  ;;  %v5265_v23 = vpop.f32.mrf.mxu0  ;;  %5393 = vmatmul.bf16.gmra.mxu1 %v11780_v15  ;;  %v5529_v9 = vpop.f32.mrf.mxu3  ;;  %v3884_v35 = vunpack.c.l.b16 %v2408_v7  ;;  %v11785_v15 = vpack.c.b16 %v11783_v39, %v11784_v25 }
 0x3fe   : > { %v5266_v17 = vadd.f32 %v5265_v23, %v10002_v16  ;;  %v11782_v16 = vld [vmem:[#allocation65_spill] sm:$0xff]  ;;  %v3100_v45 = vpop.permute.xlu1 %3099 }
 0x3ff   : > { %v10481_v46 = vadd.f32 %v5529_v9, %v5441_v52  ;;  %v3146_v53 = vmul.f32 %v11782_v16, %v9365_v31  ;;  %v3149_v29 = vmul.f32 %v3100_v45, %v11490_v44  ;;  %v3148_v16 = vmul.f32 %v10006_v21, %v9513_v18  ;;  %v7075_v21 = vld [vmem:[%s10975_s3 + $0x228] sm:$0xff] }
 0x400   : > { %5304 = vmatmul.bf16.gmra.mxu0 %v3902_v4  ;;  %v5355_v61 = vadd.f32 %v5354_v8, %v5266_v17  ;;  %v3903_v17 = vpack.c.b16 %v3884_v35, %v3883_v34 }
 0x401   : > { %5482 = vmatmul.bf16.gmra.mxu2 %v4094_v11  ;;  %v3178_v8 = vpack.c.bf16 %v3146_v53, %v3146_v53  ;;  %v3181_v7 = vpack.c.bf16 %v3149_v29, %v3149_v29  ;;  %v3180_v48 = vpack.c.bf16 %v3148_v16, %v3148_v16  ;;  %v7072_v29 = vld [vmem:[%s10975_s3 + $0x210] sm:$0xff] }
 0x402   : > { %v5356_v36 = vpop.f32.mrf.mxu1  ;;  %5571 = vmatmul.bf16.gmra.mxu3 %v4190_v38 }
 0x403   : > { %v4171_v52 = vunpack.c.l.b16 %v3178_v8  ;;  %v4174_v8 = vunpack.c.l.b16 %v3181_v7  ;;  %v4173_v45 = vunpack.c.l.b16 %v3180_v48 }
 0x404   : > { %v5443_v47 = vpop.f32.mrf.mxu2 }
 0x405   : > { %v5444_v54 = vadd.f32 %v5443_v47, %v5355_v61  ;;  %v5267_v22 = vpop.f32.mrf.mxu0  ;;  %v5532_v10 = vpop.f32.mrf.mxu3  ;;  %v4191_v38 = vpack.c.b16 %v4172_v33, %v4171_v52  ;;  %v7074_v52 = vld [vmem:[%s10975_s3 + $0x220] sm:$0xff] }
 0x406   : > { %v5268_v50 = vadd.f32 %v5267_v22, %v10014_v28  ;;  %v4076_v28 = vunpack.c.l.b16 %v2922_v5  ;;  %v2848_v47 = vpop.permute.xlu1 %2847  ;;  %v4077_v5 = vunpack.c.l.b16 %v2923_v30 }
 0x407   : > { %v10492_v62 = vadd.f32 %v5532_v10, %v5444_v54  ;;  %v11787_v54 = vld [vmem:[#allocation77_spill] sm:$0xff]  ;;  %v7076_v10 = vld [vmem:[%s10975_s3 + $0x230] sm:$0xff]  ;;  %v2893_v25 = vmul.f32 %v2848_v47, %v9077_v14  ;;  %v2412_v14 = vpack.c.bf16 %v11490_v44, %v11490_v44 }
 0x408   : > { %v5357_v43 = vadd.f32 %v5356_v36, %v5268_v50  ;;  %v4095_v4 = vpack.c.b16 %v4076_v28, %v4075_v2  ;;  %5598 = vmatpush.bf16.msrb.mxu0 %v7076_v10  ;;  %v11788_v2 = vld [vmem:[#allocation175_spill] sm:$0xff] }
 0x409   : > { %v2925_v47 = vpack.c.bf16 %v2893_v25, %v2893_v25  ;;  %v3888_v30 = vunpack.c.l.b16 %v2412_v14 }
 0x40a   : > { %v5359_v1 = vpop.f32.mrf.mxu1 }
 0x40b   : > { %v4079_v44 = vunpack.c.l.b16 %v2925_v47 }
 0x40c   : > { %v5445_v0 = vpop.f32.mrf.mxu2  ;;  %5599 = vmatpush.bf16.msrb.mxu0 %v7075_v21  ;;  %v11795_v21 = vld [vmem:[#allocation203_spill] sm:$0xff] }
 0x40d   : > { %v5446_v57 = vadd.f32 %v5445_v0, %v5357_v43  ;;  %v5270_v23 = vpop.f32.mrf.mxu0  ;;  %5398 = vmatmul.bf16.gmra.mxu1 %v11785_v15  ;;  %v5534_v9 = vpop.f32.mrf.mxu3  ;;  %v11789_v0 = vld [vmem:[#allocation40_spill] sm:$0xff]  ;;  %v11791_v15 = vld [vmem:[#allocation49_spill] sm:$0xff] }
 0x40e   : > { %v5271_v6 = vadd.f32 %v5270_v23, %v10053_v51  ;;  %v11786_v51 = vld [vmem:[#allocation73_spill] sm:$0xff]  ;;  %v4192_v23 = vpack.c.b16 %v4174_v8, %v4173_v45  ;;  %v2863_v45 = vpop.permute.xlu2 %2862 }
 0x40f   : > { %v10500_v11 = vadd.f32 %v5534_v9, %v5446_v57  ;;  %v2892_v27 = vmul.f32 %v11786_v51, %v10110_v56  ;;  %v2409_v56 = vpack.c.bf16 %v9365_v31, %v9365_v31  ;;  %v11790_v31 = vpack.c.b16 %v11788_v2, %v11789_v0  ;;  %v3115_v2 = vpop.permute.xlu0 %3114 }
 0x410   : > { %5309 = vmatmul.bf16.gmra.mxu0 %v3903_v17  ;;  %v10502_v61 = vadd.f32 %v5359_v1, %v5271_v6  ;;  %v3110_v1 = vpop.permute.xlu1 %3109  ;;  %v2894_v9 = vmul.f32 %v11791_v15, %v9120_v3  ;;  %v11792_v6 = vld [vmem:[#allocation211_spill] sm:$0xff]  ;;  %v2411_v3 = vpack.c.bf16 %v9513_v18, %v9513_v18 }
 0x411   : > { %5487 = vmatmul.bf16.gmra.mxu2 %v4095_v4  ;;  %v2924_v50 = vpack.c.bf16 %v2892_v27, %v2892_v27  ;;  %v3885_v32 = vunpack.c.l.b16 %v2409_v56  ;;  %5600 = vmatpush.bf16.msrb.mxu0 %v7074_v52  ;;  %v3151_v17 = vmul.f32 %v3110_v1, %v11792_v6  ;;  %v11793_v4 = vld [vmem:[#allocation204_spill] sm:$0xff]  ;;  %v11802_v15 = vld [vmem:[#allocation51_spill] sm:$0xff] }
 0x412   : > { %v10504_v36 = vpop.f32.mrf.mxu1  ;;  %5576 = vmatmul.bf16.gmra.mxu3 %v4191_v38  ;;  %v11794_v38 = vld [vmem:[#allocation76_spill] sm:$0xff]  ;;  %v2926_v16 = vpack.c.bf16 %v2894_v9, %v2894_v9  ;;  %v3887_v10 = vunpack.c.l.b16 %v2411_v3 }
 0x413   : > { %v4078_v59 = vunpack.c.l.b16 %v2924_v50  ;;  %v3904_v28 = vpack.c.b16 %v3886_v55, %v3885_v32  ;;  %v3150_v58 = vmul.f32 %v11794_v38, %v11793_v4 }
 0x414   : > { %v4080_v56 = vunpack.c.l.b16 %v2926_v16 }
 0x415   : > { %v5272_v53 = vpop.f32.mrf.mxu0  ;;  %v4096_v33 = vpack.c.b16 %v4078_v59, %v4077_v5  ;;  %v3905_v5 = vpack.c.b16 %v3888_v30, %v3887_v10  ;;  %v7070_v59 = vld [vmem:[%s10975_s3 + $0x200] sm:$0xff]  ;;  %v11803_v30 = vld [vmem:[#allocation35_spill] sm:$0xff] }
 0x416   : > { %v10516_v22 = vadd.f32 %v5272_v53, %v11787_v54  ;;  %v3183_v53 = vpack.c.bf16 %v3151_v17, %v3151_v17  ;;  %v3182_v54 = vpack.c.bf16 %v3150_v58, %v3150_v58  ;;  %v4097_v32 = vpack.c.b16 %v4080_v56, %v4079_v44  ;;  %v11804_v44 = vld [vmem:[#allocation43_spill] sm:$0xff] }
 0x417   : > { %v2414_v17 = vpack.c.bf16 %v11792_v6, %v11792_v6  ;;  %v2413_v58 = vpack.c.bf16 %v11793_v4, %v11793_v4  ;;  %v11805_v10 = vpack.c.b16 %v11803_v30, %v11804_v44  ;;  %v11806_v6 = vld [vmem:[#allocation52_spill] sm:$0xff] }
 0x418   : > { %v2858_v27 = vpop.permute.xlu1 %2857  ;;  %v4176_v50 = vunpack.c.l.b16 %v3183_v53  ;;  %v4175_v7 = vunpack.c.l.b16 %v3182_v54 }
 0x419   : > { %v3889_v16 = vunpack.c.l.b16 %v2413_v58 }
 0x41a   : > { %v5364_v43 = vpop.f32.mrf.mxu1  ;;  %v4193_v1 = vpack.c.b16 %v4176_v50, %v4175_v7 }
 0x41d   : > { %v5275_v35 = vpop.f32.mrf.mxu0  ;;  %5403 = vmatmul.bf16.gmra.mxu1 %v11790_v31  ;;  %v11798_v31 = vld [vmem:[#allocation215_spill] sm:$0xff] }
 0x41e   : > { %v5276_v34 = vadd.f32 %v5275_v35, %v10146_v13  ;;  %v7073_v13 = vld [vmem:[%s10975_s3 + $0x218] sm:$0xff] }
 0x41f   : > { %5601 = vmatpush.bf16.msrb.mxu0 %v7073_v13 }
 0x420   : > { %5314 = vmatmul.bf16.gmra.mxu0 %v3904_v28  ;;  %v10535_v57 = vadd.f32 %v5364_v43, %v5276_v34  ;;  %v11796_v43 = vld [vmem:[#allocation44_spill] sm:$0xff]  ;;  %v3120_v35 = vpop.permute.xlu1 %3119  ;;  %v2895_v34 = vmul.f32 %v2858_v27, %v11798_v31 }
 0x421   : > { %5492 = vmatmul.bf16.gmra.mxu2 %v4096_v33  ;;  %v11797_v55 = vpack.c.b16 %v11795_v21, %v11796_v43  ;;  %v11800_v33 = vld [vmem:[#allocation106_spill] sm:$0xff] }
 0x422   : > { %v10537_v39 = vpop.f32.mrf.mxu1  ;;  %5581 = vmatmul.bf16.gmra.mxu3 %v4192_v23  ;;  %v3153_v52 = vmul.f32 %v3120_v35, %v11800_v33  ;;  %v11801_v23 = vld [vmem:[#allocation110_spill] sm:$0xff]  ;;  %v2927_v38 = vpack.c.bf16 %v2895_v34, %v2895_v34 }
 0x423   : > { %5602 = vmatpush.bf16.msrb.mxu0 %v7072_v29  ;;  %v3152_v25 = vmul.f32 %v3115_v2, %v11801_v23  ;;  %v3890_v29 = vunpack.c.l.b16 %v2414_v17  ;;  %v11810_v35 = vld [vmem:[#allocation178_spill] sm:$0xff]  ;;  %v11815_v17 = vld [vmem:[#allocation196_spill] sm:$0xff] }
 0x424   : > { %v3185_v14 = vpack.c.bf16 %v3153_v52, %v3153_v52  ;;  %v4081_v3 = vunpack.c.l.b16 %v2927_v38 }
 0x425   : > { %v5277_v37 = vpop.f32.mrf.mxu0  ;;  %v3184_v47 = vpack.c.bf16 %v3152_v25, %v3152_v25  ;;  %v3906_v50 = vpack.c.b16 %v3890_v29, %v3889_v16  ;;  %v11813_v25 = vld [vmem:[#allocation68_spill] sm:$0xff] }
 0x426   : > { %v10549_v51 = vadd.f32 %v5277_v37, %v10175_v60  ;;  %v7071_v60 = vld [vmem:[%s10975_s3 + $0x208] sm:$0xff]  ;;  %v4178_v54 = vunpack.c.l.b16 %v3185_v14  ;;  %v11818_v16 = vld [vmem:[#allocation124_spill] sm:$0xff] }
 0x427   : > { %5603 = vmatpush.bf16.msrb.mxu0 %v7071_v60  ;;  %v4177_v60 = vunpack.c.l.b16 %v3184_v47  ;;  %v11817_v47 = vld [vmem:[#allocation107_spill] sm:$0xff] }
 0x42a   : > { %v5369_v42 = vpop.f32.mrf.mxu1 }
 0x42b   : > { %5604 = vmatpush.bf16.msrb.mxu0 %v7070_v59  ;;  %v11808_v59 = vld [vmem:[#allocation24_spill] sm:$0xff] }
 0x42d   : > { %v5280_v48 = vpop.f32.mrf.mxu0  ;;  %5408 = vmatmul.bf16.gmra.mxu1 %v11797_v55  ;;  %v11807_v55 = vld [vmem:[#allocation15_spill] sm:$0xff] }
 0x42e   : > { %v5281_v18 = vadd.f32 %v5280_v48, %v10213_v41  ;;  %v11799_v41 = vld [vmem:[#allocation210_spill] sm:$0xff]  ;;  %v4194_v48 = vpack.c.b16 %v4178_v54, %v4177_v60  ;;  %v11819_v54 = vld [vmem:[#allocation213_spill] sm:$0xff]  ;;  %v11820_v60 = vld [vmem:[#allocation212_spill] sm:$0xff] }
 0x42f   : > { %v2896_v28 = vmul.f32 %v2863_v45, %v11799_v41 }
 0x430   : > { %5319 = vmatmul.bf16.gmra.mxu0 %v3905_v5  ;;  %v10568_v8 = vadd.f32 %v5369_v42, %v5281_v18 }
 0x431   : > { %5497 = vmatmul.bf16.gmra.mxu2 %v4097_v32  ;;  %v2928_v37 = vpack.c.bf16 %v2896_v28, %v2896_v28  ;;  %v11812_v28 = vld [vmem:[#allocation81_spill] sm:$0xff] }
 0x432   : > { %v10570_v0 = vpop.f32.mrf.mxu1  ;;  %5586 = vmatmul.bf16.gmra.mxu3 %v4193_v1  ;;  %v11809_v1 = vld [vmem:[#allocation177_spill] sm:$0xff] }
 0x433   : > { %v4082_v53 = vunpack.c.l.b16 %v2928_v37  ;;  %v11811_v2 = vpack.c.b16 %v11809_v1, %v11810_v35  ;;  %v11827_v35 = vld [vmem:[#allocation26_spill] sm:$0xff] }
 0x435   : > { %v5282_v13 = vpop.f32.mrf.mxu0  ;;  %v4098_v7 = vpack.c.b16 %v4082_v53, %v4081_v3 }
 0x436   : > { %v10577_v9 = vadd.f32 %v5282_v13, %v11802_v15  ;;  %v11814_v15 = vld [vmem:[#allocation195_spill] sm:$0xff] }
 0x437   : > { %v11816_v38 = vpack.c.b16 %v11814_v15, %v11815_v17 }
 0x43a   : > { %v5374_v27 = vpop.f32.mrf.mxu1 }
 0x43d   : > { %v5285_v42 = vpop.f32.mrf.mxu0  ;;  %5413 = vmatmul.bf16.gmra.mxu1 %v11805_v10 }
 0x43e   : > { %v5286_v56 = vadd.f32 %v5285_v42, %v11806_v6  ;;  %v11821_v42 = vpack.c.b16 %v11819_v54, %v11820_v60  ;;  %v11822_v6 = vld [vmem:[#allocation55_spill] sm:$0xff]  ;;  %v7085_v60 = vld [vmem:[%s10976_s4 + $0x38] sm:$0xff] }
 0x43f   : > { %5800 = vmatpush.bf16.msrb.mxu1 %v7085_v60  ;;  %v7078_v60 = vld [vmem:[%s10976_s4] sm:$0xff] }
 0x440   : > { %5324 = vmatmul.bf16.gmra.mxu0 %v3906_v50  ;;  %v10587_v4 = vadd.f32 %v5374_v27, %v5286_v56 }
 0x441   : > { %5502 = vmatmul.bf16.gmra.mxu2 %v4098_v7 }
 0x442   : > { %v10589_v21 = vpop.f32.mrf.mxu1  ;;  %5591 = vmatmul.bf16.gmra.mxu3 %v4194_v48  ;;  %v11823_v48 = vld [vmem:[#allocation42_spill] sm:$0xff] }
 0x445   : > { %v5287_v43 = vpop.f32.mrf.mxu0 }
 0x446   : > { %v10592_v18 = vadd.f32 %v5287_v43, %v11807_v55  ;;  %v11824_v55 = vld [vmem:[#allocation222_spill] sm:$0xff] }
 0x44a   : > { %v5379_v5 = vpop.f32.mrf.mxu1 }
 0x44d   : > { %v5290_v32 = vpop.f32.mrf.mxu0 }
 0x44e   : > { %v5291_v45 = vadd.f32 %v5290_v32, %v11808_v59 }
 0x450   : > { %5605 = vmatmul.bf16.vlgmr.msrb.gmra.mxu0 %v11811_v2  ;;  %v10598_v31 = vadd.f32 %v5379_v5, %v5291_v45  ;;  %v11825_v5 = vld [vmem:[#allocation223_spill] sm:$0xff] }
 0x451   : > { %v11826_v32 = vpack.c.b16 %v11824_v55, %v11825_v5  ;;  %v11837_v55 = vld [vmem:[#allocation136_spill] sm:$0xff] }
 0x452   : > { %v10600_v34 = vpop.f32.mrf.mxu1 }
 0x455   : > { %v5292_v41 = vpop.f32.mrf.mxu0 }
 0x456   : > { %v10603_v33 = vadd.f32 %v5292_v41, %v11812_v28 }
 0x45a   : > { %v5384_v52 = vpop.f32.mrf.mxu1 }
 0x45d   : > { %v5295_v23 = vpop.f32.mrf.mxu0 }
 0x45e   : > { %v5296_v13 = vadd.f32 %v5295_v23, %v11813_v25  ;;  %v11829_v25 = vld [vmem:[#allocation75_spill] sm:$0xff] }
 0x460   : > { %5610 = vmatmul.bf16.gmra.mxu0 %v11816_v38  ;;  %v10609_v58 = vadd.f32 %v5384_v52, %v5296_v13  ;;  %v11828_v52 = vld [vmem:[#allocation27_spill] sm:$0xff]  ;;  %v11830_v13 = vld [vmem:[#allocation150_spill] sm:$0xff] }
 0x461   : > { %v11831_v15 = vpack.c.b16 %v11829_v25, %v11830_v13  ;;  %v11840_v25 = vld [vmem:[#allocation94_spill] sm:$0xff] }
 0x462   : > { %v10611_v37 = vpop.f32.mrf.mxu1 }
 0x465   : > { %v5297_v14 = vpop.f32.mrf.mxu0 }
 0x466   : > { %v10614_v27 = vadd.f32 %v5297_v14, %v11817_v47  ;;  %v11832_v47 = vld [vmem:[#allocation87_spill] sm:$0xff] }
 0x46a   : > { %v5389_v29 = vpop.f32.mrf.mxu1 }
 0x46d   : > { %v5300_v3 = vpop.f32.mrf.mxu0 }
 0x46e   : > { %v5301_v53 = vadd.f32 %v5300_v3, %v11818_v16 }
 0x470   : > { %5615 = vmatmul.bf16.gmra.mxu0 %v11821_v42  ;;  %v10620_v30 = vadd.f32 %v5389_v29, %v5301_v53  ;;  %v11833_v53 = vld [vmem:[#allocation80_spill] sm:$0xff]  ;;  %v11834_v42 = vld [vmem:[#allocation37_spill] sm:$0xff] }
 0x472   : > { %v10622_v44 = vpop.f32.mrf.mxu1 }
 0x475   : > { %v5302_v10 = vpop.f32.mrf.mxu0 }
 0x476   : > { %v10625_v56 = vadd.f32 %v5302_v10, %v11822_v6  ;;  %v11835_v10 = vld [vmem:[#allocation6_spill] sm:$0xff] }
 0x477   : > { %v11836_v6 = vpack.c.b16 %v11834_v42, %v11835_v10 }
 0x47a   : > { %v5394_v50 = vpop.f32.mrf.mxu1 }
 0x47d   : > { %v5305_v7 = vpop.f32.mrf.mxu0 }
 0x47e   : > { %v5306_v43 = vadd.f32 %v5305_v7, %v11823_v48  ;;  %v7084_v7 = vld [vmem:[%s10976_s4 + $0x30] sm:$0xff] }
 0x47f   : > { %5801 = vmatpush.bf16.msrb.mxu1 %v7084_v7  ;;  %v11842_v7 = vld [vmem:[#allocation16_spill] sm:$0xff] }
 0x480   : > { %5620 = vmatmul.bf16.gmra.mxu0 %v11826_v32  ;;  %v10631_v59 = vadd.f32 %v5394_v50, %v5306_v43  ;;  %v7083_v32 = vld [vmem:[%s10976_s4 + $0x28] sm:$0xff] }
 0x482   : > { %v10633_v45 = vpop.f32.mrf.mxu1 }
 0x483   : > { %5802 = vmatpush.bf16.msrb.mxu1 %v7083_v32 }
 0x485   : > { %v5307_v1 = vpop.f32.mrf.mxu0 }
 0x486   : > { %v10636_v2 = vadd.f32 %v5307_v1, %v11827_v35  ;;  %v7082_v1 = vld [vmem:[%s10976_s4 + $0x20] sm:$0xff] }
 0x487   : > { %5803 = vmatpush.bf16.msrb.mxu1 %v7082_v1 }
 0x48a   : > { %v5399_v41 = vpop.f32.mrf.mxu1 }
 0x48d   : > { %v5310_v28 = vpop.f32.mrf.mxu0 }
 0x48e   : > { %v5311_v23 = vadd.f32 %v5310_v28, %v11828_v52  ;;  %v11838_v28 = vld [vmem:[#allocation113_spill] sm:$0xff] }
 0x490   : > { %5625 = vmatmul.bf16.gmra.mxu0 %v11831_v15  ;;  %v10642_v17 = vadd.f32 %v5399_v41, %v5311_v23  ;;  %v11839_v23 = vld [vmem:[#allocation192_spill] sm:$0xff] }
 0x491   : > { %v11841_v13 = vpack.c.b16 %v11839_v23, %v11840_v25 }
 0x492   : > { %v10644_v38 = vpop.f32.mrf.mxu1 }
 0x495   : > { %v5312_v14 = vpop.f32.mrf.mxu0 }
 0x496   : > { %v10647_v29 = vadd.f32 %v5312_v14, %v11832_v47  ;;  %v7081_v14 = vld [vmem:[%s10976_s4 + $0x18] sm:$0xff]  ;;  %v7080_v47 = vld [vmem:[%s10976_s4 + $0x10] sm:$0xff] }
 0x497   : > { %5804 = vmatpush.bf16.msrb.mxu1 %v7081_v14 }
 0x49a   : > { %v5404_v3 = vpop.f32.mrf.mxu1 }
 0x49b   : > { %5805 = vmatpush.bf16.msrb.mxu1 %v7080_v47 }
 0x49d   : > { %v5315_v16 = vpop.f32.mrf.mxu0 }
 0x49e   : > { %v5316_v54 = vadd.f32 %v5315_v16, %v11833_v53 }
 0x4a0   : > { %5630 = vmatmul.bf16.gmra.mxu0 %v11836_v6  ;;  %v10656_v50 = vadd.f32 %v5404_v3, %v5316_v54  ;;  %v7079_v54 = vld [vmem:[%s10976_s4 + $0x8] sm:$0xff] }
 0x4a1   : > { %5806 = vmatpush.bf16.msrb.mxu1 %v7079_v54  ;;  %v5537_v54 = vpop.f32.mrf.mxu3 }
 0x4a2   : > { %v10661_v48 = vpop.f32.mrf.mxu1 }
 0x4a5   : > { %v5317_v43 = vpop.f32.mrf.mxu0  ;;  %5807 = vmatpush.bf16.msrb.mxu1 %v7078_v60 }
 0x4a6   : > { %v10664_v5 = vadd.f32 %v5317_v43, %v11837_v55  ;;  %v11843_v43 = vld [vmem:[#allocation61_spill] sm:$0xff] }
 0x4a7   : > { %v11844_v55 = vpack.c.b16 %v11842_v7, %v11843_v43 }
 0x4aa   : > { %v5409_v35 = vpop.f32.mrf.mxu1 }
 0x4ad   : > { %v5320_v41 = vpop.f32.mrf.mxu0 }
 0x4ae   : > { %v5321_v52 = vadd.f32 %v5320_v41, %v11838_v28  ;;  %v11845_v41 = vld [vmem:[#allocation88_spill] sm:$0xff]  ;;  %v11846_v28 = vld [vmem:[#allocation103_spill] sm:$0xff] }
 0x4b0   : > { %5635 = vmatmul.bf16.gmra.mxu0 %v11841_v13  ;;  %v10676_v15 = vadd.f32 %v5409_v35, %v5321_v52  ;;  %v11847_v52 = vpack.c.b16 %v11845_v41, %v11846_v28  ;;  %v5448_v13 = vpop.f32.mrf.mxu2 }
 0x4b2   : > { %v10684_v3 = vpop.f32.mrf.mxu1 }
 0x4b5   : > { %v5322_v16 = vpop.f32.mrf.mxu0 }
 0x4b6   : > { %v10687_v53 = vadd.f32 %v5322_v16, %v10395_v12 }
 0x4ba   : > { %v5414_v6 = vpop.f32.mrf.mxu1 }
 0x4bd   : > { %v5325_v42 = vpop.f32.mrf.mxu0 }
 0x4be   : > { %v5326_v10 = vadd.f32 %v5325_v42, %v10410_v20  ;;  %v11848_v42 = vld [vmem:[#allocation74_spill] sm:$0xff] }
 0x4c0   : > { %5640 = vmatmul.bf16.gmra.mxu0 %v11844_v55  ;;  %v10699_v12 = vadd.f32 %v5414_v6, %v5326_v10  ;;  %v5450_v6 = vpop.f32.mrf.mxu2  ;;  %v5539_v55 = vpop.f32.mrf.mxu3 }
 0x4c5   : > { %v5327_v32 = vpop.f32.mrf.mxu0 }
 0x4c6   : > { %v10702_v1 = vadd.f32 %v5327_v32, %v10418_v49  ;;  %v11849_v49 = vld [vmem:[#allocation9_spill] sm:$0xff] }
 0x4c7   : > { %v11850_v10 = vpack.c.b16 %v11848_v42, %v11849_v49 }
 0x4c8   : > { %v5453_v41 = vpop.f32.mrf.mxu2 }
 0x4cd   : > { %v5606_v35 = vpop.f32.mrf.mxu0 }
 0x4ce   : > { %v5607_v23 = vadd.f32 %v5606_v35, %v10433_v24 }
 0x4d0   : > { %5645 = vmatmul.bf16.gmra.mxu0 %v11847_v52  ;;  %v5686_v14 = vmax.f32 %v5607_v23, 0.0  ;;  %v11851_v52 = vld [vmem:[#allocation109_spill] sm:$0xff]  ;;  %v11852_v23 = vld [vmem:[#allocation62_spill] sm:$0xff] }
 0x4d5   : > { %v5608_v20 = vpop.f32.mrf.mxu0 }
 0x4d6   : > { %v5609_v25 = vadd.f32 %v5608_v20, %v10441_v63  ;;  %v11853_v20 = vpack.c.b16 %v11851_v52, %v11852_v23 }
 0x4d8   : > { %v5687_v47 = vmax.f32 %v5609_v25, 0.0  ;;  %v5542_v25 = vpop.f32.mrf.mxu3 }
 0x4da   : > { %v5718_v16 = vpack.c.bf16 %v5687_v47, %v5686_v14  ;;  %v5455_v47 = vpop.f32.mrf.mxu2 }
 0x4dc   : > { %5808 = vmatmul.bf16.vlgmr.msrb.gmra.mxu1 %v5718_v16 }
 0x4dd   : > { %v5611_v60 = vpop.f32.mrf.mxu0 }
 0x4de   : > { %v5612_v7 = vadd.f32 %v5611_v60, %v10453_v19 }
 0x4e0   : > { %5650 = vmatmul.bf16.gmra.mxu0 %v11850_v10  ;;  %v5688_v32 = vmax.f32 %v5612_v7, 0.0  ;;  %v5544_v49 = vpop.f32.mrf.mxu3 }
 0x4e2   : > { %v5458_v7 = vpop.f32.mrf.mxu2 }
 0x4e5   : > { %v5613_v43 = vpop.f32.mrf.mxu0 }
 0x4e6   : > { %v5614_v24 = vadd.f32 %v5613_v43, %v10461_v26  ;;  %v11854_v43 = vld [vmem:[#allocation22_spill] sm:$0xff] }
 0x4e8   : > { %v5689_v63 = vmax.f32 %v5614_v24, 0.0  ;;  %v11855_v24 = vld [vmem:[#allocation36_spill] sm:$0xff] }
 0x4ea   : > { %v5719_v35 = vpack.c.bf16 %v5689_v63, %v5688_v32  ;;  %v11856_v32 = vpack.c.b16 %v11854_v43, %v11855_v24  ;;  %v11858_v43 = vld [vmem:[#allocation96_spill] sm:$0xff] }
 0x4ec   : > { %5813 = vmatmul.bf16.gmra.mxu1 %v5719_v35  ;;  %v5547_v35 = vpop.f32.mrf.mxu3 }
 0x4ed   : > { %v5616_v28 = vpop.f32.mrf.mxu0 }
 0x4ee   : > { %v5617_v14 = vadd.f32 %v5616_v28, %v10473_v40 }
 0x4f0   : > { %5655 = vmatmul.bf16.gmra.mxu0 %v11853_v20  ;;  %v5690_v60 = vmax.f32 %v5617_v14, 0.0 }
 0x4f5   : > { %v5618_v16 = vpop.f32.mrf.mxu0 }
 0x4f6   : > { %v5619_v19 = vadd.f32 %v5618_v16, %v10481_v46  ;;  %v5460_v46 = vpop.f32.mrf.mxu2  ;;  %v5449_v16 = vadd.f32 %v5448_v13, %v10502_v61 }
 0x4f8   : > { %v5691_v26 = vmax.f32 %v5619_v19, 0.0  ;;  %v5362_v19 = vadd.f32 %v10504_v36, %v10516_v22  ;;  %v5454_v36 = vadd.f32 %v5453_v41, %v10535_v57  ;;  %v5367_v22 = vadd.f32 %v10537_v39, %v10549_v51 }
 0x4f9   : > { %v5459_v39 = vadd.f32 %v5458_v7, %v10568_v8  ;;  %v5372_v51 = vadd.f32 %v10570_v0, %v10577_v9 }
 0x4fa   : > { %v5720_v42 = vpack.c.bf16 %v5691_v26, %v5690_v60  ;;  %v5549_v60 = vpop.f32.mrf.mxu3  ;;  %v5451_v26 = vadd.f32 %v5450_v6, %v5362_v19  ;;  %v5456_v6 = vadd.f32 %v5455_v47, %v5367_v22  ;;  %v11860_v19 = vld [vmem:[#allocation12_spill] sm:$0xff]  ;;  %v3377_v47 = vpop.permute.xlu0 %3376 }
 0x4fb   : > { %v5548_v22 = vadd.f32 %v5547_v35, %v5459_v39 }
 0x4fc   : > { %5818 = vmatmul.bf16.gmra.mxu1 %v5720_v42  ;;  %v11857_v42 = vld [vmem:[#allocation39_spill] sm:$0xff] }
 0x4fd   : > { %v5621_v10 = vpop.f32.mrf.mxu0 }
 0x4fe   : > { %v5622_v63 = vadd.f32 %v5621_v10, %v10492_v62  ;;  %v11859_v62 = vpack.c.b16 %v11857_v42, %v11858_v43  ;;  %v5538_v10 = vadd.f32 %v5537_v54, %v5449_v16  ;;  %v5463_v24 = vpop.f32.mrf.mxu2  ;;  %v11861_v54 = vld [vmem:[#allocation25_spill] sm:$0xff] }
 0x4ff   : > { %v11862_v16 = vpack.c.b16 %v11860_v19, %v11861_v54  ;;  %v5464_v35 = vadd.f32 %v5463_v24, %v10587_v4 }
 0x500   : > { %5660 = vmatmul.bf16.gmra.mxu0 %v11856_v32  ;;  %v5692_v28 = vmax.f32 %v5622_v63, 0.0 }
 0x505   : > { %v5623_v52 = vpop.f32.mrf.mxu0 }
 0x506   : > { %v5624_v40 = vadd.f32 %v5623_v52, %v10500_v11  ;;  %v5540_v11 = vadd.f32 %v5539_v55, %v5451_v26  ;;  %v5465_v61 = vpop.f32.mrf.mxu2  ;;  %v5543_v55 = vadd.f32 %v5542_v25, %v5454_v36  ;;  %v5545_v26 = vadd.f32 %v5544_v49, %v5456_v6  ;;  %v11863_v25 = vld [vmem:[#allocation121_spill] sm:$0xff]  ;;  %v11867_v6 = vld [vmem:[#allocation114_spill] sm:$0xff] }
 0x508   : > { %v5693_v23 = vmax.f32 %v5624_v40, 0.0 }
 0x50a   : > { %v5721_v20 = vpack.c.bf16 %v5693_v23, %v5692_v28  ;;  %v5552_v23 = vpop.f32.mrf.mxu3 }
 0x50c   : > { %5823 = vmatmul.bf16.gmra.mxu1 %v5721_v20 }
 0x50d   : > { %v5626_v14 = vpop.f32.mrf.mxu0 }
 0x50e   : > { %v5627_v32 = vadd.f32 %v5626_v14, %v5538_v10  ;;  %v5468_v10 = vpop.f32.mrf.mxu2 }
 0x50f   : > { %v5469_v4 = vadd.f32 %v5468_v10, %v10598_v31  ;;  %v10757_v31 = vld [vmem:[%s10977_s5 + $0x3] ss:$0 sm:$0xff] }
 0x510   : > { %5665 = vmatmul.bf16.gmra.mxu0 %v11859_v62  ;;  %v5694_v40 = vmax.f32 %v5627_v32, 0.0 }
 0x512   : > { %v5554_v14 = vpop.f32.mrf.mxu3 }
 0x515   : > { %v5628_v63 = vpop.f32.mrf.mxu0 }
 0x516   : > { %v5629_v52 = vadd.f32 %v5628_v63, %v5540_v11 }
 0x518   : > { %v5695_v28 = vmax.f32 %v5629_v52, 0.0  ;;  %v5461_v52 = vadd.f32 %v5460_v46, %v5372_v51  ;;  %v5553_v51 = vadd.f32 %v5552_v23, %v5464_v35 }
 0x51a   : > { %v5722_v20 = vpack.c.bf16 %v5695_v28, %v5694_v40  ;;  %v5557_v57 = vpop.f32.mrf.mxu3  ;;  %v11864_v40 = vld [vmem:[#allocation119_spill] sm:$0xff]  ;;  %v3372_v28 = vpop.permute.xlu2 %3371  ;;  %v5550_v54 = vadd.f32 %v5549_v60, %v5461_v52  ;;  %v5377_v60 = vadd.f32 %v10589_v21, %v10592_v18  ;;  %v5382_v21 = vadd.f32 %v10600_v34, %v10603_v33 }
 0x51b   : > { %v11865_v49 = vpack.c.b16 %v11863_v25, %v11864_v40  ;;  %v3409_v19 = vmul.f32 %v3372_v28, %v11867_v6  ;;  %v5558_v23 = vadd.f32 %v5557_v57, %v5469_v4 }
 0x51c   : > { %5828 = vmatmul.bf16.gmra.mxu1 %v5722_v20  ;;  %v5470_v20 = vpop.f32.mrf.mxu2 }
 0x51d   : > { %v5631_v13 = vpop.f32.mrf.mxu0  ;;  %v3441_v0 = vpack.c.bf16 %v3409_v19, %v3409_v19  ;;  %v5471_v24 = vadd.f32 %v5470_v20, %v5382_v21 }
 0x51e   : > { %v5632_v42 = vadd.f32 %v5631_v13, %v5543_v55  ;;  %v11866_v13 = vld [vmem:[#allocation112_spill] sm:$0xff] }
 0x51f   : > { %v3410_v36 = vmul.f32 %v3377_v47, %v11866_v13 }
 0x520   : > { %5670 = vmatmul.bf16.gmra.mxu0 %v11862_v16  ;;  %v5696_v11 = vmax.f32 %v5632_v42, 0.0 }
 0x521   : > { %v3442_v8 = vpack.c.bf16 %v3410_v36, %v3410_v36 }
 0x523   : > { %v4274_v42 = vunpack.c.l.b16 %v3442_v8 }
 0x525   : > { %v5633_v43 = vpop.f32.mrf.mxu0 }
 0x526   : > { %v5634_v62 = vadd.f32 %v5633_v43, %v5545_v26  ;;  %v5559_v26 = vpop.f32.mrf.mxu3 }
 0x528   : > { %v5697_v32 = vmax.f32 %v5634_v62, 0.0  ;;  %v5473_v62 = vpop.f32.mrf.mxu2 }
 0x52a   : > { %v5723_v63 = vpack.c.bf16 %v5697_v32, %v5696_v11  ;;  %v4273_v11 = vunpack.c.l.b16 %v3441_v0 }
 0x52c   : > { %5833 = vmatmul.bf16.gmra.mxu1 %v5723_v63  ;;  %v4290_v63 = vpack.c.b16 %v4274_v42, %v4273_v11  ;;  %v11869_v42 = vld [vmem:[#allocation82_spill] sm:$0xff]  ;;  %v5474_v11 = vadd.f32 %v5473_v62, %v10609_v58 }
 0x52d   : > { %v5636_v41 = vpop.f32.mrf.mxu0 }
 0x52e   : > { %v5637_v16 = vadd.f32 %v5636_v41, %v5548_v22  ;;  %v5466_v41 = vadd.f32 %v5465_v61, %v5377_v60  ;;  %v5562_v39 = vpop.f32.mrf.mxu3  ;;  %v10750_v61 = vpop.f32.mrf.mxu1 }
 0x530   : > { %5675 = vmatmul.bf16.gmra.mxu0 %v11865_v49  ;;  %v5698_v9 = vmax.f32 %v5637_v16, 0.0  ;;  %v5555_v47 = vadd.f32 %v5554_v14, %v5466_v41  ;;  %v5475_v25 = vpop.f32.mrf.mxu2  ;;  %v5560_v14 = vadd.f32 %v5559_v26, %v5471_v24 }
 0x535   : > { %v5638_v55 = vpop.f32.mrf.mxu0 }
 0x536   : > { %v5639_v7 = vadd.f32 %v5638_v55, %v5550_v54  ;;  %v5564_v22 = vpop.f32.mrf.mxu3  ;;  %v11868_v55 = vld [vmem:[#allocation78_spill] sm:$0xff] }
 0x537   : > { %v1192_v8 = vpack.c.bf16 %v11868_v55, %v11868_v55  ;;  %v5392_v55 = vadd.f32 %v10622_v44, %v10625_v56 }
 0x538   : > { %v5699_v46 = vmax.f32 %v5639_v7, 0.0  ;;  %v5478_v18 = vpop.f32.mrf.mxu2 }
 0x539   : > { %v5889_v0 = vunpack.c.l.bf16 %v1192_v8 }
 0x53a   : > { %v5724_v43 = vpack.c.bf16 %v5699_v46, %v5698_v9 }
 0x53c   : > { %5838 = vmatmul.bf16.gmra.mxu1 %v5724_v43  ;;  %v1193_v43 = vpack.c.bf16 %v11869_v42, %v11869_v42 }
 0x53d   : > { %v5641_v32 = vpop.f32.mrf.mxu0 }
 0x53e   : > { %v5642_v52 = vadd.f32 %v5641_v32, %v5553_v51  ;;  %v5567_v54 = vpop.f32.mrf.mxu3  ;;  %v5387_v32 = vadd.f32 %v10611_v37, %v10614_v27  ;;  %v5890_v41 = vunpack.c.l.bf16 %v1193_v43  ;;  %v5563_v51 = vadd.f32 %v5562_v39, %v5474_v11  ;;  %v11872_v43 = vld [vmem:[#allocation95_spill] sm:$0xff] }
 0x53f   : > { %v1196_v11 = vpack.c.bf16 %v11872_v43, %v11872_v43 }
 0x540   : > { %5680 = vmatmul.bf16.gmra.mxu0 %v4290_v63  ;;  %v5700_v28 = vmax.f32 %v5642_v52, 0.0  ;;  %v5480_v33 = vpop.f32.mrf.mxu2  ;;  %v5476_v35 = vadd.f32 %v5475_v25, %v5387_v32 }
 0x541   : > { %v5481_v8 = vadd.f32 %v5480_v33, %v5392_v55  ;;  %v5893_v56 = vunpack.c.l.bf16 %v1196_v11 }
 0x545   : > { %v5643_v40 = vpop.f32.mrf.mxu0 }
 0x546   : > { %v5644_v49 = vadd.f32 %v5643_v40, %v5555_v47  ;;  %v5569_v63 = vpop.f32.mrf.mxu3  ;;  %v5565_v40 = vadd.f32 %v5564_v22, %v5476_v35 }
 0x548   : > { %v5701_v13 = vmax.f32 %v5644_v49, 0.0  ;;  %v5483_v52 = vpop.f32.mrf.mxu2 }
 0x54a   : > { %v5725_v36 = vpack.c.bf16 %v5701_v13, %v5700_v28 }
 0x54c   : > { %5843 = vmatmul.bf16.gmra.mxu1 %v5725_v36  ;;  %v11870_v36 = vld [vmem:[#allocation86_spill] sm:$0xff] }
 0x54d   : > { %v5646_v6 = vpop.f32.mrf.mxu0 }
 0x54e   : > { %v5647_v19 = vadd.f32 %v5646_v6, %v5558_v23  ;;  %v1194_v6 = vpack.c.bf16 %v11870_v36, %v11870_v36  ;;  %v5572_v37 = vpop.f32.mrf.mxu3 }
 0x550   : > { %v5702_v10 = vmax.f32 %v5647_v19, 0.0  ;;  %v5891_v25 = vunpack.c.l.bf16 %v1194_v6  ;;  %v5485_v22 = vpop.f32.mrf.mxu2 }
 0x555   : > { %v5648_v16 = vpop.f32.mrf.mxu0 }
 0x556   : > { %v5649_v7 = vadd.f32 %v5648_v16, %v5560_v14  ;;  %v11871_v14 = vld [vmem:[#allocation91_spill] sm:$0xff]  ;;  %v5479_v16 = vadd.f32 %v5478_v18, %v10620_v30 }
 0x557   : > { %v1195_v19 = vpack.c.bf16 %v11871_v14, %v11871_v14 }
 0x558   : > { %v5703_v34 = vmax.f32 %v5649_v7, 0.0  ;;  %v5488_v30 = vpop.f32.mrf.mxu2 }
 0x559   : > { %v5809_v20 = vpop.f32.mrf.mxu1 }
 0x55a   : > { %v5726_v9 = vpack.c.bf16 %v5703_v34, %v5702_v10  ;;  %v5810_v57 = vadd.f32 %v10757_v31, %v5809_v20  ;;  %v5892_v10 = vunpack.c.l.bf16 %v1195_v19  ;;  %v5568_v34 = vadd.f32 %v5567_v54, %v5479_v16 }
 0x55c   : > { %v10760_v26 = vadd.f32 %v5889_v0, %v5810_v57  ;;  %5848 = vmatmul.bf16.gmra.mxu1 %v5726_v9  ;;  %v5574_v0 = vpop.f32.mrf.mxu3  ;;  %v5570_v9 = vadd.f32 %v5569_v63, %v5481_v8 }
 0x55d   : > { %v5651_v46 = vpop.f32.mrf.mxu0 }
 0x55e   : > { %v5652_v49 = vadd.f32 %v5651_v46, %v5563_v51  ;;  %v11873_v51 = vld [vmem:[#allocation99_spill] sm:$0xff] }
 0x560   : > { %v5704_v62 = vmax.f32 %v5652_v49, 0.0  ;;  %v5397_v49 = vadd.f32 %v10633_v45, %v10636_v2  ;;  %v5490_v36 = vpop.f32.mrf.mxu2 }
 0x561   : > { %v5811_v60 = vpop.f32.mrf.mxu1 }
 0x562   : > { %v5812_v47 = vadd.f32 %v10757_v31, %v5811_v60 }
 0x564   : > { %v10768_v28 = vadd.f32 %v5890_v41, %v5812_v47  ;;  %v5577_v63 = vpop.f32.mrf.mxu3  ;;  %v1197_v47 = vpack.c.bf16 %v11873_v51, %v11873_v51 }
 0x565   : > { %v5653_v13 = vpop.f32.mrf.mxu0 }
 0x566   : > { %v5654_v58 = vadd.f32 %v5653_v13, %v5565_v40  ;;  %v5484_v40 = vadd.f32 %v5483_v52, %v10631_v59  ;;  %v5486_v13 = vadd.f32 %v5485_v22, %v5397_v49  ;;  %v5954_v8 = vmax.f32 %v10768_v28, 0.0 }
 0x568   : > { %v5705_v4 = vmax.f32 %v5654_v58, 0.0  ;;  %v5894_v58 = vunpack.c.l.bf16 %v1197_v47 }
 0x569   : > { %v5814_v27 = vpop.f32.mrf.mxu1 }
 0x56a   : > { %v5727_v21 = vpack.c.bf16 %v5705_v4, %v5704_v62  ;;  %v5815_v39 = vadd.f32 %v10757_v31, %v5814_v27  ;;  %v5573_v62 = vadd.f32 %v5572_v37, %v5484_v40  ;;  %v5575_v27 = vadd.f32 %v5574_v0, %v5486_v13  ;;  %v5493_v37 = vpop.f32.mrf.mxu2 }
 0x56c   : > { %v10773_v24 = vadd.f32 %v5891_v25, %v5815_v39  ;;  %5853 = vmatmul.bf16.gmra.mxu1 %v5727_v21  ;;  %v5579_v59 = vpop.f32.mrf.mxu3 }
 0x56d   : > { %v5656_v23 = vpop.f32.mrf.mxu0 }
 0x56e   : > { %v5657_v57 = vadd.f32 %v5656_v23, %v5568_v34  ;;  %v11874_v23 = vld [vmem:[#allocation104_spill] sm:$0xff] }
 0x56f   : > { %v1198_v14 = vpack.c.bf16 %v11874_v23, %v11874_v23 }
 0x570   : > { %v5706_v18 = vmax.f32 %v5657_v57, 0.0  ;;  %v5402_v57 = vadd.f32 %v10644_v38, %v10647_v29 }
 0x571   : > { %v5816_v7 = vpop.f32.mrf.mxu1  ;;  %v5895_v2 = vunpack.c.l.bf16 %v1198_v14 }
 0x572   : > { %v5817_v20 = vadd.f32 %v10757_v31, %v5816_v7  ;;  %v5491_v43 = vadd.f32 %v5490_v36, %v5402_v57 }
 0x574   : > { %v10781_v46 = vadd.f32 %v5892_v10, %v5817_v20  ;;  %v5953_v10 = vmax.f32 %v10760_v26, 0.0  ;;  %v11875_v20 = vld [vmem:[#allocation111_spill] sm:$0xff]  ;;  %v5582_v11 = vpop.f32.mrf.mxu3 }
 0x575   : > { %v5658_v42 = vpop.f32.mrf.mxu0  ;;  %v1199_v0 = vpack.c.bf16 %v11875_v20, %v11875_v20 }
 0x576   : > { %v5659_v32 = vadd.f32 %v5658_v42, %v5570_v9  ;;  %v5489_v9 = vadd.f32 %v5488_v30, %v10642_v17  ;;  %v10808_v42 = vpack.c.bf16 %v5954_v8, %v5953_v10  ;;  %v5956_v13 = vmax.f32 %v10781_v46, 0.0 }
 0x577   : > { %v5896_v28 = vunpack.c.l.bf16 %v1199_v0  ;;  %v5412_v8 = vadd.f32 %v10684_v3, %v10687_v53 }
 0x578   : > { %v5707_v35 = vmax.f32 %v5659_v32, 0.0 }
 0x579   : > { %v5819_v44 = vpop.f32.mrf.mxu1 }
 0x57a   : > { %v5728_v33 = vpack.c.bf16 %v5707_v35, %v5706_v18  ;;  %v5820_v54 = vadd.f32 %v10757_v31, %v5819_v44  ;;  %v5578_v18 = vadd.f32 %v5577_v63, %v5489_v9  ;;  %v5580_v44 = vadd.f32 %v5579_v59, %v5491_v43 }
 0x57c   : > { %v10786_v60 = vadd.f32 %v5893_v56, %v5820_v54  ;;  %5858 = vmatmul.bf16.gmra.mxu1 %v5728_v33  ;;  %v5495_v33 = vpop.f32.mrf.mxu2  ;;  %v5584_v63 = vpop.f32.mrf.mxu3 }
 0x57d   : > { %v5661_v41 = vpop.f32.mrf.mxu0 }
 0x57e   : > { %v5662_v25 = vadd.f32 %v5661_v41, %v5573_v62  ;;  %v11876_v41 = vld [vmem:[#allocation143_spill] sm:$0xff]  ;;  %v5494_v62 = vadd.f32 %v5493_v37, %v10656_v50 }
 0x57f   : > { %v1200_v17 = vpack.c.bf16 %v11876_v41, %v11876_v41 }
 0x580   : > { %v5708_v52 = vmax.f32 %v5662_v25, 0.0  ;;  %v5583_v14 = vadd.f32 %v5582_v11, %v5494_v62 }
 0x581   : > { %v5821_v6 = vpop.f32.mrf.mxu1  ;;  %v5897_v47 = vunpack.c.l.bf16 %v1200_v17 }
 0x582   : > { %v5822_v4 = vadd.f32 %v10757_v31, %v5821_v6  ;;  %v5955_v6 = vmax.f32 %v10773_v24, 0.0 }
 0x584   : > { %v10794_v21 = vadd.f32 %v5894_v58, %v5822_v4  ;;  %v5407_v4 = vadd.f32 %v10661_v48, %v10664_v5  ;;  %v10823_v25 = vpack.c.bf16 %v5956_v13, %v5955_v6  ;;  %v5587_v59 = vpop.f32.mrf.mxu3  ;;  %v5957_v5 = vmax.f32 %v10786_v60, 0.0  ;;  %v11877_v6 = vld [vmem:[#allocation189_spill] sm:$0xff] }
 0x585   : > { %v5663_v39 = vpop.f32.mrf.mxu0 }
 0x586   : > { %v5664_v19 = vadd.f32 %v5663_v39, %v5575_v27  ;;  %v5498_v27 = vpop.f32.mrf.mxu2  ;;  %v5496_v39 = vadd.f32 %v5495_v33, %v5407_v4  ;;  %v5958_v48 = vmax.f32 %v10794_v21, 0.0 }
 0x587   : > { %v5499_v37 = vadd.f32 %v5498_v27, %v10676_v15  ;;  %v11880_v27 = vld [vmem:[#allocation172_spill] sm:$0xff] }
 0x588   : > { %v5709_v16 = vmax.f32 %v5664_v19, 0.0  ;;  %v5585_v19 = vadd.f32 %v5584_v63, %v5496_v39  ;;  %v1204_v39 = vpack.c.bf16 %v11880_v27, %v11880_v27 }
 0x589   : > { %v5824_v45 = vpop.f32.mrf.mxu1  ;;  %v5588_v9 = vadd.f32 %v5587_v59, %v5499_v37 }
 0x58a   : > { %v5729_v22 = vpack.c.bf16 %v5709_v16, %v5708_v52  ;;  %v5825_v55 = vadd.f32 %v10757_v31, %v5824_v45 }
 0x58c   : > { %v10800_v7 = vadd.f32 %v5895_v2, %v5825_v55  ;;  %5863 = vmatmul.bf16.gmra.mxu1 %v5729_v22  ;;  %v5589_v10 = vpop.f32.mrf.mxu3 }
 0x58d   : > { %v5666_v34 = vpop.f32.mrf.mxu0 }
 0x58e   : > { %v5667_v26 = vadd.f32 %v5666_v34, %v5578_v18  ;;  %v5500_v2 = vpop.f32.mrf.mxu2  ;;  %v10834_v34 = vpack.c.bf16 %v5958_v48, %v5957_v5  ;;  %v5959_v53 = vmax.f32 %v10800_v7, 0.0  ;;  %v11882_v48 = vld [vmem:[#allocation159_spill] sm:$0xff] }
 0x58f   : > { %v5501_v20 = vadd.f32 %v5500_v2, %v5412_v8  ;;  %v1202_v5 = vpack.c.bf16 %v11882_v48, %v11882_v48 }
 0x590   : > { %v5710_v38 = vmax.f32 %v5667_v26, 0.0 }
 0x591   : > { %v5826_v32 = vpop.f32.mrf.mxu1  ;;  %v5590_v43 = vadd.f32 %v5589_v10, %v5501_v20  ;;  %v11883_v20 = vld [vmem:[#allocation151_spill] sm:$0xff] }
 0x592   : > { %v5827_v35 = vadd.f32 %v10757_v31, %v5826_v32 }
 0x594   : > { %v10811_v56 = vadd.f32 %v5896_v28, %v5827_v35  ;;  %v5592_v60 = vpop.f32.mrf.mxu3 }
 0x595   : > { %v5668_v54 = vpop.f32.mrf.mxu0 }
 0x596   : > { %v5669_v30 = vadd.f32 %v5668_v54, %v5580_v44  ;;  %v5503_v57 = vpop.f32.mrf.mxu2  ;;  %v5960_v15 = vmax.f32 %v10811_v56, 0.0  ;;  %v5417_v54 = vadd.f32 %v10750_v61, %v10702_v1  ;;  %v11879_v61 = vld [vmem:[#allocation194_spill] sm:$0xff] }
 0x597   : > { %v5504_v33 = vadd.f32 %v5503_v57, %v10699_v12  ;;  %v1206_v12 = vpack.c.bf16 %v11877_v6, %v11877_v6  ;;  %v1207_v62 = vpack.c.bf16 %v11879_v61, %v11879_v61  ;;  %v11886_v61 = vld [vmem:[#allocation229_spill] sm:$0xff] }
 0x598   : > { %v5711_v29 = vmax.f32 %v5669_v30, 0.0  ;;  %v10841_v41 = vpack.c.bf16 %v5960_v15, %v5959_v53 }
 0x599   : > { %v5829_v51 = vpop.f32.mrf.mxu1 }
 0x59a   : > { %v5730_v40 = vpack.c.bf16 %v5711_v29, %v5710_v38  ;;  %v5830_v49 = vadd.f32 %v10757_v31, %v5829_v51  ;;  %v5593_v38 = vadd.f32 %v5592_v60, %v5504_v33  ;;  %v5899_v60 = vunpack.c.l.bf16 %v1202_v5  ;;  %v11889_v5 = vld [vmem:[#allocation221_spill] sm:$0xff] }
 0x59c   : > { %v10817_v36 = vadd.f32 %v5897_v47, %v5830_v49  ;;  %5868 = vmatmul.bf16.gmra.mxu1 %v5730_v40  ;;  %v5594_v29 = vpop.f32.mrf.mxu3 }
 0x59d   : > { %v5671_v58 = vpop.f32.mrf.mxu0 }
 0x59e   : > { %v5672_v46 = vadd.f32 %v5671_v58, %v5583_v14  ;;  %v5505_v3 = vpop.f32.mrf.mxu2  ;;  %v11878_v58 = vld [vmem:[#allocation184_spill] sm:$0xff]  ;;  %v5903_v14 = vunpack.c.l.bf16 %v1206_v12 }
 0x59f   : > { %v5506_v17 = vadd.f32 %v5505_v3, %v5417_v54  ;;  %v1205_v1 = vpack.c.bf16 %v11878_v58, %v11878_v58 }
 0x5a0   : > { %v5712_v45 = vmax.f32 %v5672_v46, 0.0  ;;  %v11881_v46 = vld [vmem:[#allocation164_spill] sm:$0xff] }
 0x5a1   : > { %v10825_v23 = vpop.f32.mrf.mxu1  ;;  %v5595_v51 = vadd.f32 %v5594_v29, %v5506_v17  ;;  %v1203_v59 = vpack.c.bf16 %v11881_v46, %v11881_v46 }
 0x5a3   : > { %v5900_v57 = vunpack.c.l.bf16 %v1203_v59  ;;  %v11888_v59 = vld [vmem:[#allocation28_spill] sm:$0xff] }
 0x5a5   : > { %v5673_v52 = vpop.f32.mrf.mxu0 }
 0x5a6   : > { %v5674_v16 = vadd.f32 %v5673_v52, %v5585_v19  ;;  %v5902_v52 = vunpack.c.l.bf16 %v1205_v1 }
 0x5a8   : > { %v5713_v24 = vmax.f32 %v5674_v16, 0.0 }
 0x5a9   : > { %v10827_v22 = vpop.f32.mrf.mxu1 }
 0x5aa   : > { %v5731_v50 = vpack.c.bf16 %v5713_v24, %v5712_v45  ;;  %v5904_v45 = vunpack.c.l.bf16 %v1207_v62 }
 0x5ac   : > { %5873 = vmatmul.bf16.gmra.mxu1 %v5731_v50 }
 0x5ad   : > { %v5676_v55 = vpop.f32.mrf.mxu0 }
 0x5ae   : > { %v5677_v11 = vadd.f32 %v5676_v55, %v5588_v9  ;;  %v5901_v55 = vunpack.c.l.bf16 %v1204_v39  ;;  %v1201_v9 = vpack.c.bf16 %v11883_v20, %v11883_v20  ;;  %v11890_v20 = vld [vmem:[#allocation14_spill] sm:$0xff] }
 0x5b0   : > { %v5714_v28 = vmax.f32 %v5677_v11, 0.0  ;;  %v5898_v3 = vunpack.c.l.bf16 %v1201_v9  ;;  %v1216_v9 = vpack.c.bf16 %v11890_v20, %v11890_v20 }
 0x5b1   : > { %v5836_v0 = vpop.f32.mrf.mxu1 }
 0x5b2   : > { %v5837_v37 = vadd.f32 %v10757_v31, %v5836_v0 }
 0x5b4   : > { %v5932_v0 = vadd.f32 %v5900_v57, %v5837_v37 }
 0x5b5   : > { %v5678_v32 = vpop.f32.mrf.mxu0 }
 0x5b6   : > { %v5679_v21 = vadd.f32 %v5678_v32, %v5590_v43  ;;  %v11884_v43 = vld [vmem:[#allocation200_spill] sm:$0xff]  ;;  %v5835_v32 = vadd.f32 %v10757_v31, %v10827_v22  ;;  %v5964_v22 = vmax.f32 %v5932_v0, 0.0 }
 0x5b7   : > { %v1208_v11 = vpack.c.bf16 %v11884_v43, %v11884_v43 }
 0x5b8   : > { %v5715_v18 = vmax.f32 %v5679_v21, 0.0  ;;  %v5931_v33 = vadd.f32 %v5899_v60, %v5835_v32 }
 0x5b9   : > { %v5839_v35 = vpop.f32.mrf.mxu1 }
 0x5ba   : > { %v5732_v44 = vpack.c.bf16 %v5715_v18, %v5714_v28  ;;  %v5840_v24 = vadd.f32 %v10757_v31, %v5839_v35  ;;  %v5832_v35 = vadd.f32 %v10757_v31, %v10825_v23 }
 0x5bc   : > { %5878 = vmatmul.bf16.gmra.mxu1 %v5732_v44  ;;  %v5933_v21 = vadd.f32 %v5901_v55, %v5840_v24  ;;  %v1211_v55 = vpack.c.bf16 %v11889_v5, %v11889_v5  ;;  %v11899_v5 = vld [vmem:[#allocation93_spill] sm:$0xff] }
 0x5bd   : > { %v5681_v26 = vpop.f32.mrf.mxu0 }
 0x5be   : > { %v5682_v47 = vadd.f32 %v5681_v26, %v5593_v38  ;;  %v5905_v26 = vunpack.c.l.bf16 %v1208_v11  ;;  %v5965_v54 = vmax.f32 %v5933_v21, 0.0  ;;  %v5913_v11 = vunpack.c.l.bf16 %v1216_v9 }
 0x5c0   : > { %v5716_v49 = vmax.f32 %v5682_v47, 0.0 }
 0x5c1   : > { %v5841_v30 = vpop.f32.mrf.mxu1 }
 0x5c2   : > { %v5842_v19 = vadd.f32 %v10757_v31, %v5841_v30  ;;  %v5930_v30 = vadd.f32 %v5898_v3, %v5832_v35  ;;  %v11891_v35 = vld [vmem:[#allocation53_spill] sm:$0xff] }
 0x5c3   : > { %v1213_v0 = vpack.c.bf16 %v11891_v35, %v11891_v35 }
 0x5c4   : > { %v5934_v8 = vadd.f32 %v5902_v52, %v5842_v19  ;;  %v5962_v47 = vmax.f32 %v5930_v30, 0.0  ;;  %v11892_v30 = vld [vmem:[#allocation56_spill] sm:$0xff] }
 0x5c5   : > { %v5683_v40 = vpop.f32.mrf.mxu0  ;;  %v5910_v3 = vunpack.c.l.bf16 %v1213_v0 }
 0x5c6   : > { %v5684_v56 = vadd.f32 %v5683_v40, %v5595_v51  ;;  %v5966_v44 = vmax.f32 %v5934_v8, 0.0  ;;  %v5963_v51 = vmax.f32 %v5931_v33, 0.0 }
 0x5c8   : > { %v5717_v63 = vmax.f32 %v5684_v56, 0.0  ;;  %v5991_v29 = vpack.c.bf16 %v5966_v44, %v5965_v54  ;;  %v5990_v40 = vpack.c.bf16 %v5964_v22, %v5963_v51  ;;  %v5961_v56 = vmax.f32 %v10817_v36, 0.0 }
 0x5c9   : > { %v5844_v13 = vpop.f32.mrf.mxu1  ;;  %v1212_v36 = vpack.c.bf16 %v11886_v61, %v11886_v61  ;;  %v1215_v22 = vpack.c.bf16 %v11892_v30, %v11892_v30 }
 0x5ca   : > { %v5733_v7 = vpack.c.bf16 %v5717_v63, %v5716_v49  ;;  %v5845_v4 = vadd.f32 %v10757_v31, %v5844_v13  ;;  %v5989_v49 = vpack.c.bf16 %v5962_v47, %v5961_v56  ;;  %v11885_v63 = vld [vmem:[#allocation218_spill] sm:$0xff] }
 0x5cb   : > { %v1210_v13 = vpack.c.bf16 %v11885_v63, %v11885_v63  ;;  %v5912_v51 = vunpack.c.l.bf16 %v1215_v22 }
 0x5cc   : > { %5883 = vmatmul.bf16.gmra.mxu1 %v5733_v7  ;;  %v5935_v2 = vadd.f32 %v5903_v14, %v5845_v4  ;;  %v5909_v4 = vunpack.c.l.bf16 %v1212_v36  ;;  %v11887_v14 = vld [vmem:[#allocation209_spill] sm:$0xff] }
 0x5cd   : > { %v5907_v6 = vunpack.c.l.bf16 %v1210_v13  ;;  %v1209_v19 = vpack.c.bf16 %v11887_v14, %v11887_v14  ;;  %v11897_v14 = vld [vmem:[#allocation98_spill] sm:$0xff] }
 0x5ce   : > { %v5967_v28 = vmax.f32 %v5935_v2, 0.0 }
 0x5d1   : > { %v5846_v16 = vpop.f32.mrf.mxu1 }
 0x5d2   : > { %v5847_v50 = vadd.f32 %v10757_v31, %v5846_v16 }
 0x5d4   : > { %v5936_v10 = vadd.f32 %v5904_v45, %v5847_v50 }
 0x5d6   : > { %v5968_v18 = vmax.f32 %v5936_v10, 0.0  ;;  %v5908_v10 = vunpack.c.l.bf16 %v1211_v55  ;;  %v1217_v55 = vpack.c.bf16 %v11899_v5, %v11899_v5 }
 0x5d8   : > { %v5992_v15 = vpack.c.bf16 %v5968_v18, %v5967_v28 }
 0x5d9   : > { %v5849_v53 = vpop.f32.mrf.mxu1 }
 0x5da   : > { %v5850_v17 = vadd.f32 %v10757_v31, %v5849_v53  ;;  %6013 = vmatpush.bf16.msra.mxu2 %v5992_v15 }
 0x5dc   : > { %v5937_v38 = vadd.f32 %v5905_v26, %v5850_v17 }
 0x5de   : > { %6014 = vmatpush.bf16.msra.mxu2 %v5991_v29  ;;  %v5969_v50 = vmax.f32 %v5937_v38, 0.0 }
 0x5e1   : > { %v5851_v23 = vpop.f32.mrf.mxu1 }
 0x5e2   : > { %6015 = vmatpush.bf16.msra.mxu2 %v5990_v40  ;;  %v5852_v46 = vadd.f32 %v10757_v31, %v5851_v23 }
 0x5e6   : > { %6016 = vmatpush.bf16.msra.mxu2 %v5989_v49 }
 0x5e9   : > { %v5854_v7 = vpop.f32.mrf.mxu1 }
 0x5ea   : > { %v5855_v12 = vadd.f32 %v10757_v31, %v5854_v7  ;;  %6017 = vmatpush.bf16.msra.mxu2 %v10841_v41  ;;  %v11893_v7 = vld [vmem:[#allocation8_spill] sm:$0xff] }
 0x5ec   : > { %v5939_v58 = vadd.f32 %v5907_v6, %v5855_v12  ;;  %v1222_v6 = vpack.c.bf16 %v11893_v7, %v11893_v7  ;;  %v11894_v12 = vld [vmem:[#allocation187_spill] sm:$0xff] }
 0x5ee   : > { %6018 = vmatpush.bf16.msra.mxu2 %v10834_v34  ;;  %v5906_v34 = vunpack.c.l.bf16 %v1209_v19  ;;  %v5971_v18 = vmax.f32 %v5939_v58, 0.0  ;;  %v1221_v58 = vpack.c.bf16 %v11894_v12, %v11894_v12  ;;  %v1219_v19 = vpack.c.bf16 %v11897_v14, %v11897_v14 }
 0x5f0   : > { %v5938_v52 = vadd.f32 %v5906_v34, %v5852_v46 }
 0x5f1   : > { %v5856_v1 = vpop.f32.mrf.mxu1 }
 0x5f2   : > { %6019 = vmatpush.bf16.msra.mxu2 %v10823_v25  ;;  %v1214_v25 = vpack.c.bf16 %v11888_v59, %v11888_v59  ;;  %v5970_v24 = vmax.f32 %v5938_v52, 0.0  ;;  %v5857_v8 = vadd.f32 %v10757_v31, %v5856_v1  ;;  %v11895_v1 = vld [vmem:[#allocation202_spill] sm:$0xff] }
 0x5f3   : > { %v1223_v61 = vpack.c.bf16 %v11895_v1, %v11895_v1 }
 0x5f4   : > { %v5911_v45 = vunpack.c.l.bf16 %v1214_v25  ;;  %v10886_v48 = vpack.c.bf16 %v5970_v24, %v5969_v50  ;;  %v5940_v57 = vadd.f32 %v5908_v10, %v5857_v8 }
 0x5f5   : > { %v5920_v34 = vunpack.c.l.bf16 %v1223_v61 }
 0x5f6   : > { %6020 = vmatpush.bf16.msra.mxu2 %v10808_v42  ;;  %v5972_v21 = vmax.f32 %v5940_v57, 0.0  ;;  %v6930_v57 = vld [vmem:[%s10979_s7] sm:$0xf] }
 0x5f8   : > { %v10896_v60 = vpack.c.bf16 %v5972_v21, %v5971_v18 }
 0x5f9   : > { %v5859_v62 = vpop.f32.mrf.mxu1 }
 0x5fa   : > { %v5860_v27 = vadd.f32 %v10757_v31, %v5859_v62  ;;  %v11896_v62 = vld [vmem:[#allocation17_spill] sm:$0xff] }
 0x5fc   : > { %v5941_v39 = vadd.f32 %v5909_v4, %v5860_v27  ;;  %v1220_v4 = vpack.c.bf16 %v11896_v62, %v11896_v62  ;;  %v5919_v27 = vunpack.c.l.bf16 %v1222_v6 }
 0x5fe   : > { %v5973_v54 = vmax.f32 %v5941_v39, 0.0 }
 0x601   : > { %v5861_v41 = vpop.f32.mrf.mxu1 }
 0x602   : > { %v5862_v15 = vadd.f32 %v10757_v31, %v5861_v41  ;;  %v5918_v41 = vunpack.c.l.bf16 %v1221_v58 }
 0x604   : > { %v5942_v53 = vadd.f32 %v5910_v3, %v5862_v15  ;;  %v5914_v15 = vunpack.c.l.bf16 %v1217_v55 }
 0x606   : > { %v5974_v33 = vmax.f32 %v5942_v53, 0.0 }
 0x608   : > { %v5995_v17 = vpack.c.bf16 %v5974_v33, %v5973_v54 }
 0x609   : > { %v5864_v16 = vpop.f32.mrf.mxu1 }
 0x60a   : > { %v5865_v42 = vadd.f32 %v10757_v31, %v5864_v16  ;;  %v11898_v16 = vld [vmem:[#allocation70_spill] sm:$0xff] }
 0x60c   : > { %v5943_v2 = vadd.f32 %v5911_v45, %v5865_v42  ;;  %v1218_v45 = vpack.c.bf16 %v11898_v16, %v11898_v16  ;;  %v5917_v42 = vunpack.c.l.bf16 %v1220_v4 }
 0x60e   : > { %v5975_v56 = vmax.f32 %v5943_v2, 0.0 }
 0x611   : > { %v5866_v37 = vpop.f32.mrf.mxu1 }
 0x612   : > { %v5867_v29 = vadd.f32 %v10757_v31, %v5866_v37  ;;  %v5916_v37 = vunpack.c.l.bf16 %v1219_v19 }
 0x614   : > { %v5944_v47 = vadd.f32 %v5912_v51, %v5867_v29  ;;  %v6932_v51 = vld [vmem:[%s10979_s7 + $0x8] sm:$0xf0] }
 0x616   : > { %v5976_v23 = vmax.f32 %v5944_v47, 0.0 }
 0x618   : > { %v5996_v49 = vpack.c.bf16 %v5976_v23, %v5975_v56 }
 0x619   : > { %v5869_v43 = vpop.f32.mrf.mxu1 }
 0x61a   : > { %v5870_v32 = vadd.f32 %v10757_v31, %v5869_v43  ;;  %v7087_v43 = vld [vmem:[%s10979_s7 + $0x4] sm:$0xf0] }
 0x61c   : > { %v10894_v28 = vadd.f32 %v5913_v11, %v5870_v32  ;;  %v5915_v11 = vunpack.c.l.bf16 %v1218_v45  ;;  %v6931_v32 = vor.u32 %v7087_v43, %v6930_v57 }
 0x61e   : > { %6021 = vmatmul.bf16.vlgmr.msra.gmra.mxu2 %v6931_v32  ;;  %v5977_v29 = vmax.f32 %v10894_v28, 0.0 }
 0x621   : > { %v5871_v44 = vpop.f32.mrf.mxu1 }
 0x622   : > { %v5872_v21 = vadd.f32 %v10757_v31, %v5871_v44  ;;  %v7086_v44 = vld [vmem:[%s10979_s7 + $0x4] sm:$0xf] }
 0x623   : > { %v6935_v47 = vor.u32 %v7086_v44, %v6932_v51 }
 0x629   : > { %v5874_v26 = vpop.f32.mrf.mxu1 }
 0x62a   : > { %v5875_v8 = vadd.f32 %v10757_v31, %v5874_v26  ;;  %v5946_v26 = vadd.f32 %v5914_v15, %v5872_v21 }
 0x62c   : > { %v5947_v3 = vadd.f32 %v5915_v11, %v5875_v8  ;;  %v5978_v22 = vmax.f32 %v5946_v26, 0.0 }
 0x62e   : > { %v5979_v30 = vmax.f32 %v5947_v3, 0.0 }
 0x631   : > { %v5876_v38 = vpop.f32.mrf.mxu1 }
 0x632   : > { %v5877_v24 = vadd.f32 %v10757_v31, %v5876_v38 }
 0x634   : > { %v5948_v18 = vadd.f32 %v5916_v37, %v5877_v24 }
 0x636   : > { %v5980_v33 = vmax.f32 %v5948_v18, 0.0 }
 0x638   : > { %v5998_v38 = vpack.c.bf16 %v5980_v33, %v5979_v30 }
 0x639   : > { %v5879_v40 = vpop.f32.mrf.mxu1 }
 0x63a   : > { %v5880_v59 = vadd.f32 %v10757_v31, %v5879_v40 }
 0x63c   : > { %v5949_v10 = vadd.f32 %v5917_v42, %v5880_v59 }
 0x63e   : > { %v5981_v53 = vmax.f32 %v5949_v10, 0.0 }
 0x641   : > { %v5881_v63 = vpop.f32.mrf.mxu1 }
 0x642   : > { %v5882_v39 = vadd.f32 %v10757_v31, %v5881_v63 }
 0x644   : > { %v5950_v2 = vadd.f32 %v5918_v41, %v5882_v39 }
 0x646   : > { %v5982_v35 = vmax.f32 %v5950_v2, 0.0 }
 0x648   : > { %v5999_v54 = vpack.c.bf16 %v5982_v35, %v5981_v53 }
 0x649   : > { %v5884_v13 = vpop.f32.mrf.mxu1 }
 0x64a   : > { %v5885_v36 = vadd.f32 %v10757_v31, %v5884_v13 }
 0x64c   : > { %v5951_v25 = vadd.f32 %v5919_v27, %v5885_v36 }
 0x64e   : > { %v5983_v20 = vmax.f32 %v5951_v25, 0.0 }
 0x651   : > { %v5886_v46 = vpop.f32.mrf.mxu1 }
 0x652   : > { %v5887_v52 = vadd.f32 %v10757_v31, %v5886_v46  ;;  %v5997_v31 = vpack.c.bf16 %v5978_v22, %v5977_v29 }
 0x654   : > { %v5952_v50 = vadd.f32 %v5920_v34, %v5887_v52 }
 0x656   : > { %v5984_v9 = vmax.f32 %v5952_v50, 0.0 }
 0x658   : > { %v6000_v0 = vpack.c.bf16 %v5984_v9, %v5983_v20 }
 0x65a   : > { %6027 = vmatpush.bf16.msra.mxu3 %v6000_v0 }
 0x65e   : > { %6028 = vmatpush.bf16.msra.mxu3 %v5999_v54 }
 0x662   : > { %6029 = vmatpush.bf16.msra.mxu3 %v5998_v38 }
 0x666   : > { %6030 = vmatpush.bf16.msra.mxu3 %v5997_v31 }
 0x66a   : > { %6031 = vmatpush.bf16.msra.mxu3 %v5996_v49 }
 0x66e   : > { %6032 = vmatpush.bf16.msra.mxu3 %v5995_v17 }
 0x672   : > { %6033 = vmatpush.bf16.msra.mxu3 %v10896_v60 }
 0x676   : > { %6034 = vmatpush.bf16.msra.mxu3 %v10886_v48 }
 0x679   : > { %6035 = vmatmul.bf16.vlgmr.msra.gmra.mxu3 %v6935_v47 }
 0x6a1   : > { %v6022_v28 = vpop.f32.mrf.mxu2 }
 0x6a9   : > { %v6024_v60 = vpop.f32.mrf.mxu2 }
 0x6fc   : > { %v6036_v40 = vpop.f32.mrf.mxu3 }
 0x6fd   : > { %v6037_v17 = vadd.f32 %v6036_v40, %v6022_v28 }
 0x6ff   : > { %6041 = vst [vmem:[%s298_s20] sm:$0xff] %v6037_v17 }
 0x704   : > { %v6038_v23 = vpop.f32.mrf.mxu3 }
 0x705   : > { %v6039_v48 = vadd.f32 %v6038_v23, %v6024_v60 }
 0x707   : > { %6042 = vst [vmem:[%s298_s20 + $0x8] sm:$0xff] %v6039_v48 }
 0x708   : > { %7183 = shalt.err (!%p7180_p3)
}
 0x709   : > { %s7221_s18 = smov 128   ;;  %s7222_s20 = smov 8  }
 0x70a   : > { %7105 = dma.vmem_to_hbm [thread:$0]  (%p7306_p5), %s6057_s25, 256, %s6059_s22, %s6044_s26, %s7221_s18, %s7221_s18, %s7222_s20  }
 0x70b PF: > { %p7111_p4 = scmp.ge.s32.totalorder %s7218_s30, 2  ;;  %s6073_s24 = sand.u32 1, %s7206_s27  }
 0x70c   : > { %s6074_s21 = scalar_lea.sflag [#allocation3], %s6073_s24 }
 0x70d   : > { %p7108_p7 = pnand %p7111_p4, %p7310_p6 }
 0x70f   : > { %p7109_p8 = pneg %p7108_p7 }
 0x711   : > { %7201 = dma.done.wait (%p7109_p8), %s6074_s21, 256  }
 0x712   : > { %7203 = vsyncadd (%p7109_p8), %s6074_s21, 4294967040  ;;  %p18_p9 = scmp.ge.s32.totalorder %s7293_s11, 4   ;;  %s11900_s27 = smov %s7210_s28 }
 0x713   : > { %s11901_s28 = smov %s7214_s29  ;;  %s11902_s29 = smov %s7304_s14 }
 0x714   : > { %s11903_s30 = smov %s7293_s11  ;;  %20 = sbr.rel (!%p18_p9) target bundleno = 3 (0x3), region = 94 }
 0x719   :  { %6080 = vsyncpa [#allocation3], 1 }
 0x71a   :  { %6082 = vsyncpa [#allocation3 + $0x1], 1 }

</bundles_post_ra>
